<compile_context>
chip_gen: v7x
topology: tpu7x:2x2x1
jax: 0.10.0
libtpu: 0.0.40
codegen_flags: <defaults>
</compile_context>

<pallas_src>
import functools

import jax
import jax.numpy as jnp
from jax.experimental import pallas as pl
from jax.experimental.pallas import tpu as pltpu


def _fused_mlp_kernel(x_ref, w1_ref, b1_ref, w2_ref, b2_ref, w3_ref, b3_ref,
                      o_ref, acc_ref):
    """K-tiled layer-1 matmul; layers 2+3 fused into the final-step epilogue."""
    k = pl.program_id(0)

    @pl.when(k == 0)
    def _():
        acc_ref[...] = jnp.zeros_like(acc_ref)

    # Layer-1 partial matmul on this K tile (bf16 operands, f32 accumulation).
    acc_ref[...] += jnp.dot(
        x_ref[...], w1_ref[...], preferred_element_type=jnp.float32
    )

    @pl.when(k == pl.num_programs(0) - 1)
    def _():
        # Layer 1 epilogue: bias + ReLU.  Dropout(0.5) -> identity (eval mode).
        h1 = jnp.maximum(acc_ref[...] + b1_ref[...], 0.0)            # (B, 512)
        # Layer 2: Linear(512, 128) + ReLU (+ identity dropout).
        h2 = jnp.dot(h1.astype(jnp.bfloat16), w2_ref[...],
                     preferred_element_type=jnp.float32) + b2_ref[...]
        h2 = jnp.maximum(h2, 0.0)                                     # (B, 128)
        # Layer 3: Linear(128, 2).
        out = jnp.dot(h2.astype(jnp.bfloat16), w3_ref[...],
                      preferred_element_type=jnp.float32) + b3_ref[...]
        o_ref[...] = out.astype(o_ref.dtype)
        # TODO(synk): training-mode dropout (Bernoulli mask, 2x scale) not
        # emitted; eval-mode identity matches the inference forward pass.


def mlp_classifier_pallas(x, params, *, tile_k=6272):
    """Full fused forward: relu(x@W1+b1) -> relu(.@W2+b2) -> .@W3+b3.

    x:  (B, 25088) float32
    Wi: (in, out) bfloat16 (transposed vs. PyTorch's (out, in))
    bi: (1, out)  float32
    """
    (w1, b1), (w2, b2), (w3, b3) = params
    B, K = x.shape
    K1, H1 = w1.shape
    H1b, H2 = w2.shape
    H2b, NO = w3.shape
    assert K == K1 and H1 == H1b and H2 == H2b
    assert b1.shape == (1, H1) and b2.shape == (1, H2) and b3.shape == (1, NO)
    assert K % tile_k == 0, "K must be divisible by tile_k"
    grid = (K // tile_k,)

    xb = x.astype(jnp.bfloat16)  # halve x HBM bytes; MXU-native dtype

    flops = 2 * B * (K * H1 + H1 * H2 + H2 * NO)
    bytes_accessed = (
        xb.size * 2 + w1.size * 2 + w2.size * 2 + w3.size * 2
        + b1.size * 4 + b2.size * 4 + b3.size * 4 + B * NO * 4
    )

    return pl.pallas_call(
        _fused_mlp_kernel,
        out_shape=jax.ShapeDtypeStruct((B, NO), jnp.float32),
        grid_spec=pltpu.PrefetchScalarGridSpec(
            num_scalar_prefetch=0,
            grid=grid,
            in_specs=[
                pl.BlockSpec((B, tile_k), lambda k: (0, k)),    # x tile
                pl.BlockSpec((tile_k, H1), lambda k: (k, 0)),   # W1 tile
                pl.BlockSpec((1, H1), lambda k: (0, 0)),        # b1 (resident)
                pl.BlockSpec((H1, H2), lambda k: (0, 0)),       # W2 (resident)
                pl.BlockSpec((1, H2), lambda k: (0, 0)),        # b2 (resident)
                pl.BlockSpec((H2, NO), lambda k: (0, 0)),       # W3 (resident)
                pl.BlockSpec((1, NO), lambda k: (0, 0)),        # b3 (resident)
            ],
            out_specs=pl.BlockSpec((B, NO), lambda k: (0, 0)),
            scratch_shapes=[pltpu.VMEM((B, H1), jnp.float32)],  # layer-1 acc
        ),
        compiler_params=pltpu.CompilerParams(
            dimension_semantics=("arbitrary",),     # single axis = K reduction
            vmem_limit_bytes=32 * 1024 * 1024,
        ),
        cost_estimate=pl.CostEstimate(
            flops=flops, transcendentals=0, bytes_accessed=bytes_accessed
        ),
    )(xb, w1, b1, w2, b2, w3, b3)


def init_params(key):
    """Deterministic synthetic parameters matching the module's shapes.

    Weights are kept as (in, out) bfloat16 so the kernel streams half the
    bytes and computes x @ W directly; biases stay float32 (1, out).
    """
    k1, k2, k3 = jax.random.split(key, 3)
    dims = [(25088, 512), (512, 128), (128, 2)]
    params = []
    for (din, dout), k in zip(dims, [k1, k2, k3]):
        kw, kb = jax.random.split(k)
        scale = 1.0 / jnp.sqrt(jnp.float32(din))
        w = jax.random.uniform(kw, (din, dout), jnp.float32, -scale, scale)
        b = jax.random.uniform(kb, (1, dout), jnp.float32, -scale, scale)
        params.append((w.astype(jnp.bfloat16), b))
    return params


@jax.jit
def mlp_classifier_forward(x, params):
    return mlp_classifier_pallas(x, params)


def _reference_forward(x, params):
    """Plain-JAX reference mirroring the kernel's mixed-precision path."""
    (w1, b1), (w2, b2), (w3, b3) = params
    h = jnp.dot(x.astype(jnp.bfloat16), w1,
                preferred_element_type=jnp.float32) + b1
    h = jnp.maximum(h, 0.0)
    h = jnp.dot(h.astype(jnp.bfloat16), w2,
                preferred_element_type=jnp.float32) + b2
    h = jnp.maximum(h, 0.0)
    return jnp.dot(h.astype(jnp.bfloat16), w3,
                   preferred_element_type=jnp.float32) + b3


if __name__ == "__main__":
    key = jax.random.PRNGKey(0)
    kx, kp = jax.random.split(key)

    batch = 2
    x = jax.random.normal(kx, (batch, 25088), dtype=jnp.float32)
    params = init_params(kp)

    out = mlp_classifier_forward(x, params)
    jax.block_until_ready(out)

    ref = _reference_forward(x, params)
    assert out.shape == (batch, 2)
    assert jnp.allclose(out, ref, atol=1e-2, rtol=1e-2), (
        f"mismatch: max abs err {jnp.max(jnp.abs(out - ref))}"
    )

    print("KERNEL_OK")
</pallas_src>

<mosaic_0001>
module attributes {stable_mosaic.version = 11 : i64} {
  func.func @_fused_mlp_kernel(%arg0: i32, %arg1: memref<2x6272xbf16, #tpu.memory_space<vmem>>, %arg2: memref<6272x512xbf16, #tpu.memory_space<vmem>>, %arg3: memref<1x512xf32, #tpu.memory_space<vmem>>, %arg4: memref<512x128xbf16, #tpu.memory_space<vmem>>, %arg5: memref<1x128xf32, #tpu.memory_space<vmem>>, %arg6: memref<128x2xbf16, #tpu.memory_space<vmem>>, %arg7: memref<1x2xf32, #tpu.memory_space<vmem>>, %arg8: memref<2x2xf32, #tpu.memory_space<vmem>>, %arg9: memref<2x512xf32, #tpu.memory_space<vmem>>) attributes {dimension_semantics = [#tpu.dimension_semantics<arbitrary>], iteration_bounds = array<i64: 4>, scalar_prefetch = 0 : i64, scratch_operands = 1 : i64, tpu.core_type = #tpu.core_type<tc>, window_params = [{transform_indices = @transform_0, window_bounds = array<i64: 2, 6272>}, {transform_indices = @transform_1, window_bounds = array<i64: 6272, 512>}, {pipeline_mode = #tpu.pipeline_mode<synchronous>, transform_indices = @transform_2, window_bounds = array<i64: 1, 512>}, {pipeline_mode = #tpu.pipeline_mode<synchronous>, transform_indices = @transform_3, window_bounds = array<i64: 512, 128>}, {pipeline_mode = #tpu.pipeline_mode<synchronous>, transform_indices = @transform_4, window_bounds = array<i64: 1, 128>}, {pipeline_mode = #tpu.pipeline_mode<synchronous>, transform_indices = @transform_5, window_bounds = array<i64: 128, 2>}, {pipeline_mode = #tpu.pipeline_mode<synchronous>, transform_indices = @transform_6, window_bounds = array<i64: 1, 2>}, {pipeline_mode = #tpu.pipeline_mode<synchronous>, transform_indices = @transform_7, window_bounds = array<i64: 2, 2>}]} {
    %c0_i32 = arith.constant 0 : i32
    %0 = arith.cmpi eq, %arg0, %c0_i32 : i32
    %1 = arith.extui %0 : i1 to i32
    %c0_i32_0 = arith.constant 0 : i32
    %2 = arith.cmpi ne, %1, %c0_i32_0 : i32
    scf.if %2 {
      %cst_9 = arith.constant 0.000000e+00 : f32
      %12 = vector.broadcast %cst_9 : f32 to vector<2x512xf32>
      %c0_10 = arith.constant 0 : index
      %c0_11 = arith.constant 0 : index
      %13 = vector.load %arg9[%c0_10, %c0_11] : memref<2x512xf32, #tpu.memory_space<vmem>>, vector<2x512xf32>
      tpu.vector_store %arg9[%c0_10, %c0_11], %12 {strides = array<i32>} : memref<2x512xf32, #tpu.memory_space<vmem>>, vector<2x512xf32>,
    } else {
    }
    %c0 = arith.constant 0 : index
    %c0_1 = arith.constant 0 : index
    %3 = vector.load %arg9[%c0, %c0_1] : memref<2x512xf32, #tpu.memory_space<vmem>>, vector<2x512xf32>
    %c0_2 = arith.constant 0 : index
    %c0_3 = arith.constant 0 : index
    %4 = vector.load %arg1[%c0_2, %c0_3] : memref<2x6272xbf16, #tpu.memory_space<vmem>>, vector<2x6272xbf16>
    %c0_4 = arith.constant 0 : index
    %c0_5 = arith.constant 0 : index
    %5 = vector.load %arg2[%c0_4, %c0_5] : memref<6272x512xbf16, #tpu.memory_space<vmem>>, vector<6272x512xbf16>
    %cst = arith.constant dense<0.000000e+00> : vector<2x512xf32>
    %6 = tpu.matmul %4, %5, %cst {dimension_numbers = #tpu.dot_dimension_numbers<[1], [0], [0], [1], [0, 0, 1, 1], [], []>} : vector<2x6272xbf16>, vector<6272x512xbf16>, vector<2x512xf32> -> vector<2x512xf32>
    %7 = arith.addf %3, %6 : vector<2x512xf32>
    %c0_6 = arith.constant 0 : index
    %c0_7 = arith.constant 0 : index
    %8 = vector.load %arg9[%c0_6, %c0_7] : memref<2x512xf32, #tpu.memory_space<vmem>>, vector<2x512xf32>
    tpu.vector_store %arg9[%c0_6, %c0_7], %7 {strides = array<i32>} : memref<2x512xf32, #tpu.memory_space<vmem>>, vector<2x512xf32>,
    %c3_i32 = arith.constant 3 : i32
    %9 = arith.cmpi eq, %arg0, %c3_i32 : i32
    %10 = arith.extui %9 : i1 to i32
    %c0_i32_8 = arith.constant 0 : i32
    %11 = arith.cmpi ne, %10, %c0_i32_8 : i32
    scf.if %11 {
      %c0_9 = arith.constant 0 : index
      %c0_10 = arith.constant 0 : index
      %12 = vector.load %arg9[%c0_9, %c0_10] : memref<2x512xf32, #tpu.memory_space<vmem>>, vector<2x512xf32>
      %c0_11 = arith.constant 0 : index
      %c0_12 = arith.constant 0 : index
      %13 = vector.load %arg3[%c0_11, %c0_12] : memref<1x512xf32, #tpu.memory_space<vmem>>, vector<1x512xf32>
      %14 = vector.broadcast %13 : vector<1x512xf32> to vector<2x512xf32>
      %15 = arith.addf %12, %14 : vector<2x512xf32>
      %cst_13 = arith.constant 0.000000e+00 : f32
      %16 = vector.broadcast %cst_13 : f32 to vector<2x512xf32>
      %17 = arith.maximumf %15, %16 : vector<2x512xf32>
      %18 = arith.truncf %17 : vector<2x512xf32> to vector<2x512xbf16>
      %c0_14 = arith.constant 0 : index
      %c0_15 = arith.constant 0 : index
      %19 = vector.load %arg4[%c0_14, %c0_15] : memref<512x128xbf16, #tpu.memory_space<vmem>>, vector<512x128xbf16>
      %cst_16 = arith.constant dense<0.000000e+00> : vector<2x128xf32>
      %20 = tpu.matmul %18, %19, %cst_16 {dimension_numbers = #tpu.dot_dimension_numbers<[1], [0], [0], [1], [0, 0, 1, 1], [], []>} : vector<2x512xbf16>, vector<512x128xbf16>, vector<2x128xf32> -> vector<2x128xf32>
      %c0_17 = arith.constant 0 : index
      %c0_18 = arith.constant 0 : index
      %21 = vector.load %arg5[%c0_17, %c0_18] : memref<1x128xf32, #tpu.memory_space<vmem>>, vector<1x128xf32>
      %22 = vector.broadcast %21 : vector<1x128xf32> to vector<2x128xf32>
      %23 = arith.addf %20, %22 : vector<2x128xf32>
      %cst_19 = arith.constant 0.000000e+00 : f32
      %24 = vector.broadcast %cst_19 : f32 to vector<2x128xf32>
      %25 = arith.maximumf %23, %24 : vector<2x128xf32>
      %26 = arith.truncf %25 : vector<2x128xf32> to vector<2x128xbf16>
      %c0_20 = arith.constant 0 : index
      %c0_21 = arith.constant 0 : index
      %27 = vector.load %arg6[%c0_20, %c0_21] : memref<128x2xbf16, #tpu.memory_space<vmem>>, vector<128x2xbf16>
      %cst_22 = arith.constant dense<0.000000e+00> : vector<2x2xf32>
      %28 = tpu.matmul %26, %27, %cst_22 {dimension_numbers = #tpu.dot_dimension_numbers<[1], [0], [0], [1], [0, 0, 1, 1], [], []>} : vector<2x128xbf16>, vector<128x2xbf16>, vector<2x2xf32> -> vector<2x2xf32>
      %c0_23 = arith.constant 0 : index
      %c0_24 = arith.constant 0 : index
      %29 = vector.load %arg7[%c0_23, %c0_24] : memref<1x2xf32, #tpu.memory_space<vmem>>, vector<1x2xf32>
      %30 = vector.broadcast %29 : vector<1x2xf32> to vector<2x2xf32>
      %31 = arith.addf %28, %30 : vector<2x2xf32>
      %c0_25 = arith.constant 0 : index
      %c0_26 = arith.constant 0 : index
      %32 = vector.load %arg8[%c0_25, %c0_26] : memref<2x2xf32, #tpu.memory_space<vmem>>, vector<2x2xf32>
      tpu.vector_store %arg8[%c0_25, %c0_26], %31 {strides = array<i32>} : memref<2x2xf32, #tpu.memory_space<vmem>>, vector<2x2xf32>,
    } else {
    }
    return
  }
  func.func @transform_0(%arg0: i32) -> (i32, i32) {
    %c0_i32 = arith.constant 0 : i32
    %c0_i32_0 = arith.constant 0 : i32
    return %c0_i32, %arg0 : i32, i32
  }
  func.func @transform_1(%arg0: i32) -> (i32, i32) {
    %c0_i32 = arith.constant 0 : i32
    %c0_i32_0 = arith.constant 0 : i32
    return %arg0, %c0_i32 : i32, i32
  }
  func.func @transform_2(%arg0: i32) -> (i32, i32) {
    %c0_i32 = arith.constant 0 : i32
    %c0_i32_0 = arith.constant 0 : i32
    %c0_i32_1 = arith.constant 0 : i32
    return %c0_i32, %c0_i32_0 : i32, i32
  }
  func.func @transform_3(%arg0: i32) -> (i32, i32) {
    %c0_i32 = arith.constant 0 : i32
    %c0_i32_0 = arith.constant 0 : i32
    %c0_i32_1 = arith.constant 0 : i32
    return %c0_i32, %c0_i32_0 : i32, i32
  }
  func.func @transform_4(%arg0: i32) -> (i32, i32) {
    %c0_i32 = arith.constant 0 : i32
    %c0_i32_0 = arith.constant 0 : i32
    %c0_i32_1 = arith.constant 0 : i32
    return %c0_i32, %c0_i32_0 : i32, i32
  }
  func.func @transform_5(%arg0: i32) -> (i32, i32) {
    %c0_i32 = arith.constant 0 : i32
    %c0_i32_0 = arith.constant 0 : i32
    %c0_i32_1 = arith.constant 0 : i32
    return %c0_i32, %c0_i32_0 : i32, i32
  }
  func.func @transform_6(%arg0: i32) -> (i32, i32) {
    %c0_i32 = arith.constant 0 : i32
    %c0_i32_0 = arith.constant 0 : i32
    %c0_i32_1 = arith.constant 0 : i32
    return %c0_i32, %c0_i32_0 : i32, i32
  }
  func.func @transform_7(%arg0: i32) -> (i32, i32) {
    %c0_i32 = arith.constant 0 : i32
    %c0_i32_0 = arith.constant 0 : i32
    %c0_i32_1 = arith.constant 0 : i32
    return %c0_i32, %c0_i32_0 : i32, i32
  }
}

</mosaic_0001>

<bundles_post_ra>
// kernel: mlp_classifier_forward.1
= control target key start
LH: loop header
LB: loop body
LE: loop exit
PB: predicated region body
PF: predicated region fallthrough
CT: control target
= control target key end

     0   :  { %12 = vsyncpa [#allocation4], 0  ;;  %s19641_s0 = inlined_call_operand.vmem [shape: bf16[2,25088], index: 0, kind: input, shape index: {}]   ;;  %s19642_s1 = inlined_call_operand.hbm [shape: bf16[25088,512], index: 1, kind: input, shape index: {}]   ;;  %s19643_s2 = inlined_call_operand.hbm [shape: f32[1,512], index: 2, kind: input, shape index: {}]   ;;  %s19644_s3 = inlined_call_operand.hbm [shape: bf16[512,128], index: 3, kind: input, shape index: {}]   ;;  %s19645_s4 = inlined_call_operand.hbm [shape: f32[1,128], index: 4, kind: input, shape index: {}]   ;;  %s19646_s5 = inlined_call_operand.vmem [shape: bf16[128,2], index: 5, kind: input, shape index: {}]   ;;  %s19647_s6 = inlined_call_operand.hbm [shape: f32[1,2], index: 6, kind: input, shape index: {}]   ;;  %s19648_s7 = inlined_call_operand.hbm [shape: f32[2,2], index: 7, kind: output, shape index: {}]  }
   0x1   :  { %14 = vsyncpa [#allocation4 + $0x1], 0 }
   0x2   :  { %15 = vsyncpa [#allocation7], 0 }
   0x3   :  { %16 = vsyncpa [#allocation10], 0 }
   0x4   :  { %17 = vsyncpa [#allocation5], 0  ;;  %s17521_s24 = smov 0   ;;  %s17523_s25 = smov 0  }
   0x5   :  { %s17525_s26 = smov 0   ;;  %s17527_s27 = smov 0  }
   0x6 LB: > { %s17540_s28 = sadd.s32 4294967295, %s17463_s27   ;;  %p69_p0 = scmp.ne.s32.totalorder %s17455_s25, %s17451_s24  ;;  %s17463_s27 = sphi %s17527_s27, %s19667_s27   ;;  %s17459_s26 = sphi %s17525_s26, %s19666_s26   ;;  %s17455_s25 = sphi %s17523_s25, %s19665_s25   ;;  %s17451_s24 = sphi %s17521_s24, %s19664_s24  }
   0x7   : > { %p19649_p1 = scmp.eq.s32.totalorder %s17540_s28, 0  ;;  %p12850_p2 = scmp.ge.s32.totalorder %s17463_s27, 1 }
   0x8   : > { %p206_p3 = scmp.lt.s32.totalorder %s17463_s27, 5  ;;  %s17465_s8 = smov [#allocation6]  }
   0x9   : > { %p17549_p5 = por %p19649_p1, %p69_p0  ;;  %s219_s9 = sshll.u32 %s17465_s8, 4  ;;  %s220_s9 = int_to_ptr.vmem [resolvable:$true] %s219_s9 }
   0xa   : > { %p17553_p6 = pnand %p12850_p2, %p206_p3  ;;  %s17466_s10 = smov [#allocation9]  }
   0xb   : > { %s19652_s29 = scalar_select %p17549_p5, 1, 0 }
   0xc   : > { %s19653_s30 = scalar_select %p17553_p6, 1, 0 }
   0xd   : > { %p14772_p7 = pneg %p17553_p6  ;;  %s243_s11 = sshll.u32 %s17466_s10, 4  ;;  %s17565_s11 = int_to_ptr.vmem [resolvable:$true] %s243_s11 }
   0xe   : > { %s17467_s13 = smov [#allocation8]   ;;  %s17249_s17 = scalar_lea.hbm %s19643_s2, 64 }
   0xf   : > { %p17561_p8 = pnand %p14772_p7, %p19649_p1  ;;  %s229_s14 = sshll.u32 %s17467_s13, 4  ;;  %s17567_s14 = int_to_ptr.vmem [resolvable:$true] %s229_s14 }
  0x10   : > { %p17250_p9 = scmp.ne.s32.totalorder %s19643_s2, %s17249_s17  ;;  %p17256_p13 = scmp.lt.u32.totalorder %s17249_s17, %s19643_s2 }
  0x11   : > { %p17577_p10 = pneg %p17561_p8 }
  0x13   : > { %p17252_p11 = pnand %p17577_p10, %p17250_p9 }
  0x15   : > { %p17253_p12 = pneg %p17252_p11 }
  0x17   : > { %p17258_p0 = pnand %p17256_p13, %p17253_p12 }
  0x19   : > { %17261 = shalt.err (!%p17258_p0)
}
  0x1a   : > { %s17262_s23 = scalar_lea.vmem %s220_s9, 64  ;;  %p17270_p4 = scmp.lt.s32.totalorder %s220_s9, %s220_s9 }
  0x1b   : > { %p17263_p2 = scmp.ne.s32.totalorder %s220_s9, %s17262_s23  ;;  %p17271_p1 = scmp.lt.s32.totalorder %s17262_s23, %s17262_s23 }
  0x1d   : > { %p17265_p3 = pnand %p17263_p2, %p17577_p10  ;;  %p17272_p5 = por %p17271_p1, %p17270_p4 }
  0x1f   : > { %p17266_p7 = pneg %p17265_p3 }
  0x21   : > { %p17273_p6 = pnand %p17272_p5, %p17266_p7 }
  0x23   : > { %17276 = shalt.err (!%p17273_p6)
}
  0x24   : > { %14775 = dma.hbm_to_vmem [thread:$0]  (!%p17561_p8), %s19643_s2, 64, %s220_s9, [#allocation7]  }
  0x25   : > { %s17277_s15 = scalar_lea.hbm %s19645_s4, 16 }
  0x26   : > { %p17278_p9 = scmp.ne.s32.totalorder %s19645_s4, %s17277_s15  ;;  %p17284_p4 = scmp.lt.u32.totalorder %s17277_s15, %s19645_s4 }
  0x28   : > { %p17280_p11 = pnand %p17278_p9, %p17577_p10 }
  0x2a   : > { %p17281_p1 = pneg %p17280_p11 }
  0x2c   : > { %p17286_p5 = pnand %p17284_p4, %p17281_p1 }
  0x2e   : > { %17289 = shalt.err (!%p17286_p5)
}
  0x2f   : > { %s17290_s9 = scalar_lea.vmem %s17565_s11, 16  ;;  %s17297_s21 = scalar_lea.vmem %s17565_s11, 32 }
  0x30   : > { %p17291_p6 = scmp.ne.s32.totalorder %s17565_s11, %s17290_s9  ;;  %p17298_p0 = scmp.lt.s32.totalorder %s17565_s11, %s17565_s11 }
  0x31   : > { %p17299_p2 = scmp.lt.s32.totalorder %s17297_s21, %s17290_s9 }
  0x32   : > { %p17293_p12 = pnand %p17291_p6, %p17577_p10 }
  0x33   : > { %p17300_p3 = por %p17299_p2, %p17298_p0 }
  0x34   : > { %p17294_p13 = pneg %p17293_p12 }
  0x36   : > { %p17301_p7 = pnand %p17300_p3, %p17294_p13 }
  0x38   : > { %17304 = shalt.err (!%p17301_p7)
}
  0x39   : > { %14781 = dma.hbm_to_vmem [thread:$0]  (!%p17561_p8), %s19645_s4, 16, %s17565_s11, [#allocation10]  }
  0x3a   : > { %s17305_s10 = scalar_lea.hbm %s19644_s3, 4096 }
  0x3b   : > { %p17306_p9 = scmp.ne.s32.totalorder %s19644_s3, %s17305_s10  ;;  %p17312_p4 = scmp.lt.u32.totalorder %s17305_s10, %s19644_s3 }
  0x3d   : > { %p17308_p11 = pnand %p17306_p9, %p17577_p10 }
  0x3f   : > { %p17309_p1 = pneg %p17308_p11 }
  0x41   : > { %p17314_p5 = pnand %p17312_p4, %p17309_p1 }
  0x43   : > { %17317 = shalt.err (!%p17314_p5)
}
  0x44   : > { %s17318_s11 = scalar_lea.vmem %s17567_s14, 4096  ;;  %p17326_p0 = scmp.lt.s32.totalorder %s17567_s14, %s17567_s14 }
  0x45   : > { %p17319_p6 = scmp.ne.s32.totalorder %s17567_s14, %s17318_s11  ;;  %p17327_p2 = scmp.lt.s32.totalorder %s17318_s11, %s17318_s11 }
  0x47   : > { %p17321_p12 = pnand %p17319_p6, %p17577_p10  ;;  %p17328_p3 = por %p17327_p2, %p17326_p0 }
  0x49   : > { %p17322_p13 = pneg %p17321_p12 }
  0x4b   : > { %p17329_p7 = pnand %p17328_p3, %p17322_p13 }
  0x4d   : > { %17332 = shalt.err (!%p17329_p7)
}
  0x4e   : > { %s17468_s18 = smov 64   ;;  %s17469_s19 = smov 4  }
  0x4f   : > { %14778 = dma.hbm_to_vmem [thread:$0]  (!%p17561_p8), %s19644_s3, 4096, %s17567_s14, [#allocation7], %s17468_s18, %s17468_s18, %s17469_s19  }
  0x50   : > { %s17470_s22 = smov [#allocation11]   ;;  %s17333_s10 = scalar_lea.hbm %s19647_s6, 16 }
  0x51   : > { %s257_s23 = sshll.u32 %s17470_s22, 4  ;;  %p17334_p9 = scmp.ne.s32.totalorder %s19647_s6, %s17333_s10  ;;  %s258_s23 = int_to_ptr.vmem [resolvable:$true] %s257_s23 }
  0x52   : > { %p17340_p4 = scmp.lt.u32.totalorder %s17333_s10, %s19647_s6 }
  0x53   : > { %p17336_p11 = pnand %p17334_p9, %p17577_p10 }
  0x55   : > { %p17337_p1 = pneg %p17336_p11 }
  0x57   : > { %p17342_p5 = pnand %p17340_p4, %p17337_p1 }
  0x59   : > { %17345 = shalt.err (!%p17342_p5)
}
  0x5a   : > { %s17346_s14 = scalar_lea.vmem %s258_s23, 16  ;;  %s17353_s11 = scalar_lea.vmem %s258_s23, 32 }
  0x5b   : > { %p17347_p6 = scmp.ne.s32.totalorder %s258_s23, %s17346_s14  ;;  %p17354_p0 = scmp.lt.s32.totalorder %s258_s23, %s258_s23 }
  0x5c   : > { %p17355_p2 = scmp.lt.s32.totalorder %s17353_s11, %s17346_s14 }
  0x5d   : > { %p17349_p12 = pnand %p17347_p6, %p17577_p10 }
  0x5e   : > { %p17356_p3 = por %p17355_p2, %p17354_p0 }
  0x5f   : > { %p17350_p13 = pneg %p17349_p12 }
  0x61   : > { %p17357_p7 = pnand %p17356_p3, %p17350_p13 }
  0x63   : > { %17360 = shalt.err (!%p17357_p7)
}
  0x64   : > { %14784 = dma.hbm_to_vmem [thread:$0]  (!%p17561_p8), %s19647_s6, 16, %s258_s23, [#allocation10]  }
  0x65   : > { %s17659_s20 = sadd.s32 1, %s17463_s27   ;;  %s56_s9 = sadd.s32 1, %s17459_s26 }
  0x66   : > { %s53_s21 = ssub.s32 %s17463_s27, %s17659_s20  ;;  %p63_p10 = scmp.ne.s32.totalorder %s17459_s26, %s17455_s25 }
  0x67   : > { %p54_p9 = scmp.eq.s32.totalorder %s53_s21, 0  ;;  %p64_p11 = scmp.eq.s32.totalorder %s17463_s27, 0 }
  0x68   : > { %p14793_p1 = scmp.lt.s32.totalorder %s17463_s27, 4  ;;  %s276_s12 = sand.u32 1, %s17459_s26  }
  0x69   : > { %s17670_s22 = scalar_select %p54_p9, %s17459_s26, %s56_s9  }
  0x6a   : > { %p65_p4 = por %p64_p11, %p63_p10  ;;  %s14748_s24 = smul.u32 12544, %s276_s12 }
  0x6b   : > { %s14482_s8 = smul.u32 200704, %s17463_s27  ;;  %s17684_s27 = scalar_lea.sflag [#allocation4], %s276_s12 }
  0x6c   : > { %p17673_p5 = pnand %p14793_p1, %p65_p4  ;;  %s280_s16 = scalar_lea.vmem [#allocation3], %s14748_s24 }
  0x6d   : > { %s17680_s15 = scalar_lea.hbm %s19642_s1, %s14482_s8  ;;  %s288_s17 = sshll.u32 %s280_s16, 4  ;;  %s17682_s17 = int_to_ptr.vmem [resolvable:$true] %s288_s17 }
  0x6e   : > { %s17361_s14 = scalar_lea.hbm %s17680_s15, 200704  ;;  %p17363_p6 = pneg %p17673_p5 }
  0x6f   : > { %p17362_p8 = scmp.ne.s32.totalorder %s17680_s15, %s17361_s14  ;;  %s17366_s19 = scalar_lea.hbm %s19642_s1, 802816 }
  0x70   : > { %p17367_p0 = scmp.lt.u32.totalorder %s17680_s15, %s19642_s1  ;;  %p17368_p2 = scmp.lt.u32.totalorder %s17366_s19, %s17361_s14 }
  0x71   : > { %p17364_p12 = pnand %p17363_p6, %p17362_p8  ;;  %p17370_p7 = scmp.lt.u32.totalorder %s17361_s14, %s17680_s15 }
  0x72   : > { %p17369_p3 = por %p17368_p2, %p17367_p0 }
  0x73   : > { %p17365_p13 = pneg %p17364_p12 }
  0x74   : > { %p17371_p10 = por %p17370_p7, %p17369_p3 }
  0x76   : > { %p17372_p9 = pnand %p17371_p10, %p17365_p13 }
  0x78   : > { %17375 = shalt.err (!%p17372_p9)
}
  0x79   : > { %s17376_s12 = scalar_lea.vmem %s17682_s17, 200704  ;;  %s17471_s24 = smov [#allocation3]  }
  0x7a   : > { %p17377_p11 = scmp.ne.s32.totalorder %s17682_s17, %s17376_s12  ;;  %s17381_s8 = sshll.u32 %s17471_s24, 4  ;;  %s17382_s8 = int_to_ptr.vmem [resolvable:$false] %s17381_s8 }
  0x7b   : > { %s17383_s23 = scalar_lea.vmem %s17382_s8, 401408  ;;  %p17384_p8 = scmp.lt.s32.totalorder %s17682_s17, %s17382_s8 }
  0x7c   : > { %p17379_p1 = pnand %p17377_p11, %p17363_p6  ;;  %p17385_p12 = scmp.lt.s32.totalorder %s17383_s23, %s17376_s12 }
  0x7e   : > { %p17380_p4 = pneg %p17379_p1  ;;  %p17386_p0 = por %p17385_p12, %p17384_p8 }
  0x80   : > { %p17387_p2 = pnand %p17386_p0, %p17380_p4 }
  0x82   : > { %17390 = shalt.err (!%p17387_p2)
}
  0x83   : > { %s17472_s13 = smov 256   ;;  %s17473_s16 = smov 16  }
  0x84   : > { %14788 = dma.hbm_to_vmem [thread:$0]  (!%p17673_p5), %s17680_s15, 200704, %s17682_s17, %s17684_s27, %s17472_s13, %s17472_s13, %s17473_s16  }
  0x85   : > { %p19657_p6 = scmp.ne.s32.totalorder %s19653_s30, 0 }
  0x86   : > { %s302_s14 = sand.u32 (!%p19657_p6), 1, %s17455_s25   ;;  %p19658_p13 = scmp.ne.s32.totalorder (!%p19657_p6), %s19652_s29, 0 }
  0x87   : > { %300 = sbr.rel (%p19657_p6) target bundleno = 2430 (0x97e), region = 48  ;;  %s303_s18 = scalar_lea.sflag (!%p19657_p6), [#allocation4], %s302_s14 }
  0x88   : > { %s14749_s11 = smul.u32 (!%p19657_p6), 12544, %s302_s14 }
  0x8a   : > { %s17715_s19 = scalar_lea.vmem (!%p19657_p6), [#allocation3], %s14749_s11 }
  0x8e   : > { %17434 = dma.done.wait (%p19658_p13), %s303_s18, 200704  }
  0x8f   : > { %17436 = vsyncadd (%p19658_p13), %s303_s18, 4294766592  ;;  %p19659_p3 = scmp.eq.s32.totalorder %s17540_s28, 0 }
  0x91   : > { %17438 = dma.done.wait (%p19659_p3), [#allocation7], 4160   ;;  %p19660_p5 = pmov %p19659_p3 }
  0x92   : > { %p19661_p7 = pmov %p19659_p3 }
  0x93   : > { %17440 = vsyncadd (%p19660_p5), [#allocation7], 4294963136 }
  0x94   : > { %17442 = dma.done.wait (%p19661_p7), [#allocation10], 32   ;;  %p19662_p10 = pmov %p19659_p3 }
  0x95   : > { %s352_s30 = smul.u32 49, %s17540_s28  ;;  %p19663_p11 = scmp.ne.s32.totalorder %s17540_s28, 0 }
  0x96   : > { %17444 = vsyncadd (%p19662_p10), [#allocation10], 4294967264  ;;  %v17474_v0 = vmov (!%p19663_p11), 0.0  }
  0x97   : > { %p353_p9 = scmp.lt.s32.totalorder %s352_s30, 195  ;;  %362 = sbr.rel (%p19663_p11) target bundleno = 158 (0x9e), region = 72  ;;  %363 = vst [vmem:[#allocation2] sm:$0xff] (!%p19663_p11), %v17474_v0 }
  0x99   : > { %s19669_s30 = smov (!%p353_p9, %s352_s30), 195 }
  0x9a   : > { %s17733_s29 = scalar_lea.vmem %s19641_s0, %s19669_s30 }
  0x9e PF: > { %v14847_v1 = vld [vmem:[%s17715_s19 + $0x4] ss:$16 sps:$4 sm:$0xff]   ;;  %v14849_v2 = vld [vmem:[%s17715_s19 + $0xc] ss:$16 sps:$4 sm:$0xff]   ;;  %v14851_v3 = vld [vmem:[%s17715_s19] ss:$16 sps:$4 sm:$0xff]   ;;  %v1951_v39 = vlaneseq }
  0x9f   : > { %10144 = vmatprep.subr.bf16.mxu0 %v14847_v1  ;;  %v14852_v4 = vld [vmem:[%s17715_s19 + $0x8] ss:$16 sps:$4 sm:$0xff]   ;;  %11169 = vmatprep.subr.bf16.mxu1 %v14849_v2  ;;  %v14853_v5 = vld [vmem:[%s17715_s19 + $0x24] ss:$16 sps:$4 sm:$0xff]   ;;  %v14855_v6 = vld [vmem:[%s17715_s19 + $0x2c] ss:$16 sps:$4 sm:$0xff]  }
  0xa0   : > { %10145 = vmatpush1.bf16.msra.mxu0 %v14851_v3  ;;  %11170 = vmatpush1.bf16.msra.mxu1 %v14852_v4  ;;  %v14857_v7 = vld [vmem:[%s17715_s19 + $0x20] ss:$16 sps:$4 sm:$0xff]   ;;  %v14858_v8 = vld [vmem:[%s17715_s19 + $0x28] ss:$16 sps:$4 sm:$0xff]   ;;  %v14859_v9 = vld [vmem:[%s17715_s19 + $0x44] ss:$16 sps:$4 sm:$0xff]  }
  0xa1   : > { %10146 = vmatprep.subr.bf16.mxu0 %v14853_v5  ;;  %11171 = vmatprep.subr.bf16.mxu1 %v14855_v6  ;;  %v14861_v10 = vld [vmem:[%s17715_s19 + $0x4c] ss:$16 sps:$4 sm:$0xff]   ;;  %v14863_v11 = vld [vmem:[%s17715_s19 + $0x40] ss:$16 sps:$4 sm:$0xff]   ;;  %v14864_v12 = vld [vmem:[%s17715_s19 + $0x48] ss:$16 sps:$4 sm:$0xff]  }
  0xa2   : > { %v14865_v13 = vld [vmem:[%s17715_s19 + $0x64] ss:$16 sps:$4 sm:$0xff]   ;;  %v14867_v14 = vld [vmem:[%s17715_s19 + $0x6c] ss:$16 sps:$4 sm:$0xff]   ;;  %v14869_v15 = vld [vmem:[%s17715_s19 + $0x60] ss:$16 sps:$4 sm:$0xff]  }
  0xa3   : > { %v14870_v16 = vld [vmem:[%s17715_s19 + $0x68] ss:$16 sps:$4 sm:$0xff]   ;;  %v14871_v17 = vld [vmem:[%s17715_s19 + $0x84] ss:$16 sps:$4 sm:$0xff]   ;;  %v14873_v18 = vld [vmem:[%s17715_s19 + $0x8c] ss:$16 sps:$4 sm:$0xff]  }
  0xa4   : > { %10147 = vmatpush1.bf16.msra.mxu0 %v14857_v7  ;;  %11172 = vmatpush1.bf16.msra.mxu1 %v14858_v8  ;;  %v14875_v19 = vld [vmem:[%s17715_s19 + $0x80] ss:$16 sps:$4 sm:$0xff]   ;;  %v14876_v20 = vld [vmem:[%s17715_s19 + $0x88] ss:$16 sps:$4 sm:$0xff]   ;;  %v14877_v21 = vld [vmem:[%s17715_s19 + $0xa4] ss:$16 sps:$4 sm:$0xff]  }
  0xa5   : > { %10148 = vmatprep.subr.bf16.mxu0 %v14859_v9  ;;  %11173 = vmatprep.subr.bf16.mxu1 %v14861_v10  ;;  %v14879_v22 = vld [vmem:[%s17715_s19 + $0xac] ss:$16 sps:$4 sm:$0xff]   ;;  %v14881_v23 = vld [vmem:[%s17715_s19 + $0xa0] ss:$16 sps:$4 sm:$0xff]   ;;  %v14882_v24 = vld [vmem:[%s17715_s19 + $0xa8] ss:$16 sps:$4 sm:$0xff]  }
  0xa6   : > { %v14883_v25 = vld [vmem:[%s17715_s19 + $0xc4] ss:$16 sps:$4 sm:$0xff]   ;;  %v14885_v26 = vld [vmem:[%s17715_s19 + $0xcc] ss:$16 sps:$4 sm:$0xff]   ;;  %v14887_v27 = vld [vmem:[%s17715_s19 + $0xc0] ss:$16 sps:$4 sm:$0xff]  }
  0xa7   : > { %v14888_v28 = vld [vmem:[%s17715_s19 + $0xc8] ss:$16 sps:$4 sm:$0xff]   ;;  %v14889_v29 = vld [vmem:[%s17715_s19 + $0xe4] ss:$16 sps:$4 sm:$0xff]   ;;  %v14891_v30 = vld [vmem:[%s17715_s19 + $0xec] ss:$16 sps:$4 sm:$0xff]  }
  0xa8   : > { %10149 = vmatpush1.bf16.msra.mxu0 %v14863_v11  ;;  %11174 = vmatpush1.bf16.msra.mxu1 %v14864_v12  ;;  %v14893_v31 = vld [vmem:[%s17715_s19 + $0xe0] ss:$16 sps:$4 sm:$0xff]   ;;  %v14894_v32 = vld [vmem:[%s17715_s19 + $0xe8] ss:$16 sps:$4 sm:$0xff]   ;;  %v14895_v33 = vld [vmem:[%s17715_s19 + $0x104] ss:$16 sps:$4 sm:$0xff]  }
  0xa9   : > { %10150 = vmatprep.subr.bf16.mxu0 %v14865_v13  ;;  %11175 = vmatprep.subr.bf16.mxu1 %v14867_v14  ;;  %v14897_v34 = vld [vmem:[%s17715_s19 + $0x10c] ss:$16 sps:$4 sm:$0xff]   ;;  %v14899_v35 = vld [vmem:[%s17715_s19 + $0x100] ss:$16 sps:$4 sm:$0xff]   ;;  %v14900_v36 = vld [vmem:[%s17715_s19 + $0x108] ss:$16 sps:$4 sm:$0xff]  }
  0xaa   : > { %v17475_v37 = vmov 1966171168   ;;  %v14901_v40 = vld [vmem:[%s17715_s19 + $0x124] ss:$16 sps:$4 sm:$0xff]   ;;  %v14903_v41 = vld [vmem:[%s17715_s19 + $0x12c] ss:$16 sps:$4 sm:$0xff]  }
  0xab   : > { %v1949_v38 = vunpack.c.l.s4 %v17475_v37  ;;  %v14905_v42 = vld [vmem:[%s17715_s19 + $0x120] ss:$16 sps:$4 sm:$0xff]   ;;  %v17776_v44 = vshrl.u32 %v1951_v39, 7  ;;  %v14906_v45 = vld [vmem:[%s17715_s19 + $0x128] ss:$16 sps:$4 sm:$0xff]   ;;  %p14433_p1 = scmp.ne.s32.totalorder %s17540_s28, 3 }
  0xac   : > { %10151 = vmatpush1.bf16.msra.mxu0 %v14869_v15  ;;  %11176 = vmatpush1.bf16.msra.mxu1 %v14870_v16  ;;  %v14907_v46 = vld [vmem:[%s17715_s19 + $0x144] ss:$16 sps:$4 sm:$0xff]   ;;  %v14909_v47 = vld [vmem:[%s17715_s19 + $0x14c] ss:$16 sps:$4 sm:$0xff]   ;;  %v14911_v48 = vld [vmem:[%s17715_s19 + $0x140] ss:$16 sps:$4 sm:$0xff]  }
  0xad   : > { %10152 = vmatprep.subr.bf16.mxu0 %v14871_v17  ;;  %11177 = vmatprep.subr.bf16.mxu1 %v14873_v18  ;;  %v1950_v43 = vunpack.c.0.s8 %v1949_v38  ;;  %v14912_v49 = vld [vmem:[%s17715_s19 + $0x148] ss:$16 sps:$4 sm:$0xff]   ;;  %v14913_v51 = vld [vmem:[%s17715_s19 + $0x164] ss:$16 sps:$4 sm:$0xff]   ;;  %v14915_v52 = vld [vmem:[%s17715_s19 + $0x16c] ss:$16 sps:$4 sm:$0xff]  }
  0xae   : > { %v17789_v53 = vld [vmem:[%s17733_s29] sm:$0xff]  ;;  %v14917_v54 = vld [vmem:[%s17715_s19 + $0x160] ss:$16 sps:$4 sm:$0xff]   ;;  %v14919_v57 = vld [vmem:[%s17715_s19 + $0x184] ss:$16 sps:$4 sm:$0xff]   ;;  %vm17479_vm0 = vmmov (!%p14433_p1), 0  }
  0xaf   : > { %v17784_v50 = vsub.s32 %v1950_v43, %v17776_v44  ;;  %v14918_v56 = vld [vmem:[%s17715_s19 + $0x168] ss:$16 sps:$4 sm:$0xff]   ;;  %v14921_v58 = vld [vmem:[%s17715_s19 + $0x18c] ss:$16 sps:$4 sm:$0xff]   ;;  %v14923_v60 = vld [vmem:[%s17715_s19 + $0x180] ss:$16 sps:$4 sm:$0xff]  }
  0xb0   : > { %10153 = vmatpush1.bf16.msra.mxu0 %v14875_v19  ;;  %11178 = vmatpush1.bf16.msra.mxu1 %v14876_v20  ;;  %v14924_v62 = vld [vmem:[%s17715_s19 + $0x188] ss:$16 sps:$4 sm:$0xff]   ;;  %v14925_v63 = vld [vmem:[%s17715_s19 + $0x1a4] ss:$16 sps:$4 sm:$0xff]   ;;  %v14927_v0 = vld [vmem:[%s17715_s19 + $0x1ac] ss:$16 sps:$4 sm:$0xff]  }
  0xb1   : > { %10154 = vmatprep.subr.bf16.mxu0 %v14877_v21  ;;  %11179 = vmatprep.subr.bf16.mxu1 %v14879_v22  ;;  %v1954_v55 = vrot.slane %v17789_v53, %v17784_v50  ;;  %v14929_v1 = vld [vmem:[%s17715_s19 + $0x1a0] ss:$16 sps:$4 sm:$0xff]   ;;  %v14930_v2 = vld [vmem:[%s17715_s19 + $0x1a8] ss:$16 sps:$4 sm:$0xff]   ;;  %v14931_v3 = vld [vmem:[%s17715_s19 + $0x1c4] ss:$16 sps:$4 sm:$0xff]  }
  0xb2   : > { %v14933_v4 = vld [vmem:[%s17715_s19 + $0x1cc] ss:$16 sps:$4 sm:$0xff]   ;;  %v14935_v5 = vld [vmem:[%s17715_s19 + $0x1c0] ss:$16 sps:$4 sm:$0xff]   ;;  %v14936_v6 = vld [vmem:[%s17715_s19 + $0x1c8] ss:$16 sps:$4 sm:$0xff]  }
  0xb3   : > { %v1962_v59 = vcombine.high %v1954_v55, %v1954_v55  ;;  %v14937_v7 = vld [vmem:[%s17715_s19 + $0x1e4] ss:$16 sps:$4 sm:$0xff]   ;;  %v14939_v8 = vld [vmem:[%s17715_s19 + $0x1ec] ss:$16 sps:$4 sm:$0xff]   ;;  %v14941_v9 = vld [vmem:[%s17715_s19 + $0x1e0] ss:$16 sps:$4 sm:$0xff]   ;;  %v17816_v14 = vrot.slane %v1954_v55, %v17784_v50 }
  0xb4   : > { %10155 = vmatpush1.bf16.msra.mxu0 %v14881_v23  ;;  %11180 = vmatpush1.bf16.msra.mxu1 %v14882_v24  ;;  %v14942_v10 = vld [vmem:[%s17715_s19 + $0x1e8] ss:$16 sps:$4 sm:$0xff]   ;;  %v14945_v11 = vld [vmem:[%s17715_s19 + $0x204] ss:$16 sps:$4 sm:$0xff]   ;;  %v14948_v12 = vld [vmem:[%s17715_s19 + $0x20c] ss:$16 sps:$4 sm:$0xff]  }
  0xb5   : > { %10156 = vmatprep.subr.bf16.mxu0 %v14883_v25  ;;  %11181 = vmatprep.subr.bf16.mxu1 %v14885_v26  ;;  %v1984_v61 = vrot.slane %v1962_v59, %v17784_v50  ;;  %v14943_v13 = vld [vmem:[%s17715_s19 + $0x200] ss:$16 sps:$4 sm:$0xff]   ;;  %v14946_v15 = vld [vmem:[%s17715_s19 + $0x208] ss:$16 sps:$4 sm:$0xff]   ;;  %v14951_v16 = vld [vmem:[%s17715_s19 + $0x224] ss:$16 sps:$4 sm:$0xff]  }
  0xb6   : > { %v14954_v17 = vld [vmem:[%s17715_s19 + $0x22c] ss:$16 sps:$4 sm:$0xff]   ;;  %v14949_v19 = vld [vmem:[%s17715_s19 + $0x220] ss:$16 sps:$4 sm:$0xff]   ;;  %v14952_v20 = vld [vmem:[%s17715_s19 + $0x228] ss:$16 sps:$4 sm:$0xff]  }
  0xb7   : > { %10176 = vmatprep.mubr.bf16.mxu0 %v1984_v61  ;;  %11201 = vmatprep.mubr.bf16.mxu1 %v1984_v61  ;;  %v1994_v18 = vcombine.high %v1984_v61, %v1984_v61  ;;  %v14957_v21 = vld [vmem:[%s17715_s19 + $0x244] ss:$16 sps:$4 sm:$0xff]   ;;  %v14960_v22 = vld [vmem:[%s17715_s19 + $0x24c] ss:$16 sps:$4 sm:$0xff]   ;;  %v14955_v23 = vld [vmem:[%s17715_s19 + $0x240] ss:$16 sps:$4 sm:$0xff]  }
  0xb8   : > { %10157 = vmatpush1.bf16.msra.mxu0 %v14887_v27  ;;  %11182 = vmatpush1.bf16.msra.mxu1 %v14888_v28  ;;  %v14958_v24 = vld [vmem:[%s17715_s19 + $0x248] ss:$16 sps:$4 sm:$0xff]   ;;  %v14963_v25 = vld [vmem:[%s17715_s19 + $0x264] ss:$16 sps:$4 sm:$0xff]   ;;  %v14966_v26 = vld [vmem:[%s17715_s19 + $0x26c] ss:$16 sps:$4 sm:$0xff]  }
  0xb9   : > { %10158 = vmatprep.subr.bf16.mxu0 %v14889_v29  ;;  %11183 = vmatprep.subr.bf16.mxu1 %v14891_v30  ;;  %v14961_v27 = vld [vmem:[%s17715_s19 + $0x260] ss:$16 sps:$4 sm:$0xff]   ;;  %v14964_v28 = vld [vmem:[%s17715_s19 + $0x268] ss:$16 sps:$4 sm:$0xff]   ;;  %v14969_v29 = vld [vmem:[%s17715_s19 + $0x284] ss:$16 sps:$4 sm:$0xff]  }
  0xba   : > { %v14972_v30 = vld [vmem:[%s17715_s19 + $0x28c] ss:$16 sps:$4 sm:$0xff]   ;;  %v14981_v37 = vld [vmem:[%s17715_s19 + $0x2c4] ss:$16 sps:$4 sm:$0xff]   ;;  %v14979_v39 = vld [vmem:[%s17715_s19 + $0x2c0] ss:$16 sps:$4 sm:$0xff]  }
  0xbb   : > { %v14984_v38 = vld [vmem:[%s17715_s19 + $0x2cc] ss:$16 sps:$4 sm:$0xff]   ;;  %v14985_v43 = vld [vmem:[%s17715_s19 + $0x2e0] ss:$16 sps:$4 sm:$0xff]   ;;  %v15000_v55 = vld [vmem:[%s17715_s19 + $0x328] ss:$16 sps:$4 sm:$0xff]  }
  0xbc   : > { %10159 = vmatpush1.bf16.msra.mxu0 %v14893_v31  ;;  %11184 = vmatpush1.bf16.msra.mxu1 %v14894_v32  ;;  %v14967_v31 = vld [vmem:[%s17715_s19 + $0x280] ss:$16 sps:$4 sm:$0xff]   ;;  %v14970_v32 = vld [vmem:[%s17715_s19 + $0x288] ss:$16 sps:$4 sm:$0xff]   ;;  %v15014_v61 = vld [vmem:[%s17715_s19 + $0x36c] ss:$16 sps:$4 sm:$0xff]  }
  0xbd   : > { %10160 = vmatprep.subr.bf16.mxu0 %v14895_v33  ;;  %11185 = vmatprep.subr.bf16.mxu1 %v14897_v34  ;;  %v14975_v33 = vld [vmem:[%s17715_s19 + $0x2a4] ss:$16 sps:$4 sm:$0xff]   ;;  %v14978_v34 = vld [vmem:[%s17715_s19 + $0x2ac] ss:$16 sps:$4 sm:$0xff]   ;;  %v15006_v59 = vld [vmem:[%s17715_s19 + $0x348] ss:$16 sps:$4 sm:$0xff]  }
  0xbe   : > { %vm12743_vm1 = vcmask (!%p14433_p1), 9216  }
  0xc0   : > { %10161 = vmatpush1.bf16.msra.mxu0 %v14899_v35  ;;  %11186 = vmatpush1.bf16.msra.mxu1 %v14900_v36  ;;  %v14973_v35 = vld [vmem:[%s17715_s19 + $0x2a0] ss:$16 sps:$4 sm:$0xff]   ;;  %v14976_v36 = vld [vmem:[%s17715_s19 + $0x2a8] ss:$16 sps:$4 sm:$0xff]  }
  0xc1   : > { %10162 = vmatprep.subr.bf16.mxu0 %v14901_v40  ;;  %11187 = vmatprep.subr.bf16.mxu1 %v14903_v41  ;;  %v14982_v40 = vld [vmem:[%s17715_s19 + $0x2c8] ss:$16 sps:$4 sm:$0xff]   ;;  %v14987_v41 = vld [vmem:[%s17715_s19 + $0x2e4] ss:$16 sps:$4 sm:$0xff]  }
  0xc4   : > { %10163 = vmatpush1.bf16.msra.mxu0 %v14905_v42  ;;  %11188 = vmatpush1.bf16.msra.mxu1 %v14906_v45  ;;  %v14990_v42 = vld [vmem:[%s17715_s19 + $0x2ec] ss:$16 sps:$4 sm:$0xff]   ;;  %v14988_v45 = vld [vmem:[%s17715_s19 + $0x2e8] ss:$16 sps:$4 sm:$0xff]  }
  0xc5   : > { %10164 = vmatprep.subr.bf16.mxu0 %v14907_v46  ;;  %11189 = vmatprep.subr.bf16.mxu1 %v14909_v47  ;;  %v14993_v46 = vld [vmem:[%s17715_s19 + $0x304] ss:$16 sps:$4 sm:$0xff]   ;;  %v14996_v47 = vld [vmem:[%s17715_s19 + $0x30c] ss:$16 sps:$4 sm:$0xff]  }
  0xc8   : > { %10165 = vmatpush1.bf16.msra.mxu0 %v14911_v48  ;;  %11190 = vmatpush1.bf16.msra.mxu1 %v14912_v49  ;;  %v14991_v48 = vld [vmem:[%s17715_s19 + $0x300] ss:$16 sps:$4 sm:$0xff]   ;;  %v14994_v49 = vld [vmem:[%s17715_s19 + $0x308] ss:$16 sps:$4 sm:$0xff]  }
  0xc9   : > { %10166 = vmatprep.subr.bf16.mxu0 %v14913_v51  ;;  %11191 = vmatprep.subr.bf16.mxu1 %v14915_v52  ;;  %v14999_v51 = vld [vmem:[%s17715_s19 + $0x324] ss:$16 sps:$4 sm:$0xff]   ;;  %v15002_v52 = vld [vmem:[%s17715_s19 + $0x32c] ss:$16 sps:$4 sm:$0xff]  }
  0xcc   : > { %10167 = vmatpush1.bf16.msra.mxu0 %v14917_v54  ;;  %11192 = vmatpush1.bf16.msra.mxu1 %v14918_v56  ;;  %v14997_v54 = vld [vmem:[%s17715_s19 + $0x320] ss:$16 sps:$4 sm:$0xff]   ;;  %v15005_v56 = vld [vmem:[%s17715_s19 + $0x344] ss:$16 sps:$4 sm:$0xff]  }
  0xcd   : > { %10168 = vmatprep.subr.bf16.mxu0 %v14919_v57  ;;  %11193 = vmatprep.subr.bf16.mxu1 %v14921_v58  ;;  %v15008_v57 = vld [vmem:[%s17715_s19 + $0x34c] ss:$16 sps:$4 sm:$0xff]   ;;  %v15003_v58 = vld [vmem:[%s17715_s19 + $0x340] ss:$16 sps:$4 sm:$0xff]  }
  0xd0   : > { %10169 = vmatpush1.bf16.msra.mxu0 %v14923_v60  ;;  %11194 = vmatpush1.bf16.msra.mxu1 %v14924_v62  ;;  %v15011_v60 = vld [vmem:[%s17715_s19 + $0x364] ss:$16 sps:$4 sm:$0xff]   ;;  %v15009_v62 = vld [vmem:[%s17715_s19 + $0x360] ss:$16 sps:$4 sm:$0xff]  }
  0xd1   : > { %10170 = vmatprep.subr.bf16.mxu0 %v14925_v63  ;;  %11195 = vmatprep.subr.bf16.mxu1 %v14927_v0  ;;  %v15012_v63 = vld [vmem:[%s17715_s19 + $0x368] ss:$16 sps:$4 sm:$0xff]   ;;  %v15017_v0 = vld [vmem:[%s17715_s19 + $0x384] ss:$16 sps:$4 sm:$0xff]  }
  0xd4   : > { %10171 = vmatpush1.bf16.msra.mxu0 %v14929_v1  ;;  %11196 = vmatpush1.bf16.msra.mxu1 %v14930_v2  ;;  %v15020_v1 = vld [vmem:[%s17715_s19 + $0x38c] ss:$16 sps:$4 sm:$0xff]   ;;  %v15015_v2 = vld [vmem:[%s17715_s19 + $0x380] ss:$16 sps:$4 sm:$0xff]  }
  0xd5   : > { %10172 = vmatprep.subr.bf16.mxu0 %v14931_v3  ;;  %11197 = vmatprep.subr.bf16.mxu1 %v14933_v4  ;;  %v15018_v3 = vld [vmem:[%s17715_s19 + $0x388] ss:$16 sps:$4 sm:$0xff]   ;;  %v15023_v4 = vld [vmem:[%s17715_s19 + $0x3a4] ss:$16 sps:$4 sm:$0xff]  }
  0xd8   : > { %10173 = vmatpush1.bf16.msra.mxu0 %v14935_v5  ;;  %11198 = vmatpush1.bf16.msra.mxu1 %v14936_v6  ;;  %v15026_v5 = vld [vmem:[%s17715_s19 + $0x3ac] ss:$16 sps:$4 sm:$0xff]   ;;  %v15021_v6 = vld [vmem:[%s17715_s19 + $0x3a0] ss:$16 sps:$4 sm:$0xff]  }
  0xd9   : > { %10174 = vmatprep.subr.bf16.mxu0 %v14937_v7  ;;  %11199 = vmatprep.subr.bf16.mxu1 %v14939_v8  ;;  %v15024_v7 = vld [vmem:[%s17715_s19 + $0x3a8] ss:$16 sps:$4 sm:$0xff]   ;;  %v15029_v8 = vld [vmem:[%s17715_s19 + $0x3c4] ss:$16 sps:$4 sm:$0xff]  }
  0xdc   : > { %10175 = vmatpush1.bf16.msra.mxu0 %v14941_v9  ;;  %11200 = vmatpush1.bf16.msra.mxu1 %v14942_v10  ;;  %v15032_v9 = vld [vmem:[%s17715_s19 + $0x3cc] ss:$16 sps:$4 sm:$0xff]   ;;  %v1947_v10 = vcombine.high %v17789_v53, %v17789_v53  ;;  %v15036_v53 = vld [vmem:[%s17715_s19 + $0x3e8] ss:$16 sps:$4 sm:$0xff]  }
  0xdd   : > { %10185 = vmatprep.subr.bf16.mxu0 %v14945_v11  ;;  %11210 = vmatprep.subr.bf16.mxu1 %v14948_v12  ;;  %v15027_v11 = vld [vmem:[%s17715_s19 + $0x3c0] ss:$16 sps:$4 sm:$0xff]   ;;  %v15030_v12 = vld [vmem:[%s17715_s19 + $0x3c8] ss:$16 sps:$4 sm:$0xff]  }
  0xdf   : > { %10177 = vmatmul.mubr.bf16.vlgmr.msra.gmra.mrb[0].mxu0 %v17816_v14  ;;  %11202 = vmatmul.mubr.bf16.vlgmr.msra.gmra.mrb[0].mxu1 %v17816_v14 }
  0xe0   : > { %10186 = vmatpush1.bf16.msra.mxu0 %v14943_v13  ;;  %11211 = vmatpush1.bf16.msra.mxu1 %v14946_v15  ;;  %v15035_v13 = vld [vmem:[%s17715_s19 + $0x3e4] ss:$16 sps:$4 sm:$0xff]   ;;  %v15038_v15 = vld [vmem:[%s17715_s19 + $0x3ec] ss:$16 sps:$4 sm:$0xff]  }
  0xe1   : > { %10187 = vmatprep.subr.bf16.mxu0 %v14951_v16  ;;  %11212 = vmatprep.subr.bf16.mxu1 %v14954_v17  ;;  %v17882_v16 = vrot.slane %v1947_v10, %v17784_v50  ;;  %v15033_v17 = vld [vmem:[%s17715_s19 + $0x3e0] ss:$16 sps:$4 sm:$0xff]   ;;  %v15114_v10 = vld [vmem:[%s17715_s19 + $0x588] ss:$16 sps:$4 sm:$0xff]  }
  0xe2   : > { %10217 = vmatprep.mubr.bf16.mxu0 %v1994_v18  ;;  %11242 = vmatprep.mubr.bf16.mxu1 %v1994_v18  ;;  %v15041_v18 = vld [vmem:[%s17715_s19 + $0x404] ss:$16 sps:$4 sm:$0xff]  }
  0xe4   : > { %10188 = vmatpush1.bf16.msra.mxu0 %v14949_v19  ;;  %11213 = vmatpush1.bf16.msra.mxu1 %v14952_v20  ;;  %v15044_v19 = vld [vmem:[%s17715_s19 + $0x40c] ss:$16 sps:$4 sm:$0xff]   ;;  %v1963_v20 = vcombine.high %v17882_v16, %v17882_v16 }
  0xe5   : > { %10189 = vmatprep.subr.bf16.mxu0 %v14957_v21  ;;  %11214 = vmatprep.subr.bf16.mxu1 %v14960_v22  ;;  %v15039_v21 = vld [vmem:[%s17715_s19 + $0x400] ss:$16 sps:$4 sm:$0xff]   ;;  %v1992_v22 = vcombine.high %v17816_v14, %v17816_v14  ;;  %v15048_v14 = vld [vmem:[%s17715_s19 + $0x428] ss:$16 sps:$4 sm:$0xff]  }
  0xe8   : > { %10190 = vmatpush1.bf16.msra.mxu0 %v14955_v23  ;;  %11215 = vmatpush1.bf16.msra.mxu1 %v14958_v24  ;;  %v15042_v23 = vld [vmem:[%s17715_s19 + $0x408] ss:$16 sps:$4 sm:$0xff]   ;;  %v15047_v24 = vld [vmem:[%s17715_s19 + $0x424] ss:$16 sps:$4 sm:$0xff]  }
  0xe9   : > { %10191 = vmatprep.subr.bf16.mxu0 %v14963_v25  ;;  %11216 = vmatprep.subr.bf16.mxu1 %v14966_v26  ;;  %v15050_v25 = vld [vmem:[%s17715_s19 + $0x42c] ss:$16 sps:$4 sm:$0xff]   ;;  %v17897_v26 = vrot.slane %v1963_v20, %v17784_v50  ;;  %v15131_v20 = vld [vmem:[%s17715_s19 + $0x5e4] ss:$16 sps:$4 sm:$0xff]  }
  0xec   : > { %10192 = vmatpush1.bf16.msra.mxu0 %v14961_v27  ;;  %11217 = vmatpush1.bf16.msra.mxu1 %v14964_v28  ;;  %v15045_v27 = vld [vmem:[%s17715_s19 + $0x420] ss:$16 sps:$4 sm:$0xff]   ;;  %v15053_v28 = vld [vmem:[%s17715_s19 + $0x444] ss:$16 sps:$4 sm:$0xff]  }
  0xed   : > { %10193 = vmatprep.subr.bf16.mxu0 %v14969_v29  ;;  %11218 = vmatprep.subr.bf16.mxu1 %v14972_v30  ;;  %v15056_v29 = vld [vmem:[%s17715_s19 + $0x44c] ss:$16 sps:$4 sm:$0xff]   ;;  %v15051_v30 = vld [vmem:[%s17715_s19 + $0x440] ss:$16 sps:$4 sm:$0xff]  }
  0xf0   : > { %10194 = vmatpush1.bf16.msra.mxu0 %v14967_v31  ;;  %11219 = vmatpush1.bf16.msra.mxu1 %v14970_v32  ;;  %v15054_v31 = vld [vmem:[%s17715_s19 + $0x448] ss:$16 sps:$4 sm:$0xff]   ;;  %v15059_v32 = vld [vmem:[%s17715_s19 + $0x464] ss:$16 sps:$4 sm:$0xff]  }
  0xf1   : > { %10195 = vmatprep.subr.bf16.mxu0 %v14975_v33  ;;  %11220 = vmatprep.subr.bf16.mxu1 %v14978_v34  ;;  %v15062_v33 = vld [vmem:[%s17715_s19 + $0x46c] ss:$16 sps:$4 sm:$0xff]   ;;  %v15057_v34 = vld [vmem:[%s17715_s19 + $0x460] ss:$16 sps:$4 sm:$0xff]  }
  0xf4   : > { %10196 = vmatpush1.bf16.msra.mxu0 %v14973_v35  ;;  %11221 = vmatpush1.bf16.msra.mxu1 %v14976_v36  ;;  %v15060_v35 = vld [vmem:[%s17715_s19 + $0x468] ss:$16 sps:$4 sm:$0xff]   ;;  %v15065_v36 = vld [vmem:[%s17715_s19 + $0x484] ss:$16 sps:$4 sm:$0xff]  }
  0xf5   : > { %10197 = vmatprep.subr.bf16.mxu0 %v14981_v37  ;;  %11222 = vmatprep.subr.bf16.mxu1 %v14984_v38  ;;  %v15068_v37 = vld [vmem:[%s17715_s19 + $0x48c] ss:$16 sps:$4 sm:$0xff]   ;;  %v15063_v38 = vld [vmem:[%s17715_s19 + $0x480] ss:$16 sps:$4 sm:$0xff]  }
  0xf8   : > { %10198 = vmatpush1.bf16.msra.mxu0 %v14979_v39  ;;  %11223 = vmatpush1.bf16.msra.mxu1 %v14982_v40  ;;  %v15066_v39 = vld [vmem:[%s17715_s19 + $0x488] ss:$16 sps:$4 sm:$0xff]   ;;  %v15071_v40 = vld [vmem:[%s17715_s19 + $0x4a4] ss:$16 sps:$4 sm:$0xff]  }
  0xf9   : > { %10199 = vmatprep.subr.bf16.mxu0 %v14987_v41  ;;  %11224 = vmatprep.subr.bf16.mxu1 %v14990_v42  ;;  %v15074_v41 = vld [vmem:[%s17715_s19 + $0x4ac] ss:$16 sps:$4 sm:$0xff]   ;;  %v15069_v42 = vld [vmem:[%s17715_s19 + $0x4a0] ss:$16 sps:$4 sm:$0xff]  }
  0xfc   : > { %10200 = vmatpush1.bf16.msra.mxu0 %v14985_v43  ;;  %11225 = vmatpush1.bf16.msra.mxu1 %v14988_v45  ;;  %v15072_v43 = vld [vmem:[%s17715_s19 + $0x4a8] ss:$16 sps:$4 sm:$0xff]   ;;  %v15077_v45 = vld [vmem:[%s17715_s19 + $0x4c4] ss:$16 sps:$4 sm:$0xff]  }
  0xfd   : > { %10201 = vmatprep.subr.bf16.mxu0 %v14993_v46  ;;  %11226 = vmatprep.subr.bf16.mxu1 %v14996_v47  ;;  %v15080_v46 = vld [vmem:[%s17715_s19 + $0x4cc] ss:$16 sps:$4 sm:$0xff]   ;;  %v15075_v47 = vld [vmem:[%s17715_s19 + $0x4c0] ss:$16 sps:$4 sm:$0xff]  }
 0x100   : > { %10202 = vmatpush1.bf16.msra.mxu0 %v14991_v48  ;;  %11227 = vmatpush1.bf16.msra.mxu1 %v14994_v49  ;;  %v15078_v48 = vld [vmem:[%s17715_s19 + $0x4c8] ss:$16 sps:$4 sm:$0xff]   ;;  %v15083_v49 = vld [vmem:[%s17715_s19 + $0x4e4] ss:$16 sps:$4 sm:$0xff]  }
 0x101   : > { %10203 = vmatprep.subr.bf16.mxu0 %v14999_v51  ;;  %11228 = vmatprep.subr.bf16.mxu1 %v15002_v52  ;;  %v15086_v51 = vld [vmem:[%s17715_s19 + $0x4ec] ss:$16 sps:$4 sm:$0xff]   ;;  %v15081_v52 = vld [vmem:[%s17715_s19 + $0x4e0] ss:$16 sps:$4 sm:$0xff]  }
 0x104   : > { %10204 = vmatpush1.bf16.msra.mxu0 %v14997_v54  ;;  %11229 = vmatpush1.bf16.msra.mxu1 %v15000_v55  ;;  %v15084_v54 = vld [vmem:[%s17715_s19 + $0x4e8] ss:$16 sps:$4 sm:$0xff]   ;;  %v15089_v55 = vld [vmem:[%s17715_s19 + $0x504] ss:$16 sps:$4 sm:$0xff]  }
 0x105   : > { %10205 = vmatprep.subr.bf16.mxu0 %v15005_v56  ;;  %11230 = vmatprep.subr.bf16.mxu1 %v15008_v57  ;;  %v15092_v56 = vld [vmem:[%s17715_s19 + $0x50c] ss:$16 sps:$4 sm:$0xff]   ;;  %v15087_v57 = vld [vmem:[%s17715_s19 + $0x500] ss:$16 sps:$4 sm:$0xff]  }
 0x108   : > { %10206 = vmatpush1.bf16.msra.mxu0 %v15003_v58  ;;  %11231 = vmatpush1.bf16.msra.mxu1 %v15006_v59  ;;  %v15090_v58 = vld [vmem:[%s17715_s19 + $0x508] ss:$16 sps:$4 sm:$0xff]   ;;  %v15095_v59 = vld [vmem:[%s17715_s19 + $0x524] ss:$16 sps:$4 sm:$0xff]  }
 0x109   : > { %10207 = vmatprep.subr.bf16.mxu0 %v15011_v60  ;;  %11232 = vmatprep.subr.bf16.mxu1 %v15014_v61  ;;  %v15098_v60 = vld [vmem:[%s17715_s19 + $0x52c] ss:$16 sps:$4 sm:$0xff]   ;;  %v15093_v61 = vld [vmem:[%s17715_s19 + $0x520] ss:$16 sps:$4 sm:$0xff]  }
 0x10c   : > { %10208 = vmatpush1.bf16.msra.mxu0 %v15009_v62  ;;  %11233 = vmatpush1.bf16.msra.mxu1 %v15012_v63  ;;  %v15096_v62 = vld [vmem:[%s17715_s19 + $0x528] ss:$16 sps:$4 sm:$0xff]   ;;  %v15101_v63 = vld [vmem:[%s17715_s19 + $0x544] ss:$16 sps:$4 sm:$0xff]  }
 0x10d   : > { %10209 = vmatprep.subr.bf16.mxu0 %v15017_v0  ;;  %11234 = vmatprep.subr.bf16.mxu1 %v15020_v1  ;;  %v15104_v0 = vld [vmem:[%s17715_s19 + $0x54c] ss:$16 sps:$4 sm:$0xff]   ;;  %v15099_v1 = vld [vmem:[%s17715_s19 + $0x540] ss:$16 sps:$4 sm:$0xff]  }
 0x110   : > { %10210 = vmatpush1.bf16.msra.mxu0 %v15015_v2  ;;  %11235 = vmatpush1.bf16.msra.mxu1 %v15018_v3  ;;  %v15102_v2 = vld [vmem:[%s17715_s19 + $0x548] ss:$16 sps:$4 sm:$0xff]   ;;  %v15107_v3 = vld [vmem:[%s17715_s19 + $0x564] ss:$16 sps:$4 sm:$0xff]  }
 0x111   : > { %10211 = vmatprep.subr.bf16.mxu0 %v15023_v4  ;;  %11236 = vmatprep.subr.bf16.mxu1 %v15026_v5  ;;  %v15110_v4 = vld [vmem:[%s17715_s19 + $0x56c] ss:$16 sps:$4 sm:$0xff]   ;;  %v15105_v5 = vld [vmem:[%s17715_s19 + $0x560] ss:$16 sps:$4 sm:$0xff]  }
 0x114   : > { %10212 = vmatpush1.bf16.msra.mxu0 %v15021_v6  ;;  %11237 = vmatpush1.bf16.msra.mxu1 %v15024_v7  ;;  %v15108_v6 = vld [vmem:[%s17715_s19 + $0x568] ss:$16 sps:$4 sm:$0xff]   ;;  %v15113_v7 = vld [vmem:[%s17715_s19 + $0x584] ss:$16 sps:$4 sm:$0xff]  }
 0x115   : > { %10213 = vmatprep.subr.bf16.mxu0 %v15029_v8  ;;  %11238 = vmatprep.subr.bf16.mxu1 %v15032_v9  ;;  %v15116_v8 = vld [vmem:[%s17715_s19 + $0x58c] ss:$16 sps:$4 sm:$0xff]   ;;  %v15111_v9 = vld [vmem:[%s17715_s19 + $0x580] ss:$16 sps:$4 sm:$0xff]  }
 0x118   : > { %10214 = vmatpush1.bf16.msra.mxu0 %v15027_v11  ;;  %11239 = vmatpush1.bf16.msra.mxu1 %v15030_v12  ;;  %v15119_v11 = vld [vmem:[%s17715_s19 + $0x5a4] ss:$16 sps:$4 sm:$0xff]   ;;  %v15122_v12 = vld [vmem:[%s17715_s19 + $0x5ac] ss:$16 sps:$4 sm:$0xff]  }
 0x119   : > { %10215 = vmatprep.subr.bf16.mxu0 %v15035_v13  ;;  %11240 = vmatprep.subr.bf16.mxu1 %v15038_v15  ;;  %v15117_v13 = vld [vmem:[%s17715_s19 + $0x5a0] ss:$16 sps:$4 sm:$0xff]   ;;  %v15120_v15 = vld [vmem:[%s17715_s19 + $0x5a8] ss:$16 sps:$4 sm:$0xff]  }
 0x11c   : > { %10216 = vmatpush1.bf16.msra.mxu0 %v15033_v17  ;;  %11241 = vmatpush1.bf16.msra.mxu1 %v15036_v53  ;;  %v15125_v17 = vld [vmem:[%s17715_s19 + $0x5c4] ss:$16 sps:$4 sm:$0xff]   ;;  %v15128_v53 = vld [vmem:[%s17715_s19 + $0x5cc] ss:$16 sps:$4 sm:$0xff]  }
 0x11d   : > { %10226 = vmatprep.subr.bf16.mxu0 %v15041_v18  ;;  %11251 = vmatprep.subr.bf16.mxu1 %v15044_v19  ;;  %v15123_v18 = vld [vmem:[%s17715_s19 + $0x5c0] ss:$16 sps:$4 sm:$0xff]   ;;  %v15126_v19 = vld [vmem:[%s17715_s19 + $0x5c8] ss:$16 sps:$4 sm:$0xff]  }
 0x11f   : > { %10218 = vmatmul.mubr.bf16.vlgmr.msra.gmra.mrb[0].mxu0 %v1992_v22  ;;  %11243 = vmatmul.mubr.bf16.vlgmr.msra.gmra.mrb[0].mxu1 %v1992_v22  ;;  %v15129_v22 = vld [vmem:[%s17715_s19 + $0x5e0] ss:$16 sps:$4 sm:$0xff]  }
 0x120   : > { %10227 = vmatpush1.bf16.msra.mxu0 %v15039_v21  ;;  %11252 = vmatpush1.bf16.msra.mxu1 %v15042_v23  ;;  %v15134_v21 = vld [vmem:[%s17715_s19 + $0x5ec] ss:$16 sps:$4 sm:$0xff]   ;;  %v15132_v23 = vld [vmem:[%s17715_s19 + $0x5e8] ss:$16 sps:$4 sm:$0xff]  }
 0x121   : > { %10228 = vmatprep.subr.bf16.mxu0 %v15047_v24  ;;  %11253 = vmatprep.subr.bf16.mxu1 %v15050_v25  ;;  %v15138_v24 = vld [vmem:[%s17715_s19 + $0x604] ss:$16 sps:$4 sm:$0xff]   ;;  %v15141_v25 = vld [vmem:[%s17715_s19 + $0x60c] ss:$16 sps:$4 sm:$0xff]  }
 0x122   : > { %10258 = vmatprep.mubr.bf16.mxu0 %v17897_v26  ;;  %11283 = vmatprep.mubr.bf16.mxu1 %v17897_v26 }
 0x124   : > { %10229 = vmatpush1.bf16.msra.mxu0 %v15045_v27  ;;  %11254 = vmatpush1.bf16.msra.mxu1 %v15048_v14  ;;  %v15136_v27 = vld [vmem:[%s17715_s19 + $0x600] ss:$16 sps:$4 sm:$0xff]   ;;  %v17964_v14 = vrot.slane %v17882_v16, %v17784_v50 }
 0x125   : > { %10230 = vmatprep.subr.bf16.mxu0 %v15053_v28  ;;  %11255 = vmatprep.subr.bf16.mxu1 %v15056_v29  ;;  %v15139_v28 = vld [vmem:[%s17715_s19 + $0x608] ss:$16 sps:$4 sm:$0xff]   ;;  %v15144_v29 = vld [vmem:[%s17715_s19 + $0x624] ss:$16 sps:$4 sm:$0xff]   ;;  %v15142_v16 = vld [vmem:[%s17715_s19 + $0x620] ss:$16 sps:$4 sm:$0xff]  }
 0x128   : > { %10231 = vmatpush1.bf16.msra.mxu0 %v15051_v30  ;;  %11256 = vmatpush1.bf16.msra.mxu1 %v15054_v31  ;;  %v15147_v30 = vld [vmem:[%s17715_s19 + $0x62c] ss:$16 sps:$4 sm:$0xff]   ;;  %v1995_v31 = vcombine.high %v17897_v26, %v17897_v26  ;;  %v15148_v26 = vld [vmem:[%s17715_s19 + $0x640] ss:$16 sps:$4 sm:$0xff]  }
 0x129   : > { %10232 = vmatprep.subr.bf16.mxu0 %v15059_v32  ;;  %11257 = vmatprep.subr.bf16.mxu1 %v15062_v33  ;;  %v15145_v32 = vld [vmem:[%s17715_s19 + $0x628] ss:$16 sps:$4 sm:$0xff]   ;;  %v15150_v33 = vld [vmem:[%s17715_s19 + $0x644] ss:$16 sps:$4 sm:$0xff]  }
 0x12c   : > { %10233 = vmatpush1.bf16.msra.mxu0 %v15057_v34  ;;  %11258 = vmatpush1.bf16.msra.mxu1 %v15060_v35  ;;  %v15153_v34 = vld [vmem:[%s17715_s19 + $0x64c] ss:$16 sps:$4 sm:$0xff]   ;;  %v15151_v35 = vld [vmem:[%s17715_s19 + $0x648] ss:$16 sps:$4 sm:$0xff]  }
 0x12d   : > { %10234 = vmatprep.subr.bf16.mxu0 %v15065_v36  ;;  %11259 = vmatprep.subr.bf16.mxu1 %v15068_v37  ;;  %v15156_v36 = vld [vmem:[%s17715_s19 + $0x664] ss:$16 sps:$4 sm:$0xff]   ;;  %v15159_v37 = vld [vmem:[%s17715_s19 + $0x66c] ss:$16 sps:$4 sm:$0xff]  }
 0x130   : > { %10235 = vmatpush1.bf16.msra.mxu0 %v15063_v38  ;;  %11260 = vmatpush1.bf16.msra.mxu1 %v15066_v39  ;;  %v15154_v38 = vld [vmem:[%s17715_s19 + $0x660] ss:$16 sps:$4 sm:$0xff]   ;;  %v15157_v39 = vld [vmem:[%s17715_s19 + $0x668] ss:$16 sps:$4 sm:$0xff]  }
 0x131   : > { %10236 = vmatprep.subr.bf16.mxu0 %v15071_v40  ;;  %11261 = vmatprep.subr.bf16.mxu1 %v15074_v41  ;;  %v15162_v40 = vld [vmem:[%s17715_s19 + $0x684] ss:$16 sps:$4 sm:$0xff]   ;;  %v15165_v41 = vld [vmem:[%s17715_s19 + $0x68c] ss:$16 sps:$4 sm:$0xff]  }
 0x134   : > { %10237 = vmatpush1.bf16.msra.mxu0 %v15069_v42  ;;  %11262 = vmatpush1.bf16.msra.mxu1 %v15072_v43  ;;  %v15160_v42 = vld [vmem:[%s17715_s19 + $0x680] ss:$16 sps:$4 sm:$0xff]   ;;  %v15163_v43 = vld [vmem:[%s17715_s19 + $0x688] ss:$16 sps:$4 sm:$0xff]  }
 0x135   : > { %10238 = vmatprep.subr.bf16.mxu0 %v15077_v45  ;;  %11263 = vmatprep.subr.bf16.mxu1 %v15080_v46  ;;  %v15168_v45 = vld [vmem:[%s17715_s19 + $0x6a4] ss:$16 sps:$4 sm:$0xff]   ;;  %v15171_v46 = vld [vmem:[%s17715_s19 + $0x6ac] ss:$16 sps:$4 sm:$0xff]  }
 0x138   : > { %10239 = vmatpush1.bf16.msra.mxu0 %v15075_v47  ;;  %11264 = vmatpush1.bf16.msra.mxu1 %v15078_v48  ;;  %v15166_v47 = vld [vmem:[%s17715_s19 + $0x6a0] ss:$16 sps:$4 sm:$0xff]   ;;  %v15169_v48 = vld [vmem:[%s17715_s19 + $0x6a8] ss:$16 sps:$4 sm:$0xff]  }
 0x139   : > { %10240 = vmatprep.subr.bf16.mxu0 %v15083_v49  ;;  %11265 = vmatprep.subr.bf16.mxu1 %v15086_v51  ;;  %v15174_v49 = vld [vmem:[%s17715_s19 + $0x6c4] ss:$16 sps:$4 sm:$0xff]   ;;  %v15177_v51 = vld [vmem:[%s17715_s19 + $0x6cc] ss:$16 sps:$4 sm:$0xff]  }
 0x13c   : > { %10241 = vmatpush1.bf16.msra.mxu0 %v15081_v52  ;;  %11266 = vmatpush1.bf16.msra.mxu1 %v15084_v54  ;;  %v15172_v52 = vld [vmem:[%s17715_s19 + $0x6c0] ss:$16 sps:$4 sm:$0xff]   ;;  %v15175_v54 = vld [vmem:[%s17715_s19 + $0x6c8] ss:$16 sps:$4 sm:$0xff]  }
 0x13d   : > { %10242 = vmatprep.subr.bf16.mxu0 %v15089_v55  ;;  %11267 = vmatprep.subr.bf16.mxu1 %v15092_v56  ;;  %v15180_v55 = vld [vmem:[%s17715_s19 + $0x6e4] ss:$16 sps:$4 sm:$0xff]   ;;  %v15183_v56 = vld [vmem:[%s17715_s19 + $0x6ec] ss:$16 sps:$4 sm:$0xff]  }
 0x140   : > { %10243 = vmatpush1.bf16.msra.mxu0 %v15087_v57  ;;  %11268 = vmatpush1.bf16.msra.mxu1 %v15090_v58  ;;  %v15178_v57 = vld [vmem:[%s17715_s19 + $0x6e0] ss:$16 sps:$4 sm:$0xff]   ;;  %v15181_v58 = vld [vmem:[%s17715_s19 + $0x6e8] ss:$16 sps:$4 sm:$0xff]  }
 0x141   : > { %10244 = vmatprep.subr.bf16.mxu0 %v15095_v59  ;;  %11269 = vmatprep.subr.bf16.mxu1 %v15098_v60  ;;  %v15186_v59 = vld [vmem:[%s17715_s19 + $0x704] ss:$16 sps:$4 sm:$0xff]   ;;  %v15189_v60 = vld [vmem:[%s17715_s19 + $0x70c] ss:$16 sps:$4 sm:$0xff]  }
 0x144   : > { %10245 = vmatpush1.bf16.msra.mxu0 %v15093_v61  ;;  %11270 = vmatpush1.bf16.msra.mxu1 %v15096_v62  ;;  %v15184_v61 = vld [vmem:[%s17715_s19 + $0x700] ss:$16 sps:$4 sm:$0xff]   ;;  %v15187_v62 = vld [vmem:[%s17715_s19 + $0x708] ss:$16 sps:$4 sm:$0xff]  }
 0x145   : > { %10246 = vmatprep.subr.bf16.mxu0 %v15101_v63  ;;  %11271 = vmatprep.subr.bf16.mxu1 %v15104_v0  ;;  %v15192_v63 = vld [vmem:[%s17715_s19 + $0x724] ss:$16 sps:$4 sm:$0xff]   ;;  %v15195_v0 = vld [vmem:[%s17715_s19 + $0x72c] ss:$16 sps:$4 sm:$0xff]  }
 0x148   : > { %10247 = vmatpush1.bf16.msra.mxu0 %v15099_v1  ;;  %11272 = vmatpush1.bf16.msra.mxu1 %v15102_v2  ;;  %v15190_v1 = vld [vmem:[%s17715_s19 + $0x720] ss:$16 sps:$4 sm:$0xff]   ;;  %v15193_v2 = vld [vmem:[%s17715_s19 + $0x728] ss:$16 sps:$4 sm:$0xff]  }
 0x149   : > { %10248 = vmatprep.subr.bf16.mxu0 %v15107_v3  ;;  %11273 = vmatprep.subr.bf16.mxu1 %v15110_v4  ;;  %v15198_v3 = vld [vmem:[%s17715_s19 + $0x744] ss:$16 sps:$4 sm:$0xff]   ;;  %v15201_v4 = vld [vmem:[%s17715_s19 + $0x74c] ss:$16 sps:$4 sm:$0xff]  }
 0x14c   : > { %10249 = vmatpush1.bf16.msra.mxu0 %v15105_v5  ;;  %11274 = vmatpush1.bf16.msra.mxu1 %v15108_v6  ;;  %v15196_v5 = vld [vmem:[%s17715_s19 + $0x740] ss:$16 sps:$4 sm:$0xff]   ;;  %v15199_v6 = vld [vmem:[%s17715_s19 + $0x748] ss:$16 sps:$4 sm:$0xff]  }
 0x14d   : > { %10250 = vmatprep.subr.bf16.mxu0 %v15113_v7  ;;  %11275 = vmatprep.subr.bf16.mxu1 %v15116_v8  ;;  %v15204_v7 = vld [vmem:[%s17715_s19 + $0x764] ss:$16 sps:$4 sm:$0xff]   ;;  %v15207_v8 = vld [vmem:[%s17715_s19 + $0x76c] ss:$16 sps:$4 sm:$0xff]  }
 0x150   : > { %10251 = vmatpush1.bf16.msra.mxu0 %v15111_v9  ;;  %11276 = vmatpush1.bf16.msra.mxu1 %v15114_v10  ;;  %v15202_v9 = vld [vmem:[%s17715_s19 + $0x760] ss:$16 sps:$4 sm:$0xff]   ;;  %v15205_v10 = vld [vmem:[%s17715_s19 + $0x768] ss:$16 sps:$4 sm:$0xff]  }
 0x151   : > { %10252 = vmatprep.subr.bf16.mxu0 %v15119_v11  ;;  %11277 = vmatprep.subr.bf16.mxu1 %v15122_v12  ;;  %v15210_v11 = vld [vmem:[%s17715_s19 + $0x784] ss:$16 sps:$4 sm:$0xff]   ;;  %v15213_v12 = vld [vmem:[%s17715_s19 + $0x78c] ss:$16 sps:$4 sm:$0xff]  }
 0x154   : > { %10253 = vmatpush1.bf16.msra.mxu0 %v15117_v13  ;;  %11278 = vmatpush1.bf16.msra.mxu1 %v15120_v15  ;;  %v15208_v13 = vld [vmem:[%s17715_s19 + $0x780] ss:$16 sps:$4 sm:$0xff]   ;;  %v15211_v15 = vld [vmem:[%s17715_s19 + $0x788] ss:$16 sps:$4 sm:$0xff]  }
 0x155   : > { %10254 = vmatprep.subr.bf16.mxu0 %v15125_v17  ;;  %11279 = vmatprep.subr.bf16.mxu1 %v15128_v53  ;;  %v15216_v17 = vld [vmem:[%s17715_s19 + $0x7a4] ss:$16 sps:$4 sm:$0xff]   ;;  %v15219_v53 = vld [vmem:[%s17715_s19 + $0x7ac] ss:$16 sps:$4 sm:$0xff]  }
 0x158   : > { %10255 = vmatpush1.bf16.msra.mxu0 %v15123_v18  ;;  %11280 = vmatpush1.bf16.msra.mxu1 %v15126_v19  ;;  %v15214_v18 = vld [vmem:[%s17715_s19 + $0x7a0] ss:$16 sps:$4 sm:$0xff]   ;;  %v15217_v19 = vld [vmem:[%s17715_s19 + $0x7a8] ss:$16 sps:$4 sm:$0xff]  }
 0x159   : > { %10256 = vmatprep.subr.bf16.mxu0 %v15131_v20  ;;  %11281 = vmatprep.subr.bf16.mxu1 %v15134_v21  ;;  %v15222_v20 = vld [vmem:[%s17715_s19 + $0x7c4] ss:$16 sps:$4 sm:$0xff]   ;;  %v15225_v21 = vld [vmem:[%s17715_s19 + $0x7cc] ss:$16 sps:$4 sm:$0xff]  }
 0x15c   : > { %10257 = vmatpush1.bf16.msra.mxu0 %v15129_v22  ;;  %11282 = vmatpush1.bf16.msra.mxu1 %v15132_v23  ;;  %v18026_v22 = vld.sshfl [vmem:[%s17733_s29 + $0x8] sm:$0xff pattern:$0x75316420] }
 0x15d   : > { %10267 = vmatprep.subr.bf16.mxu0 %v15138_v24  ;;  %11292 = vmatprep.subr.bf16.mxu1 %v15141_v25  ;;  %v15220_v23 = vld [vmem:[%s17715_s19 + $0x7c0] ss:$16 sps:$4 sm:$0xff]   ;;  %v15223_v24 = vld [vmem:[%s17715_s19 + $0x7c8] ss:$16 sps:$4 sm:$0xff]   ;;  %v15228_v25 = vld [vmem:[%s17715_s19 + $0x7e4] ss:$16 sps:$4 sm:$0xff]  }
 0x15f   : > { %10259 = vmatmul.mubr.bf16.vlgmr.msra.gmra.mrb[0].mxu0 %v17964_v14  ;;  %11284 = vmatmul.mubr.bf16.vlgmr.msra.gmra.mrb[0].mxu1 %v17964_v14 }
 0x160   : > { %10268 = vmatpush1.bf16.msra.mxu0 %v15136_v27  ;;  %11293 = vmatpush1.bf16.msra.mxu1 %v15139_v28  ;;  %v15231_v27 = vld [vmem:[%s17715_s19 + $0x7ec] ss:$16 sps:$4 sm:$0xff]   ;;  %v15226_v28 = vld [vmem:[%s17715_s19 + $0x7e0] ss:$16 sps:$4 sm:$0xff]  }
 0x161   : > { %10269 = vmatprep.subr.bf16.mxu0 %v15144_v29  ;;  %11294 = vmatprep.subr.bf16.mxu1 %v15147_v30  ;;  %v15229_v29 = vld [vmem:[%s17715_s19 + $0x7e8] ss:$16 sps:$4 sm:$0xff]   ;;  %v15234_v30 = vld [vmem:[%s17715_s19 + $0x804] ss:$16 sps:$4 sm:$0xff]  }
 0x162   : > { %10299 = vmatprep.mubr.bf16.mxu0 %v1995_v31  ;;  %11324 = vmatprep.mubr.bf16.mxu1 %v1995_v31  ;;  %v15237_v31 = vld [vmem:[%s17715_s19 + $0x80c] ss:$16 sps:$4 sm:$0xff]  }
 0x164   : > { %10270 = vmatpush1.bf16.msra.mxu0 %v15142_v16  ;;  %11295 = vmatpush1.bf16.msra.mxu1 %v15145_v32  ;;  %v2011_v16 = vcombine.high %v18026_v22, %v18026_v22  ;;  %v1993_v32 = vcombine.high %v17964_v14, %v17964_v14  ;;  %v15238_v14 = vld [vmem:[%s17715_s19 + $0x820] ss:$16 sps:$4 sm:$0xff]  }
 0x165   : > { %10271 = vmatprep.subr.bf16.mxu0 %v15150_v33  ;;  %11296 = vmatprep.subr.bf16.mxu1 %v15153_v34  ;;  %v15232_v33 = vld [vmem:[%s17715_s19 + $0x800] ss:$16 sps:$4 sm:$0xff]   ;;  %v15235_v34 = vld [vmem:[%s17715_s19 + $0x808] ss:$16 sps:$4 sm:$0xff]  }
 0x168   : > { %10272 = vmatpush1.bf16.msra.mxu0 %v15148_v26  ;;  %11297 = vmatpush1.bf16.msra.mxu1 %v15151_v35  ;;  %v15240_v26 = vld [vmem:[%s17715_s19 + $0x824] ss:$16 sps:$4 sm:$0xff]   ;;  %v15243_v35 = vld [vmem:[%s17715_s19 + $0x82c] ss:$16 sps:$4 sm:$0xff]  }
 0x169   : > { %10273 = vmatprep.subr.bf16.mxu0 %v15156_v36  ;;  %11298 = vmatprep.subr.bf16.mxu1 %v15159_v37  ;;  %v18045_v36 = vrot.slane %v2011_v16, %v17784_v50  ;;  %v15241_v37 = vld [vmem:[%s17715_s19 + $0x828] ss:$16 sps:$4 sm:$0xff]   ;;  %v15324_v16 = vld [vmem:[%s17715_s19 + $0x9e4] ss:$16 sps:$4 sm:$0xff]  }
 0x16c   : > { %10274 = vmatpush1.bf16.msra.mxu0 %v15154_v38  ;;  %11299 = vmatpush1.bf16.msra.mxu1 %v15157_v39  ;;  %v15246_v38 = vld [vmem:[%s17715_s19 + $0x844] ss:$16 sps:$4 sm:$0xff]   ;;  %v15249_v39 = vld [vmem:[%s17715_s19 + $0x84c] ss:$16 sps:$4 sm:$0xff]  }
 0x16d   : > { %10275 = vmatprep.subr.bf16.mxu0 %v15162_v40  ;;  %11300 = vmatprep.subr.bf16.mxu1 %v15165_v41  ;;  %v15244_v40 = vld [vmem:[%s17715_s19 + $0x840] ss:$16 sps:$4 sm:$0xff]   ;;  %v15247_v41 = vld [vmem:[%s17715_s19 + $0x848] ss:$16 sps:$4 sm:$0xff]  }
 0x170   : > { %10276 = vmatpush1.bf16.msra.mxu0 %v15160_v42  ;;  %11301 = vmatpush1.bf16.msra.mxu1 %v15163_v43  ;;  %v15252_v42 = vld [vmem:[%s17715_s19 + $0x864] ss:$16 sps:$4 sm:$0xff]   ;;  %v15255_v43 = vld [vmem:[%s17715_s19 + $0x86c] ss:$16 sps:$4 sm:$0xff]  }
 0x171   : > { %10277 = vmatprep.subr.bf16.mxu0 %v15168_v45  ;;  %11302 = vmatprep.subr.bf16.mxu1 %v15171_v46  ;;  %v15250_v45 = vld [vmem:[%s17715_s19 + $0x860] ss:$16 sps:$4 sm:$0xff]   ;;  %v15253_v46 = vld [vmem:[%s17715_s19 + $0x868] ss:$16 sps:$4 sm:$0xff]  }
 0x174   : > { %10278 = vmatpush1.bf16.msra.mxu0 %v15166_v47  ;;  %11303 = vmatpush1.bf16.msra.mxu1 %v15169_v48  ;;  %v15258_v47 = vld [vmem:[%s17715_s19 + $0x884] ss:$16 sps:$4 sm:$0xff]   ;;  %v15261_v48 = vld [vmem:[%s17715_s19 + $0x88c] ss:$16 sps:$4 sm:$0xff]  }
 0x175   : > { %10279 = vmatprep.subr.bf16.mxu0 %v15174_v49  ;;  %11304 = vmatprep.subr.bf16.mxu1 %v15177_v51  ;;  %v15256_v49 = vld [vmem:[%s17715_s19 + $0x880] ss:$16 sps:$4 sm:$0xff]   ;;  %v15259_v51 = vld [vmem:[%s17715_s19 + $0x888] ss:$16 sps:$4 sm:$0xff]  }
 0x178   : > { %10280 = vmatpush1.bf16.msra.mxu0 %v15172_v52  ;;  %11305 = vmatpush1.bf16.msra.mxu1 %v15175_v54  ;;  %v15264_v52 = vld [vmem:[%s17715_s19 + $0x8a4] ss:$16 sps:$4 sm:$0xff]   ;;  %v15267_v54 = vld [vmem:[%s17715_s19 + $0x8ac] ss:$16 sps:$4 sm:$0xff]  }
 0x179   : > { %10281 = vmatprep.subr.bf16.mxu0 %v15180_v55  ;;  %11306 = vmatprep.subr.bf16.mxu1 %v15183_v56  ;;  %v15262_v55 = vld [vmem:[%s17715_s19 + $0x8a0] ss:$16 sps:$4 sm:$0xff]   ;;  %v15265_v56 = vld [vmem:[%s17715_s19 + $0x8a8] ss:$16 sps:$4 sm:$0xff]  }
 0x17c   : > { %10282 = vmatpush1.bf16.msra.mxu0 %v15178_v57  ;;  %11307 = vmatpush1.bf16.msra.mxu1 %v15181_v58  ;;  %v15270_v57 = vld [vmem:[%s17715_s19 + $0x8c4] ss:$16 sps:$4 sm:$0xff]   ;;  %v15273_v58 = vld [vmem:[%s17715_s19 + $0x8cc] ss:$16 sps:$4 sm:$0xff]  }
 0x17d   : > { %10283 = vmatprep.subr.bf16.mxu0 %v15186_v59  ;;  %11308 = vmatprep.subr.bf16.mxu1 %v15189_v60  ;;  %v15268_v59 = vld [vmem:[%s17715_s19 + $0x8c0] ss:$16 sps:$4 sm:$0xff]   ;;  %v15271_v60 = vld [vmem:[%s17715_s19 + $0x8c8] ss:$16 sps:$4 sm:$0xff]  }
 0x180   : > { %10284 = vmatpush1.bf16.msra.mxu0 %v15184_v61  ;;  %11309 = vmatpush1.bf16.msra.mxu1 %v15187_v62  ;;  %v15276_v61 = vld [vmem:[%s17715_s19 + $0x8e4] ss:$16 sps:$4 sm:$0xff]   ;;  %v15279_v62 = vld [vmem:[%s17715_s19 + $0x8ec] ss:$16 sps:$4 sm:$0xff]  }
 0x181   : > { %10285 = vmatprep.subr.bf16.mxu0 %v15192_v63  ;;  %11310 = vmatprep.subr.bf16.mxu1 %v15195_v0  ;;  %v15274_v63 = vld [vmem:[%s17715_s19 + $0x8e0] ss:$16 sps:$4 sm:$0xff]   ;;  %v15277_v0 = vld [vmem:[%s17715_s19 + $0x8e8] ss:$16 sps:$4 sm:$0xff]  }
 0x184   : > { %10286 = vmatpush1.bf16.msra.mxu0 %v15190_v1  ;;  %11311 = vmatpush1.bf16.msra.mxu1 %v15193_v2  ;;  %v15282_v1 = vld [vmem:[%s17715_s19 + $0x904] ss:$16 sps:$4 sm:$0xff]   ;;  %v15285_v2 = vld [vmem:[%s17715_s19 + $0x90c] ss:$16 sps:$4 sm:$0xff]  }
 0x185   : > { %10287 = vmatprep.subr.bf16.mxu0 %v15198_v3  ;;  %11312 = vmatprep.subr.bf16.mxu1 %v15201_v4  ;;  %v15280_v3 = vld [vmem:[%s17715_s19 + $0x900] ss:$16 sps:$4 sm:$0xff]   ;;  %v15283_v4 = vld [vmem:[%s17715_s19 + $0x908] ss:$16 sps:$4 sm:$0xff]  }
 0x188   : > { %10288 = vmatpush1.bf16.msra.mxu0 %v15196_v5  ;;  %11313 = vmatpush1.bf16.msra.mxu1 %v15199_v6  ;;  %v15288_v5 = vld [vmem:[%s17715_s19 + $0x924] ss:$16 sps:$4 sm:$0xff]   ;;  %v15291_v6 = vld [vmem:[%s17715_s19 + $0x92c] ss:$16 sps:$4 sm:$0xff]  }
 0x189   : > { %10289 = vmatprep.subr.bf16.mxu0 %v15204_v7  ;;  %11314 = vmatprep.subr.bf16.mxu1 %v15207_v8  ;;  %v15286_v7 = vld [vmem:[%s17715_s19 + $0x920] ss:$16 sps:$4 sm:$0xff]   ;;  %v15289_v8 = vld [vmem:[%s17715_s19 + $0x928] ss:$16 sps:$4 sm:$0xff]  }
 0x18c   : > { %10290 = vmatpush1.bf16.msra.mxu0 %v15202_v9  ;;  %11315 = vmatpush1.bf16.msra.mxu1 %v15205_v10  ;;  %v15294_v9 = vld [vmem:[%s17715_s19 + $0x944] ss:$16 sps:$4 sm:$0xff]   ;;  %v15297_v10 = vld [vmem:[%s17715_s19 + $0x94c] ss:$16 sps:$4 sm:$0xff]  }
 0x18d   : > { %10291 = vmatprep.subr.bf16.mxu0 %v15210_v11  ;;  %11316 = vmatprep.subr.bf16.mxu1 %v15213_v12  ;;  %v15292_v11 = vld [vmem:[%s17715_s19 + $0x940] ss:$16 sps:$4 sm:$0xff]   ;;  %v15295_v12 = vld [vmem:[%s17715_s19 + $0x948] ss:$16 sps:$4 sm:$0xff]  }
 0x190   : > { %10292 = vmatpush1.bf16.msra.mxu0 %v15208_v13  ;;  %11317 = vmatpush1.bf16.msra.mxu1 %v15211_v15  ;;  %v15300_v13 = vld [vmem:[%s17715_s19 + $0x964] ss:$16 sps:$4 sm:$0xff]   ;;  %v15303_v15 = vld [vmem:[%s17715_s19 + $0x96c] ss:$16 sps:$4 sm:$0xff]  }
 0x191   : > { %10293 = vmatprep.subr.bf16.mxu0 %v15216_v17  ;;  %11318 = vmatprep.subr.bf16.mxu1 %v15219_v53  ;;  %v15298_v17 = vld [vmem:[%s17715_s19 + $0x960] ss:$16 sps:$4 sm:$0xff]   ;;  %v15301_v53 = vld [vmem:[%s17715_s19 + $0x968] ss:$16 sps:$4 sm:$0xff]  }
 0x194   : > { %10294 = vmatpush1.bf16.msra.mxu0 %v15214_v18  ;;  %11319 = vmatpush1.bf16.msra.mxu1 %v15217_v19  ;;  %v15306_v18 = vld [vmem:[%s17715_s19 + $0x984] ss:$16 sps:$4 sm:$0xff]   ;;  %v15309_v19 = vld [vmem:[%s17715_s19 + $0x98c] ss:$16 sps:$4 sm:$0xff]  }
 0x195   : > { %10295 = vmatprep.subr.bf16.mxu0 %v15222_v20  ;;  %11320 = vmatprep.subr.bf16.mxu1 %v15225_v21  ;;  %v15304_v20 = vld [vmem:[%s17715_s19 + $0x980] ss:$16 sps:$4 sm:$0xff]   ;;  %v15307_v21 = vld [vmem:[%s17715_s19 + $0x988] ss:$16 sps:$4 sm:$0xff]  }
 0x198   : > { %10296 = vmatpush1.bf16.msra.mxu0 %v15220_v23  ;;  %11321 = vmatpush1.bf16.msra.mxu1 %v15223_v24  ;;  %v15312_v23 = vld [vmem:[%s17715_s19 + $0x9a4] ss:$16 sps:$4 sm:$0xff]   ;;  %v15315_v24 = vld [vmem:[%s17715_s19 + $0x9ac] ss:$16 sps:$4 sm:$0xff]  }
 0x199   : > { %10297 = vmatprep.subr.bf16.mxu0 %v15228_v25  ;;  %11322 = vmatprep.subr.bf16.mxu1 %v15231_v27  ;;  %v15310_v25 = vld [vmem:[%s17715_s19 + $0x9a0] ss:$16 sps:$4 sm:$0xff]   ;;  %v15313_v27 = vld [vmem:[%s17715_s19 + $0x9a8] ss:$16 sps:$4 sm:$0xff]  }
 0x19c   : > { %10298 = vmatpush1.bf16.msra.mxu0 %v15226_v28  ;;  %11323 = vmatpush1.bf16.msra.mxu1 %v15229_v29  ;;  %v15318_v28 = vld [vmem:[%s17715_s19 + $0x9c4] ss:$16 sps:$4 sm:$0xff]   ;;  %v15321_v29 = vld [vmem:[%s17715_s19 + $0x9cc] ss:$16 sps:$4 sm:$0xff]  }
 0x19d   : > { %10308 = vmatprep.subr.bf16.mxu0 %v15234_v30  ;;  %11333 = vmatprep.subr.bf16.mxu1 %v15237_v31  ;;  %v15316_v30 = vld [vmem:[%s17715_s19 + $0x9c0] ss:$16 sps:$4 sm:$0xff]   ;;  %v15319_v31 = vld [vmem:[%s17715_s19 + $0x9c8] ss:$16 sps:$4 sm:$0xff]  }
 0x19f   : > { %10300 = vmatmul.mubr.bf16.vlgmr.msra.gmra.mrb[0].mxu0 %v1993_v32  ;;  %11325 = vmatmul.mubr.bf16.vlgmr.msra.gmra.mrb[0].mxu1 %v1993_v32  ;;  %v15327_v32 = vld [vmem:[%s17715_s19 + $0x9ec] ss:$16 sps:$4 sm:$0xff]  }
 0x1a0   : > { %10309 = vmatpush1.bf16.msra.mxu0 %v15232_v33  ;;  %11334 = vmatpush1.bf16.msra.mxu1 %v15235_v34  ;;  %v15322_v33 = vld [vmem:[%s17715_s19 + $0x9e0] ss:$16 sps:$4 sm:$0xff]   ;;  %v15325_v34 = vld [vmem:[%s17715_s19 + $0x9e8] ss:$16 sps:$4 sm:$0xff]  }
 0x1a1   : > { %10310 = vmatprep.subr.bf16.mxu0 %v15240_v26  ;;  %11335 = vmatprep.subr.bf16.mxu1 %v15243_v35  ;;  %v15330_v26 = vld [vmem:[%s17715_s19 + $0xa04] ss:$16 sps:$4 sm:$0xff]   ;;  %v15333_v35 = vld [vmem:[%s17715_s19 + $0xa0c] ss:$16 sps:$4 sm:$0xff]  }
 0x1a2   : > { %10340 = vmatprep.mubr.bf16.mxu0 %v18045_v36  ;;  %11365 = vmatprep.mubr.bf16.mxu1 %v18045_v36 }
 0x1a4   : > { %10311 = vmatpush1.bf16.msra.mxu0 %v15238_v14  ;;  %11336 = vmatpush1.bf16.msra.mxu1 %v15241_v37  ;;  %v18111_v14 = vrot.slane %v18026_v22, %v17784_v50  ;;  %v15328_v37 = vld [vmem:[%s17715_s19 + $0xa00] ss:$16 sps:$4 sm:$0xff]  }
 0x1a5   : > { %10312 = vmatprep.subr.bf16.mxu0 %v15246_v38  ;;  %11337 = vmatprep.subr.bf16.mxu1 %v15249_v39  ;;  %v15331_v38 = vld [vmem:[%s17715_s19 + $0xa08] ss:$16 sps:$4 sm:$0xff]   ;;  %v15336_v39 = vld [vmem:[%s17715_s19 + $0xa24] ss:$16 sps:$4 sm:$0xff]   ;;  %v15334_v22 = vld [vmem:[%s17715_s19 + $0xa20] ss:$16 sps:$4 sm:$0xff]  }
 0x1a8   : > { %10313 = vmatpush1.bf16.msra.mxu0 %v15244_v40  ;;  %11338 = vmatpush1.bf16.msra.mxu1 %v15247_v41  ;;  %v15339_v40 = vld [vmem:[%s17715_s19 + $0xa2c] ss:$16 sps:$4 sm:$0xff]   ;;  %v2043_v41 = vcombine.high %v18045_v36, %v18045_v36  ;;  %v15340_v36 = vld [vmem:[%s17715_s19 + $0xa40] ss:$16 sps:$4 sm:$0xff]  }
 0x1a9   : > { %10314 = vmatprep.subr.bf16.mxu0 %v15252_v42  ;;  %11339 = vmatprep.subr.bf16.mxu1 %v15255_v43  ;;  %v15337_v42 = vld [vmem:[%s17715_s19 + $0xa28] ss:$16 sps:$4 sm:$0xff]   ;;  %v15342_v43 = vld [vmem:[%s17715_s19 + $0xa44] ss:$16 sps:$4 sm:$0xff]  }
 0x1ac   : > { %10315 = vmatpush1.bf16.msra.mxu0 %v15250_v45  ;;  %11340 = vmatpush1.bf16.msra.mxu1 %v15253_v46  ;;  %v15345_v45 = vld [vmem:[%s17715_s19 + $0xa4c] ss:$16 sps:$4 sm:$0xff]   ;;  %v15343_v46 = vld [vmem:[%s17715_s19 + $0xa48] ss:$16 sps:$4 sm:$0xff]  }
 0x1ad   : > { %10316 = vmatprep.subr.bf16.mxu0 %v15258_v47  ;;  %11341 = vmatprep.subr.bf16.mxu1 %v15261_v48  ;;  %v15348_v47 = vld [vmem:[%s17715_s19 + $0xa64] ss:$16 sps:$4 sm:$0xff]   ;;  %v15351_v48 = vld [vmem:[%s17715_s19 + $0xa6c] ss:$16 sps:$4 sm:$0xff]  }
 0x1b0   : > { %10317 = vmatpush1.bf16.msra.mxu0 %v15256_v49  ;;  %11342 = vmatpush1.bf16.msra.mxu1 %v15259_v51  ;;  %v15346_v49 = vld [vmem:[%s17715_s19 + $0xa60] ss:$16 sps:$4 sm:$0xff]   ;;  %v15349_v51 = vld [vmem:[%s17715_s19 + $0xa68] ss:$16 sps:$4 sm:$0xff]  }
 0x1b1   : > { %10318 = vmatprep.subr.bf16.mxu0 %v15264_v52  ;;  %11343 = vmatprep.subr.bf16.mxu1 %v15267_v54  ;;  %v15354_v52 = vld [vmem:[%s17715_s19 + $0xa84] ss:$16 sps:$4 sm:$0xff]   ;;  %v15357_v54 = vld [vmem:[%s17715_s19 + $0xa8c] ss:$16 sps:$4 sm:$0xff]  }
 0x1b4   : > { %10319 = vmatpush1.bf16.msra.mxu0 %v15262_v55  ;;  %11344 = vmatpush1.bf16.msra.mxu1 %v15265_v56  ;;  %v15352_v55 = vld [vmem:[%s17715_s19 + $0xa80] ss:$16 sps:$4 sm:$0xff]   ;;  %v15355_v56 = vld [vmem:[%s17715_s19 + $0xa88] ss:$16 sps:$4 sm:$0xff]  }
 0x1b5   : > { %10320 = vmatprep.subr.bf16.mxu0 %v15270_v57  ;;  %11345 = vmatprep.subr.bf16.mxu1 %v15273_v58  ;;  %v15360_v57 = vld [vmem:[%s17715_s19 + $0xaa4] ss:$16 sps:$4 sm:$0xff]   ;;  %v15363_v58 = vld [vmem:[%s17715_s19 + $0xaac] ss:$16 sps:$4 sm:$0xff]  }
 0x1b8   : > { %10321 = vmatpush1.bf16.msra.mxu0 %v15268_v59  ;;  %11346 = vmatpush1.bf16.msra.mxu1 %v15271_v60  ;;  %v15358_v59 = vld [vmem:[%s17715_s19 + $0xaa0] ss:$16 sps:$4 sm:$0xff]   ;;  %v15361_v60 = vld [vmem:[%s17715_s19 + $0xaa8] ss:$16 sps:$4 sm:$0xff]  }
 0x1b9   : > { %10322 = vmatprep.subr.bf16.mxu0 %v15276_v61  ;;  %11347 = vmatprep.subr.bf16.mxu1 %v15279_v62  ;;  %v15366_v61 = vld [vmem:[%s17715_s19 + $0xac4] ss:$16 sps:$4 sm:$0xff]   ;;  %v15369_v62 = vld [vmem:[%s17715_s19 + $0xacc] ss:$16 sps:$4 sm:$0xff]  }
 0x1bc   : > { %10323 = vmatpush1.bf16.msra.mxu0 %v15274_v63  ;;  %11348 = vmatpush1.bf16.msra.mxu1 %v15277_v0  ;;  %v15364_v63 = vld [vmem:[%s17715_s19 + $0xac0] ss:$16 sps:$4 sm:$0xff]   ;;  %v15367_v0 = vld [vmem:[%s17715_s19 + $0xac8] ss:$16 sps:$4 sm:$0xff]  }
 0x1bd   : > { %10324 = vmatprep.subr.bf16.mxu0 %v15282_v1  ;;  %11349 = vmatprep.subr.bf16.mxu1 %v15285_v2  ;;  %v15372_v1 = vld [vmem:[%s17715_s19 + $0xae4] ss:$16 sps:$4 sm:$0xff]   ;;  %v15375_v2 = vld [vmem:[%s17715_s19 + $0xaec] ss:$16 sps:$4 sm:$0xff]  }
 0x1c0   : > { %10325 = vmatpush1.bf16.msra.mxu0 %v15280_v3  ;;  %11350 = vmatpush1.bf16.msra.mxu1 %v15283_v4  ;;  %v15370_v3 = vld [vmem:[%s17715_s19 + $0xae0] ss:$16 sps:$4 sm:$0xff]   ;;  %v15373_v4 = vld [vmem:[%s17715_s19 + $0xae8] ss:$16 sps:$4 sm:$0xff]  }
 0x1c1   : > { %10326 = vmatprep.subr.bf16.mxu0 %v15288_v5  ;;  %11351 = vmatprep.subr.bf16.mxu1 %v15291_v6  ;;  %v15378_v5 = vld [vmem:[%s17715_s19 + $0xb04] ss:$16 sps:$4 sm:$0xff]   ;;  %v15381_v6 = vld [vmem:[%s17715_s19 + $0xb0c] ss:$16 sps:$4 sm:$0xff]  }
 0x1c4   : > { %10327 = vmatpush1.bf16.msra.mxu0 %v15286_v7  ;;  %11352 = vmatpush1.bf16.msra.mxu1 %v15289_v8  ;;  %v15376_v7 = vld [vmem:[%s17715_s19 + $0xb00] ss:$16 sps:$4 sm:$0xff]   ;;  %v15379_v8 = vld [vmem:[%s17715_s19 + $0xb08] ss:$16 sps:$4 sm:$0xff]  }
 0x1c5   : > { %10328 = vmatprep.subr.bf16.mxu0 %v15294_v9  ;;  %11353 = vmatprep.subr.bf16.mxu1 %v15297_v10  ;;  %v15384_v9 = vld [vmem:[%s17715_s19 + $0xb24] ss:$16 sps:$4 sm:$0xff]   ;;  %v15387_v10 = vld [vmem:[%s17715_s19 + $0xb2c] ss:$16 sps:$4 sm:$0xff]  }
 0x1c8   : > { %10329 = vmatpush1.bf16.msra.mxu0 %v15292_v11  ;;  %11354 = vmatpush1.bf16.msra.mxu1 %v15295_v12  ;;  %v15382_v11 = vld [vmem:[%s17715_s19 + $0xb20] ss:$16 sps:$4 sm:$0xff]   ;;  %v15385_v12 = vld [vmem:[%s17715_s19 + $0xb28] ss:$16 sps:$4 sm:$0xff]  }
 0x1c9   : > { %10330 = vmatprep.subr.bf16.mxu0 %v15300_v13  ;;  %11355 = vmatprep.subr.bf16.mxu1 %v15303_v15  ;;  %v15390_v13 = vld [vmem:[%s17715_s19 + $0xb44] ss:$16 sps:$4 sm:$0xff]   ;;  %v15393_v15 = vld [vmem:[%s17715_s19 + $0xb4c] ss:$16 sps:$4 sm:$0xff]  }
 0x1cc   : > { %10331 = vmatpush1.bf16.msra.mxu0 %v15298_v17  ;;  %11356 = vmatpush1.bf16.msra.mxu1 %v15301_v53  ;;  %v15388_v17 = vld [vmem:[%s17715_s19 + $0xb40] ss:$16 sps:$4 sm:$0xff]   ;;  %v15391_v53 = vld [vmem:[%s17715_s19 + $0xb48] ss:$16 sps:$4 sm:$0xff]  }
 0x1cd   : > { %10332 = vmatprep.subr.bf16.mxu0 %v15306_v18  ;;  %11357 = vmatprep.subr.bf16.mxu1 %v15309_v19  ;;  %v15396_v18 = vld [vmem:[%s17715_s19 + $0xb64] ss:$16 sps:$4 sm:$0xff]   ;;  %v15399_v19 = vld [vmem:[%s17715_s19 + $0xb6c] ss:$16 sps:$4 sm:$0xff]  }
 0x1d0   : > { %10333 = vmatpush1.bf16.msra.mxu0 %v15304_v20  ;;  %11358 = vmatpush1.bf16.msra.mxu1 %v15307_v21  ;;  %v15394_v20 = vld [vmem:[%s17715_s19 + $0xb60] ss:$16 sps:$4 sm:$0xff]   ;;  %v15397_v21 = vld [vmem:[%s17715_s19 + $0xb68] ss:$16 sps:$4 sm:$0xff]  }
 0x1d1   : > { %10334 = vmatprep.subr.bf16.mxu0 %v15312_v23  ;;  %11359 = vmatprep.subr.bf16.mxu1 %v15315_v24  ;;  %v15402_v23 = vld [vmem:[%s17715_s19 + $0xb84] ss:$16 sps:$4 sm:$0xff]   ;;  %v15405_v24 = vld [vmem:[%s17715_s19 + $0xb8c] ss:$16 sps:$4 sm:$0xff]  }
 0x1d4   : > { %10335 = vmatpush1.bf16.msra.mxu0 %v15310_v25  ;;  %11360 = vmatpush1.bf16.msra.mxu1 %v15313_v27  ;;  %v15400_v25 = vld [vmem:[%s17715_s19 + $0xb80] ss:$16 sps:$4 sm:$0xff]   ;;  %v15403_v27 = vld [vmem:[%s17715_s19 + $0xb88] ss:$16 sps:$4 sm:$0xff]  }
 0x1d5   : > { %10336 = vmatprep.subr.bf16.mxu0 %v15318_v28  ;;  %11361 = vmatprep.subr.bf16.mxu1 %v15321_v29  ;;  %v15408_v28 = vld [vmem:[%s17715_s19 + $0xba4] ss:$16 sps:$4 sm:$0xff]   ;;  %v15411_v29 = vld [vmem:[%s17715_s19 + $0xbac] ss:$16 sps:$4 sm:$0xff]  }
 0x1d8   : > { %10337 = vmatpush1.bf16.msra.mxu0 %v15316_v30  ;;  %11362 = vmatpush1.bf16.msra.mxu1 %v15319_v31  ;;  %v15406_v30 = vld [vmem:[%s17715_s19 + $0xba0] ss:$16 sps:$4 sm:$0xff]   ;;  %v15409_v31 = vld [vmem:[%s17715_s19 + $0xba8] ss:$16 sps:$4 sm:$0xff]  }
 0x1d9   : > { %10338 = vmatprep.subr.bf16.mxu0 %v15324_v16  ;;  %11363 = vmatprep.subr.bf16.mxu1 %v15327_v32  ;;  %v15414_v16 = vld [vmem:[%s17715_s19 + $0xbc4] ss:$16 sps:$4 sm:$0xff]   ;;  %v15417_v32 = vld [vmem:[%s17715_s19 + $0xbcc] ss:$16 sps:$4 sm:$0xff]  }
 0x1dc   : > { %10339 = vmatpush1.bf16.msra.mxu0 %v15322_v33  ;;  %11364 = vmatpush1.bf16.msra.mxu1 %v15325_v34  ;;  %v17205_v33 = vld [vmem:[%s17733_s29 + $0x8] sm:$0xff] }
 0x1dd   : > { %10349 = vmatprep.subr.bf16.mxu0 %v15330_v26  ;;  %11374 = vmatprep.subr.bf16.mxu1 %v15333_v35  ;;  %v1996_v34 = vcombine.high %v17205_v33, %v17205_v33  ;;  %v15412_v26 = vld [vmem:[%s17715_s19 + $0xbc0] ss:$16 sps:$4 sm:$0xff]   ;;  %v15415_v35 = vld [vmem:[%s17715_s19 + $0xbc8] ss:$16 sps:$4 sm:$0xff]  }
 0x1de   : > { %v15496_v33 = vld [vmem:[%s17715_s19 + $0xd80] ss:$16 sps:$4 sm:$0xff]  }
 0x1df   : > { %10341 = vmatmul.mubr.bf16.vlgmr.msra.gmra.mrb[0].mxu0 %v18111_v14  ;;  %11366 = vmatmul.mubr.bf16.vlgmr.msra.gmra.mrb[0].mxu1 %v18111_v14 }
 0x1e0   : > { %10350 = vmatpush1.bf16.msra.mxu0 %v15328_v37  ;;  %11375 = vmatpush1.bf16.msra.mxu1 %v15331_v38  ;;  %v15420_v37 = vld [vmem:[%s17715_s19 + $0xbe4] ss:$16 sps:$4 sm:$0xff]   ;;  %v15423_v38 = vld [vmem:[%s17715_s19 + $0xbec] ss:$16 sps:$4 sm:$0xff]  }
 0x1e1   : > { %10351 = vmatprep.subr.bf16.mxu0 %v15336_v39  ;;  %11376 = vmatprep.subr.bf16.mxu1 %v15339_v40  ;;  %v18179_v39 = vrot.slane %v1996_v34, %v17784_v50  ;;  %v15418_v40 = vld [vmem:[%s17715_s19 + $0xbe0] ss:$16 sps:$4 sm:$0xff]   ;;  %v15499_v34 = vld [vmem:[%s17715_s19 + $0xd88] ss:$16 sps:$4 sm:$0xff]  }
 0x1e2   : > { %10381 = vmatprep.mubr.bf16.mxu0 %v2043_v41  ;;  %11406 = vmatprep.mubr.bf16.mxu1 %v2043_v41  ;;  %v15421_v41 = vld [vmem:[%s17715_s19 + $0xbe8] ss:$16 sps:$4 sm:$0xff]  }
 0x1e4   : > { %10352 = vmatpush1.bf16.msra.mxu0 %v15334_v22  ;;  %11377 = vmatpush1.bf16.msra.mxu1 %v15337_v42  ;;  %v15426_v22 = vld [vmem:[%s17715_s19 + $0xc04] ss:$16 sps:$4 sm:$0xff]   ;;  %v15429_v42 = vld [vmem:[%s17715_s19 + $0xc0c] ss:$16 sps:$4 sm:$0xff]  }
 0x1e5   : > { %10353 = vmatprep.subr.bf16.mxu0 %v15342_v43  ;;  %11378 = vmatprep.subr.bf16.mxu1 %v15345_v45  ;;  %v2012_v43 = vcombine.high %v18179_v39, %v18179_v39  ;;  %v2041_v45 = vcombine.high %v18111_v14, %v18111_v14  ;;  %v15430_v14 = vld [vmem:[%s17715_s19 + $0xc20] ss:$16 sps:$4 sm:$0xff]  }
 0x1e8   : > { %10354 = vmatpush1.bf16.msra.mxu0 %v15340_v36  ;;  %11379 = vmatpush1.bf16.msra.mxu1 %v15343_v46  ;;  %v15424_v36 = vld [vmem:[%s17715_s19 + $0xc00] ss:$16 sps:$4 sm:$0xff]   ;;  %v15427_v46 = vld [vmem:[%s17715_s19 + $0xc08] ss:$16 sps:$4 sm:$0xff]  }
 0x1e9   : > { %10355 = vmatprep.subr.bf16.mxu0 %v15348_v47  ;;  %11380 = vmatprep.subr.bf16.mxu1 %v15351_v48  ;;  %v15432_v47 = vld [vmem:[%s17715_s19 + $0xc24] ss:$16 sps:$4 sm:$0xff]   ;;  %v15435_v48 = vld [vmem:[%s17715_s19 + $0xc2c] ss:$16 sps:$4 sm:$0xff]  }
 0x1ec   : > { %10356 = vmatpush1.bf16.msra.mxu0 %v15346_v49  ;;  %11381 = vmatpush1.bf16.msra.mxu1 %v15349_v51  ;;  %v18194_v49 = vrot.slane %v2012_v43, %v17784_v50  ;;  %v15433_v51 = vld [vmem:[%s17715_s19 + $0xc28] ss:$16 sps:$4 sm:$0xff]   ;;  %v15516_v43 = vld [vmem:[%s17715_s19 + $0xde4] ss:$16 sps:$4 sm:$0xff]  }
 0x1ed   : > { %10357 = vmatprep.subr.bf16.mxu0 %v15354_v52  ;;  %11382 = vmatprep.subr.bf16.mxu1 %v15357_v54  ;;  %v15438_v52 = vld [vmem:[%s17715_s19 + $0xc44] ss:$16 sps:$4 sm:$0xff]   ;;  %v15441_v54 = vld [vmem:[%s17715_s19 + $0xc4c] ss:$16 sps:$4 sm:$0xff]  }
 0x1f0   : > { %10358 = vmatpush1.bf16.msra.mxu0 %v15352_v55  ;;  %11383 = vmatpush1.bf16.msra.mxu1 %v15355_v56  ;;  %v15436_v55 = vld [vmem:[%s17715_s19 + $0xc40] ss:$16 sps:$4 sm:$0xff]   ;;  %v15439_v56 = vld [vmem:[%s17715_s19 + $0xc48] ss:$16 sps:$4 sm:$0xff]  }
 0x1f1   : > { %10359 = vmatprep.subr.bf16.mxu0 %v15360_v57  ;;  %11384 = vmatprep.subr.bf16.mxu1 %v15363_v58  ;;  %v15444_v57 = vld [vmem:[%s17715_s19 + $0xc64] ss:$16 sps:$4 sm:$0xff]   ;;  %v15447_v58 = vld [vmem:[%s17715_s19 + $0xc6c] ss:$16 sps:$4 sm:$0xff]  }
 0x1f4   : > { %10360 = vmatpush1.bf16.msra.mxu0 %v15358_v59  ;;  %11385 = vmatpush1.bf16.msra.mxu1 %v15361_v60  ;;  %v15442_v59 = vld [vmem:[%s17715_s19 + $0xc60] ss:$16 sps:$4 sm:$0xff]   ;;  %v15445_v60 = vld [vmem:[%s17715_s19 + $0xc68] ss:$16 sps:$4 sm:$0xff]  }
 0x1f5   : > { %10361 = vmatprep.subr.bf16.mxu0 %v15366_v61  ;;  %11386 = vmatprep.subr.bf16.mxu1 %v15369_v62  ;;  %v15450_v61 = vld [vmem:[%s17715_s19 + $0xc84] ss:$16 sps:$4 sm:$0xff]   ;;  %v15453_v62 = vld [vmem:[%s17715_s19 + $0xc8c] ss:$16 sps:$4 sm:$0xff]  }
 0x1f8   : > { %10362 = vmatpush1.bf16.msra.mxu0 %v15364_v63  ;;  %11387 = vmatpush1.bf16.msra.mxu1 %v15367_v0  ;;  %v15448_v63 = vld [vmem:[%s17715_s19 + $0xc80] ss:$16 sps:$4 sm:$0xff]   ;;  %v15451_v0 = vld [vmem:[%s17715_s19 + $0xc88] ss:$16 sps:$4 sm:$0xff]  }
 0x1f9   : > { %10363 = vmatprep.subr.bf16.mxu0 %v15372_v1  ;;  %11388 = vmatprep.subr.bf16.mxu1 %v15375_v2  ;;  %v15456_v1 = vld [vmem:[%s17715_s19 + $0xca4] ss:$16 sps:$4 sm:$0xff]   ;;  %v15459_v2 = vld [vmem:[%s17715_s19 + $0xcac] ss:$16 sps:$4 sm:$0xff]  }
 0x1fc   : > { %10364 = vmatpush1.bf16.msra.mxu0 %v15370_v3  ;;  %11389 = vmatpush1.bf16.msra.mxu1 %v15373_v4  ;;  %v15454_v3 = vld [vmem:[%s17715_s19 + $0xca0] ss:$16 sps:$4 sm:$0xff]   ;;  %v15457_v4 = vld [vmem:[%s17715_s19 + $0xca8] ss:$16 sps:$4 sm:$0xff]  }
 0x1fd   : > { %10365 = vmatprep.subr.bf16.mxu0 %v15378_v5  ;;  %11390 = vmatprep.subr.bf16.mxu1 %v15381_v6  ;;  %v15462_v5 = vld [vmem:[%s17715_s19 + $0xcc4] ss:$16 sps:$4 sm:$0xff]   ;;  %v15465_v6 = vld [vmem:[%s17715_s19 + $0xccc] ss:$16 sps:$4 sm:$0xff]  }
 0x200   : > { %10366 = vmatpush1.bf16.msra.mxu0 %v15376_v7  ;;  %11391 = vmatpush1.bf16.msra.mxu1 %v15379_v8  ;;  %v15460_v7 = vld [vmem:[%s17715_s19 + $0xcc0] ss:$16 sps:$4 sm:$0xff]   ;;  %v15463_v8 = vld [vmem:[%s17715_s19 + $0xcc8] ss:$16 sps:$4 sm:$0xff]  }
 0x201   : > { %10367 = vmatprep.subr.bf16.mxu0 %v15384_v9  ;;  %11392 = vmatprep.subr.bf16.mxu1 %v15387_v10  ;;  %v15468_v9 = vld [vmem:[%s17715_s19 + $0xce4] ss:$16 sps:$4 sm:$0xff]   ;;  %v15471_v10 = vld [vmem:[%s17715_s19 + $0xcec] ss:$16 sps:$4 sm:$0xff]  }
 0x204   : > { %10368 = vmatpush1.bf16.msra.mxu0 %v15382_v11  ;;  %11393 = vmatpush1.bf16.msra.mxu1 %v15385_v12  ;;  %v15466_v11 = vld [vmem:[%s17715_s19 + $0xce0] ss:$16 sps:$4 sm:$0xff]   ;;  %v15469_v12 = vld [vmem:[%s17715_s19 + $0xce8] ss:$16 sps:$4 sm:$0xff]  }
 0x205   : > { %10369 = vmatprep.subr.bf16.mxu0 %v15390_v13  ;;  %11394 = vmatprep.subr.bf16.mxu1 %v15393_v15  ;;  %v15474_v13 = vld [vmem:[%s17715_s19 + $0xd04] ss:$16 sps:$4 sm:$0xff]   ;;  %v15477_v15 = vld [vmem:[%s17715_s19 + $0xd0c] ss:$16 sps:$4 sm:$0xff]  }
 0x208   : > { %10370 = vmatpush1.bf16.msra.mxu0 %v15388_v17  ;;  %11395 = vmatpush1.bf16.msra.mxu1 %v15391_v53  ;;  %v15472_v17 = vld [vmem:[%s17715_s19 + $0xd00] ss:$16 sps:$4 sm:$0xff]   ;;  %v15475_v53 = vld [vmem:[%s17715_s19 + $0xd08] ss:$16 sps:$4 sm:$0xff]  }
 0x209   : > { %10371 = vmatprep.subr.bf16.mxu0 %v15396_v18  ;;  %11396 = vmatprep.subr.bf16.mxu1 %v15399_v19  ;;  %v15480_v18 = vld [vmem:[%s17715_s19 + $0xd24] ss:$16 sps:$4 sm:$0xff]   ;;  %v15483_v19 = vld [vmem:[%s17715_s19 + $0xd2c] ss:$16 sps:$4 sm:$0xff]  }
 0x20c   : > { %10372 = vmatpush1.bf16.msra.mxu0 %v15394_v20  ;;  %11397 = vmatpush1.bf16.msra.mxu1 %v15397_v21  ;;  %v15478_v20 = vld [vmem:[%s17715_s19 + $0xd20] ss:$16 sps:$4 sm:$0xff]   ;;  %v15481_v21 = vld [vmem:[%s17715_s19 + $0xd28] ss:$16 sps:$4 sm:$0xff]  }
 0x20d   : > { %10373 = vmatprep.subr.bf16.mxu0 %v15402_v23  ;;  %11398 = vmatprep.subr.bf16.mxu1 %v15405_v24  ;;  %v15486_v23 = vld [vmem:[%s17715_s19 + $0xd44] ss:$16 sps:$4 sm:$0xff]   ;;  %v15489_v24 = vld [vmem:[%s17715_s19 + $0xd4c] ss:$16 sps:$4 sm:$0xff]  }
 0x210   : > { %10374 = vmatpush1.bf16.msra.mxu0 %v15400_v25  ;;  %11399 = vmatpush1.bf16.msra.mxu1 %v15403_v27  ;;  %v15484_v25 = vld [vmem:[%s17715_s19 + $0xd40] ss:$16 sps:$4 sm:$0xff]   ;;  %v15487_v27 = vld [vmem:[%s17715_s19 + $0xd48] ss:$16 sps:$4 sm:$0xff]  }
 0x211   : > { %10375 = vmatprep.subr.bf16.mxu0 %v15408_v28  ;;  %11400 = vmatprep.subr.bf16.mxu1 %v15411_v29  ;;  %v15492_v28 = vld [vmem:[%s17715_s19 + $0xd64] ss:$16 sps:$4 sm:$0xff]   ;;  %v15495_v29 = vld [vmem:[%s17715_s19 + $0xd6c] ss:$16 sps:$4 sm:$0xff]  }
 0x214   : > { %10376 = vmatpush1.bf16.msra.mxu0 %v15406_v30  ;;  %11401 = vmatpush1.bf16.msra.mxu1 %v15409_v31  ;;  %v15490_v30 = vld [vmem:[%s17715_s19 + $0xd60] ss:$16 sps:$4 sm:$0xff]   ;;  %v15493_v31 = vld [vmem:[%s17715_s19 + $0xd68] ss:$16 sps:$4 sm:$0xff]  }
 0x215   : > { %10377 = vmatprep.subr.bf16.mxu0 %v15414_v16  ;;  %11402 = vmatprep.subr.bf16.mxu1 %v15417_v32  ;;  %v15498_v16 = vld [vmem:[%s17715_s19 + $0xd84] ss:$16 sps:$4 sm:$0xff]   ;;  %v15501_v32 = vld [vmem:[%s17715_s19 + $0xd8c] ss:$16 sps:$4 sm:$0xff]  }
 0x218   : > { %10378 = vmatpush1.bf16.msra.mxu0 %v15412_v26  ;;  %11403 = vmatpush1.bf16.msra.mxu1 %v15415_v35  ;;  %v15504_v26 = vld [vmem:[%s17715_s19 + $0xda4] ss:$16 sps:$4 sm:$0xff]   ;;  %v15507_v35 = vld [vmem:[%s17715_s19 + $0xdac] ss:$16 sps:$4 sm:$0xff]  }
 0x219   : > { %10379 = vmatprep.subr.bf16.mxu0 %v15420_v37  ;;  %11404 = vmatprep.subr.bf16.mxu1 %v15423_v38  ;;  %v15502_v37 = vld [vmem:[%s17715_s19 + $0xda0] ss:$16 sps:$4 sm:$0xff]   ;;  %v15505_v38 = vld [vmem:[%s17715_s19 + $0xda8] ss:$16 sps:$4 sm:$0xff]  }
 0x21c   : > { %10380 = vmatpush1.bf16.msra.mxu0 %v15418_v40  ;;  %11405 = vmatpush1.bf16.msra.mxu1 %v15421_v41  ;;  %v15510_v40 = vld [vmem:[%s17715_s19 + $0xdc4] ss:$16 sps:$4 sm:$0xff]   ;;  %v15513_v41 = vld [vmem:[%s17715_s19 + $0xdcc] ss:$16 sps:$4 sm:$0xff]  }
 0x21d   : > { %10390 = vmatprep.subr.bf16.mxu0 %v15426_v22  ;;  %11415 = vmatprep.subr.bf16.mxu1 %v15429_v42  ;;  %v15508_v22 = vld [vmem:[%s17715_s19 + $0xdc0] ss:$16 sps:$4 sm:$0xff]   ;;  %v15511_v42 = vld [vmem:[%s17715_s19 + $0xdc8] ss:$16 sps:$4 sm:$0xff]  }
 0x21f   : > { %10382 = vmatmul.mubr.bf16.vlgmr.msra.gmra.mrb[0].mxu0 %v2041_v45  ;;  %11407 = vmatmul.mubr.bf16.vlgmr.msra.gmra.mrb[0].mxu1 %v2041_v45  ;;  %v15519_v45 = vld [vmem:[%s17715_s19 + $0xdec] ss:$16 sps:$4 sm:$0xff]  }
 0x220   : > { %10391 = vmatpush1.bf16.msra.mxu0 %v15424_v36  ;;  %11416 = vmatpush1.bf16.msra.mxu1 %v15427_v46  ;;  %v15514_v36 = vld [vmem:[%s17715_s19 + $0xde0] ss:$16 sps:$4 sm:$0xff]   ;;  %v15517_v46 = vld [vmem:[%s17715_s19 + $0xde8] ss:$16 sps:$4 sm:$0xff]  }
 0x221   : > { %10392 = vmatprep.subr.bf16.mxu0 %v15432_v47  ;;  %11417 = vmatprep.subr.bf16.mxu1 %v15435_v48  ;;  %v15523_v47 = vld [vmem:[%s17715_s19 + $0xe04] ss:$16 sps:$4 sm:$0xff]   ;;  %v15526_v48 = vld [vmem:[%s17715_s19 + $0xe0c] ss:$16 sps:$4 sm:$0xff]  }
 0x222   : > { %10422 = vmatprep.mubr.bf16.mxu0 %v18194_v49  ;;  %11447 = vmatprep.mubr.bf16.mxu1 %v18194_v49 }
 0x224   : > { %10393 = vmatpush1.bf16.msra.mxu0 %v15430_v14  ;;  %11418 = vmatpush1.bf16.msra.mxu1 %v15433_v51  ;;  %v18260_v14 = vrot.slane %v18179_v39, %v17784_v50  ;;  %v15521_v51 = vld [vmem:[%s17715_s19 + $0xe00] ss:$16 sps:$4 sm:$0xff]  }
 0x225   : > { %10394 = vmatprep.subr.bf16.mxu0 %v15438_v52  ;;  %11419 = vmatprep.subr.bf16.mxu1 %v15441_v54  ;;  %v15524_v52 = vld [vmem:[%s17715_s19 + $0xe08] ss:$16 sps:$4 sm:$0xff]   ;;  %v15529_v54 = vld [vmem:[%s17715_s19 + $0xe24] ss:$16 sps:$4 sm:$0xff]   ;;  %v15527_v39 = vld [vmem:[%s17715_s19 + $0xe20] ss:$16 sps:$4 sm:$0xff]  }
 0x228   : > { %10395 = vmatpush1.bf16.msra.mxu0 %v15436_v55  ;;  %11420 = vmatpush1.bf16.msra.mxu1 %v15439_v56  ;;  %v15532_v55 = vld [vmem:[%s17715_s19 + $0xe2c] ss:$16 sps:$4 sm:$0xff]   ;;  %v2044_v56 = vcombine.high %v18194_v49, %v18194_v49  ;;  %v15533_v49 = vld [vmem:[%s17715_s19 + $0xe40] ss:$16 sps:$4 sm:$0xff]  }
 0x229   : > { %10396 = vmatprep.subr.bf16.mxu0 %v15444_v57  ;;  %11421 = vmatprep.subr.bf16.mxu1 %v15447_v58  ;;  %v15530_v57 = vld [vmem:[%s17715_s19 + $0xe28] ss:$16 sps:$4 sm:$0xff]   ;;  %v15535_v58 = vld [vmem:[%s17715_s19 + $0xe44] ss:$16 sps:$4 sm:$0xff]  }
 0x22c   : > { %10397 = vmatpush1.bf16.msra.mxu0 %v15442_v59  ;;  %11422 = vmatpush1.bf16.msra.mxu1 %v15445_v60  ;;  %v15538_v59 = vld [vmem:[%s17715_s19 + $0xe4c] ss:$16 sps:$4 sm:$0xff]   ;;  %v15536_v60 = vld [vmem:[%s17715_s19 + $0xe48] ss:$16 sps:$4 sm:$0xff]  }
 0x22d   : > { %10398 = vmatprep.subr.bf16.mxu0 %v15450_v61  ;;  %11423 = vmatprep.subr.bf16.mxu1 %v15453_v62  ;;  %v15541_v61 = vld [vmem:[%s17715_s19 + $0xe64] ss:$16 sps:$4 sm:$0xff]   ;;  %v15544_v62 = vld [vmem:[%s17715_s19 + $0xe6c] ss:$16 sps:$4 sm:$0xff]  }
 0x230   : > { %10399 = vmatpush1.bf16.msra.mxu0 %v15448_v63  ;;  %11424 = vmatpush1.bf16.msra.mxu1 %v15451_v0  ;;  %v15539_v63 = vld [vmem:[%s17715_s19 + $0xe60] ss:$16 sps:$4 sm:$0xff]   ;;  %v15542_v0 = vld [vmem:[%s17715_s19 + $0xe68] ss:$16 sps:$4 sm:$0xff]  }
 0x231   : > { %10400 = vmatprep.subr.bf16.mxu0 %v15456_v1  ;;  %11425 = vmatprep.subr.bf16.mxu1 %v15459_v2  ;;  %v15547_v1 = vld [vmem:[%s17715_s19 + $0xe84] ss:$16 sps:$4 sm:$0xff]   ;;  %v15550_v2 = vld [vmem:[%s17715_s19 + $0xe8c] ss:$16 sps:$4 sm:$0xff]  }
 0x234   : > { %10401 = vmatpush1.bf16.msra.mxu0 %v15454_v3  ;;  %11426 = vmatpush1.bf16.msra.mxu1 %v15457_v4  ;;  %v15545_v3 = vld [vmem:[%s17715_s19 + $0xe80] ss:$16 sps:$4 sm:$0xff]   ;;  %v15548_v4 = vld [vmem:[%s17715_s19 + $0xe88] ss:$16 sps:$4 sm:$0xff]  }
 0x235   : > { %10402 = vmatprep.subr.bf16.mxu0 %v15462_v5  ;;  %11427 = vmatprep.subr.bf16.mxu1 %v15465_v6  ;;  %v15553_v5 = vld [vmem:[%s17715_s19 + $0xea4] ss:$16 sps:$4 sm:$0xff]   ;;  %v15556_v6 = vld [vmem:[%s17715_s19 + $0xeac] ss:$16 sps:$4 sm:$0xff]  }
 0x238   : > { %10403 = vmatpush1.bf16.msra.mxu0 %v15460_v7  ;;  %11428 = vmatpush1.bf16.msra.mxu1 %v15463_v8  ;;  %v15551_v7 = vld [vmem:[%s17715_s19 + $0xea0] ss:$16 sps:$4 sm:$0xff]   ;;  %v15554_v8 = vld [vmem:[%s17715_s19 + $0xea8] ss:$16 sps:$4 sm:$0xff]  }
 0x239   : > { %10404 = vmatprep.subr.bf16.mxu0 %v15468_v9  ;;  %11429 = vmatprep.subr.bf16.mxu1 %v15471_v10  ;;  %v15559_v9 = vld [vmem:[%s17715_s19 + $0xec4] ss:$16 sps:$4 sm:$0xff]   ;;  %v15562_v10 = vld [vmem:[%s17715_s19 + $0xecc] ss:$16 sps:$4 sm:$0xff]  }
 0x23c   : > { %10405 = vmatpush1.bf16.msra.mxu0 %v15466_v11  ;;  %11430 = vmatpush1.bf16.msra.mxu1 %v15469_v12  ;;  %v15557_v11 = vld [vmem:[%s17715_s19 + $0xec0] ss:$16 sps:$4 sm:$0xff]   ;;  %v15560_v12 = vld [vmem:[%s17715_s19 + $0xec8] ss:$16 sps:$4 sm:$0xff]  }
 0x23d   : > { %10406 = vmatprep.subr.bf16.mxu0 %v15474_v13  ;;  %11431 = vmatprep.subr.bf16.mxu1 %v15477_v15  ;;  %v15565_v13 = vld [vmem:[%s17715_s19 + $0xee4] ss:$16 sps:$4 sm:$0xff]   ;;  %v15568_v15 = vld [vmem:[%s17715_s19 + $0xeec] ss:$16 sps:$4 sm:$0xff]  }
 0x240   : > { %10407 = vmatpush1.bf16.msra.mxu0 %v15472_v17  ;;  %11432 = vmatpush1.bf16.msra.mxu1 %v15475_v53  ;;  %v15563_v17 = vld [vmem:[%s17715_s19 + $0xee0] ss:$16 sps:$4 sm:$0xff]   ;;  %v15566_v53 = vld [vmem:[%s17715_s19 + $0xee8] ss:$16 sps:$4 sm:$0xff]  }
 0x241   : > { %10408 = vmatprep.subr.bf16.mxu0 %v15480_v18  ;;  %11433 = vmatprep.subr.bf16.mxu1 %v15483_v19  ;;  %v15571_v18 = vld [vmem:[%s17715_s19 + $0xf04] ss:$16 sps:$4 sm:$0xff]   ;;  %v15574_v19 = vld [vmem:[%s17715_s19 + $0xf0c] ss:$16 sps:$4 sm:$0xff]  }
 0x244   : > { %10409 = vmatpush1.bf16.msra.mxu0 %v15478_v20  ;;  %11434 = vmatpush1.bf16.msra.mxu1 %v15481_v21  ;;  %v15569_v20 = vld [vmem:[%s17715_s19 + $0xf00] ss:$16 sps:$4 sm:$0xff]   ;;  %v15572_v21 = vld [vmem:[%s17715_s19 + $0xf08] ss:$16 sps:$4 sm:$0xff]  }
 0x245   : > { %10410 = vmatprep.subr.bf16.mxu0 %v15486_v23  ;;  %11435 = vmatprep.subr.bf16.mxu1 %v15489_v24  ;;  %v15577_v23 = vld [vmem:[%s17715_s19 + $0xf24] ss:$16 sps:$4 sm:$0xff]   ;;  %v15580_v24 = vld [vmem:[%s17715_s19 + $0xf2c] ss:$16 sps:$4 sm:$0xff]  }
 0x248   : > { %10411 = vmatpush1.bf16.msra.mxu0 %v15484_v25  ;;  %11436 = vmatpush1.bf16.msra.mxu1 %v15487_v27  ;;  %v15575_v25 = vld [vmem:[%s17715_s19 + $0xf20] ss:$16 sps:$4 sm:$0xff]   ;;  %v15578_v27 = vld [vmem:[%s17715_s19 + $0xf28] ss:$16 sps:$4 sm:$0xff]  }
 0x249   : > { %10412 = vmatprep.subr.bf16.mxu0 %v15492_v28  ;;  %11437 = vmatprep.subr.bf16.mxu1 %v15495_v29  ;;  %v15583_v28 = vld [vmem:[%s17715_s19 + $0xf44] ss:$16 sps:$4 sm:$0xff]   ;;  %v15586_v29 = vld [vmem:[%s17715_s19 + $0xf4c] ss:$16 sps:$4 sm:$0xff]  }
 0x24c   : > { %10413 = vmatpush1.bf16.msra.mxu0 %v15490_v30  ;;  %11438 = vmatpush1.bf16.msra.mxu1 %v15493_v31  ;;  %v15581_v30 = vld [vmem:[%s17715_s19 + $0xf40] ss:$16 sps:$4 sm:$0xff]   ;;  %v15584_v31 = vld [vmem:[%s17715_s19 + $0xf48] ss:$16 sps:$4 sm:$0xff]  }
 0x24d   : > { %10414 = vmatprep.subr.bf16.mxu0 %v15498_v16  ;;  %11439 = vmatprep.subr.bf16.mxu1 %v15501_v32  ;;  %v15589_v16 = vld [vmem:[%s17715_s19 + $0xf64] ss:$16 sps:$4 sm:$0xff]   ;;  %v15592_v32 = vld [vmem:[%s17715_s19 + $0xf6c] ss:$16 sps:$4 sm:$0xff]  }
 0x250   : > { %10415 = vmatpush1.bf16.msra.mxu0 %v15496_v33  ;;  %11440 = vmatpush1.bf16.msra.mxu1 %v15499_v34  ;;  %v15587_v33 = vld [vmem:[%s17715_s19 + $0xf60] ss:$16 sps:$4 sm:$0xff]   ;;  %v15590_v34 = vld [vmem:[%s17715_s19 + $0xf68] ss:$16 sps:$4 sm:$0xff]  }
 0x251   : > { %10416 = vmatprep.subr.bf16.mxu0 %v15504_v26  ;;  %11441 = vmatprep.subr.bf16.mxu1 %v15507_v35  ;;  %v15595_v26 = vld [vmem:[%s17715_s19 + $0xf84] ss:$16 sps:$4 sm:$0xff]   ;;  %v15598_v35 = vld [vmem:[%s17715_s19 + $0xf8c] ss:$16 sps:$4 sm:$0xff]  }
 0x254   : > { %10417 = vmatpush1.bf16.msra.mxu0 %v15502_v37  ;;  %11442 = vmatpush1.bf16.msra.mxu1 %v15505_v38  ;;  %v15593_v37 = vld [vmem:[%s17715_s19 + $0xf80] ss:$16 sps:$4 sm:$0xff]   ;;  %v15596_v38 = vld [vmem:[%s17715_s19 + $0xf88] ss:$16 sps:$4 sm:$0xff]  }
 0x255   : > { %10418 = vmatprep.subr.bf16.mxu0 %v15510_v40  ;;  %11443 = vmatprep.subr.bf16.mxu1 %v15513_v41  ;;  %v15601_v40 = vld [vmem:[%s17715_s19 + $0xfa4] ss:$16 sps:$4 sm:$0xff]   ;;  %v15604_v41 = vld [vmem:[%s17715_s19 + $0xfac] ss:$16 sps:$4 sm:$0xff]  }
 0x258   : > { %10419 = vmatpush1.bf16.msra.mxu0 %v15508_v22  ;;  %11444 = vmatpush1.bf16.msra.mxu1 %v15511_v42  ;;  %v15599_v22 = vld [vmem:[%s17715_s19 + $0xfa0] ss:$16 sps:$4 sm:$0xff]   ;;  %v15602_v42 = vld [vmem:[%s17715_s19 + $0xfa8] ss:$16 sps:$4 sm:$0xff]  }
 0x259   : > { %10420 = vmatprep.subr.bf16.mxu0 %v15516_v43  ;;  %11445 = vmatprep.subr.bf16.mxu1 %v15519_v45  ;;  %v15607_v43 = vld [vmem:[%s17715_s19 + $0xfc4] ss:$16 sps:$4 sm:$0xff]   ;;  %v15610_v45 = vld [vmem:[%s17715_s19 + $0xfcc] ss:$16 sps:$4 sm:$0xff]  }
 0x25c   : > { %10421 = vmatpush1.bf16.msra.mxu0 %v15514_v36  ;;  %11446 = vmatpush1.bf16.msra.mxu1 %v15517_v46  ;;  %v18323_v36 = vld.sshfl [vmem:[%s17733_s29 + $0x10] sm:$0xff pattern:$0x75316420]  ;;  %v15605_v46 = vld [vmem:[%s17715_s19 + $0xfc0] ss:$16 sps:$4 sm:$0xff]  }
 0x25d   : > { %10431 = vmatprep.subr.bf16.mxu0 %v15523_v47  ;;  %11456 = vmatprep.subr.bf16.mxu1 %v15526_v48  ;;  %v15608_v47 = vld [vmem:[%s17715_s19 + $0xfc8] ss:$16 sps:$4 sm:$0xff]   ;;  %v15613_v48 = vld [vmem:[%s17715_s19 + $0xfe4] ss:$16 sps:$4 sm:$0xff]  }
 0x25f   : > { %10423 = vmatmul.mubr.bf16.vlgmr.msra.gmra.mrb[0].mxu0 %v18260_v14  ;;  %11448 = vmatmul.mubr.bf16.vlgmr.msra.gmra.mrb[0].mxu1 %v18260_v14 }
 0x260   : > { %10432 = vmatpush1.bf16.msra.mxu0 %v15521_v51  ;;  %11457 = vmatpush1.bf16.msra.mxu1 %v15524_v52  ;;  %v15616_v51 = vld [vmem:[%s17715_s19 + $0xfec] ss:$16 sps:$4 sm:$0xff]   ;;  %v15611_v52 = vld [vmem:[%s17715_s19 + $0xfe0] ss:$16 sps:$4 sm:$0xff]  }
 0x261   : > { %10433 = vmatprep.subr.bf16.mxu0 %v15529_v54  ;;  %11458 = vmatprep.subr.bf16.mxu1 %v15532_v55  ;;  %v15614_v54 = vld [vmem:[%s17715_s19 + $0xfe8] ss:$16 sps:$4 sm:$0xff]   ;;  %v15619_v55 = vld [vmem:[%s17715_s19 + $0x1004] ss:$16 sps:$4 sm:$0xff]  }
 0x262   : > { %10463 = vmatprep.mubr.bf16.mxu0 %v2044_v56  ;;  %11488 = vmatprep.mubr.bf16.mxu1 %v2044_v56  ;;  %v15622_v56 = vld [vmem:[%s17715_s19 + $0x100c] ss:$16 sps:$4 sm:$0xff]  }
 0x264   : > { %10434 = vmatpush1.bf16.msra.mxu0 %v15527_v39  ;;  %11459 = vmatpush1.bf16.msra.mxu1 %v15530_v57  ;;  %v2060_v39 = vcombine.high %v18323_v36, %v18323_v36  ;;  %v2042_v57 = vcombine.high %v18260_v14, %v18260_v14  ;;  %v15623_v14 = vld [vmem:[%s17715_s19 + $0x1020] ss:$16 sps:$4 sm:$0xff]  }
 0x265   : > { %10435 = vmatprep.subr.bf16.mxu0 %v15535_v58  ;;  %11460 = vmatprep.subr.bf16.mxu1 %v15538_v59  ;;  %v15617_v58 = vld [vmem:[%s17715_s19 + $0x1000] ss:$16 sps:$4 sm:$0xff]   ;;  %v15620_v59 = vld [vmem:[%s17715_s19 + $0x1008] ss:$16 sps:$4 sm:$0xff]  }
 0x268   : > { %10436 = vmatpush1.bf16.msra.mxu0 %v15533_v49  ;;  %11461 = vmatpush1.bf16.msra.mxu1 %v15536_v60  ;;  %v15625_v49 = vld [vmem:[%s17715_s19 + $0x1024] ss:$16 sps:$4 sm:$0xff]   ;;  %v15628_v60 = vld [vmem:[%s17715_s19 + $0x102c] ss:$16 sps:$4 sm:$0xff]  }
 0x269   : > { %10437 = vmatprep.subr.bf16.mxu0 %v15541_v61  ;;  %11462 = vmatprep.subr.bf16.mxu1 %v15544_v62  ;;  %v18342_v61 = vrot.slane %v2060_v39, %v17784_v50  ;;  %v15626_v62 = vld [vmem:[%s17715_s19 + $0x1028] ss:$16 sps:$4 sm:$0xff]   ;;  %v15709_v39 = vld [vmem:[%s17715_s19 + $0x11e4] ss:$16 sps:$4 sm:$0xff]  }
 0x26c   : > { %10438 = vmatpush1.bf16.msra.mxu0 %v15539_v63  ;;  %11463 = vmatpush1.bf16.msra.mxu1 %v15542_v0  ;;  %v15631_v63 = vld [vmem:[%s17715_s19 + $0x1044] ss:$16 sps:$4 sm:$0xff]   ;;  %v15634_v0 = vld [vmem:[%s17715_s19 + $0x104c] ss:$16 sps:$4 sm:$0xff]  }
 0x26d   : > { %10439 = vmatprep.subr.bf16.mxu0 %v15547_v1  ;;  %11464 = vmatprep.subr.bf16.mxu1 %v15550_v2  ;;  %v15629_v1 = vld [vmem:[%s17715_s19 + $0x1040] ss:$16 sps:$4 sm:$0xff]   ;;  %v15632_v2 = vld [vmem:[%s17715_s19 + $0x1048] ss:$16 sps:$4 sm:$0xff]  }
 0x270   : > { %10440 = vmatpush1.bf16.msra.mxu0 %v15545_v3  ;;  %11465 = vmatpush1.bf16.msra.mxu1 %v15548_v4  ;;  %v15637_v3 = vld [vmem:[%s17715_s19 + $0x1064] ss:$16 sps:$4 sm:$0xff]   ;;  %v15640_v4 = vld [vmem:[%s17715_s19 + $0x106c] ss:$16 sps:$4 sm:$0xff]  }
 0x271   : > { %10441 = vmatprep.subr.bf16.mxu0 %v15553_v5  ;;  %11466 = vmatprep.subr.bf16.mxu1 %v15556_v6  ;;  %v15635_v5 = vld [vmem:[%s17715_s19 + $0x1060] ss:$16 sps:$4 sm:$0xff]   ;;  %v15638_v6 = vld [vmem:[%s17715_s19 + $0x1068] ss:$16 sps:$4 sm:$0xff]  }
 0x274   : > { %10442 = vmatpush1.bf16.msra.mxu0 %v15551_v7  ;;  %11467 = vmatpush1.bf16.msra.mxu1 %v15554_v8  ;;  %v15643_v7 = vld [vmem:[%s17715_s19 + $0x1084] ss:$16 sps:$4 sm:$0xff]   ;;  %v15646_v8 = vld [vmem:[%s17715_s19 + $0x108c] ss:$16 sps:$4 sm:$0xff]  }
 0x275   : > { %10443 = vmatprep.subr.bf16.mxu0 %v15559_v9  ;;  %11468 = vmatprep.subr.bf16.mxu1 %v15562_v10  ;;  %v15641_v9 = vld [vmem:[%s17715_s19 + $0x1080] ss:$16 sps:$4 sm:$0xff]   ;;  %v15644_v10 = vld [vmem:[%s17715_s19 + $0x1088] ss:$16 sps:$4 sm:$0xff]  }
 0x278   : > { %10444 = vmatpush1.bf16.msra.mxu0 %v15557_v11  ;;  %11469 = vmatpush1.bf16.msra.mxu1 %v15560_v12  ;;  %v15649_v11 = vld [vmem:[%s17715_s19 + $0x10a4] ss:$16 sps:$4 sm:$0xff]   ;;  %v15652_v12 = vld [vmem:[%s17715_s19 + $0x10ac] ss:$16 sps:$4 sm:$0xff]  }
 0x279   : > { %10445 = vmatprep.subr.bf16.mxu0 %v15565_v13  ;;  %11470 = vmatprep.subr.bf16.mxu1 %v15568_v15  ;;  %v15647_v13 = vld [vmem:[%s17715_s19 + $0x10a0] ss:$16 sps:$4 sm:$0xff]   ;;  %v15650_v15 = vld [vmem:[%s17715_s19 + $0x10a8] ss:$16 sps:$4 sm:$0xff]  }
 0x27c   : > { %10446 = vmatpush1.bf16.msra.mxu0 %v15563_v17  ;;  %11471 = vmatpush1.bf16.msra.mxu1 %v15566_v53  ;;  %v15655_v17 = vld [vmem:[%s17715_s19 + $0x10c4] ss:$16 sps:$4 sm:$0xff]   ;;  %v15658_v53 = vld [vmem:[%s17715_s19 + $0x10cc] ss:$16 sps:$4 sm:$0xff]  }
 0x27d   : > { %10447 = vmatprep.subr.bf16.mxu0 %v15571_v18  ;;  %11472 = vmatprep.subr.bf16.mxu1 %v15574_v19  ;;  %v15653_v18 = vld [vmem:[%s17715_s19 + $0x10c0] ss:$16 sps:$4 sm:$0xff]   ;;  %v15656_v19 = vld [vmem:[%s17715_s19 + $0x10c8] ss:$16 sps:$4 sm:$0xff]  }
 0x280   : > { %10448 = vmatpush1.bf16.msra.mxu0 %v15569_v20  ;;  %11473 = vmatpush1.bf16.msra.mxu1 %v15572_v21  ;;  %v15661_v20 = vld [vmem:[%s17715_s19 + $0x10e4] ss:$16 sps:$4 sm:$0xff]   ;;  %v15664_v21 = vld [vmem:[%s17715_s19 + $0x10ec] ss:$16 sps:$4 sm:$0xff]  }
 0x281   : > { %10449 = vmatprep.subr.bf16.mxu0 %v15577_v23  ;;  %11474 = vmatprep.subr.bf16.mxu1 %v15580_v24  ;;  %v15659_v23 = vld [vmem:[%s17715_s19 + $0x10e0] ss:$16 sps:$4 sm:$0xff]   ;;  %v15662_v24 = vld [vmem:[%s17715_s19 + $0x10e8] ss:$16 sps:$4 sm:$0xff]  }
 0x284   : > { %10450 = vmatpush1.bf16.msra.mxu0 %v15575_v25  ;;  %11475 = vmatpush1.bf16.msra.mxu1 %v15578_v27  ;;  %v15667_v25 = vld [vmem:[%s17715_s19 + $0x1104] ss:$16 sps:$4 sm:$0xff]   ;;  %v15670_v27 = vld [vmem:[%s17715_s19 + $0x110c] ss:$16 sps:$4 sm:$0xff]  }
 0x285   : > { %10451 = vmatprep.subr.bf16.mxu0 %v15583_v28  ;;  %11476 = vmatprep.subr.bf16.mxu1 %v15586_v29  ;;  %v15665_v28 = vld [vmem:[%s17715_s19 + $0x1100] ss:$16 sps:$4 sm:$0xff]   ;;  %v15668_v29 = vld [vmem:[%s17715_s19 + $0x1108] ss:$16 sps:$4 sm:$0xff]  }
 0x288   : > { %10452 = vmatpush1.bf16.msra.mxu0 %v15581_v30  ;;  %11477 = vmatpush1.bf16.msra.mxu1 %v15584_v31  ;;  %v15673_v30 = vld [vmem:[%s17715_s19 + $0x1124] ss:$16 sps:$4 sm:$0xff]   ;;  %v15676_v31 = vld [vmem:[%s17715_s19 + $0x112c] ss:$16 sps:$4 sm:$0xff]  }
 0x289   : > { %10453 = vmatprep.subr.bf16.mxu0 %v15589_v16  ;;  %11478 = vmatprep.subr.bf16.mxu1 %v15592_v32  ;;  %v15671_v16 = vld [vmem:[%s17715_s19 + $0x1120] ss:$16 sps:$4 sm:$0xff]   ;;  %v15674_v32 = vld [vmem:[%s17715_s19 + $0x1128] ss:$16 sps:$4 sm:$0xff]  }
 0x28c   : > { %10454 = vmatpush1.bf16.msra.mxu0 %v15587_v33  ;;  %11479 = vmatpush1.bf16.msra.mxu1 %v15590_v34  ;;  %v15679_v33 = vld [vmem:[%s17715_s19 + $0x1144] ss:$16 sps:$4 sm:$0xff]   ;;  %v15682_v34 = vld [vmem:[%s17715_s19 + $0x114c] ss:$16 sps:$4 sm:$0xff]  }
 0x28d   : > { %10455 = vmatprep.subr.bf16.mxu0 %v15595_v26  ;;  %11480 = vmatprep.subr.bf16.mxu1 %v15598_v35  ;;  %v15677_v26 = vld [vmem:[%s17715_s19 + $0x1140] ss:$16 sps:$4 sm:$0xff]   ;;  %v15680_v35 = vld [vmem:[%s17715_s19 + $0x1148] ss:$16 sps:$4 sm:$0xff]  }
 0x290   : > { %10456 = vmatpush1.bf16.msra.mxu0 %v15593_v37  ;;  %11481 = vmatpush1.bf16.msra.mxu1 %v15596_v38  ;;  %v15685_v37 = vld [vmem:[%s17715_s19 + $0x1164] ss:$16 sps:$4 sm:$0xff]   ;;  %v15688_v38 = vld [vmem:[%s17715_s19 + $0x116c] ss:$16 sps:$4 sm:$0xff]  }
 0x291   : > { %10457 = vmatprep.subr.bf16.mxu0 %v15601_v40  ;;  %11482 = vmatprep.subr.bf16.mxu1 %v15604_v41  ;;  %v15683_v40 = vld [vmem:[%s17715_s19 + $0x1160] ss:$16 sps:$4 sm:$0xff]   ;;  %v15686_v41 = vld [vmem:[%s17715_s19 + $0x1168] ss:$16 sps:$4 sm:$0xff]  }
 0x294   : > { %10458 = vmatpush1.bf16.msra.mxu0 %v15599_v22  ;;  %11483 = vmatpush1.bf16.msra.mxu1 %v15602_v42  ;;  %v15691_v22 = vld [vmem:[%s17715_s19 + $0x1184] ss:$16 sps:$4 sm:$0xff]   ;;  %v15694_v42 = vld [vmem:[%s17715_s19 + $0x118c] ss:$16 sps:$4 sm:$0xff]  }
 0x295   : > { %10459 = vmatprep.subr.bf16.mxu0 %v15607_v43  ;;  %11484 = vmatprep.subr.bf16.mxu1 %v15610_v45  ;;  %v15689_v43 = vld [vmem:[%s17715_s19 + $0x1180] ss:$16 sps:$4 sm:$0xff]   ;;  %v15692_v45 = vld [vmem:[%s17715_s19 + $0x1188] ss:$16 sps:$4 sm:$0xff]  }
 0x298   : > { %10460 = vmatpush1.bf16.msra.mxu0 %v15605_v46  ;;  %11485 = vmatpush1.bf16.msra.mxu1 %v15608_v47  ;;  %v15697_v46 = vld [vmem:[%s17715_s19 + $0x11a4] ss:$16 sps:$4 sm:$0xff]   ;;  %v15700_v47 = vld [vmem:[%s17715_s19 + $0x11ac] ss:$16 sps:$4 sm:$0xff]  }
 0x299   : > { %10461 = vmatprep.subr.bf16.mxu0 %v15613_v48  ;;  %11486 = vmatprep.subr.bf16.mxu1 %v15616_v51  ;;  %v15695_v48 = vld [vmem:[%s17715_s19 + $0x11a0] ss:$16 sps:$4 sm:$0xff]   ;;  %v15698_v51 = vld [vmem:[%s17715_s19 + $0x11a8] ss:$16 sps:$4 sm:$0xff]  }
 0x29c   : > { %10462 = vmatpush1.bf16.msra.mxu0 %v15611_v52  ;;  %11487 = vmatpush1.bf16.msra.mxu1 %v15614_v54  ;;  %v15703_v52 = vld [vmem:[%s17715_s19 + $0x11c4] ss:$16 sps:$4 sm:$0xff]   ;;  %v15706_v54 = vld [vmem:[%s17715_s19 + $0x11cc] ss:$16 sps:$4 sm:$0xff]  }
 0x29d   : > { %10472 = vmatprep.subr.bf16.mxu0 %v15619_v55  ;;  %11497 = vmatprep.subr.bf16.mxu1 %v15622_v56  ;;  %v15701_v55 = vld [vmem:[%s17715_s19 + $0x11c0] ss:$16 sps:$4 sm:$0xff]   ;;  %v15704_v56 = vld [vmem:[%s17715_s19 + $0x11c8] ss:$16 sps:$4 sm:$0xff]  }
 0x29f   : > { %10464 = vmatmul.mubr.bf16.vlgmr.msra.gmra.mrb[0].mxu0 %v2042_v57  ;;  %11489 = vmatmul.mubr.bf16.vlgmr.msra.gmra.mrb[0].mxu1 %v2042_v57  ;;  %v15712_v57 = vld [vmem:[%s17715_s19 + $0x11ec] ss:$16 sps:$4 sm:$0xff]  }
 0x2a0   : > { %10473 = vmatpush1.bf16.msra.mxu0 %v15617_v58  ;;  %11498 = vmatpush1.bf16.msra.mxu1 %v15620_v59  ;;  %v15707_v58 = vld [vmem:[%s17715_s19 + $0x11e0] ss:$16 sps:$4 sm:$0xff]   ;;  %v15710_v59 = vld [vmem:[%s17715_s19 + $0x11e8] ss:$16 sps:$4 sm:$0xff]  }
 0x2a1   : > { %10474 = vmatprep.subr.bf16.mxu0 %v15625_v49  ;;  %11499 = vmatprep.subr.bf16.mxu1 %v15628_v60  ;;  %v15715_v49 = vld [vmem:[%s17715_s19 + $0x1204] ss:$16 sps:$4 sm:$0xff]   ;;  %v15718_v60 = vld [vmem:[%s17715_s19 + $0x120c] ss:$16 sps:$4 sm:$0xff]  }
 0x2a2   : > { %10504 = vmatprep.mubr.bf16.mxu0 %v18342_v61  ;;  %11529 = vmatprep.mubr.bf16.mxu1 %v18342_v61 }
 0x2a4   : > { %10475 = vmatpush1.bf16.msra.mxu0 %v15623_v14  ;;  %11500 = vmatpush1.bf16.msra.mxu1 %v15626_v62  ;;  %v18408_v14 = vrot.slane %v18323_v36, %v17784_v50  ;;  %v15713_v62 = vld [vmem:[%s17715_s19 + $0x1200] ss:$16 sps:$4 sm:$0xff]  }
 0x2a5   : > { %10476 = vmatprep.subr.bf16.mxu0 %v15631_v63  ;;  %11501 = vmatprep.subr.bf16.mxu1 %v15634_v0  ;;  %v15716_v63 = vld [vmem:[%s17715_s19 + $0x1208] ss:$16 sps:$4 sm:$0xff]   ;;  %v15721_v0 = vld [vmem:[%s17715_s19 + $0x1224] ss:$16 sps:$4 sm:$0xff]   ;;  %v15719_v36 = vld [vmem:[%s17715_s19 + $0x1220] ss:$16 sps:$4 sm:$0xff]  }
 0x2a8   : > { %10477 = vmatpush1.bf16.msra.mxu0 %v15629_v1  ;;  %11502 = vmatpush1.bf16.msra.mxu1 %v15632_v2  ;;  %v15724_v1 = vld [vmem:[%s17715_s19 + $0x122c] ss:$16 sps:$4 sm:$0xff]   ;;  %v2092_v2 = vcombine.high %v18342_v61, %v18342_v61  ;;  %v15725_v61 = vld [vmem:[%s17715_s19 + $0x1240] ss:$16 sps:$4 sm:$0xff]  }
 0x2a9   : > { %10478 = vmatprep.subr.bf16.mxu0 %v15637_v3  ;;  %11503 = vmatprep.subr.bf16.mxu1 %v15640_v4  ;;  %v15722_v3 = vld [vmem:[%s17715_s19 + $0x1228] ss:$16 sps:$4 sm:$0xff]   ;;  %v15727_v4 = vld [vmem:[%s17715_s19 + $0x1244] ss:$16 sps:$4 sm:$0xff]  }
 0x2ac   : > { %10479 = vmatpush1.bf16.msra.mxu0 %v15635_v5  ;;  %11504 = vmatpush1.bf16.msra.mxu1 %v15638_v6  ;;  %v15730_v5 = vld [vmem:[%s17715_s19 + $0x124c] ss:$16 sps:$4 sm:$0xff]   ;;  %v15728_v6 = vld [vmem:[%s17715_s19 + $0x1248] ss:$16 sps:$4 sm:$0xff]  }
 0x2ad   : > { %10480 = vmatprep.subr.bf16.mxu0 %v15643_v7  ;;  %11505 = vmatprep.subr.bf16.mxu1 %v15646_v8  ;;  %v15733_v7 = vld [vmem:[%s17715_s19 + $0x1264] ss:$16 sps:$4 sm:$0xff]   ;;  %v15736_v8 = vld [vmem:[%s17715_s19 + $0x126c] ss:$16 sps:$4 sm:$0xff]  }
 0x2b0   : > { %10481 = vmatpush1.bf16.msra.mxu0 %v15641_v9  ;;  %11506 = vmatpush1.bf16.msra.mxu1 %v15644_v10  ;;  %v15731_v9 = vld [vmem:[%s17715_s19 + $0x1260] ss:$16 sps:$4 sm:$0xff]   ;;  %v15734_v10 = vld [vmem:[%s17715_s19 + $0x1268] ss:$16 sps:$4 sm:$0xff]  }
 0x2b1   : > { %10482 = vmatprep.subr.bf16.mxu0 %v15649_v11  ;;  %11507 = vmatprep.subr.bf16.mxu1 %v15652_v12  ;;  %v15739_v11 = vld [vmem:[%s17715_s19 + $0x1284] ss:$16 sps:$4 sm:$0xff]   ;;  %v15742_v12 = vld [vmem:[%s17715_s19 + $0x128c] ss:$16 sps:$4 sm:$0xff]  }
 0x2b4   : > { %10483 = vmatpush1.bf16.msra.mxu0 %v15647_v13  ;;  %11508 = vmatpush1.bf16.msra.mxu1 %v15650_v15  ;;  %v15737_v13 = vld [vmem:[%s17715_s19 + $0x1280] ss:$16 sps:$4 sm:$0xff]   ;;  %v15740_v15 = vld [vmem:[%s17715_s19 + $0x1288] ss:$16 sps:$4 sm:$0xff]  }
 0x2b5   : > { %10484 = vmatprep.subr.bf16.mxu0 %v15655_v17  ;;  %11509 = vmatprep.subr.bf16.mxu1 %v15658_v53  ;;  %v15745_v17 = vld [vmem:[%s17715_s19 + $0x12a4] ss:$16 sps:$4 sm:$0xff]   ;;  %v15748_v53 = vld [vmem:[%s17715_s19 + $0x12ac] ss:$16 sps:$4 sm:$0xff]  }
 0x2b8   : > { %10485 = vmatpush1.bf16.msra.mxu0 %v15653_v18  ;;  %11510 = vmatpush1.bf16.msra.mxu1 %v15656_v19  ;;  %v15743_v18 = vld [vmem:[%s17715_s19 + $0x12a0] ss:$16 sps:$4 sm:$0xff]   ;;  %v15746_v19 = vld [vmem:[%s17715_s19 + $0x12a8] ss:$16 sps:$4 sm:$0xff]  }
 0x2b9   : > { %10486 = vmatprep.subr.bf16.mxu0 %v15661_v20  ;;  %11511 = vmatprep.subr.bf16.mxu1 %v15664_v21  ;;  %v15751_v20 = vld [vmem:[%s17715_s19 + $0x12c4] ss:$16 sps:$4 sm:$0xff]   ;;  %v15754_v21 = vld [vmem:[%s17715_s19 + $0x12cc] ss:$16 sps:$4 sm:$0xff]  }
 0x2bc   : > { %10487 = vmatpush1.bf16.msra.mxu0 %v15659_v23  ;;  %11512 = vmatpush1.bf16.msra.mxu1 %v15662_v24  ;;  %v15749_v23 = vld [vmem:[%s17715_s19 + $0x12c0] ss:$16 sps:$4 sm:$0xff]   ;;  %v15752_v24 = vld [vmem:[%s17715_s19 + $0x12c8] ss:$16 sps:$4 sm:$0xff]  }
 0x2bd   : > { %10488 = vmatprep.subr.bf16.mxu0 %v15667_v25  ;;  %11513 = vmatprep.subr.bf16.mxu1 %v15670_v27  ;;  %v15757_v25 = vld [vmem:[%s17715_s19 + $0x12e4] ss:$16 sps:$4 sm:$0xff]   ;;  %v15760_v27 = vld [vmem:[%s17715_s19 + $0x12ec] ss:$16 sps:$4 sm:$0xff]  }
 0x2c0   : > { %10489 = vmatpush1.bf16.msra.mxu0 %v15665_v28  ;;  %11514 = vmatpush1.bf16.msra.mxu1 %v15668_v29  ;;  %v15755_v28 = vld [vmem:[%s17715_s19 + $0x12e0] ss:$16 sps:$4 sm:$0xff]   ;;  %v15758_v29 = vld [vmem:[%s17715_s19 + $0x12e8] ss:$16 sps:$4 sm:$0xff]  }
 0x2c1   : > { %10490 = vmatprep.subr.bf16.mxu0 %v15673_v30  ;;  %11515 = vmatprep.subr.bf16.mxu1 %v15676_v31  ;;  %v15763_v30 = vld [vmem:[%s17715_s19 + $0x1304] ss:$16 sps:$4 sm:$0xff]   ;;  %v15766_v31 = vld [vmem:[%s17715_s19 + $0x130c] ss:$16 sps:$4 sm:$0xff]  }
 0x2c4   : > { %10491 = vmatpush1.bf16.msra.mxu0 %v15671_v16  ;;  %11516 = vmatpush1.bf16.msra.mxu1 %v15674_v32  ;;  %v15761_v16 = vld [vmem:[%s17715_s19 + $0x1300] ss:$16 sps:$4 sm:$0xff]   ;;  %v15764_v32 = vld [vmem:[%s17715_s19 + $0x1308] ss:$16 sps:$4 sm:$0xff]  }
 0x2c5   : > { %10492 = vmatprep.subr.bf16.mxu0 %v15679_v33  ;;  %11517 = vmatprep.subr.bf16.mxu1 %v15682_v34  ;;  %v15769_v33 = vld [vmem:[%s17715_s19 + $0x1324] ss:$16 sps:$4 sm:$0xff]   ;;  %v15772_v34 = vld [vmem:[%s17715_s19 + $0x132c] ss:$16 sps:$4 sm:$0xff]  }
 0x2c8   : > { %10493 = vmatpush1.bf16.msra.mxu0 %v15677_v26  ;;  %11518 = vmatpush1.bf16.msra.mxu1 %v15680_v35  ;;  %v15767_v26 = vld [vmem:[%s17715_s19 + $0x1320] ss:$16 sps:$4 sm:$0xff]   ;;  %v15770_v35 = vld [vmem:[%s17715_s19 + $0x1328] ss:$16 sps:$4 sm:$0xff]  }
 0x2c9   : > { %10494 = vmatprep.subr.bf16.mxu0 %v15685_v37  ;;  %11519 = vmatprep.subr.bf16.mxu1 %v15688_v38  ;;  %v15775_v37 = vld [vmem:[%s17715_s19 + $0x1344] ss:$16 sps:$4 sm:$0xff]   ;;  %v15778_v38 = vld [vmem:[%s17715_s19 + $0x134c] ss:$16 sps:$4 sm:$0xff]  }
 0x2cc   : > { %10495 = vmatpush1.bf16.msra.mxu0 %v15683_v40  ;;  %11520 = vmatpush1.bf16.msra.mxu1 %v15686_v41  ;;  %v15773_v40 = vld [vmem:[%s17715_s19 + $0x1340] ss:$16 sps:$4 sm:$0xff]   ;;  %v15776_v41 = vld [vmem:[%s17715_s19 + $0x1348] ss:$16 sps:$4 sm:$0xff]  }
 0x2cd   : > { %10496 = vmatprep.subr.bf16.mxu0 %v15691_v22  ;;  %11521 = vmatprep.subr.bf16.mxu1 %v15694_v42  ;;  %v15781_v22 = vld [vmem:[%s17715_s19 + $0x1364] ss:$16 sps:$4 sm:$0xff]   ;;  %v15784_v42 = vld [vmem:[%s17715_s19 + $0x136c] ss:$16 sps:$4 sm:$0xff]  }
 0x2d0   : > { %10497 = vmatpush1.bf16.msra.mxu0 %v15689_v43  ;;  %11522 = vmatpush1.bf16.msra.mxu1 %v15692_v45  ;;  %v15779_v43 = vld [vmem:[%s17715_s19 + $0x1360] ss:$16 sps:$4 sm:$0xff]   ;;  %v15782_v45 = vld [vmem:[%s17715_s19 + $0x1368] ss:$16 sps:$4 sm:$0xff]  }
 0x2d1   : > { %10498 = vmatprep.subr.bf16.mxu0 %v15697_v46  ;;  %11523 = vmatprep.subr.bf16.mxu1 %v15700_v47  ;;  %v15787_v46 = vld [vmem:[%s17715_s19 + $0x1384] ss:$16 sps:$4 sm:$0xff]   ;;  %v15790_v47 = vld [vmem:[%s17715_s19 + $0x138c] ss:$16 sps:$4 sm:$0xff]  }
 0x2d4   : > { %10499 = vmatpush1.bf16.msra.mxu0 %v15695_v48  ;;  %11524 = vmatpush1.bf16.msra.mxu1 %v15698_v51  ;;  %v15785_v48 = vld [vmem:[%s17715_s19 + $0x1380] ss:$16 sps:$4 sm:$0xff]   ;;  %v15788_v51 = vld [vmem:[%s17715_s19 + $0x1388] ss:$16 sps:$4 sm:$0xff]  }
 0x2d5   : > { %10500 = vmatprep.subr.bf16.mxu0 %v15703_v52  ;;  %11525 = vmatprep.subr.bf16.mxu1 %v15706_v54  ;;  %v15793_v52 = vld [vmem:[%s17715_s19 + $0x13a4] ss:$16 sps:$4 sm:$0xff]   ;;  %v15796_v54 = vld [vmem:[%s17715_s19 + $0x13ac] ss:$16 sps:$4 sm:$0xff]  }
 0x2d8   : > { %10501 = vmatpush1.bf16.msra.mxu0 %v15701_v55  ;;  %11526 = vmatpush1.bf16.msra.mxu1 %v15704_v56  ;;  %v15791_v55 = vld [vmem:[%s17715_s19 + $0x13a0] ss:$16 sps:$4 sm:$0xff]   ;;  %v15794_v56 = vld [vmem:[%s17715_s19 + $0x13a8] ss:$16 sps:$4 sm:$0xff]  }
 0x2d9   : > { %10502 = vmatprep.subr.bf16.mxu0 %v15709_v39  ;;  %11527 = vmatprep.subr.bf16.mxu1 %v15712_v57  ;;  %v15799_v39 = vld [vmem:[%s17715_s19 + $0x13c4] ss:$16 sps:$4 sm:$0xff]   ;;  %v15802_v57 = vld [vmem:[%s17715_s19 + $0x13cc] ss:$16 sps:$4 sm:$0xff]  }
 0x2dc   : > { %10503 = vmatpush1.bf16.msra.mxu0 %v15707_v58  ;;  %11528 = vmatpush1.bf16.msra.mxu1 %v15710_v59  ;;  %v17206_v58 = vld [vmem:[%s17733_s29 + $0x10] sm:$0xff] }
 0x2dd   : > { %10513 = vmatprep.subr.bf16.mxu0 %v15715_v49  ;;  %11538 = vmatprep.subr.bf16.mxu1 %v15718_v60  ;;  %v2045_v59 = vcombine.high %v17206_v58, %v17206_v58  ;;  %v15797_v49 = vld [vmem:[%s17715_s19 + $0x13c0] ss:$16 sps:$4 sm:$0xff]   ;;  %v15800_v60 = vld [vmem:[%s17715_s19 + $0x13c8] ss:$16 sps:$4 sm:$0xff]  }
 0x2de   : > { %v15881_v58 = vld [vmem:[%s17715_s19 + $0x1580] ss:$16 sps:$4 sm:$0xff]  }
 0x2df   : > { %10505 = vmatmul.mubr.bf16.vlgmr.msra.gmra.mrb[0].mxu0 %v18408_v14  ;;  %11530 = vmatmul.mubr.bf16.vlgmr.msra.gmra.mrb[0].mxu1 %v18408_v14 }
 0x2e0   : > { %10514 = vmatpush1.bf16.msra.mxu0 %v15713_v62  ;;  %11539 = vmatpush1.bf16.msra.mxu1 %v15716_v63  ;;  %v15805_v62 = vld [vmem:[%s17715_s19 + $0x13e4] ss:$16 sps:$4 sm:$0xff]   ;;  %v15808_v63 = vld [vmem:[%s17715_s19 + $0x13ec] ss:$16 sps:$4 sm:$0xff]  }
 0x2e1   : > { %10515 = vmatprep.subr.bf16.mxu0 %v15721_v0  ;;  %11540 = vmatprep.subr.bf16.mxu1 %v15724_v1  ;;  %v18476_v0 = vrot.slane %v2045_v59, %v17784_v50  ;;  %v15803_v1 = vld [vmem:[%s17715_s19 + $0x13e0] ss:$16 sps:$4 sm:$0xff]   ;;  %v15884_v59 = vld [vmem:[%s17715_s19 + $0x1588] ss:$16 sps:$4 sm:$0xff]  }
 0x2e2   : > { %10545 = vmatprep.mubr.bf16.mxu0 %v2092_v2  ;;  %11570 = vmatprep.mubr.bf16.mxu1 %v2092_v2  ;;  %v15806_v2 = vld [vmem:[%s17715_s19 + $0x13e8] ss:$16 sps:$4 sm:$0xff]  }
 0x2e4   : > { %10516 = vmatpush1.bf16.msra.mxu0 %v15719_v36  ;;  %11541 = vmatpush1.bf16.msra.mxu1 %v15722_v3  ;;  %v15811_v36 = vld [vmem:[%s17715_s19 + $0x1404] ss:$16 sps:$4 sm:$0xff]   ;;  %v15814_v3 = vld [vmem:[%s17715_s19 + $0x140c] ss:$16 sps:$4 sm:$0xff]  }
 0x2e5   : > { %10517 = vmatprep.subr.bf16.mxu0 %v15727_v4  ;;  %11542 = vmatprep.subr.bf16.mxu1 %v15730_v5  ;;  %v2061_v4 = vcombine.high %v18476_v0, %v18476_v0  ;;  %v2090_v5 = vcombine.high %v18408_v14, %v18408_v14  ;;  %v15815_v14 = vld [vmem:[%s17715_s19 + $0x1420] ss:$16 sps:$4 sm:$0xff]  }
 0x2e8   : > { %10518 = vmatpush1.bf16.msra.mxu0 %v15725_v61  ;;  %11543 = vmatpush1.bf16.msra.mxu1 %v15728_v6  ;;  %v15809_v61 = vld [vmem:[%s17715_s19 + $0x1400] ss:$16 sps:$4 sm:$0xff]   ;;  %v15812_v6 = vld [vmem:[%s17715_s19 + $0x1408] ss:$16 sps:$4 sm:$0xff]  }
 0x2e9   : > { %10519 = vmatprep.subr.bf16.mxu0 %v15733_v7  ;;  %11544 = vmatprep.subr.bf16.mxu1 %v15736_v8  ;;  %v15817_v7 = vld [vmem:[%s17715_s19 + $0x1424] ss:$16 sps:$4 sm:$0xff]   ;;  %v15820_v8 = vld [vmem:[%s17715_s19 + $0x142c] ss:$16 sps:$4 sm:$0xff]  }
 0x2ec   : > { %10520 = vmatpush1.bf16.msra.mxu0 %v15731_v9  ;;  %11545 = vmatpush1.bf16.msra.mxu1 %v15734_v10  ;;  %v18491_v9 = vrot.slane %v2061_v4, %v17784_v50  ;;  %v15818_v10 = vld [vmem:[%s17715_s19 + $0x1428] ss:$16 sps:$4 sm:$0xff]   ;;  %v15901_v4 = vld [vmem:[%s17715_s19 + $0x15e4] ss:$16 sps:$4 sm:$0xff]  }
 0x2ed   : > { %10521 = vmatprep.subr.bf16.mxu0 %v15739_v11  ;;  %11546 = vmatprep.subr.bf16.mxu1 %v15742_v12  ;;  %v15823_v11 = vld [vmem:[%s17715_s19 + $0x1444] ss:$16 sps:$4 sm:$0xff]   ;;  %v15826_v12 = vld [vmem:[%s17715_s19 + $0x144c] ss:$16 sps:$4 sm:$0xff]  }
 0x2f0   : > { %10522 = vmatpush1.bf16.msra.mxu0 %v15737_v13  ;;  %11547 = vmatpush1.bf16.msra.mxu1 %v15740_v15  ;;  %v15821_v13 = vld [vmem:[%s17715_s19 + $0x1440] ss:$16 sps:$4 sm:$0xff]   ;;  %v15824_v15 = vld [vmem:[%s17715_s19 + $0x1448] ss:$16 sps:$4 sm:$0xff]  }
 0x2f1   : > { %10523 = vmatprep.subr.bf16.mxu0 %v15745_v17  ;;  %11548 = vmatprep.subr.bf16.mxu1 %v15748_v53  ;;  %v15829_v17 = vld [vmem:[%s17715_s19 + $0x1464] ss:$16 sps:$4 sm:$0xff]   ;;  %v15832_v53 = vld [vmem:[%s17715_s19 + $0x146c] ss:$16 sps:$4 sm:$0xff]  }
 0x2f4   : > { %10524 = vmatpush1.bf16.msra.mxu0 %v15743_v18  ;;  %11549 = vmatpush1.bf16.msra.mxu1 %v15746_v19  ;;  %v15827_v18 = vld [vmem:[%s17715_s19 + $0x1460] ss:$16 sps:$4 sm:$0xff]   ;;  %v15830_v19 = vld [vmem:[%s17715_s19 + $0x1468] ss:$16 sps:$4 sm:$0xff]  }
 0x2f5   : > { %10525 = vmatprep.subr.bf16.mxu0 %v15751_v20  ;;  %11550 = vmatprep.subr.bf16.mxu1 %v15754_v21  ;;  %v15835_v20 = vld [vmem:[%s17715_s19 + $0x1484] ss:$16 sps:$4 sm:$0xff]   ;;  %v15838_v21 = vld [vmem:[%s17715_s19 + $0x148c] ss:$16 sps:$4 sm:$0xff]  }
 0x2f8   : > { %10526 = vmatpush1.bf16.msra.mxu0 %v15749_v23  ;;  %11551 = vmatpush1.bf16.msra.mxu1 %v15752_v24  ;;  %v15833_v23 = vld [vmem:[%s17715_s19 + $0x1480] ss:$16 sps:$4 sm:$0xff]   ;;  %v15836_v24 = vld [vmem:[%s17715_s19 + $0x1488] ss:$16 sps:$4 sm:$0xff]  }
 0x2f9   : > { %10527 = vmatprep.subr.bf16.mxu0 %v15757_v25  ;;  %11552 = vmatprep.subr.bf16.mxu1 %v15760_v27  ;;  %v15841_v25 = vld [vmem:[%s17715_s19 + $0x14a4] ss:$16 sps:$4 sm:$0xff]   ;;  %v15844_v27 = vld [vmem:[%s17715_s19 + $0x14ac] ss:$16 sps:$4 sm:$0xff]  }
 0x2fc   : > { %10528 = vmatpush1.bf16.msra.mxu0 %v15755_v28  ;;  %11553 = vmatpush1.bf16.msra.mxu1 %v15758_v29  ;;  %v15839_v28 = vld [vmem:[%s17715_s19 + $0x14a0] ss:$16 sps:$4 sm:$0xff]   ;;  %v15842_v29 = vld [vmem:[%s17715_s19 + $0x14a8] ss:$16 sps:$4 sm:$0xff]  }
 0x2fd   : > { %10529 = vmatprep.subr.bf16.mxu0 %v15763_v30  ;;  %11554 = vmatprep.subr.bf16.mxu1 %v15766_v31  ;;  %v15847_v30 = vld [vmem:[%s17715_s19 + $0x14c4] ss:$16 sps:$4 sm:$0xff]   ;;  %v15850_v31 = vld [vmem:[%s17715_s19 + $0x14cc] ss:$16 sps:$4 sm:$0xff]  }
 0x300   : > { %10530 = vmatpush1.bf16.msra.mxu0 %v15761_v16  ;;  %11555 = vmatpush1.bf16.msra.mxu1 %v15764_v32  ;;  %v15845_v16 = vld [vmem:[%s17715_s19 + $0x14c0] ss:$16 sps:$4 sm:$0xff]   ;;  %v15848_v32 = vld [vmem:[%s17715_s19 + $0x14c8] ss:$16 sps:$4 sm:$0xff]  }
 0x301   : > { %10531 = vmatprep.subr.bf16.mxu0 %v15769_v33  ;;  %11556 = vmatprep.subr.bf16.mxu1 %v15772_v34  ;;  %v15853_v33 = vld [vmem:[%s17715_s19 + $0x14e4] ss:$16 sps:$4 sm:$0xff]   ;;  %v15856_v34 = vld [vmem:[%s17715_s19 + $0x14ec] ss:$16 sps:$4 sm:$0xff]  }
 0x304   : > { %10532 = vmatpush1.bf16.msra.mxu0 %v15767_v26  ;;  %11557 = vmatpush1.bf16.msra.mxu1 %v15770_v35  ;;  %v15851_v26 = vld [vmem:[%s17715_s19 + $0x14e0] ss:$16 sps:$4 sm:$0xff]   ;;  %v15854_v35 = vld [vmem:[%s17715_s19 + $0x14e8] ss:$16 sps:$4 sm:$0xff]  }
 0x305   : > { %10533 = vmatprep.subr.bf16.mxu0 %v15775_v37  ;;  %11558 = vmatprep.subr.bf16.mxu1 %v15778_v38  ;;  %v15859_v37 = vld [vmem:[%s17715_s19 + $0x1504] ss:$16 sps:$4 sm:$0xff]   ;;  %v15862_v38 = vld [vmem:[%s17715_s19 + $0x150c] ss:$16 sps:$4 sm:$0xff]  }
 0x308   : > { %10534 = vmatpush1.bf16.msra.mxu0 %v15773_v40  ;;  %11559 = vmatpush1.bf16.msra.mxu1 %v15776_v41  ;;  %v15857_v40 = vld [vmem:[%s17715_s19 + $0x1500] ss:$16 sps:$4 sm:$0xff]   ;;  %v15860_v41 = vld [vmem:[%s17715_s19 + $0x1508] ss:$16 sps:$4 sm:$0xff]  }
 0x309   : > { %10535 = vmatprep.subr.bf16.mxu0 %v15781_v22  ;;  %11560 = vmatprep.subr.bf16.mxu1 %v15784_v42  ;;  %v15865_v22 = vld [vmem:[%s17715_s19 + $0x1524] ss:$16 sps:$4 sm:$0xff]   ;;  %v15868_v42 = vld [vmem:[%s17715_s19 + $0x152c] ss:$16 sps:$4 sm:$0xff]  }
 0x30c   : > { %10536 = vmatpush1.bf16.msra.mxu0 %v15779_v43  ;;  %11561 = vmatpush1.bf16.msra.mxu1 %v15782_v45  ;;  %v15863_v43 = vld [vmem:[%s17715_s19 + $0x1520] ss:$16 sps:$4 sm:$0xff]   ;;  %v15866_v45 = vld [vmem:[%s17715_s19 + $0x1528] ss:$16 sps:$4 sm:$0xff]  }
 0x30d   : > { %10537 = vmatprep.subr.bf16.mxu0 %v15787_v46  ;;  %11562 = vmatprep.subr.bf16.mxu1 %v15790_v47  ;;  %v15871_v46 = vld [vmem:[%s17715_s19 + $0x1544] ss:$16 sps:$4 sm:$0xff]   ;;  %v15874_v47 = vld [vmem:[%s17715_s19 + $0x154c] ss:$16 sps:$4 sm:$0xff]  }
 0x310   : > { %10538 = vmatpush1.bf16.msra.mxu0 %v15785_v48  ;;  %11563 = vmatpush1.bf16.msra.mxu1 %v15788_v51  ;;  %v15869_v48 = vld [vmem:[%s17715_s19 + $0x1540] ss:$16 sps:$4 sm:$0xff]   ;;  %v15872_v51 = vld [vmem:[%s17715_s19 + $0x1548] ss:$16 sps:$4 sm:$0xff]  }
 0x311   : > { %10539 = vmatprep.subr.bf16.mxu0 %v15793_v52  ;;  %11564 = vmatprep.subr.bf16.mxu1 %v15796_v54  ;;  %v15877_v52 = vld [vmem:[%s17715_s19 + $0x1564] ss:$16 sps:$4 sm:$0xff]   ;;  %v15880_v54 = vld [vmem:[%s17715_s19 + $0x156c] ss:$16 sps:$4 sm:$0xff]  }
 0x314   : > { %10540 = vmatpush1.bf16.msra.mxu0 %v15791_v55  ;;  %11565 = vmatpush1.bf16.msra.mxu1 %v15794_v56  ;;  %v15875_v55 = vld [vmem:[%s17715_s19 + $0x1560] ss:$16 sps:$4 sm:$0xff]   ;;  %v15878_v56 = vld [vmem:[%s17715_s19 + $0x1568] ss:$16 sps:$4 sm:$0xff]  }
 0x315   : > { %10541 = vmatprep.subr.bf16.mxu0 %v15799_v39  ;;  %11566 = vmatprep.subr.bf16.mxu1 %v15802_v57  ;;  %v15883_v39 = vld [vmem:[%s17715_s19 + $0x1584] ss:$16 sps:$4 sm:$0xff]   ;;  %v15886_v57 = vld [vmem:[%s17715_s19 + $0x158c] ss:$16 sps:$4 sm:$0xff]  }
 0x318   : > { %10542 = vmatpush1.bf16.msra.mxu0 %v15797_v49  ;;  %11567 = vmatpush1.bf16.msra.mxu1 %v15800_v60  ;;  %v15889_v49 = vld [vmem:[%s17715_s19 + $0x15a4] ss:$16 sps:$4 sm:$0xff]   ;;  %v15892_v60 = vld [vmem:[%s17715_s19 + $0x15ac] ss:$16 sps:$4 sm:$0xff]  }
 0x319   : > { %10543 = vmatprep.subr.bf16.mxu0 %v15805_v62  ;;  %11568 = vmatprep.subr.bf16.mxu1 %v15808_v63  ;;  %v15887_v62 = vld [vmem:[%s17715_s19 + $0x15a0] ss:$16 sps:$4 sm:$0xff]   ;;  %v15890_v63 = vld [vmem:[%s17715_s19 + $0x15a8] ss:$16 sps:$4 sm:$0xff]  }
 0x31c   : > { %10544 = vmatpush1.bf16.msra.mxu0 %v15803_v1  ;;  %11569 = vmatpush1.bf16.msra.mxu1 %v15806_v2  ;;  %v15895_v1 = vld [vmem:[%s17715_s19 + $0x15c4] ss:$16 sps:$4 sm:$0xff]   ;;  %v15898_v2 = vld [vmem:[%s17715_s19 + $0x15cc] ss:$16 sps:$4 sm:$0xff]  }
 0x31d   : > { %10554 = vmatprep.subr.bf16.mxu0 %v15811_v36  ;;  %11579 = vmatprep.subr.bf16.mxu1 %v15814_v3  ;;  %v15893_v36 = vld [vmem:[%s17715_s19 + $0x15c0] ss:$16 sps:$4 sm:$0xff]   ;;  %v15896_v3 = vld [vmem:[%s17715_s19 + $0x15c8] ss:$16 sps:$4 sm:$0xff]  }
 0x31f   : > { %10546 = vmatmul.mubr.bf16.vlgmr.msra.gmra.mrb[0].mxu0 %v2090_v5  ;;  %11571 = vmatmul.mubr.bf16.vlgmr.msra.gmra.mrb[0].mxu1 %v2090_v5  ;;  %v15904_v5 = vld [vmem:[%s17715_s19 + $0x15ec] ss:$16 sps:$4 sm:$0xff]  }
 0x320   : > { %10555 = vmatpush1.bf16.msra.mxu0 %v15809_v61  ;;  %11580 = vmatpush1.bf16.msra.mxu1 %v15812_v6  ;;  %v15899_v61 = vld [vmem:[%s17715_s19 + $0x15e0] ss:$16 sps:$4 sm:$0xff]   ;;  %v15902_v6 = vld [vmem:[%s17715_s19 + $0x15e8] ss:$16 sps:$4 sm:$0xff]  }
 0x321   : > { %10556 = vmatprep.subr.bf16.mxu0 %v15817_v7  ;;  %11581 = vmatprep.subr.bf16.mxu1 %v15820_v8  ;;  %v15908_v7 = vld [vmem:[%s17715_s19 + $0x1604] ss:$16 sps:$4 sm:$0xff]   ;;  %v15911_v8 = vld [vmem:[%s17715_s19 + $0x160c] ss:$16 sps:$4 sm:$0xff]  }
 0x322   : > { %10586 = vmatprep.mubr.bf16.mxu0 %v18491_v9  ;;  %11611 = vmatprep.mubr.bf16.mxu1 %v18491_v9 }
 0x324   : > { %10557 = vmatpush1.bf16.msra.mxu0 %v15815_v14  ;;  %11582 = vmatpush1.bf16.msra.mxu1 %v15818_v10  ;;  %v18557_v14 = vrot.slane %v18476_v0, %v17784_v50  ;;  %v15906_v10 = vld [vmem:[%s17715_s19 + $0x1600] ss:$16 sps:$4 sm:$0xff]  }
 0x325   : > { %10558 = vmatprep.subr.bf16.mxu0 %v15823_v11  ;;  %11583 = vmatprep.subr.bf16.mxu1 %v15826_v12  ;;  %v15909_v11 = vld [vmem:[%s17715_s19 + $0x1608] ss:$16 sps:$4 sm:$0xff]   ;;  %v15914_v12 = vld [vmem:[%s17715_s19 + $0x1624] ss:$16 sps:$4 sm:$0xff]   ;;  %v15912_v0 = vld [vmem:[%s17715_s19 + $0x1620] ss:$16 sps:$4 sm:$0xff]  }
 0x328   : > { %10559 = vmatpush1.bf16.msra.mxu0 %v15821_v13  ;;  %11584 = vmatpush1.bf16.msra.mxu1 %v15824_v15  ;;  %v15917_v13 = vld [vmem:[%s17715_s19 + $0x162c] ss:$16 sps:$4 sm:$0xff]   ;;  %v2093_v15 = vcombine.high %v18491_v9, %v18491_v9  ;;  %v15918_v9 = vld [vmem:[%s17715_s19 + $0x1640] ss:$16 sps:$4 sm:$0xff]  }
 0x329   : > { %10560 = vmatprep.subr.bf16.mxu0 %v15829_v17  ;;  %11585 = vmatprep.subr.bf16.mxu1 %v15832_v53  ;;  %v15915_v17 = vld [vmem:[%s17715_s19 + $0x1628] ss:$16 sps:$4 sm:$0xff]   ;;  %v15920_v53 = vld [vmem:[%s17715_s19 + $0x1644] ss:$16 sps:$4 sm:$0xff]  }
 0x32c   : > { %10561 = vmatpush1.bf16.msra.mxu0 %v15827_v18  ;;  %11586 = vmatpush1.bf16.msra.mxu1 %v15830_v19  ;;  %v15923_v18 = vld [vmem:[%s17715_s19 + $0x164c] ss:$16 sps:$4 sm:$0xff]   ;;  %v15921_v19 = vld [vmem:[%s17715_s19 + $0x1648] ss:$16 sps:$4 sm:$0xff]  }
 0x32d   : > { %10562 = vmatprep.subr.bf16.mxu0 %v15835_v20  ;;  %11587 = vmatprep.subr.bf16.mxu1 %v15838_v21  ;;  %v15926_v20 = vld [vmem:[%s17715_s19 + $0x1664] ss:$16 sps:$4 sm:$0xff]   ;;  %v15929_v21 = vld [vmem:[%s17715_s19 + $0x166c] ss:$16 sps:$4 sm:$0xff]  }
 0x330   : > { %10563 = vmatpush1.bf16.msra.mxu0 %v15833_v23  ;;  %11588 = vmatpush1.bf16.msra.mxu1 %v15836_v24  ;;  %v15924_v23 = vld [vmem:[%s17715_s19 + $0x1660] ss:$16 sps:$4 sm:$0xff]   ;;  %v15927_v24 = vld [vmem:[%s17715_s19 + $0x1668] ss:$16 sps:$4 sm:$0xff]  }
 0x331   : > { %10564 = vmatprep.subr.bf16.mxu0 %v15841_v25  ;;  %11589 = vmatprep.subr.bf16.mxu1 %v15844_v27  ;;  %v15932_v25 = vld [vmem:[%s17715_s19 + $0x1684] ss:$16 sps:$4 sm:$0xff]   ;;  %v15935_v27 = vld [vmem:[%s17715_s19 + $0x168c] ss:$16 sps:$4 sm:$0xff]  }
 0x334   : > { %10565 = vmatpush1.bf16.msra.mxu0 %v15839_v28  ;;  %11590 = vmatpush1.bf16.msra.mxu1 %v15842_v29  ;;  %v15930_v28 = vld [vmem:[%s17715_s19 + $0x1680] ss:$16 sps:$4 sm:$0xff]   ;;  %v15933_v29 = vld [vmem:[%s17715_s19 + $0x1688] ss:$16 sps:$4 sm:$0xff]  }
 0x335   : > { %10566 = vmatprep.subr.bf16.mxu0 %v15847_v30  ;;  %11591 = vmatprep.subr.bf16.mxu1 %v15850_v31  ;;  %v15938_v30 = vld [vmem:[%s17715_s19 + $0x16a4] ss:$16 sps:$4 sm:$0xff]   ;;  %v15941_v31 = vld [vmem:[%s17715_s19 + $0x16ac] ss:$16 sps:$4 sm:$0xff]  }
 0x338   : > { %10567 = vmatpush1.bf16.msra.mxu0 %v15845_v16  ;;  %11592 = vmatpush1.bf16.msra.mxu1 %v15848_v32  ;;  %v15936_v16 = vld [vmem:[%s17715_s19 + $0x16a0] ss:$16 sps:$4 sm:$0xff]   ;;  %v15939_v32 = vld [vmem:[%s17715_s19 + $0x16a8] ss:$16 sps:$4 sm:$0xff]  }
 0x339   : > { %10568 = vmatprep.subr.bf16.mxu0 %v15853_v33  ;;  %11593 = vmatprep.subr.bf16.mxu1 %v15856_v34  ;;  %v15944_v33 = vld [vmem:[%s17715_s19 + $0x16c4] ss:$16 sps:$4 sm:$0xff]   ;;  %v15947_v34 = vld [vmem:[%s17715_s19 + $0x16cc] ss:$16 sps:$4 sm:$0xff]  }
 0x33c   : > { %10569 = vmatpush1.bf16.msra.mxu0 %v15851_v26  ;;  %11594 = vmatpush1.bf16.msra.mxu1 %v15854_v35  ;;  %v15942_v26 = vld [vmem:[%s17715_s19 + $0x16c0] ss:$16 sps:$4 sm:$0xff]   ;;  %v15945_v35 = vld [vmem:[%s17715_s19 + $0x16c8] ss:$16 sps:$4 sm:$0xff]  }
 0x33d   : > { %10570 = vmatprep.subr.bf16.mxu0 %v15859_v37  ;;  %11595 = vmatprep.subr.bf16.mxu1 %v15862_v38  ;;  %v15950_v37 = vld [vmem:[%s17715_s19 + $0x16e4] ss:$16 sps:$4 sm:$0xff]   ;;  %v15953_v38 = vld [vmem:[%s17715_s19 + $0x16ec] ss:$16 sps:$4 sm:$0xff]  }
 0x340   : > { %10571 = vmatpush1.bf16.msra.mxu0 %v15857_v40  ;;  %11596 = vmatpush1.bf16.msra.mxu1 %v15860_v41  ;;  %v15948_v40 = vld [vmem:[%s17715_s19 + $0x16e0] ss:$16 sps:$4 sm:$0xff]   ;;  %v15951_v41 = vld [vmem:[%s17715_s19 + $0x16e8] ss:$16 sps:$4 sm:$0xff]  }
 0x341   : > { %10572 = vmatprep.subr.bf16.mxu0 %v15865_v22  ;;  %11597 = vmatprep.subr.bf16.mxu1 %v15868_v42  ;;  %v15956_v22 = vld [vmem:[%s17715_s19 + $0x1704] ss:$16 sps:$4 sm:$0xff]   ;;  %v15959_v42 = vld [vmem:[%s17715_s19 + $0x170c] ss:$16 sps:$4 sm:$0xff]  }
 0x344   : > { %10573 = vmatpush1.bf16.msra.mxu0 %v15863_v43  ;;  %11598 = vmatpush1.bf16.msra.mxu1 %v15866_v45  ;;  %v15954_v43 = vld [vmem:[%s17715_s19 + $0x1700] ss:$16 sps:$4 sm:$0xff]   ;;  %v15957_v45 = vld [vmem:[%s17715_s19 + $0x1708] ss:$16 sps:$4 sm:$0xff]  }
 0x345   : > { %10574 = vmatprep.subr.bf16.mxu0 %v15871_v46  ;;  %11599 = vmatprep.subr.bf16.mxu1 %v15874_v47  ;;  %v15962_v46 = vld [vmem:[%s17715_s19 + $0x1724] ss:$16 sps:$4 sm:$0xff]   ;;  %v15965_v47 = vld [vmem:[%s17715_s19 + $0x172c] ss:$16 sps:$4 sm:$0xff]  }
 0x348   : > { %10575 = vmatpush1.bf16.msra.mxu0 %v15869_v48  ;;  %11600 = vmatpush1.bf16.msra.mxu1 %v15872_v51  ;;  %v15960_v48 = vld [vmem:[%s17715_s19 + $0x1720] ss:$16 sps:$4 sm:$0xff]   ;;  %v15963_v51 = vld [vmem:[%s17715_s19 + $0x1728] ss:$16 sps:$4 sm:$0xff]  }
 0x349   : > { %10576 = vmatprep.subr.bf16.mxu0 %v15877_v52  ;;  %11601 = vmatprep.subr.bf16.mxu1 %v15880_v54  ;;  %v15968_v52 = vld [vmem:[%s17715_s19 + $0x1744] ss:$16 sps:$4 sm:$0xff]   ;;  %v15971_v54 = vld [vmem:[%s17715_s19 + $0x174c] ss:$16 sps:$4 sm:$0xff]  }
 0x34c   : > { %10577 = vmatpush1.bf16.msra.mxu0 %v15875_v55  ;;  %11602 = vmatpush1.bf16.msra.mxu1 %v15878_v56  ;;  %v15966_v55 = vld [vmem:[%s17715_s19 + $0x1740] ss:$16 sps:$4 sm:$0xff]   ;;  %v15969_v56 = vld [vmem:[%s17715_s19 + $0x1748] ss:$16 sps:$4 sm:$0xff]  }
 0x34d   : > { %10578 = vmatprep.subr.bf16.mxu0 %v15883_v39  ;;  %11603 = vmatprep.subr.bf16.mxu1 %v15886_v57  ;;  %v15974_v39 = vld [vmem:[%s17715_s19 + $0x1764] ss:$16 sps:$4 sm:$0xff]   ;;  %v15977_v57 = vld [vmem:[%s17715_s19 + $0x176c] ss:$16 sps:$4 sm:$0xff]  }
 0x350   : > { %10579 = vmatpush1.bf16.msra.mxu0 %v15881_v58  ;;  %11604 = vmatpush1.bf16.msra.mxu1 %v15884_v59  ;;  %v15972_v58 = vld [vmem:[%s17715_s19 + $0x1760] ss:$16 sps:$4 sm:$0xff]   ;;  %v15975_v59 = vld [vmem:[%s17715_s19 + $0x1768] ss:$16 sps:$4 sm:$0xff]  }
 0x351   : > { %10580 = vmatprep.subr.bf16.mxu0 %v15889_v49  ;;  %11605 = vmatprep.subr.bf16.mxu1 %v15892_v60  ;;  %v15980_v49 = vld [vmem:[%s17715_s19 + $0x1784] ss:$16 sps:$4 sm:$0xff]   ;;  %v15983_v60 = vld [vmem:[%s17715_s19 + $0x178c] ss:$16 sps:$4 sm:$0xff]  }
 0x354   : > { %10581 = vmatpush1.bf16.msra.mxu0 %v15887_v62  ;;  %11606 = vmatpush1.bf16.msra.mxu1 %v15890_v63  ;;  %v15978_v62 = vld [vmem:[%s17715_s19 + $0x1780] ss:$16 sps:$4 sm:$0xff]   ;;  %v15981_v63 = vld [vmem:[%s17715_s19 + $0x1788] ss:$16 sps:$4 sm:$0xff]  }
 0x355   : > { %10582 = vmatprep.subr.bf16.mxu0 %v15895_v1  ;;  %11607 = vmatprep.subr.bf16.mxu1 %v15898_v2  ;;  %v15986_v1 = vld [vmem:[%s17715_s19 + $0x17a4] ss:$16 sps:$4 sm:$0xff]   ;;  %v15989_v2 = vld [vmem:[%s17715_s19 + $0x17ac] ss:$16 sps:$4 sm:$0xff]  }
 0x358   : > { %10583 = vmatpush1.bf16.msra.mxu0 %v15893_v36  ;;  %11608 = vmatpush1.bf16.msra.mxu1 %v15896_v3  ;;  %v15984_v36 = vld [vmem:[%s17715_s19 + $0x17a0] ss:$16 sps:$4 sm:$0xff]   ;;  %v15987_v3 = vld [vmem:[%s17715_s19 + $0x17a8] ss:$16 sps:$4 sm:$0xff]  }
 0x359   : > { %10584 = vmatprep.subr.bf16.mxu0 %v15901_v4  ;;  %11609 = vmatprep.subr.bf16.mxu1 %v15904_v5  ;;  %v15992_v4 = vld [vmem:[%s17715_s19 + $0x17c4] ss:$16 sps:$4 sm:$0xff]   ;;  %v15995_v5 = vld [vmem:[%s17715_s19 + $0x17cc] ss:$16 sps:$4 sm:$0xff]  }
 0x35c   : > { %10585 = vmatpush1.bf16.msra.mxu0 %v15899_v61  ;;  %11610 = vmatpush1.bf16.msra.mxu1 %v15902_v6  ;;  %v18620_v61 = vld [vmem:[%s17733_s29 + $0x18] sm:$0xff] }
 0x35d   : > { %10595 = vmatprep.subr.bf16.mxu0 %v15908_v7  ;;  %11620 = vmatprep.subr.bf16.mxu1 %v15911_v8  ;;  %v15990_v6 = vld [vmem:[%s17715_s19 + $0x17c0] ss:$16 sps:$4 sm:$0xff]   ;;  %v15993_v7 = vld [vmem:[%s17715_s19 + $0x17c8] ss:$16 sps:$4 sm:$0xff]   ;;  %v15998_v8 = vld [vmem:[%s17715_s19 + $0x17e4] ss:$16 sps:$4 sm:$0xff]  }
 0x35f   : > { %10587 = vmatmul.mubr.bf16.vlgmr.msra.gmra.mrb[0].mxu0 %v18557_v14  ;;  %11612 = vmatmul.mubr.bf16.vlgmr.msra.gmra.mrb[0].mxu1 %v18557_v14 }
 0x360   : > { %10596 = vmatpush1.bf16.msra.mxu0 %v15906_v10  ;;  %11621 = vmatpush1.bf16.msra.mxu1 %v15909_v11  ;;  %v16001_v10 = vld [vmem:[%s17715_s19 + $0x17ec] ss:$16 sps:$4 sm:$0xff]   ;;  %v18628_v11 = vrot.slane %v18620_v61, %v17784_v50 }
 0x361   : > { %10597 = vmatprep.subr.bf16.mxu0 %v15914_v12  ;;  %11622 = vmatprep.subr.bf16.mxu1 %v15917_v13  ;;  %v15996_v12 = vld [vmem:[%s17715_s19 + $0x17e0] ss:$16 sps:$4 sm:$0xff]   ;;  %v15999_v13 = vld [vmem:[%s17715_s19 + $0x17e8] ss:$16 sps:$4 sm:$0xff]  }
 0x362   : > { %10627 = vmatprep.mubr.bf16.mxu0 %v2093_v15  ;;  %11652 = vmatprep.mubr.bf16.mxu1 %v2093_v15  ;;  %v16004_v15 = vld [vmem:[%s17715_s19 + $0x1804] ss:$16 sps:$4 sm:$0xff]  }
 0x364   : > { %10598 = vmatpush1.bf16.msra.mxu0 %v15912_v0  ;;  %11623 = vmatpush1.bf16.msra.mxu1 %v15915_v17  ;;  %v16007_v0 = vld [vmem:[%s17715_s19 + $0x180c] ss:$16 sps:$4 sm:$0xff]   ;;  %v2109_v17 = vcombine.high %v18628_v11, %v18628_v11 }
 0x365   : > { %10599 = vmatprep.subr.bf16.mxu0 %v15920_v53  ;;  %11624 = vmatprep.subr.bf16.mxu1 %v15923_v18  ;;  %v2091_v53 = vcombine.high %v18557_v14, %v18557_v14  ;;  %v16002_v18 = vld [vmem:[%s17715_s19 + $0x1800] ss:$16 sps:$4 sm:$0xff]  }
 0x366   : > { %v16008_v14 = vld [vmem:[%s17715_s19 + $0x1820] ss:$16 sps:$4 sm:$0xff]  }
 0x368   : > { %10600 = vmatpush1.bf16.msra.mxu0 %v15918_v9  ;;  %11625 = vmatpush1.bf16.msra.mxu1 %v15921_v19  ;;  %v16005_v9 = vld [vmem:[%s17715_s19 + $0x1808] ss:$16 sps:$4 sm:$0xff]   ;;  %v16010_v19 = vld [vmem:[%s17715_s19 + $0x1824] ss:$16 sps:$4 sm:$0xff]  }
 0x369   : > { %10601 = vmatprep.subr.bf16.mxu0 %v15926_v20  ;;  %11626 = vmatprep.subr.bf16.mxu1 %v15929_v21  ;;  %v16013_v20 = vld [vmem:[%s17715_s19 + $0x182c] ss:$16 sps:$4 sm:$0xff]   ;;  %v18643_v21 = vrot.slane %v2109_v17, %v17784_v50  ;;  %v16089_v17 = vld [vmem:[%s17715_s19 + $0x19c8] ss:$16 sps:$4 sm:$0xff]  }
 0x36c   : > { %10602 = vmatpush1.bf16.msra.mxu0 %v15924_v23  ;;  %11627 = vmatpush1.bf16.msra.mxu1 %v15927_v24  ;;  %v16011_v23 = vld [vmem:[%s17715_s19 + $0x1828] ss:$16 sps:$4 sm:$0xff]   ;;  %v16016_v24 = vld [vmem:[%s17715_s19 + $0x1844] ss:$16 sps:$4 sm:$0xff]  }
 0x36d   : > { %10603 = vmatprep.subr.bf16.mxu0 %v15932_v25  ;;  %11628 = vmatprep.subr.bf16.mxu1 %v15935_v27  ;;  %v16019_v25 = vld [vmem:[%s17715_s19 + $0x184c] ss:$16 sps:$4 sm:$0xff]   ;;  %v16014_v27 = vld [vmem:[%s17715_s19 + $0x1840] ss:$16 sps:$4 sm:$0xff]  }
 0x370   : > { %10604 = vmatpush1.bf16.msra.mxu0 %v15930_v28  ;;  %11629 = vmatpush1.bf16.msra.mxu1 %v15933_v29  ;;  %v16017_v28 = vld [vmem:[%s17715_s19 + $0x1848] ss:$16 sps:$4 sm:$0xff]   ;;  %v16022_v29 = vld [vmem:[%s17715_s19 + $0x1864] ss:$16 sps:$4 sm:$0xff]  }
 0x371   : > { %10605 = vmatprep.subr.bf16.mxu0 %v15938_v30  ;;  %11630 = vmatprep.subr.bf16.mxu1 %v15941_v31  ;;  %v16025_v30 = vld [vmem:[%s17715_s19 + $0x186c] ss:$16 sps:$4 sm:$0xff]   ;;  %v16020_v31 = vld [vmem:[%s17715_s19 + $0x1860] ss:$16 sps:$4 sm:$0xff]  }
 0x374   : > { %10606 = vmatpush1.bf16.msra.mxu0 %v15936_v16  ;;  %11631 = vmatpush1.bf16.msra.mxu1 %v15939_v32  ;;  %v16023_v16 = vld [vmem:[%s17715_s19 + $0x1868] ss:$16 sps:$4 sm:$0xff]   ;;  %v16028_v32 = vld [vmem:[%s17715_s19 + $0x1884] ss:$16 sps:$4 sm:$0xff]  }
 0x375   : > { %10607 = vmatprep.subr.bf16.mxu0 %v15944_v33  ;;  %11632 = vmatprep.subr.bf16.mxu1 %v15947_v34  ;;  %v16031_v33 = vld [vmem:[%s17715_s19 + $0x188c] ss:$16 sps:$4 sm:$0xff]   ;;  %v16026_v34 = vld [vmem:[%s17715_s19 + $0x1880] ss:$16 sps:$4 sm:$0xff]  }
 0x378   : > { %10608 = vmatpush1.bf16.msra.mxu0 %v15942_v26  ;;  %11633 = vmatpush1.bf16.msra.mxu1 %v15945_v35  ;;  %v16029_v26 = vld [vmem:[%s17715_s19 + $0x1888] ss:$16 sps:$4 sm:$0xff]   ;;  %v16034_v35 = vld [vmem:[%s17715_s19 + $0x18a4] ss:$16 sps:$4 sm:$0xff]  }
 0x379   : > { %10609 = vmatprep.subr.bf16.mxu0 %v15950_v37  ;;  %11634 = vmatprep.subr.bf16.mxu1 %v15953_v38  ;;  %v16037_v37 = vld [vmem:[%s17715_s19 + $0x18ac] ss:$16 sps:$4 sm:$0xff]   ;;  %v16032_v38 = vld [vmem:[%s17715_s19 + $0x18a0] ss:$16 sps:$4 sm:$0xff]  }
 0x37c   : > { %10610 = vmatpush1.bf16.msra.mxu0 %v15948_v40  ;;  %11635 = vmatpush1.bf16.msra.mxu1 %v15951_v41  ;;  %v16035_v40 = vld [vmem:[%s17715_s19 + $0x18a8] ss:$16 sps:$4 sm:$0xff]   ;;  %v16040_v41 = vld [vmem:[%s17715_s19 + $0x18c4] ss:$16 sps:$4 sm:$0xff]  }
 0x37d   : > { %10611 = vmatprep.subr.bf16.mxu0 %v15956_v22  ;;  %11636 = vmatprep.subr.bf16.mxu1 %v15959_v42  ;;  %v16043_v22 = vld [vmem:[%s17715_s19 + $0x18cc] ss:$16 sps:$4 sm:$0xff]   ;;  %v16038_v42 = vld [vmem:[%s17715_s19 + $0x18c0] ss:$16 sps:$4 sm:$0xff]  }
 0x380   : > { %10612 = vmatpush1.bf16.msra.mxu0 %v15954_v43  ;;  %11637 = vmatpush1.bf16.msra.mxu1 %v15957_v45  ;;  %v16041_v43 = vld [vmem:[%s17715_s19 + $0x18c8] ss:$16 sps:$4 sm:$0xff]   ;;  %v16046_v45 = vld [vmem:[%s17715_s19 + $0x18e4] ss:$16 sps:$4 sm:$0xff]  }
 0x381   : > { %10613 = vmatprep.subr.bf16.mxu0 %v15962_v46  ;;  %11638 = vmatprep.subr.bf16.mxu1 %v15965_v47  ;;  %v16049_v46 = vld [vmem:[%s17715_s19 + $0x18ec] ss:$16 sps:$4 sm:$0xff]   ;;  %v16044_v47 = vld [vmem:[%s17715_s19 + $0x18e0] ss:$16 sps:$4 sm:$0xff]  }
 0x384   : > { %10614 = vmatpush1.bf16.msra.mxu0 %v15960_v48  ;;  %11639 = vmatpush1.bf16.msra.mxu1 %v15963_v51  ;;  %v16047_v48 = vld [vmem:[%s17715_s19 + $0x18e8] ss:$16 sps:$4 sm:$0xff]   ;;  %v16052_v51 = vld [vmem:[%s17715_s19 + $0x1904] ss:$16 sps:$4 sm:$0xff]  }
 0x385   : > { %10615 = vmatprep.subr.bf16.mxu0 %v15968_v52  ;;  %11640 = vmatprep.subr.bf16.mxu1 %v15971_v54  ;;  %v16055_v52 = vld [vmem:[%s17715_s19 + $0x190c] ss:$16 sps:$4 sm:$0xff]   ;;  %v16050_v54 = vld [vmem:[%s17715_s19 + $0x1900] ss:$16 sps:$4 sm:$0xff]  }
 0x388   : > { %10616 = vmatpush1.bf16.msra.mxu0 %v15966_v55  ;;  %11641 = vmatpush1.bf16.msra.mxu1 %v15969_v56  ;;  %v16053_v55 = vld [vmem:[%s17715_s19 + $0x1908] ss:$16 sps:$4 sm:$0xff]   ;;  %v16058_v56 = vld [vmem:[%s17715_s19 + $0x1924] ss:$16 sps:$4 sm:$0xff]  }
 0x389   : > { %10617 = vmatprep.subr.bf16.mxu0 %v15974_v39  ;;  %11642 = vmatprep.subr.bf16.mxu1 %v15977_v57  ;;  %v16061_v39 = vld [vmem:[%s17715_s19 + $0x192c] ss:$16 sps:$4 sm:$0xff]   ;;  %v16056_v57 = vld [vmem:[%s17715_s19 + $0x1920] ss:$16 sps:$4 sm:$0xff]  }
 0x38c   : > { %10618 = vmatpush1.bf16.msra.mxu0 %v15972_v58  ;;  %11643 = vmatpush1.bf16.msra.mxu1 %v15975_v59  ;;  %v16059_v58 = vld [vmem:[%s17715_s19 + $0x1928] ss:$16 sps:$4 sm:$0xff]   ;;  %v16064_v59 = vld [vmem:[%s17715_s19 + $0x1944] ss:$16 sps:$4 sm:$0xff]  }
 0x38d   : > { %10619 = vmatprep.subr.bf16.mxu0 %v15980_v49  ;;  %11644 = vmatprep.subr.bf16.mxu1 %v15983_v60  ;;  %v16067_v49 = vld [vmem:[%s17715_s19 + $0x194c] ss:$16 sps:$4 sm:$0xff]   ;;  %v16062_v60 = vld [vmem:[%s17715_s19 + $0x1940] ss:$16 sps:$4 sm:$0xff]  }
 0x390   : > { %10620 = vmatpush1.bf16.msra.mxu0 %v15978_v62  ;;  %11645 = vmatpush1.bf16.msra.mxu1 %v15981_v63  ;;  %v16065_v62 = vld [vmem:[%s17715_s19 + $0x1948] ss:$16 sps:$4 sm:$0xff]   ;;  %v16070_v63 = vld [vmem:[%s17715_s19 + $0x1964] ss:$16 sps:$4 sm:$0xff]  }
 0x391   : > { %10621 = vmatprep.subr.bf16.mxu0 %v15986_v1  ;;  %11646 = vmatprep.subr.bf16.mxu1 %v15989_v2  ;;  %v16073_v1 = vld [vmem:[%s17715_s19 + $0x196c] ss:$16 sps:$4 sm:$0xff]   ;;  %v16068_v2 = vld [vmem:[%s17715_s19 + $0x1960] ss:$16 sps:$4 sm:$0xff]  }
 0x394   : > { %10622 = vmatpush1.bf16.msra.mxu0 %v15984_v36  ;;  %11647 = vmatpush1.bf16.msra.mxu1 %v15987_v3  ;;  %v16071_v36 = vld [vmem:[%s17715_s19 + $0x1968] ss:$16 sps:$4 sm:$0xff]   ;;  %v16076_v3 = vld [vmem:[%s17715_s19 + $0x1984] ss:$16 sps:$4 sm:$0xff]  }
 0x395   : > { %10623 = vmatprep.subr.bf16.mxu0 %v15992_v4  ;;  %11648 = vmatprep.subr.bf16.mxu1 %v15995_v5  ;;  %v16079_v4 = vld [vmem:[%s17715_s19 + $0x198c] ss:$16 sps:$4 sm:$0xff]   ;;  %v16074_v5 = vld [vmem:[%s17715_s19 + $0x1980] ss:$16 sps:$4 sm:$0xff]  }
 0x398   : > { %10624 = vmatpush1.bf16.msra.mxu0 %v15990_v6  ;;  %11649 = vmatpush1.bf16.msra.mxu1 %v15993_v7  ;;  %v16077_v6 = vld [vmem:[%s17715_s19 + $0x1988] ss:$16 sps:$4 sm:$0xff]   ;;  %v16082_v7 = vld [vmem:[%s17715_s19 + $0x19a4] ss:$16 sps:$4 sm:$0xff]  }
 0x399   : > { %10625 = vmatprep.subr.bf16.mxu0 %v15998_v8  ;;  %11650 = vmatprep.subr.bf16.mxu1 %v16001_v10  ;;  %v16085_v8 = vld [vmem:[%s17715_s19 + $0x19ac] ss:$16 sps:$4 sm:$0xff]   ;;  %v16080_v10 = vld [vmem:[%s17715_s19 + $0x19a0] ss:$16 sps:$4 sm:$0xff]  }
 0x39c   : > { %10626 = vmatpush1.bf16.msra.mxu0 %v15996_v12  ;;  %11651 = vmatpush1.bf16.msra.mxu1 %v15999_v13  ;;  %v16083_v12 = vld [vmem:[%s17715_s19 + $0x19a8] ss:$16 sps:$4 sm:$0xff]   ;;  %v16088_v13 = vld [vmem:[%s17715_s19 + $0x19c4] ss:$16 sps:$4 sm:$0xff]  }
 0x39d   : > { %10636 = vmatprep.subr.bf16.mxu0 %v16004_v15  ;;  %11661 = vmatprep.subr.bf16.mxu1 %v16007_v0  ;;  %v16091_v15 = vld [vmem:[%s17715_s19 + $0x19cc] ss:$16 sps:$4 sm:$0xff]   ;;  %v16086_v0 = vld [vmem:[%s17715_s19 + $0x19c0] ss:$16 sps:$4 sm:$0xff]  }
 0x39f   : > { %10628 = vmatmul.mubr.bf16.vlgmr.msra.gmra.mrb[0].mxu0 %v2091_v53  ;;  %11653 = vmatmul.mubr.bf16.vlgmr.msra.gmra.mrb[0].mxu1 %v2091_v53  ;;  %v16094_v53 = vld [vmem:[%s17715_s19 + $0x19e4] ss:$16 sps:$4 sm:$0xff]  }
 0x3a0   : > { %10637 = vmatpush1.bf16.msra.mxu0 %v16002_v18  ;;  %11662 = vmatpush1.bf16.msra.mxu1 %v16005_v9  ;;  %v16097_v18 = vld [vmem:[%s17715_s19 + $0x19ec] ss:$16 sps:$4 sm:$0xff]   ;;  %v16092_v9 = vld [vmem:[%s17715_s19 + $0x19e0] ss:$16 sps:$4 sm:$0xff]  }
 0x3a1   : > { %10638 = vmatprep.subr.bf16.mxu0 %v16010_v19  ;;  %11663 = vmatprep.subr.bf16.mxu1 %v16013_v20  ;;  %v16095_v19 = vld [vmem:[%s17715_s19 + $0x19e8] ss:$16 sps:$4 sm:$0xff]   ;;  %v16100_v20 = vld [vmem:[%s17715_s19 + $0x1a04] ss:$16 sps:$4 sm:$0xff]  }
 0x3a2   : > { %10668 = vmatprep.mubr.bf16.mxu0 %v18643_v21  ;;  %11693 = vmatprep.mubr.bf16.mxu1 %v18643_v21 }
 0x3a4   : > { %10639 = vmatpush1.bf16.msra.mxu0 %v16008_v14  ;;  %11664 = vmatpush1.bf16.msra.mxu1 %v16011_v23  ;;  %v16103_v14 = vld [vmem:[%s17715_s19 + $0x1a0c] ss:$16 sps:$4 sm:$0xff]   ;;  %v18709_v23 = vrot.slane %v18628_v11, %v17784_v50  ;;  %v16104_v11 = vld [vmem:[%s17715_s19 + $0x1a20] ss:$16 sps:$4 sm:$0xff]  }
 0x3a5   : > { %10640 = vmatprep.subr.bf16.mxu0 %v16016_v24  ;;  %11665 = vmatprep.subr.bf16.mxu1 %v16019_v25  ;;  %v16098_v24 = vld [vmem:[%s17715_s19 + $0x1a00] ss:$16 sps:$4 sm:$0xff]   ;;  %v16101_v25 = vld [vmem:[%s17715_s19 + $0x1a08] ss:$16 sps:$4 sm:$0xff]  }
 0x3a8   : > { %10641 = vmatpush1.bf16.msra.mxu0 %v16014_v27  ;;  %11666 = vmatpush1.bf16.msra.mxu1 %v16017_v28  ;;  %v16106_v27 = vld [vmem:[%s17715_s19 + $0x1a24] ss:$16 sps:$4 sm:$0xff]   ;;  %v16109_v28 = vld [vmem:[%s17715_s19 + $0x1a2c] ss:$16 sps:$4 sm:$0xff]  }
 0x3a9   : > { %10642 = vmatprep.subr.bf16.mxu0 %v16022_v29  ;;  %11667 = vmatprep.subr.bf16.mxu1 %v16025_v30  ;;  %v2141_v29 = vcombine.high %v18643_v21, %v18643_v21  ;;  %v16107_v30 = vld [vmem:[%s17715_s19 + $0x1a28] ss:$16 sps:$4 sm:$0xff]   ;;  %v16110_v21 = vld [vmem:[%s17715_s19 + $0x1a40] ss:$16 sps:$4 sm:$0xff]  }
 0x3ac   : > { %10643 = vmatpush1.bf16.msra.mxu0 %v16020_v31  ;;  %11668 = vmatpush1.bf16.msra.mxu1 %v16023_v16  ;;  %v16112_v31 = vld [vmem:[%s17715_s19 + $0x1a44] ss:$16 sps:$4 sm:$0xff]   ;;  %v16115_v16 = vld [vmem:[%s17715_s19 + $0x1a4c] ss:$16 sps:$4 sm:$0xff]  }
 0x3ad   : > { %10644 = vmatprep.subr.bf16.mxu0 %v16028_v32  ;;  %11669 = vmatprep.subr.bf16.mxu1 %v16031_v33  ;;  %v16113_v32 = vld [vmem:[%s17715_s19 + $0x1a48] ss:$16 sps:$4 sm:$0xff]   ;;  %v16118_v33 = vld [vmem:[%s17715_s19 + $0x1a64] ss:$16 sps:$4 sm:$0xff]  }
 0x3b0   : > { %10645 = vmatpush1.bf16.msra.mxu0 %v16026_v34  ;;  %11670 = vmatpush1.bf16.msra.mxu1 %v16029_v26  ;;  %v16121_v34 = vld [vmem:[%s17715_s19 + $0x1a6c] ss:$16 sps:$4 sm:$0xff]   ;;  %v16116_v26 = vld [vmem:[%s17715_s19 + $0x1a60] ss:$16 sps:$4 sm:$0xff]  }
 0x3b1   : > { %10646 = vmatprep.subr.bf16.mxu0 %v16034_v35  ;;  %11671 = vmatprep.subr.bf16.mxu1 %v16037_v37  ;;  %v16119_v35 = vld [vmem:[%s17715_s19 + $0x1a68] ss:$16 sps:$4 sm:$0xff]   ;;  %v16124_v37 = vld [vmem:[%s17715_s19 + $0x1a84] ss:$16 sps:$4 sm:$0xff]  }
 0x3b4   : > { %10647 = vmatpush1.bf16.msra.mxu0 %v16032_v38  ;;  %11672 = vmatpush1.bf16.msra.mxu1 %v16035_v40  ;;  %v16127_v38 = vld [vmem:[%s17715_s19 + $0x1a8c] ss:$16 sps:$4 sm:$0xff]   ;;  %v16122_v40 = vld [vmem:[%s17715_s19 + $0x1a80] ss:$16 sps:$4 sm:$0xff]  }
 0x3b5   : > { %10648 = vmatprep.subr.bf16.mxu0 %v16040_v41  ;;  %11673 = vmatprep.subr.bf16.mxu1 %v16043_v22  ;;  %v16125_v41 = vld [vmem:[%s17715_s19 + $0x1a88] ss:$16 sps:$4 sm:$0xff]   ;;  %v16130_v22 = vld [vmem:[%s17715_s19 + $0x1aa4] ss:$16 sps:$4 sm:$0xff]  }
 0x3b8   : > { %10649 = vmatpush1.bf16.msra.mxu0 %v16038_v42  ;;  %11674 = vmatpush1.bf16.msra.mxu1 %v16041_v43  ;;  %v16133_v42 = vld [vmem:[%s17715_s19 + $0x1aac] ss:$16 sps:$4 sm:$0xff]   ;;  %v16128_v43 = vld [vmem:[%s17715_s19 + $0x1aa0] ss:$16 sps:$4 sm:$0xff]  }
 0x3b9   : > { %10650 = vmatprep.subr.bf16.mxu0 %v16046_v45  ;;  %11675 = vmatprep.subr.bf16.mxu1 %v16049_v46  ;;  %v16131_v45 = vld [vmem:[%s17715_s19 + $0x1aa8] ss:$16 sps:$4 sm:$0xff]   ;;  %v16136_v46 = vld [vmem:[%s17715_s19 + $0x1ac4] ss:$16 sps:$4 sm:$0xff]  }
 0x3bc   : > { %10651 = vmatpush1.bf16.msra.mxu0 %v16044_v47  ;;  %11676 = vmatpush1.bf16.msra.mxu1 %v16047_v48  ;;  %v16139_v47 = vld [vmem:[%s17715_s19 + $0x1acc] ss:$16 sps:$4 sm:$0xff]   ;;  %v16134_v48 = vld [vmem:[%s17715_s19 + $0x1ac0] ss:$16 sps:$4 sm:$0xff]  }
 0x3bd   : > { %10652 = vmatprep.subr.bf16.mxu0 %v16052_v51  ;;  %11677 = vmatprep.subr.bf16.mxu1 %v16055_v52  ;;  %v16137_v51 = vld [vmem:[%s17715_s19 + $0x1ac8] ss:$16 sps:$4 sm:$0xff]   ;;  %v16142_v52 = vld [vmem:[%s17715_s19 + $0x1ae4] ss:$16 sps:$4 sm:$0xff]  }
 0x3c0   : > { %10653 = vmatpush1.bf16.msra.mxu0 %v16050_v54  ;;  %11678 = vmatpush1.bf16.msra.mxu1 %v16053_v55  ;;  %v16145_v54 = vld [vmem:[%s17715_s19 + $0x1aec] ss:$16 sps:$4 sm:$0xff]   ;;  %v16140_v55 = vld [vmem:[%s17715_s19 + $0x1ae0] ss:$16 sps:$4 sm:$0xff]  }
 0x3c1   : > { %10654 = vmatprep.subr.bf16.mxu0 %v16058_v56  ;;  %11679 = vmatprep.subr.bf16.mxu1 %v16061_v39  ;;  %v16143_v56 = vld [vmem:[%s17715_s19 + $0x1ae8] ss:$16 sps:$4 sm:$0xff]   ;;  %v16148_v39 = vld [vmem:[%s17715_s19 + $0x1b04] ss:$16 sps:$4 sm:$0xff]  }
 0x3c4   : > { %10655 = vmatpush1.bf16.msra.mxu0 %v16056_v57  ;;  %11680 = vmatpush1.bf16.msra.mxu1 %v16059_v58  ;;  %v16151_v57 = vld [vmem:[%s17715_s19 + $0x1b0c] ss:$16 sps:$4 sm:$0xff]   ;;  %v16146_v58 = vld [vmem:[%s17715_s19 + $0x1b00] ss:$16 sps:$4 sm:$0xff]  }
 0x3c5   : > { %10656 = vmatprep.subr.bf16.mxu0 %v16064_v59  ;;  %11681 = vmatprep.subr.bf16.mxu1 %v16067_v49  ;;  %v16149_v59 = vld [vmem:[%s17715_s19 + $0x1b08] ss:$16 sps:$4 sm:$0xff]   ;;  %v16154_v49 = vld [vmem:[%s17715_s19 + $0x1b24] ss:$16 sps:$4 sm:$0xff]  }
 0x3c8   : > { %10657 = vmatpush1.bf16.msra.mxu0 %v16062_v60  ;;  %11682 = vmatpush1.bf16.msra.mxu1 %v16065_v62  ;;  %v16157_v60 = vld [vmem:[%s17715_s19 + $0x1b2c] ss:$16 sps:$4 sm:$0xff]   ;;  %v16152_v62 = vld [vmem:[%s17715_s19 + $0x1b20] ss:$16 sps:$4 sm:$0xff]  }
 0x3c9   : > { %10658 = vmatprep.subr.bf16.mxu0 %v16070_v63  ;;  %11683 = vmatprep.subr.bf16.mxu1 %v16073_v1  ;;  %v16155_v63 = vld [vmem:[%s17715_s19 + $0x1b28] ss:$16 sps:$4 sm:$0xff]   ;;  %v16160_v1 = vld [vmem:[%s17715_s19 + $0x1b44] ss:$16 sps:$4 sm:$0xff]  }
 0x3cc   : > { %10659 = vmatpush1.bf16.msra.mxu0 %v16068_v2  ;;  %11684 = vmatpush1.bf16.msra.mxu1 %v16071_v36  ;;  %v16163_v2 = vld [vmem:[%s17715_s19 + $0x1b4c] ss:$16 sps:$4 sm:$0xff]   ;;  %v16158_v36 = vld [vmem:[%s17715_s19 + $0x1b40] ss:$16 sps:$4 sm:$0xff]  }
 0x3cd   : > { %10660 = vmatprep.subr.bf16.mxu0 %v16076_v3  ;;  %11685 = vmatprep.subr.bf16.mxu1 %v16079_v4  ;;  %v16161_v3 = vld [vmem:[%s17715_s19 + $0x1b48] ss:$16 sps:$4 sm:$0xff]   ;;  %v16166_v4 = vld [vmem:[%s17715_s19 + $0x1b64] ss:$16 sps:$4 sm:$0xff]  }
 0x3d0   : > { %10661 = vmatpush1.bf16.msra.mxu0 %v16074_v5  ;;  %11686 = vmatpush1.bf16.msra.mxu1 %v16077_v6  ;;  %v16169_v5 = vld [vmem:[%s17715_s19 + $0x1b6c] ss:$16 sps:$4 sm:$0xff]   ;;  %v16164_v6 = vld [vmem:[%s17715_s19 + $0x1b60] ss:$16 sps:$4 sm:$0xff]  }
 0x3d1   : > { %10662 = vmatprep.subr.bf16.mxu0 %v16082_v7  ;;  %11687 = vmatprep.subr.bf16.mxu1 %v16085_v8  ;;  %v16167_v7 = vld [vmem:[%s17715_s19 + $0x1b68] ss:$16 sps:$4 sm:$0xff]   ;;  %v16172_v8 = vld [vmem:[%s17715_s19 + $0x1b84] ss:$16 sps:$4 sm:$0xff]  }
 0x3d4   : > { %10663 = vmatpush1.bf16.msra.mxu0 %v16080_v10  ;;  %11688 = vmatpush1.bf16.msra.mxu1 %v16083_v12  ;;  %v16175_v10 = vld [vmem:[%s17715_s19 + $0x1b8c] ss:$16 sps:$4 sm:$0xff]   ;;  %v16170_v12 = vld [vmem:[%s17715_s19 + $0x1b80] ss:$16 sps:$4 sm:$0xff]  }
 0x3d5   : > { %10664 = vmatprep.subr.bf16.mxu0 %v16088_v13  ;;  %11689 = vmatprep.subr.bf16.mxu1 %v16091_v15  ;;  %v16173_v13 = vld [vmem:[%s17715_s19 + $0x1b88] ss:$16 sps:$4 sm:$0xff]   ;;  %v16178_v15 = vld [vmem:[%s17715_s19 + $0x1ba4] ss:$16 sps:$4 sm:$0xff]  }
 0x3d8   : > { %10665 = vmatpush1.bf16.msra.mxu0 %v16086_v0  ;;  %11690 = vmatpush1.bf16.msra.mxu1 %v16089_v17  ;;  %v16181_v0 = vld [vmem:[%s17715_s19 + $0x1bac] ss:$16 sps:$4 sm:$0xff]   ;;  %v16176_v17 = vld [vmem:[%s17715_s19 + $0x1ba0] ss:$16 sps:$4 sm:$0xff]  }
 0x3d9   : > { %10666 = vmatprep.subr.bf16.mxu0 %v16094_v53  ;;  %11691 = vmatprep.subr.bf16.mxu1 %v16097_v18  ;;  %v16179_v53 = vld [vmem:[%s17715_s19 + $0x1ba8] ss:$16 sps:$4 sm:$0xff]   ;;  %v16184_v18 = vld [vmem:[%s17715_s19 + $0x1bc4] ss:$16 sps:$4 sm:$0xff]  }
 0x3dc   : > { %10667 = vmatpush1.bf16.msra.mxu0 %v16092_v9  ;;  %11692 = vmatpush1.bf16.msra.mxu1 %v16095_v19  ;;  %v16187_v9 = vld [vmem:[%s17715_s19 + $0x1bcc] ss:$16 sps:$4 sm:$0xff]   ;;  %v2094_v19 = vcombine.high %v18620_v61, %v18620_v61  ;;  %v16188_v61 = vld [vmem:[%s17715_s19 + $0x1be0] ss:$16 sps:$4 sm:$0xff]  }
 0x3dd   : > { %10677 = vmatprep.subr.bf16.mxu0 %v16100_v20  ;;  %11702 = vmatprep.subr.bf16.mxu1 %v16103_v14  ;;  %v16182_v20 = vld [vmem:[%s17715_s19 + $0x1bc0] ss:$16 sps:$4 sm:$0xff]   ;;  %v16185_v14 = vld [vmem:[%s17715_s19 + $0x1bc8] ss:$16 sps:$4 sm:$0xff]  }
 0x3df   : > { %10669 = vmatmul.mubr.bf16.vlgmr.msra.gmra.mrb[0].mxu0 %v18709_v23  ;;  %11694 = vmatmul.mubr.bf16.vlgmr.msra.gmra.mrb[0].mxu1 %v18709_v23 }
 0x3e0   : > { %10678 = vmatpush1.bf16.msra.mxu0 %v16098_v24  ;;  %11703 = vmatpush1.bf16.msra.mxu1 %v16101_v25  ;;  %v16190_v24 = vld [vmem:[%s17715_s19 + $0x1be4] ss:$16 sps:$4 sm:$0xff]   ;;  %v16193_v25 = vld [vmem:[%s17715_s19 + $0x1bec] ss:$16 sps:$4 sm:$0xff]  }
 0x3e1   : > { %10679 = vmatprep.subr.bf16.mxu0 %v16106_v27  ;;  %11704 = vmatprep.subr.bf16.mxu1 %v16109_v28  ;;  %v18778_v27 = vrot.slane %v2094_v19, %v17784_v50  ;;  %v16191_v28 = vld [vmem:[%s17715_s19 + $0x1be8] ss:$16 sps:$4 sm:$0xff]  }
 0x3e2   : > { %10709 = vmatprep.mubr.bf16.mxu0 %v2141_v29  ;;  %11734 = vmatprep.mubr.bf16.mxu1 %v2141_v29  ;;  %v16196_v29 = vld [vmem:[%s17715_s19 + $0x1c04] ss:$16 sps:$4 sm:$0xff]   ;;  %v16269_v19 = vld [vmem:[%s17715_s19 + $0x1d88] ss:$16 sps:$4 sm:$0xff]  }
 0x3e4   : > { %10680 = vmatpush1.bf16.msra.mxu0 %v16104_v11  ;;  %11705 = vmatpush1.bf16.msra.mxu1 %v16107_v30  ;;  %v16199_v11 = vld [vmem:[%s17715_s19 + $0x1c0c] ss:$16 sps:$4 sm:$0xff]   ;;  %v2110_v30 = vcombine.high %v18778_v27, %v18778_v27 }
 0x3e5   : > { %10681 = vmatprep.subr.bf16.mxu0 %v16112_v31  ;;  %11706 = vmatprep.subr.bf16.mxu1 %v16115_v16  ;;  %v2139_v31 = vcombine.high %v18709_v23, %v18709_v23  ;;  %v16194_v16 = vld [vmem:[%s17715_s19 + $0x1c00] ss:$16 sps:$4 sm:$0xff]  }
 0x3e6   : > { %v16200_v23 = vld [vmem:[%s17715_s19 + $0x1c20] ss:$16 sps:$4 sm:$0xff]  }
 0x3e8   : > { %10682 = vmatpush1.bf16.msra.mxu0 %v16110_v21  ;;  %11707 = vmatpush1.bf16.msra.mxu1 %v16113_v32  ;;  %v16197_v21 = vld [vmem:[%s17715_s19 + $0x1c08] ss:$16 sps:$4 sm:$0xff]   ;;  %v16202_v32 = vld [vmem:[%s17715_s19 + $0x1c24] ss:$16 sps:$4 sm:$0xff]  }
 0x3e9   : > { %10683 = vmatprep.subr.bf16.mxu0 %v16118_v33  ;;  %11708 = vmatprep.subr.bf16.mxu1 %v16121_v34  ;;  %v16205_v33 = vld [vmem:[%s17715_s19 + $0x1c2c] ss:$16 sps:$4 sm:$0xff]   ;;  %v18793_v34 = vrot.slane %v2110_v30, %v17784_v50  ;;  %v16286_v30 = vld [vmem:[%s17715_s19 + $0x1de4] ss:$16 sps:$4 sm:$0xff]  }
 0x3ec   : > { %10684 = vmatpush1.bf16.msra.mxu0 %v16116_v26  ;;  %11709 = vmatpush1.bf16.msra.mxu1 %v16119_v35  ;;  %v16203_v26 = vld [vmem:[%s17715_s19 + $0x1c28] ss:$16 sps:$4 sm:$0xff]   ;;  %v16208_v35 = vld [vmem:[%s17715_s19 + $0x1c44] ss:$16 sps:$4 sm:$0xff]  }
 0x3ed   : > { %10685 = vmatprep.subr.bf16.mxu0 %v16124_v37  ;;  %11710 = vmatprep.subr.bf16.mxu1 %v16127_v38  ;;  %v16211_v37 = vld [vmem:[%s17715_s19 + $0x1c4c] ss:$16 sps:$4 sm:$0xff]   ;;  %v16206_v38 = vld [vmem:[%s17715_s19 + $0x1c40] ss:$16 sps:$4 sm:$0xff]  }
 0x3f0   : > { %10686 = vmatpush1.bf16.msra.mxu0 %v16122_v40  ;;  %11711 = vmatpush1.bf16.msra.mxu1 %v16125_v41  ;;  %v16209_v40 = vld [vmem:[%s17715_s19 + $0x1c48] ss:$16 sps:$4 sm:$0xff]   ;;  %v16214_v41 = vld [vmem:[%s17715_s19 + $0x1c64] ss:$16 sps:$4 sm:$0xff]  }
 0x3f1   : > { %10687 = vmatprep.subr.bf16.mxu0 %v16130_v22  ;;  %11712 = vmatprep.subr.bf16.mxu1 %v16133_v42  ;;  %v16217_v22 = vld [vmem:[%s17715_s19 + $0x1c6c] ss:$16 sps:$4 sm:$0xff]   ;;  %v16212_v42 = vld [vmem:[%s17715_s19 + $0x1c60] ss:$16 sps:$4 sm:$0xff]  }
 0x3f4   : > { %10688 = vmatpush1.bf16.msra.mxu0 %v16128_v43  ;;  %11713 = vmatpush1.bf16.msra.mxu1 %v16131_v45  ;;  %v16215_v43 = vld [vmem:[%s17715_s19 + $0x1c68] ss:$16 sps:$4 sm:$0xff]   ;;  %v16220_v45 = vld [vmem:[%s17715_s19 + $0x1c84] ss:$16 sps:$4 sm:$0xff]  }
 0x3f5   : > { %10689 = vmatprep.subr.bf16.mxu0 %v16136_v46  ;;  %11714 = vmatprep.subr.bf16.mxu1 %v16139_v47  ;;  %v16223_v46 = vld [vmem:[%s17715_s19 + $0x1c8c] ss:$16 sps:$4 sm:$0xff]   ;;  %v16218_v47 = vld [vmem:[%s17715_s19 + $0x1c80] ss:$16 sps:$4 sm:$0xff]  }
 0x3f8   : > { %10690 = vmatpush1.bf16.msra.mxu0 %v16134_v48  ;;  %11715 = vmatpush1.bf16.msra.mxu1 %v16137_v51  ;;  %v16221_v48 = vld [vmem:[%s17715_s19 + $0x1c88] ss:$16 sps:$4 sm:$0xff]   ;;  %v16226_v51 = vld [vmem:[%s17715_s19 + $0x1ca4] ss:$16 sps:$4 sm:$0xff]  }
 0x3f9   : > { %10691 = vmatprep.subr.bf16.mxu0 %v16142_v52  ;;  %11716 = vmatprep.subr.bf16.mxu1 %v16145_v54  ;;  %v16229_v52 = vld [vmem:[%s17715_s19 + $0x1cac] ss:$16 sps:$4 sm:$0xff]   ;;  %v16224_v54 = vld [vmem:[%s17715_s19 + $0x1ca0] ss:$16 sps:$4 sm:$0xff]  }
 0x3fc   : > { %10692 = vmatpush1.bf16.msra.mxu0 %v16140_v55  ;;  %11717 = vmatpush1.bf16.msra.mxu1 %v16143_v56  ;;  %v16227_v55 = vld [vmem:[%s17715_s19 + $0x1ca8] ss:$16 sps:$4 sm:$0xff]   ;;  %v16232_v56 = vld [vmem:[%s17715_s19 + $0x1cc4] ss:$16 sps:$4 sm:$0xff]  }
 0x3fd   : > { %10693 = vmatprep.subr.bf16.mxu0 %v16148_v39  ;;  %11718 = vmatprep.subr.bf16.mxu1 %v16151_v57  ;;  %v16235_v39 = vld [vmem:[%s17715_s19 + $0x1ccc] ss:$16 sps:$4 sm:$0xff]   ;;  %v16230_v57 = vld [vmem:[%s17715_s19 + $0x1cc0] ss:$16 sps:$4 sm:$0xff]  }
 0x400   : > { %10694 = vmatpush1.bf16.msra.mxu0 %v16146_v58  ;;  %11719 = vmatpush1.bf16.msra.mxu1 %v16149_v59  ;;  %v16233_v58 = vld [vmem:[%s17715_s19 + $0x1cc8] ss:$16 sps:$4 sm:$0xff]   ;;  %v16238_v59 = vld [vmem:[%s17715_s19 + $0x1ce4] ss:$16 sps:$4 sm:$0xff]  }
 0x401   : > { %10695 = vmatprep.subr.bf16.mxu0 %v16154_v49  ;;  %11720 = vmatprep.subr.bf16.mxu1 %v16157_v60  ;;  %v16241_v49 = vld [vmem:[%s17715_s19 + $0x1cec] ss:$16 sps:$4 sm:$0xff]   ;;  %v16236_v60 = vld [vmem:[%s17715_s19 + $0x1ce0] ss:$16 sps:$4 sm:$0xff]  }
 0x404   : > { %10696 = vmatpush1.bf16.msra.mxu0 %v16152_v62  ;;  %11721 = vmatpush1.bf16.msra.mxu1 %v16155_v63  ;;  %v16239_v62 = vld [vmem:[%s17715_s19 + $0x1ce8] ss:$16 sps:$4 sm:$0xff]   ;;  %v16244_v63 = vld [vmem:[%s17715_s19 + $0x1d04] ss:$16 sps:$4 sm:$0xff]  }
 0x405   : > { %10697 = vmatprep.subr.bf16.mxu0 %v16160_v1  ;;  %11722 = vmatprep.subr.bf16.mxu1 %v16163_v2  ;;  %v16247_v1 = vld [vmem:[%s17715_s19 + $0x1d0c] ss:$16 sps:$4 sm:$0xff]   ;;  %v16242_v2 = vld [vmem:[%s17715_s19 + $0x1d00] ss:$16 sps:$4 sm:$0xff]  }
 0x408   : > { %10698 = vmatpush1.bf16.msra.mxu0 %v16158_v36  ;;  %11723 = vmatpush1.bf16.msra.mxu1 %v16161_v3  ;;  %v16245_v36 = vld [vmem:[%s17715_s19 + $0x1d08] ss:$16 sps:$4 sm:$0xff]   ;;  %v16250_v3 = vld [vmem:[%s17715_s19 + $0x1d24] ss:$16 sps:$4 sm:$0xff]  }
 0x409   : > { %10699 = vmatprep.subr.bf16.mxu0 %v16166_v4  ;;  %11724 = vmatprep.subr.bf16.mxu1 %v16169_v5  ;;  %v16253_v4 = vld [vmem:[%s17715_s19 + $0x1d2c] ss:$16 sps:$4 sm:$0xff]   ;;  %v16248_v5 = vld [vmem:[%s17715_s19 + $0x1d20] ss:$16 sps:$4 sm:$0xff]  }
 0x40c   : > { %10700 = vmatpush1.bf16.msra.mxu0 %v16164_v6  ;;  %11725 = vmatpush1.bf16.msra.mxu1 %v16167_v7  ;;  %v16251_v6 = vld [vmem:[%s17715_s19 + $0x1d28] ss:$16 sps:$4 sm:$0xff]   ;;  %v16256_v7 = vld [vmem:[%s17715_s19 + $0x1d44] ss:$16 sps:$4 sm:$0xff]  }
 0x40d   : > { %10701 = vmatprep.subr.bf16.mxu0 %v16172_v8  ;;  %11726 = vmatprep.subr.bf16.mxu1 %v16175_v10  ;;  %v16259_v8 = vld [vmem:[%s17715_s19 + $0x1d4c] ss:$16 sps:$4 sm:$0xff]   ;;  %v16254_v10 = vld [vmem:[%s17715_s19 + $0x1d40] ss:$16 sps:$4 sm:$0xff]  }
 0x410   : > { %10702 = vmatpush1.bf16.msra.mxu0 %v16170_v12  ;;  %11727 = vmatpush1.bf16.msra.mxu1 %v16173_v13  ;;  %v16257_v12 = vld [vmem:[%s17715_s19 + $0x1d48] ss:$16 sps:$4 sm:$0xff]   ;;  %v16262_v13 = vld [vmem:[%s17715_s19 + $0x1d64] ss:$16 sps:$4 sm:$0xff]  }
 0x411   : > { %10703 = vmatprep.subr.bf16.mxu0 %v16178_v15  ;;  %11728 = vmatprep.subr.bf16.mxu1 %v16181_v0  ;;  %v16265_v15 = vld [vmem:[%s17715_s19 + $0x1d6c] ss:$16 sps:$4 sm:$0xff]   ;;  %v16260_v0 = vld [vmem:[%s17715_s19 + $0x1d60] ss:$16 sps:$4 sm:$0xff]  }
 0x414   : > { %10704 = vmatpush1.bf16.msra.mxu0 %v16176_v17  ;;  %11729 = vmatpush1.bf16.msra.mxu1 %v16179_v53  ;;  %v16263_v17 = vld [vmem:[%s17715_s19 + $0x1d68] ss:$16 sps:$4 sm:$0xff]   ;;  %v16268_v53 = vld [vmem:[%s17715_s19 + $0x1d84] ss:$16 sps:$4 sm:$0xff]  }
 0x415   : > { %10705 = vmatprep.subr.bf16.mxu0 %v16184_v18  ;;  %11730 = vmatprep.subr.bf16.mxu1 %v16187_v9  ;;  %v16271_v18 = vld [vmem:[%s17715_s19 + $0x1d8c] ss:$16 sps:$4 sm:$0xff]   ;;  %v16266_v9 = vld [vmem:[%s17715_s19 + $0x1d80] ss:$16 sps:$4 sm:$0xff]  }
 0x418   : > { %10706 = vmatpush1.bf16.msra.mxu0 %v16182_v20  ;;  %11731 = vmatpush1.bf16.msra.mxu1 %v16185_v14  ;;  %v16274_v20 = vld [vmem:[%s17715_s19 + $0x1da4] ss:$16 sps:$4 sm:$0xff]   ;;  %v16277_v14 = vld [vmem:[%s17715_s19 + $0x1dac] ss:$16 sps:$4 sm:$0xff]  }
 0x419   : > { %10707 = vmatprep.subr.bf16.mxu0 %v16190_v24  ;;  %11732 = vmatprep.subr.bf16.mxu1 %v16193_v25  ;;  %v16272_v24 = vld [vmem:[%s17715_s19 + $0x1da0] ss:$16 sps:$4 sm:$0xff]   ;;  %v16275_v25 = vld [vmem:[%s17715_s19 + $0x1da8] ss:$16 sps:$4 sm:$0xff]  }
 0x41c   : > { %10708 = vmatpush1.bf16.msra.mxu0 %v16188_v61  ;;  %11733 = vmatpush1.bf16.msra.mxu1 %v16191_v28  ;;  %v16280_v61 = vld [vmem:[%s17715_s19 + $0x1dc4] ss:$16 sps:$4 sm:$0xff]   ;;  %v16283_v28 = vld [vmem:[%s17715_s19 + $0x1dcc] ss:$16 sps:$4 sm:$0xff]  }
 0x41d   : > { %10718 = vmatprep.subr.bf16.mxu0 %v16196_v29  ;;  %11743 = vmatprep.subr.bf16.mxu1 %v16199_v11  ;;  %v16278_v29 = vld [vmem:[%s17715_s19 + $0x1dc0] ss:$16 sps:$4 sm:$0xff]   ;;  %v16281_v11 = vld [vmem:[%s17715_s19 + $0x1dc8] ss:$16 sps:$4 sm:$0xff]  }
 0x41f   : > { %10710 = vmatmul.mubr.bf16.vlgmr.msra.gmra.mrb[0].mxu0 %v2139_v31  ;;  %11735 = vmatmul.mubr.bf16.vlgmr.msra.gmra.mrb[0].mxu1 %v2139_v31  ;;  %v16289_v31 = vld [vmem:[%s17715_s19 + $0x1dec] ss:$16 sps:$4 sm:$0xff]  }
 0x420   : > { %10719 = vmatpush1.bf16.msra.mxu0 %v16194_v16  ;;  %11744 = vmatpush1.bf16.msra.mxu1 %v16197_v21  ;;  %v16284_v16 = vld [vmem:[%s17715_s19 + $0x1de0] ss:$16 sps:$4 sm:$0xff]   ;;  %v16287_v21 = vld [vmem:[%s17715_s19 + $0x1de8] ss:$16 sps:$4 sm:$0xff]  }
 0x421   : > { %10720 = vmatprep.subr.bf16.mxu0 %v16202_v32  ;;  %11745 = vmatprep.subr.bf16.mxu1 %v16205_v33  ;;  %v16293_v32 = vld [vmem:[%s17715_s19 + $0x1e04] ss:$16 sps:$4 sm:$0xff]   ;;  %v16296_v33 = vld [vmem:[%s17715_s19 + $0x1e0c] ss:$16 sps:$4 sm:$0xff]  }
 0x422   : > { %10750 = vmatprep.mubr.bf16.mxu0 %v18793_v34  ;;  %11775 = vmatprep.mubr.bf16.mxu1 %v18793_v34 }
 0x424   : > { %10721 = vmatpush1.bf16.msra.mxu0 %v16200_v23  ;;  %11746 = vmatpush1.bf16.msra.mxu1 %v16203_v26  ;;  %v18859_v23 = vrot.slane %v18778_v27, %v17784_v50  ;;  %v16291_v26 = vld [vmem:[%s17715_s19 + $0x1e00] ss:$16 sps:$4 sm:$0xff]  }
 0x425   : > { %10722 = vmatprep.subr.bf16.mxu0 %v16208_v35  ;;  %11747 = vmatprep.subr.bf16.mxu1 %v16211_v37  ;;  %v16294_v35 = vld [vmem:[%s17715_s19 + $0x1e08] ss:$16 sps:$4 sm:$0xff]   ;;  %v16299_v37 = vld [vmem:[%s17715_s19 + $0x1e24] ss:$16 sps:$4 sm:$0xff]   ;;  %v16297_v27 = vld [vmem:[%s17715_s19 + $0x1e20] ss:$16 sps:$4 sm:$0xff]  }
 0x428   : > { %10723 = vmatpush1.bf16.msra.mxu0 %v16206_v38  ;;  %11748 = vmatpush1.bf16.msra.mxu1 %v16209_v40  ;;  %v16302_v38 = vld [vmem:[%s17715_s19 + $0x1e2c] ss:$16 sps:$4 sm:$0xff]   ;;  %v2142_v40 = vcombine.high %v18793_v34, %v18793_v34  ;;  %v16303_v34 = vld [vmem:[%s17715_s19 + $0x1e40] ss:$16 sps:$4 sm:$0xff]  }
 0x429   : > { %10724 = vmatprep.subr.bf16.mxu0 %v16214_v41  ;;  %11749 = vmatprep.subr.bf16.mxu1 %v16217_v22  ;;  %v16300_v41 = vld [vmem:[%s17715_s19 + $0x1e28] ss:$16 sps:$4 sm:$0xff]   ;;  %v16305_v22 = vld [vmem:[%s17715_s19 + $0x1e44] ss:$16 sps:$4 sm:$0xff]  }
 0x42c   : > { %10725 = vmatpush1.bf16.msra.mxu0 %v16212_v42  ;;  %11750 = vmatpush1.bf16.msra.mxu1 %v16215_v43  ;;  %v16308_v42 = vld [vmem:[%s17715_s19 + $0x1e4c] ss:$16 sps:$4 sm:$0xff]   ;;  %v16306_v43 = vld [vmem:[%s17715_s19 + $0x1e48] ss:$16 sps:$4 sm:$0xff]  }
 0x42d   : > { %10726 = vmatprep.subr.bf16.mxu0 %v16220_v45  ;;  %11751 = vmatprep.subr.bf16.mxu1 %v16223_v46  ;;  %v16311_v45 = vld [vmem:[%s17715_s19 + $0x1e64] ss:$16 sps:$4 sm:$0xff]   ;;  %v16314_v46 = vld [vmem:[%s17715_s19 + $0x1e6c] ss:$16 sps:$4 sm:$0xff]  }
 0x430   : > { %10727 = vmatpush1.bf16.msra.mxu0 %v16218_v47  ;;  %11752 = vmatpush1.bf16.msra.mxu1 %v16221_v48  ;;  %v16309_v47 = vld [vmem:[%s17715_s19 + $0x1e60] ss:$16 sps:$4 sm:$0xff]   ;;  %v16312_v48 = vld [vmem:[%s17715_s19 + $0x1e68] ss:$16 sps:$4 sm:$0xff]  }
 0x431   : > { %10728 = vmatprep.subr.bf16.mxu0 %v16226_v51  ;;  %11753 = vmatprep.subr.bf16.mxu1 %v16229_v52  ;;  %v16317_v51 = vld [vmem:[%s17715_s19 + $0x1e84] ss:$16 sps:$4 sm:$0xff]   ;;  %v16320_v52 = vld [vmem:[%s17715_s19 + $0x1e8c] ss:$16 sps:$4 sm:$0xff]  }
 0x434   : > { %10729 = vmatpush1.bf16.msra.mxu0 %v16224_v54  ;;  %11754 = vmatpush1.bf16.msra.mxu1 %v16227_v55  ;;  %v16315_v54 = vld [vmem:[%s17715_s19 + $0x1e80] ss:$16 sps:$4 sm:$0xff]   ;;  %v16318_v55 = vld [vmem:[%s17715_s19 + $0x1e88] ss:$16 sps:$4 sm:$0xff]  }
 0x435   : > { %10730 = vmatprep.subr.bf16.mxu0 %v16232_v56  ;;  %11755 = vmatprep.subr.bf16.mxu1 %v16235_v39  ;;  %v16323_v56 = vld [vmem:[%s17715_s19 + $0x1ea4] ss:$16 sps:$4 sm:$0xff]   ;;  %v16326_v39 = vld [vmem:[%s17715_s19 + $0x1eac] ss:$16 sps:$4 sm:$0xff]  }
 0x438   : > { %10731 = vmatpush1.bf16.msra.mxu0 %v16230_v57  ;;  %11756 = vmatpush1.bf16.msra.mxu1 %v16233_v58  ;;  %v16321_v57 = vld [vmem:[%s17715_s19 + $0x1ea0] ss:$16 sps:$4 sm:$0xff]   ;;  %v16324_v58 = vld [vmem:[%s17715_s19 + $0x1ea8] ss:$16 sps:$4 sm:$0xff]  }
 0x439   : > { %10732 = vmatprep.subr.bf16.mxu0 %v16238_v59  ;;  %11757 = vmatprep.subr.bf16.mxu1 %v16241_v49  ;;  %v16329_v59 = vld [vmem:[%s17715_s19 + $0x1ec4] ss:$16 sps:$4 sm:$0xff]   ;;  %v16332_v49 = vld [vmem:[%s17715_s19 + $0x1ecc] ss:$16 sps:$4 sm:$0xff]  }
 0x43c   : > { %10733 = vmatpush1.bf16.msra.mxu0 %v16236_v60  ;;  %11758 = vmatpush1.bf16.msra.mxu1 %v16239_v62  ;;  %v16327_v60 = vld [vmem:[%s17715_s19 + $0x1ec0] ss:$16 sps:$4 sm:$0xff]   ;;  %v16330_v62 = vld [vmem:[%s17715_s19 + $0x1ec8] ss:$16 sps:$4 sm:$0xff]  }
 0x43d   : > { %10734 = vmatprep.subr.bf16.mxu0 %v16244_v63  ;;  %11759 = vmatprep.subr.bf16.mxu1 %v16247_v1  ;;  %v16335_v63 = vld [vmem:[%s17715_s19 + $0x1ee4] ss:$16 sps:$4 sm:$0xff]   ;;  %v16338_v1 = vld [vmem:[%s17715_s19 + $0x1eec] ss:$16 sps:$4 sm:$0xff]  }
 0x440   : > { %10735 = vmatpush1.bf16.msra.mxu0 %v16242_v2  ;;  %11760 = vmatpush1.bf16.msra.mxu1 %v16245_v36  ;;  %v16333_v2 = vld [vmem:[%s17715_s19 + $0x1ee0] ss:$16 sps:$4 sm:$0xff]   ;;  %v16336_v36 = vld [vmem:[%s17715_s19 + $0x1ee8] ss:$16 sps:$4 sm:$0xff]  }
 0x441   : > { %10736 = vmatprep.subr.bf16.mxu0 %v16250_v3  ;;  %11761 = vmatprep.subr.bf16.mxu1 %v16253_v4  ;;  %v16341_v3 = vld [vmem:[%s17715_s19 + $0x1f04] ss:$16 sps:$4 sm:$0xff]   ;;  %v16344_v4 = vld [vmem:[%s17715_s19 + $0x1f0c] ss:$16 sps:$4 sm:$0xff]  }
 0x444   : > { %10737 = vmatpush1.bf16.msra.mxu0 %v16248_v5  ;;  %11762 = vmatpush1.bf16.msra.mxu1 %v16251_v6  ;;  %v16339_v5 = vld [vmem:[%s17715_s19 + $0x1f00] ss:$16 sps:$4 sm:$0xff]   ;;  %v16342_v6 = vld [vmem:[%s17715_s19 + $0x1f08] ss:$16 sps:$4 sm:$0xff]  }
 0x445   : > { %10738 = vmatprep.subr.bf16.mxu0 %v16256_v7  ;;  %11763 = vmatprep.subr.bf16.mxu1 %v16259_v8  ;;  %v16347_v7 = vld [vmem:[%s17715_s19 + $0x1f24] ss:$16 sps:$4 sm:$0xff]   ;;  %v16350_v8 = vld [vmem:[%s17715_s19 + $0x1f2c] ss:$16 sps:$4 sm:$0xff]  }
 0x448   : > { %10739 = vmatpush1.bf16.msra.mxu0 %v16254_v10  ;;  %11764 = vmatpush1.bf16.msra.mxu1 %v16257_v12  ;;  %v16345_v10 = vld [vmem:[%s17715_s19 + $0x1f20] ss:$16 sps:$4 sm:$0xff]   ;;  %v16348_v12 = vld [vmem:[%s17715_s19 + $0x1f28] ss:$16 sps:$4 sm:$0xff]  }
 0x449   : > { %10740 = vmatprep.subr.bf16.mxu0 %v16262_v13  ;;  %11765 = vmatprep.subr.bf16.mxu1 %v16265_v15  ;;  %v16353_v13 = vld [vmem:[%s17715_s19 + $0x1f44] ss:$16 sps:$4 sm:$0xff]   ;;  %v16356_v15 = vld [vmem:[%s17715_s19 + $0x1f4c] ss:$16 sps:$4 sm:$0xff]  }
 0x44c   : > { %10741 = vmatpush1.bf16.msra.mxu0 %v16260_v0  ;;  %11766 = vmatpush1.bf16.msra.mxu1 %v16263_v17  ;;  %v16351_v0 = vld [vmem:[%s17715_s19 + $0x1f40] ss:$16 sps:$4 sm:$0xff]   ;;  %v16354_v17 = vld [vmem:[%s17715_s19 + $0x1f48] ss:$16 sps:$4 sm:$0xff]  }
 0x44d   : > { %10742 = vmatprep.subr.bf16.mxu0 %v16268_v53  ;;  %11767 = vmatprep.subr.bf16.mxu1 %v16271_v18  ;;  %v16359_v53 = vld [vmem:[%s17715_s19 + $0x1f64] ss:$16 sps:$4 sm:$0xff]   ;;  %v16362_v18 = vld [vmem:[%s17715_s19 + $0x1f6c] ss:$16 sps:$4 sm:$0xff]  }
 0x450   : > { %10743 = vmatpush1.bf16.msra.mxu0 %v16266_v9  ;;  %11768 = vmatpush1.bf16.msra.mxu1 %v16269_v19  ;;  %v16357_v9 = vld [vmem:[%s17715_s19 + $0x1f60] ss:$16 sps:$4 sm:$0xff]   ;;  %v16360_v19 = vld [vmem:[%s17715_s19 + $0x1f68] ss:$16 sps:$4 sm:$0xff]  }
 0x451   : > { %10744 = vmatprep.subr.bf16.mxu0 %v16274_v20  ;;  %11769 = vmatprep.subr.bf16.mxu1 %v16277_v14  ;;  %v16365_v20 = vld [vmem:[%s17715_s19 + $0x1f84] ss:$16 sps:$4 sm:$0xff]   ;;  %v16368_v14 = vld [vmem:[%s17715_s19 + $0x1f8c] ss:$16 sps:$4 sm:$0xff]  }
 0x454   : > { %10745 = vmatpush1.bf16.msra.mxu0 %v16272_v24  ;;  %11770 = vmatpush1.bf16.msra.mxu1 %v16275_v25  ;;  %v16363_v24 = vld [vmem:[%s17715_s19 + $0x1f80] ss:$16 sps:$4 sm:$0xff]   ;;  %v16366_v25 = vld [vmem:[%s17715_s19 + $0x1f88] ss:$16 sps:$4 sm:$0xff]  }
 0x455   : > { %10746 = vmatprep.subr.bf16.mxu0 %v16280_v61  ;;  %11771 = vmatprep.subr.bf16.mxu1 %v16283_v28  ;;  %v16371_v61 = vld [vmem:[%s17715_s19 + $0x1fa4] ss:$16 sps:$4 sm:$0xff]   ;;  %v16374_v28 = vld [vmem:[%s17715_s19 + $0x1fac] ss:$16 sps:$4 sm:$0xff]  }
 0x458   : > { %10747 = vmatpush1.bf16.msra.mxu0 %v16278_v29  ;;  %11772 = vmatpush1.bf16.msra.mxu1 %v16281_v11  ;;  %v16369_v29 = vld [vmem:[%s17715_s19 + $0x1fa0] ss:$16 sps:$4 sm:$0xff]   ;;  %v16372_v11 = vld [vmem:[%s17715_s19 + $0x1fa8] ss:$16 sps:$4 sm:$0xff]  }
 0x459   : > { %10748 = vmatprep.subr.bf16.mxu0 %v16286_v30  ;;  %11773 = vmatprep.subr.bf16.mxu1 %v16289_v31  ;;  %v16377_v30 = vld [vmem:[%s17715_s19 + $0x1fc4] ss:$16 sps:$4 sm:$0xff]   ;;  %v16380_v31 = vld [vmem:[%s17715_s19 + $0x1fcc] ss:$16 sps:$4 sm:$0xff]  }
 0x45c   : > { %10749 = vmatpush1.bf16.msra.mxu0 %v16284_v16  ;;  %11774 = vmatpush1.bf16.msra.mxu1 %v16287_v21  ;;  %v18922_v16 = vld [vmem:[%s17733_s29 + $0x20] sm:$0xff]  ;;  %v16375_v21 = vld [vmem:[%s17715_s19 + $0x1fc0] ss:$16 sps:$4 sm:$0xff]  }
 0x45d   : > { %10759 = vmatprep.subr.bf16.mxu0 %v16293_v32  ;;  %11784 = vmatprep.subr.bf16.mxu1 %v16296_v33  ;;  %v16378_v32 = vld [vmem:[%s17715_s19 + $0x1fc8] ss:$16 sps:$4 sm:$0xff]   ;;  %v16383_v33 = vld [vmem:[%s17715_s19 + $0x1fe4] ss:$16 sps:$4 sm:$0xff]  }
 0x45f   : > { %10751 = vmatmul.mubr.bf16.vlgmr.msra.gmra.mrb[0].mxu0 %v18859_v23  ;;  %11776 = vmatmul.mubr.bf16.vlgmr.msra.gmra.mrb[0].mxu1 %v18859_v23 }
 0x460   : > { %10760 = vmatpush1.bf16.msra.mxu0 %v16291_v26  ;;  %11785 = vmatpush1.bf16.msra.mxu1 %v16294_v35  ;;  %v16386_v26 = vld [vmem:[%s17715_s19 + $0x1fec] ss:$16 sps:$4 sm:$0xff]   ;;  %v18930_v35 = vrot.slane %v18922_v16, %v17784_v50 }
 0x461   : > { %10761 = vmatprep.subr.bf16.mxu0 %v16299_v37  ;;  %11786 = vmatprep.subr.bf16.mxu1 %v16302_v38  ;;  %v16381_v37 = vld [vmem:[%s17715_s19 + $0x1fe0] ss:$16 sps:$4 sm:$0xff]   ;;  %v16384_v38 = vld [vmem:[%s17715_s19 + $0x1fe8] ss:$16 sps:$4 sm:$0xff]  }
 0x462   : > { %10791 = vmatprep.mubr.bf16.mxu0 %v2142_v40  ;;  %11816 = vmatprep.mubr.bf16.mxu1 %v2142_v40  ;;  %v16389_v40 = vld [vmem:[%s17715_s19 + $0x2004] ss:$16 sps:$4 sm:$0xff]  }
 0x464   : > { %10762 = vmatpush1.bf16.msra.mxu0 %v16297_v27  ;;  %11787 = vmatpush1.bf16.msra.mxu1 %v16300_v41  ;;  %v16392_v27 = vld [vmem:[%s17715_s19 + $0x200c] ss:$16 sps:$4 sm:$0xff]   ;;  %v2158_v41 = vcombine.high %v18930_v35, %v18930_v35 }
 0x465   : > { %10763 = vmatprep.subr.bf16.mxu0 %v16305_v22  ;;  %11788 = vmatprep.subr.bf16.mxu1 %v16308_v42  ;;  %v2140_v22 = vcombine.high %v18859_v23, %v18859_v23  ;;  %v16387_v42 = vld [vmem:[%s17715_s19 + $0x2000] ss:$16 sps:$4 sm:$0xff]  }
 0x466   : > { %v16393_v23 = vld [vmem:[%s17715_s19 + $0x2020] ss:$16 sps:$4 sm:$0xff]  }
 0x468   : > { %10764 = vmatpush1.bf16.msra.mxu0 %v16303_v34  ;;  %11789 = vmatpush1.bf16.msra.mxu1 %v16306_v43  ;;  %v16390_v34 = vld [vmem:[%s17715_s19 + $0x2008] ss:$16 sps:$4 sm:$0xff]   ;;  %v16395_v43 = vld [vmem:[%s17715_s19 + $0x2024] ss:$16 sps:$4 sm:$0xff]  }
 0x469   : > { %10765 = vmatprep.subr.bf16.mxu0 %v16311_v45  ;;  %11790 = vmatprep.subr.bf16.mxu1 %v16314_v46  ;;  %v16398_v45 = vld [vmem:[%s17715_s19 + $0x202c] ss:$16 sps:$4 sm:$0xff]   ;;  %v18945_v46 = vrot.slane %v2158_v41, %v17784_v50  ;;  %v16474_v41 = vld [vmem:[%s17715_s19 + $0x21c8] ss:$16 sps:$4 sm:$0xff]  }
 0x46c   : > { %10766 = vmatpush1.bf16.msra.mxu0 %v16309_v47  ;;  %11791 = vmatpush1.bf16.msra.mxu1 %v16312_v48  ;;  %v16396_v47 = vld [vmem:[%s17715_s19 + $0x2028] ss:$16 sps:$4 sm:$0xff]   ;;  %v16401_v48 = vld [vmem:[%s17715_s19 + $0x2044] ss:$16 sps:$4 sm:$0xff]  }
 0x46d   : > { %10767 = vmatprep.subr.bf16.mxu0 %v16317_v51  ;;  %11792 = vmatprep.subr.bf16.mxu1 %v16320_v52  ;;  %v16404_v51 = vld [vmem:[%s17715_s19 + $0x204c] ss:$16 sps:$4 sm:$0xff]   ;;  %v16399_v52 = vld [vmem:[%s17715_s19 + $0x2040] ss:$16 sps:$4 sm:$0xff]  }
 0x470   : > { %10768 = vmatpush1.bf16.msra.mxu0 %v16315_v54  ;;  %11793 = vmatpush1.bf16.msra.mxu1 %v16318_v55  ;;  %v16402_v54 = vld [vmem:[%s17715_s19 + $0x2048] ss:$16 sps:$4 sm:$0xff]   ;;  %v16407_v55 = vld [vmem:[%s17715_s19 + $0x2064] ss:$16 sps:$4 sm:$0xff]  }
 0x471   : > { %10769 = vmatprep.subr.bf16.mxu0 %v16323_v56  ;;  %11794 = vmatprep.subr.bf16.mxu1 %v16326_v39  ;;  %v16410_v56 = vld [vmem:[%s17715_s19 + $0x206c] ss:$16 sps:$4 sm:$0xff]   ;;  %v16405_v39 = vld [vmem:[%s17715_s19 + $0x2060] ss:$16 sps:$4 sm:$0xff]  }
 0x474   : > { %10770 = vmatpush1.bf16.msra.mxu0 %v16321_v57  ;;  %11795 = vmatpush1.bf16.msra.mxu1 %v16324_v58  ;;  %v16408_v57 = vld [vmem:[%s17715_s19 + $0x2068] ss:$16 sps:$4 sm:$0xff]   ;;  %v16413_v58 = vld [vmem:[%s17715_s19 + $0x2084] ss:$16 sps:$4 sm:$0xff]  }
 0x475   : > { %10771 = vmatprep.subr.bf16.mxu0 %v16329_v59  ;;  %11796 = vmatprep.subr.bf16.mxu1 %v16332_v49  ;;  %v16416_v59 = vld [vmem:[%s17715_s19 + $0x208c] ss:$16 sps:$4 sm:$0xff]   ;;  %v16411_v49 = vld [vmem:[%s17715_s19 + $0x2080] ss:$16 sps:$4 sm:$0xff]  }
 0x478   : > { %10772 = vmatpush1.bf16.msra.mxu0 %v16327_v60  ;;  %11797 = vmatpush1.bf16.msra.mxu1 %v16330_v62  ;;  %v16414_v60 = vld [vmem:[%s17715_s19 + $0x2088] ss:$16 sps:$4 sm:$0xff]   ;;  %v16419_v62 = vld [vmem:[%s17715_s19 + $0x20a4] ss:$16 sps:$4 sm:$0xff]  }
 0x479   : > { %10773 = vmatprep.subr.bf16.mxu0 %v16335_v63  ;;  %11798 = vmatprep.subr.bf16.mxu1 %v16338_v1  ;;  %v16422_v63 = vld [vmem:[%s17715_s19 + $0x20ac] ss:$16 sps:$4 sm:$0xff]   ;;  %v16417_v1 = vld [vmem:[%s17715_s19 + $0x20a0] ss:$16 sps:$4 sm:$0xff]  }
 0x47c   : > { %10774 = vmatpush1.bf16.msra.mxu0 %v16333_v2  ;;  %11799 = vmatpush1.bf16.msra.mxu1 %v16336_v36  ;;  %v16420_v2 = vld [vmem:[%s17715_s19 + $0x20a8] ss:$16 sps:$4 sm:$0xff]   ;;  %v16425_v36 = vld [vmem:[%s17715_s19 + $0x20c4] ss:$16 sps:$4 sm:$0xff]  }
 0x47d   : > { %10775 = vmatprep.subr.bf16.mxu0 %v16341_v3  ;;  %11800 = vmatprep.subr.bf16.mxu1 %v16344_v4  ;;  %v16428_v3 = vld [vmem:[%s17715_s19 + $0x20cc] ss:$16 sps:$4 sm:$0xff]   ;;  %v16423_v4 = vld [vmem:[%s17715_s19 + $0x20c0] ss:$16 sps:$4 sm:$0xff]  }
 0x480   : > { %10776 = vmatpush1.bf16.msra.mxu0 %v16339_v5  ;;  %11801 = vmatpush1.bf16.msra.mxu1 %v16342_v6  ;;  %v16426_v5 = vld [vmem:[%s17715_s19 + $0x20c8] ss:$16 sps:$4 sm:$0xff]   ;;  %v16431_v6 = vld [vmem:[%s17715_s19 + $0x20e4] ss:$16 sps:$4 sm:$0xff]  }
 0x481   : > { %10777 = vmatprep.subr.bf16.mxu0 %v16347_v7  ;;  %11802 = vmatprep.subr.bf16.mxu1 %v16350_v8  ;;  %v16434_v7 = vld [vmem:[%s17715_s19 + $0x20ec] ss:$16 sps:$4 sm:$0xff]   ;;  %v16429_v8 = vld [vmem:[%s17715_s19 + $0x20e0] ss:$16 sps:$4 sm:$0xff]  }
 0x484   : > { %10778 = vmatpush1.bf16.msra.mxu0 %v16345_v10  ;;  %11803 = vmatpush1.bf16.msra.mxu1 %v16348_v12  ;;  %v16432_v10 = vld [vmem:[%s17715_s19 + $0x20e8] ss:$16 sps:$4 sm:$0xff]   ;;  %v16437_v12 = vld [vmem:[%s17715_s19 + $0x2104] ss:$16 sps:$4 sm:$0xff]  }
 0x485   : > { %10779 = vmatprep.subr.bf16.mxu0 %v16353_v13  ;;  %11804 = vmatprep.subr.bf16.mxu1 %v16356_v15  ;;  %v16440_v13 = vld [vmem:[%s17715_s19 + $0x210c] ss:$16 sps:$4 sm:$0xff]   ;;  %v16435_v15 = vld [vmem:[%s17715_s19 + $0x2100] ss:$16 sps:$4 sm:$0xff]  }
 0x488   : > { %10780 = vmatpush1.bf16.msra.mxu0 %v16351_v0  ;;  %11805 = vmatpush1.bf16.msra.mxu1 %v16354_v17  ;;  %v16438_v0 = vld [vmem:[%s17715_s19 + $0x2108] ss:$16 sps:$4 sm:$0xff]   ;;  %v16443_v17 = vld [vmem:[%s17715_s19 + $0x2124] ss:$16 sps:$4 sm:$0xff]  }
 0x489   : > { %10781 = vmatprep.subr.bf16.mxu0 %v16359_v53  ;;  %11806 = vmatprep.subr.bf16.mxu1 %v16362_v18  ;;  %v16446_v53 = vld [vmem:[%s17715_s19 + $0x212c] ss:$16 sps:$4 sm:$0xff]   ;;  %v16441_v18 = vld [vmem:[%s17715_s19 + $0x2120] ss:$16 sps:$4 sm:$0xff]  }
 0x48c   : > { %10782 = vmatpush1.bf16.msra.mxu0 %v16357_v9  ;;  %11807 = vmatpush1.bf16.msra.mxu1 %v16360_v19  ;;  %v16444_v9 = vld [vmem:[%s17715_s19 + $0x2128] ss:$16 sps:$4 sm:$0xff]   ;;  %v16449_v19 = vld [vmem:[%s17715_s19 + $0x2144] ss:$16 sps:$4 sm:$0xff]  }
 0x48d   : > { %10783 = vmatprep.subr.bf16.mxu0 %v16365_v20  ;;  %11808 = vmatprep.subr.bf16.mxu1 %v16368_v14  ;;  %v16452_v20 = vld [vmem:[%s17715_s19 + $0x214c] ss:$16 sps:$4 sm:$0xff]   ;;  %v16447_v14 = vld [vmem:[%s17715_s19 + $0x2140] ss:$16 sps:$4 sm:$0xff]  }
 0x490   : > { %10784 = vmatpush1.bf16.msra.mxu0 %v16363_v24  ;;  %11809 = vmatpush1.bf16.msra.mxu1 %v16366_v25  ;;  %v16450_v24 = vld [vmem:[%s17715_s19 + $0x2148] ss:$16 sps:$4 sm:$0xff]   ;;  %v16455_v25 = vld [vmem:[%s17715_s19 + $0x2164] ss:$16 sps:$4 sm:$0xff]  }
 0x491   : > { %10785 = vmatprep.subr.bf16.mxu0 %v16371_v61  ;;  %11810 = vmatprep.subr.bf16.mxu1 %v16374_v28  ;;  %v16458_v61 = vld [vmem:[%s17715_s19 + $0x216c] ss:$16 sps:$4 sm:$0xff]   ;;  %v16453_v28 = vld [vmem:[%s17715_s19 + $0x2160] ss:$16 sps:$4 sm:$0xff]  }
 0x494   : > { %10786 = vmatpush1.bf16.msra.mxu0 %v16369_v29  ;;  %11811 = vmatpush1.bf16.msra.mxu1 %v16372_v11  ;;  %v16456_v29 = vld [vmem:[%s17715_s19 + $0x2168] ss:$16 sps:$4 sm:$0xff]   ;;  %v16461_v11 = vld [vmem:[%s17715_s19 + $0x2184] ss:$16 sps:$4 sm:$0xff]  }
 0x495   : > { %10787 = vmatprep.subr.bf16.mxu0 %v16377_v30  ;;  %11812 = vmatprep.subr.bf16.mxu1 %v16380_v31  ;;  %v16464_v30 = vld [vmem:[%s17715_s19 + $0x218c] ss:$16 sps:$4 sm:$0xff]   ;;  %v16459_v31 = vld [vmem:[%s17715_s19 + $0x2180] ss:$16 sps:$4 sm:$0xff]  }
 0x498   : > { %10788 = vmatpush1.bf16.msra.mxu0 %v16375_v21  ;;  %11813 = vmatpush1.bf16.msra.mxu1 %v16378_v32  ;;  %v16462_v21 = vld [vmem:[%s17715_s19 + $0x2188] ss:$16 sps:$4 sm:$0xff]   ;;  %v16467_v32 = vld [vmem:[%s17715_s19 + $0x21a4] ss:$16 sps:$4 sm:$0xff]  }
 0x499   : > { %10789 = vmatprep.subr.bf16.mxu0 %v16383_v33  ;;  %11814 = vmatprep.subr.bf16.mxu1 %v16386_v26  ;;  %v16470_v33 = vld [vmem:[%s17715_s19 + $0x21ac] ss:$16 sps:$4 sm:$0xff]   ;;  %v16465_v26 = vld [vmem:[%s17715_s19 + $0x21a0] ss:$16 sps:$4 sm:$0xff]  }
 0x49c   : > { %10790 = vmatpush1.bf16.msra.mxu0 %v16381_v37  ;;  %11815 = vmatpush1.bf16.msra.mxu1 %v16384_v38  ;;  %v16468_v37 = vld [vmem:[%s17715_s19 + $0x21a8] ss:$16 sps:$4 sm:$0xff]   ;;  %v16473_v38 = vld [vmem:[%s17715_s19 + $0x21c4] ss:$16 sps:$4 sm:$0xff]  }
 0x49d   : > { %10800 = vmatprep.subr.bf16.mxu0 %v16389_v40  ;;  %11825 = vmatprep.subr.bf16.mxu1 %v16392_v27  ;;  %v16476_v40 = vld [vmem:[%s17715_s19 + $0x21cc] ss:$16 sps:$4 sm:$0xff]   ;;  %v16471_v27 = vld [vmem:[%s17715_s19 + $0x21c0] ss:$16 sps:$4 sm:$0xff]  }
 0x49f   : > { %10792 = vmatmul.mubr.bf16.vlgmr.msra.gmra.mrb[0].mxu0 %v2140_v22  ;;  %11817 = vmatmul.mubr.bf16.vlgmr.msra.gmra.mrb[0].mxu1 %v2140_v22  ;;  %v16479_v22 = vld [vmem:[%s17715_s19 + $0x21e4] ss:$16 sps:$4 sm:$0xff]  }
 0x4a0   : > { %10801 = vmatpush1.bf16.msra.mxu0 %v16387_v42  ;;  %11826 = vmatpush1.bf16.msra.mxu1 %v16390_v34  ;;  %v16482_v42 = vld [vmem:[%s17715_s19 + $0x21ec] ss:$16 sps:$4 sm:$0xff]   ;;  %v16477_v34 = vld [vmem:[%s17715_s19 + $0x21e0] ss:$16 sps:$4 sm:$0xff]  }
 0x4a1   : > { %10802 = vmatprep.subr.bf16.mxu0 %v16395_v43  ;;  %11827 = vmatprep.subr.bf16.mxu1 %v16398_v45  ;;  %v16480_v43 = vld [vmem:[%s17715_s19 + $0x21e8] ss:$16 sps:$4 sm:$0xff]   ;;  %v16485_v45 = vld [vmem:[%s17715_s19 + $0x2204] ss:$16 sps:$4 sm:$0xff]  }
 0x4a2   : > { %10832 = vmatprep.mubr.bf16.mxu0 %v18945_v46  ;;  %11857 = vmatprep.mubr.bf16.mxu1 %v18945_v46 }
 0x4a4   : > { %10803 = vmatpush1.bf16.msra.mxu0 %v16393_v23  ;;  %11828 = vmatpush1.bf16.msra.mxu1 %v16396_v47  ;;  %v16488_v23 = vld [vmem:[%s17715_s19 + $0x220c] ss:$16 sps:$4 sm:$0xff]   ;;  %v19011_v47 = vrot.slane %v18930_v35, %v17784_v50  ;;  %v16489_v35 = vld [vmem:[%s17715_s19 + $0x2220] ss:$16 sps:$4 sm:$0xff]  }
 0x4a5   : > { %10804 = vmatprep.subr.bf16.mxu0 %v16401_v48  ;;  %11829 = vmatprep.subr.bf16.mxu1 %v16404_v51  ;;  %v16483_v48 = vld [vmem:[%s17715_s19 + $0x2200] ss:$16 sps:$4 sm:$0xff]   ;;  %v16486_v51 = vld [vmem:[%s17715_s19 + $0x2208] ss:$16 sps:$4 sm:$0xff]  }
 0x4a8   : > { %10805 = vmatpush1.bf16.msra.mxu0 %v16399_v52  ;;  %11830 = vmatpush1.bf16.msra.mxu1 %v16402_v54  ;;  %v16491_v52 = vld [vmem:[%s17715_s19 + $0x2224] ss:$16 sps:$4 sm:$0xff]   ;;  %v16494_v54 = vld [vmem:[%s17715_s19 + $0x222c] ss:$16 sps:$4 sm:$0xff]  }
 0x4a9   : > { %10806 = vmatprep.subr.bf16.mxu0 %v16407_v55  ;;  %11831 = vmatprep.subr.bf16.mxu1 %v16410_v56  ;;  %v2190_v55 = vcombine.high %v18945_v46, %v18945_v46  ;;  %v16492_v56 = vld [vmem:[%s17715_s19 + $0x2228] ss:$16 sps:$4 sm:$0xff]   ;;  %v16495_v46 = vld [vmem:[%s17715_s19 + $0x2240] ss:$16 sps:$4 sm:$0xff]  }
 0x4ac   : > { %10807 = vmatpush1.bf16.msra.mxu0 %v16405_v39  ;;  %11832 = vmatpush1.bf16.msra.mxu1 %v16408_v57  ;;  %v16497_v39 = vld [vmem:[%s17715_s19 + $0x2244] ss:$16 sps:$4 sm:$0xff]   ;;  %v16500_v57 = vld [vmem:[%s17715_s19 + $0x224c] ss:$16 sps:$4 sm:$0xff]  }
 0x4ad   : > { %10808 = vmatprep.subr.bf16.mxu0 %v16413_v58  ;;  %11833 = vmatprep.subr.bf16.mxu1 %v16416_v59  ;;  %v16498_v58 = vld [vmem:[%s17715_s19 + $0x2248] ss:$16 sps:$4 sm:$0xff]   ;;  %v16503_v59 = vld [vmem:[%s17715_s19 + $0x2264] ss:$16 sps:$4 sm:$0xff]  }
 0x4b0   : > { %10809 = vmatpush1.bf16.msra.mxu0 %v16411_v49  ;;  %11834 = vmatpush1.bf16.msra.mxu1 %v16414_v60  ;;  %v16506_v49 = vld [vmem:[%s17715_s19 + $0x226c] ss:$16 sps:$4 sm:$0xff]   ;;  %v16501_v60 = vld [vmem:[%s17715_s19 + $0x2260] ss:$16 sps:$4 sm:$0xff]  }
 0x4b1   : > { %10810 = vmatprep.subr.bf16.mxu0 %v16419_v62  ;;  %11835 = vmatprep.subr.bf16.mxu1 %v16422_v63  ;;  %v16504_v62 = vld [vmem:[%s17715_s19 + $0x2268] ss:$16 sps:$4 sm:$0xff]   ;;  %v16509_v63 = vld [vmem:[%s17715_s19 + $0x2284] ss:$16 sps:$4 sm:$0xff]  }
 0x4b4   : > { %10811 = vmatpush1.bf16.msra.mxu0 %v16417_v1  ;;  %11836 = vmatpush1.bf16.msra.mxu1 %v16420_v2  ;;  %v16512_v1 = vld [vmem:[%s17715_s19 + $0x228c] ss:$16 sps:$4 sm:$0xff]   ;;  %v16507_v2 = vld [vmem:[%s17715_s19 + $0x2280] ss:$16 sps:$4 sm:$0xff]  }
 0x4b5   : > { %10812 = vmatprep.subr.bf16.mxu0 %v16425_v36  ;;  %11837 = vmatprep.subr.bf16.mxu1 %v16428_v3  ;;  %v16510_v36 = vld [vmem:[%s17715_s19 + $0x2288] ss:$16 sps:$4 sm:$0xff]   ;;  %v16515_v3 = vld [vmem:[%s17715_s19 + $0x22a4] ss:$16 sps:$4 sm:$0xff]  }
 0x4b8   : > { %10813 = vmatpush1.bf16.msra.mxu0 %v16423_v4  ;;  %11838 = vmatpush1.bf16.msra.mxu1 %v16426_v5  ;;  %v16518_v4 = vld [vmem:[%s17715_s19 + $0x22ac] ss:$16 sps:$4 sm:$0xff]   ;;  %v16513_v5 = vld [vmem:[%s17715_s19 + $0x22a0] ss:$16 sps:$4 sm:$0xff]  }
 0x4b9   : > { %10814 = vmatprep.subr.bf16.mxu0 %v16431_v6  ;;  %11839 = vmatprep.subr.bf16.mxu1 %v16434_v7  ;;  %v16516_v6 = vld [vmem:[%s17715_s19 + $0x22a8] ss:$16 sps:$4 sm:$0xff]   ;;  %v16521_v7 = vld [vmem:[%s17715_s19 + $0x22c4] ss:$16 sps:$4 sm:$0xff]  }
 0x4bc   : > { %10815 = vmatpush1.bf16.msra.mxu0 %v16429_v8  ;;  %11840 = vmatpush1.bf16.msra.mxu1 %v16432_v10  ;;  %v16524_v8 = vld [vmem:[%s17715_s19 + $0x22cc] ss:$16 sps:$4 sm:$0xff]   ;;  %v16519_v10 = vld [vmem:[%s17715_s19 + $0x22c0] ss:$16 sps:$4 sm:$0xff]  }
 0x4bd   : > { %10816 = vmatprep.subr.bf16.mxu0 %v16437_v12  ;;  %11841 = vmatprep.subr.bf16.mxu1 %v16440_v13  ;;  %v16522_v12 = vld [vmem:[%s17715_s19 + $0x22c8] ss:$16 sps:$4 sm:$0xff]   ;;  %v16527_v13 = vld [vmem:[%s17715_s19 + $0x22e4] ss:$16 sps:$4 sm:$0xff]  }
 0x4c0   : > { %10817 = vmatpush1.bf16.msra.mxu0 %v16435_v15  ;;  %11842 = vmatpush1.bf16.msra.mxu1 %v16438_v0  ;;  %v16530_v15 = vld [vmem:[%s17715_s19 + $0x22ec] ss:$16 sps:$4 sm:$0xff]   ;;  %v16525_v0 = vld [vmem:[%s17715_s19 + $0x22e0] ss:$16 sps:$4 sm:$0xff]  }
 0x4c1   : > { %10818 = vmatprep.subr.bf16.mxu0 %v16443_v17  ;;  %11843 = vmatprep.subr.bf16.mxu1 %v16446_v53  ;;  %v16528_v17 = vld [vmem:[%s17715_s19 + $0x22e8] ss:$16 sps:$4 sm:$0xff]   ;;  %v16533_v53 = vld [vmem:[%s17715_s19 + $0x2304] ss:$16 sps:$4 sm:$0xff]  }
 0x4c4   : > { %10819 = vmatpush1.bf16.msra.mxu0 %v16441_v18  ;;  %11844 = vmatpush1.bf16.msra.mxu1 %v16444_v9  ;;  %v16536_v18 = vld [vmem:[%s17715_s19 + $0x230c] ss:$16 sps:$4 sm:$0xff]   ;;  %v16531_v9 = vld [vmem:[%s17715_s19 + $0x2300] ss:$16 sps:$4 sm:$0xff]  }
 0x4c5   : > { %10820 = vmatprep.subr.bf16.mxu0 %v16449_v19  ;;  %11845 = vmatprep.subr.bf16.mxu1 %v16452_v20  ;;  %v16534_v19 = vld [vmem:[%s17715_s19 + $0x2308] ss:$16 sps:$4 sm:$0xff]   ;;  %v16539_v20 = vld [vmem:[%s17715_s19 + $0x2324] ss:$16 sps:$4 sm:$0xff]  }
 0x4c8   : > { %10821 = vmatpush1.bf16.msra.mxu0 %v16447_v14  ;;  %11846 = vmatpush1.bf16.msra.mxu1 %v16450_v24  ;;  %v16542_v14 = vld [vmem:[%s17715_s19 + $0x232c] ss:$16 sps:$4 sm:$0xff]   ;;  %v16537_v24 = vld [vmem:[%s17715_s19 + $0x2320] ss:$16 sps:$4 sm:$0xff]  }
 0x4c9   : > { %10822 = vmatprep.subr.bf16.mxu0 %v16455_v25  ;;  %11847 = vmatprep.subr.bf16.mxu1 %v16458_v61  ;;  %v16540_v25 = vld [vmem:[%s17715_s19 + $0x2328] ss:$16 sps:$4 sm:$0xff]   ;;  %v16545_v61 = vld [vmem:[%s17715_s19 + $0x2344] ss:$16 sps:$4 sm:$0xff]  }
 0x4cc   : > { %10823 = vmatpush1.bf16.msra.mxu0 %v16453_v28  ;;  %11848 = vmatpush1.bf16.msra.mxu1 %v16456_v29  ;;  %v16548_v28 = vld [vmem:[%s17715_s19 + $0x234c] ss:$16 sps:$4 sm:$0xff]   ;;  %v16543_v29 = vld [vmem:[%s17715_s19 + $0x2340] ss:$16 sps:$4 sm:$0xff]  }
 0x4cd   : > { %10824 = vmatprep.subr.bf16.mxu0 %v16461_v11  ;;  %11849 = vmatprep.subr.bf16.mxu1 %v16464_v30  ;;  %v16546_v11 = vld [vmem:[%s17715_s19 + $0x2348] ss:$16 sps:$4 sm:$0xff]   ;;  %v16551_v30 = vld [vmem:[%s17715_s19 + $0x2364] ss:$16 sps:$4 sm:$0xff]  }
 0x4d0   : > { %10825 = vmatpush1.bf16.msra.mxu0 %v16459_v31  ;;  %11850 = vmatpush1.bf16.msra.mxu1 %v16462_v21  ;;  %v16554_v31 = vld [vmem:[%s17715_s19 + $0x236c] ss:$16 sps:$4 sm:$0xff]   ;;  %v16549_v21 = vld [vmem:[%s17715_s19 + $0x2360] ss:$16 sps:$4 sm:$0xff]  }
 0x4d1   : > { %10826 = vmatprep.subr.bf16.mxu0 %v16467_v32  ;;  %11851 = vmatprep.subr.bf16.mxu1 %v16470_v33  ;;  %v16552_v32 = vld [vmem:[%s17715_s19 + $0x2368] ss:$16 sps:$4 sm:$0xff]   ;;  %v16557_v33 = vld [vmem:[%s17715_s19 + $0x2384] ss:$16 sps:$4 sm:$0xff]  }
 0x4d4   : > { %10827 = vmatpush1.bf16.msra.mxu0 %v16465_v26  ;;  %11852 = vmatpush1.bf16.msra.mxu1 %v16468_v37  ;;  %v16560_v26 = vld [vmem:[%s17715_s19 + $0x238c] ss:$16 sps:$4 sm:$0xff]   ;;  %v16555_v37 = vld [vmem:[%s17715_s19 + $0x2380] ss:$16 sps:$4 sm:$0xff]  }
 0x4d5   : > { %10828 = vmatprep.subr.bf16.mxu0 %v16473_v38  ;;  %11853 = vmatprep.subr.bf16.mxu1 %v16476_v40  ;;  %v16558_v38 = vld [vmem:[%s17715_s19 + $0x2388] ss:$16 sps:$4 sm:$0xff]   ;;  %v16563_v40 = vld [vmem:[%s17715_s19 + $0x23a4] ss:$16 sps:$4 sm:$0xff]  }
 0x4d8   : > { %10829 = vmatpush1.bf16.msra.mxu0 %v16471_v27  ;;  %11854 = vmatpush1.bf16.msra.mxu1 %v16474_v41  ;;  %v16566_v27 = vld [vmem:[%s17715_s19 + $0x23ac] ss:$16 sps:$4 sm:$0xff]   ;;  %v16561_v41 = vld [vmem:[%s17715_s19 + $0x23a0] ss:$16 sps:$4 sm:$0xff]  }
 0x4d9   : > { %10830 = vmatprep.subr.bf16.mxu0 %v16479_v22  ;;  %11855 = vmatprep.subr.bf16.mxu1 %v16482_v42  ;;  %v16564_v22 = vld [vmem:[%s17715_s19 + $0x23a8] ss:$16 sps:$4 sm:$0xff]   ;;  %v16569_v42 = vld [vmem:[%s17715_s19 + $0x23c4] ss:$16 sps:$4 sm:$0xff]  }
 0x4dc   : > { %10831 = vmatpush1.bf16.msra.mxu0 %v16477_v34  ;;  %11856 = vmatpush1.bf16.msra.mxu1 %v16480_v43  ;;  %v16572_v34 = vld [vmem:[%s17715_s19 + $0x23cc] ss:$16 sps:$4 sm:$0xff]   ;;  %v2143_v43 = vcombine.high %v18922_v16, %v18922_v16  ;;  %v16573_v16 = vld [vmem:[%s17715_s19 + $0x23e0] ss:$16 sps:$4 sm:$0xff]  }
 0x4dd   : > { %10841 = vmatprep.subr.bf16.mxu0 %v16485_v45  ;;  %11866 = vmatprep.subr.bf16.mxu1 %v16488_v23  ;;  %v16567_v45 = vld [vmem:[%s17715_s19 + $0x23c0] ss:$16 sps:$4 sm:$0xff]   ;;  %v16570_v23 = vld [vmem:[%s17715_s19 + $0x23c8] ss:$16 sps:$4 sm:$0xff]  }
 0x4df   : > { %10833 = vmatmul.mubr.bf16.vlgmr.msra.gmra.mrb[0].mxu0 %v19011_v47  ;;  %11858 = vmatmul.mubr.bf16.vlgmr.msra.gmra.mrb[0].mxu1 %v19011_v47 }
 0x4e0   : > { %10842 = vmatpush1.bf16.msra.mxu0 %v16483_v48  ;;  %11867 = vmatpush1.bf16.msra.mxu1 %v16486_v51  ;;  %v16575_v48 = vld [vmem:[%s17715_s19 + $0x23e4] ss:$16 sps:$4 sm:$0xff]   ;;  %v16578_v51 = vld [vmem:[%s17715_s19 + $0x23ec] ss:$16 sps:$4 sm:$0xff]  }
 0x4e1   : > { %10843 = vmatprep.subr.bf16.mxu0 %v16491_v52  ;;  %11868 = vmatprep.subr.bf16.mxu1 %v16494_v54  ;;  %v19080_v52 = vrot.slane %v2143_v43, %v17784_v50  ;;  %v16576_v54 = vld [vmem:[%s17715_s19 + $0x23e8] ss:$16 sps:$4 sm:$0xff]  }
 0x4e2   : > { %10873 = vmatprep.mubr.bf16.mxu0 %v2190_v55  ;;  %11898 = vmatprep.mubr.bf16.mxu1 %v2190_v55  ;;  %v16581_v55 = vld [vmem:[%s17715_s19 + $0x2404] ss:$16 sps:$4 sm:$0xff]   ;;  %v16654_v43 = vld [vmem:[%s17715_s19 + $0x2588] ss:$16 sps:$4 sm:$0xff]  }
 0x4e4   : > { %10844 = vmatpush1.bf16.msra.mxu0 %v16489_v35  ;;  %11869 = vmatpush1.bf16.msra.mxu1 %v16492_v56  ;;  %v16584_v35 = vld [vmem:[%s17715_s19 + $0x240c] ss:$16 sps:$4 sm:$0xff]   ;;  %v2159_v56 = vcombine.high %v19080_v52, %v19080_v52 }
 0x4e5   : > { %10845 = vmatprep.subr.bf16.mxu0 %v16497_v39  ;;  %11870 = vmatprep.subr.bf16.mxu1 %v16500_v57  ;;  %v2188_v39 = vcombine.high %v19011_v47, %v19011_v47  ;;  %v16579_v57 = vld [vmem:[%s17715_s19 + $0x2400] ss:$16 sps:$4 sm:$0xff]  }
 0x4e6   : > { %v16585_v47 = vld [vmem:[%s17715_s19 + $0x2420] ss:$16 sps:$4 sm:$0xff]  }
 0x4e8   : > { %10846 = vmatpush1.bf16.msra.mxu0 %v16495_v46  ;;  %11871 = vmatpush1.bf16.msra.mxu1 %v16498_v58  ;;  %v16582_v46 = vld [vmem:[%s17715_s19 + $0x2408] ss:$16 sps:$4 sm:$0xff]   ;;  %v16587_v58 = vld [vmem:[%s17715_s19 + $0x2424] ss:$16 sps:$4 sm:$0xff]  }
 0x4e9   : > { %10847 = vmatprep.subr.bf16.mxu0 %v16503_v59  ;;  %11872 = vmatprep.subr.bf16.mxu1 %v16506_v49  ;;  %v16590_v59 = vld [vmem:[%s17715_s19 + $0x242c] ss:$16 sps:$4 sm:$0xff]   ;;  %v19095_v49 = vrot.slane %v2159_v56, %v17784_v50  ;;  %v16671_v56 = vld [vmem:[%s17715_s19 + $0x25e4] ss:$16 sps:$4 sm:$0xff]  }
 0x4ec   : > { %10848 = vmatpush1.bf16.msra.mxu0 %v16501_v60  ;;  %11873 = vmatpush1.bf16.msra.mxu1 %v16504_v62  ;;  %v16588_v60 = vld [vmem:[%s17715_s19 + $0x2428] ss:$16 sps:$4 sm:$0xff]   ;;  %v16593_v62 = vld [vmem:[%s17715_s19 + $0x2444] ss:$16 sps:$4 sm:$0xff]  }
 0x4ed   : > { %10849 = vmatprep.subr.bf16.mxu0 %v16509_v63  ;;  %11874 = vmatprep.subr.bf16.mxu1 %v16512_v1  ;;  %v16596_v63 = vld [vmem:[%s17715_s19 + $0x244c] ss:$16 sps:$4 sm:$0xff]   ;;  %v16591_v1 = vld [vmem:[%s17715_s19 + $0x2440] ss:$16 sps:$4 sm:$0xff]  }
 0x4f0   : > { %10850 = vmatpush1.bf16.msra.mxu0 %v16507_v2  ;;  %11875 = vmatpush1.bf16.msra.mxu1 %v16510_v36  ;;  %v16594_v2 = vld [vmem:[%s17715_s19 + $0x2448] ss:$16 sps:$4 sm:$0xff]   ;;  %v16599_v36 = vld [vmem:[%s17715_s19 + $0x2464] ss:$16 sps:$4 sm:$0xff]  }
 0x4f1   : > { %10851 = vmatprep.subr.bf16.mxu0 %v16515_v3  ;;  %11876 = vmatprep.subr.bf16.mxu1 %v16518_v4  ;;  %v16602_v3 = vld [vmem:[%s17715_s19 + $0x246c] ss:$16 sps:$4 sm:$0xff]   ;;  %v16597_v4 = vld [vmem:[%s17715_s19 + $0x2460] ss:$16 sps:$4 sm:$0xff]  }
 0x4f4   : > { %10852 = vmatpush1.bf16.msra.mxu0 %v16513_v5  ;;  %11877 = vmatpush1.bf16.msra.mxu1 %v16516_v6  ;;  %v16600_v5 = vld [vmem:[%s17715_s19 + $0x2468] ss:$16 sps:$4 sm:$0xff]   ;;  %v16605_v6 = vld [vmem:[%s17715_s19 + $0x2484] ss:$16 sps:$4 sm:$0xff]  }
 0x4f5   : > { %10853 = vmatprep.subr.bf16.mxu0 %v16521_v7  ;;  %11878 = vmatprep.subr.bf16.mxu1 %v16524_v8  ;;  %v16608_v7 = vld [vmem:[%s17715_s19 + $0x248c] ss:$16 sps:$4 sm:$0xff]   ;;  %v16603_v8 = vld [vmem:[%s17715_s19 + $0x2480] ss:$16 sps:$4 sm:$0xff]  }
 0x4f8   : > { %10854 = vmatpush1.bf16.msra.mxu0 %v16519_v10  ;;  %11879 = vmatpush1.bf16.msra.mxu1 %v16522_v12  ;;  %v16606_v10 = vld [vmem:[%s17715_s19 + $0x2488] ss:$16 sps:$4 sm:$0xff]   ;;  %v16611_v12 = vld [vmem:[%s17715_s19 + $0x24a4] ss:$16 sps:$4 sm:$0xff]  }
 0x4f9   : > { %10855 = vmatprep.subr.bf16.mxu0 %v16527_v13  ;;  %11880 = vmatprep.subr.bf16.mxu1 %v16530_v15  ;;  %v16614_v13 = vld [vmem:[%s17715_s19 + $0x24ac] ss:$16 sps:$4 sm:$0xff]   ;;  %v16609_v15 = vld [vmem:[%s17715_s19 + $0x24a0] ss:$16 sps:$4 sm:$0xff]  }
 0x4fc   : > { %10856 = vmatpush1.bf16.msra.mxu0 %v16525_v0  ;;  %11881 = vmatpush1.bf16.msra.mxu1 %v16528_v17  ;;  %v16612_v0 = vld [vmem:[%s17715_s19 + $0x24a8] ss:$16 sps:$4 sm:$0xff]   ;;  %v16617_v17 = vld [vmem:[%s17715_s19 + $0x24c4] ss:$16 sps:$4 sm:$0xff]  }
 0x4fd   : > { %10857 = vmatprep.subr.bf16.mxu0 %v16533_v53  ;;  %11882 = vmatprep.subr.bf16.mxu1 %v16536_v18  ;;  %v16620_v53 = vld [vmem:[%s17715_s19 + $0x24cc] ss:$16 sps:$4 sm:$0xff]   ;;  %v16615_v18 = vld [vmem:[%s17715_s19 + $0x24c0] ss:$16 sps:$4 sm:$0xff]  }
 0x500   : > { %10858 = vmatpush1.bf16.msra.mxu0 %v16531_v9  ;;  %11883 = vmatpush1.bf16.msra.mxu1 %v16534_v19  ;;  %v16618_v9 = vld [vmem:[%s17715_s19 + $0x24c8] ss:$16 sps:$4 sm:$0xff]   ;;  %v16623_v19 = vld [vmem:[%s17715_s19 + $0x24e4] ss:$16 sps:$4 sm:$0xff]  }
 0x501   : > { %10859 = vmatprep.subr.bf16.mxu0 %v16539_v20  ;;  %11884 = vmatprep.subr.bf16.mxu1 %v16542_v14  ;;  %v16626_v20 = vld [vmem:[%s17715_s19 + $0x24ec] ss:$16 sps:$4 sm:$0xff]   ;;  %v16621_v14 = vld [vmem:[%s17715_s19 + $0x24e0] ss:$16 sps:$4 sm:$0xff]  }
 0x504   : > { %10860 = vmatpush1.bf16.msra.mxu0 %v16537_v24  ;;  %11885 = vmatpush1.bf16.msra.mxu1 %v16540_v25  ;;  %v16624_v24 = vld [vmem:[%s17715_s19 + $0x24e8] ss:$16 sps:$4 sm:$0xff]   ;;  %v16629_v25 = vld [vmem:[%s17715_s19 + $0x2504] ss:$16 sps:$4 sm:$0xff]  }
 0x505   : > { %10861 = vmatprep.subr.bf16.mxu0 %v16545_v61  ;;  %11886 = vmatprep.subr.bf16.mxu1 %v16548_v28  ;;  %v16632_v61 = vld [vmem:[%s17715_s19 + $0x250c] ss:$16 sps:$4 sm:$0xff]   ;;  %v16627_v28 = vld [vmem:[%s17715_s19 + $0x2500] ss:$16 sps:$4 sm:$0xff]  }
 0x508   : > { %10862 = vmatpush1.bf16.msra.mxu0 %v16543_v29  ;;  %11887 = vmatpush1.bf16.msra.mxu1 %v16546_v11  ;;  %v16630_v29 = vld [vmem:[%s17715_s19 + $0x2508] ss:$16 sps:$4 sm:$0xff]   ;;  %v16635_v11 = vld [vmem:[%s17715_s19 + $0x2524] ss:$16 sps:$4 sm:$0xff]  }
 0x509   : > { %10863 = vmatprep.subr.bf16.mxu0 %v16551_v30  ;;  %11888 = vmatprep.subr.bf16.mxu1 %v16554_v31  ;;  %v16638_v30 = vld [vmem:[%s17715_s19 + $0x252c] ss:$16 sps:$4 sm:$0xff]   ;;  %v16633_v31 = vld [vmem:[%s17715_s19 + $0x2520] ss:$16 sps:$4 sm:$0xff]  }
 0x50c   : > { %10864 = vmatpush1.bf16.msra.mxu0 %v16549_v21  ;;  %11889 = vmatpush1.bf16.msra.mxu1 %v16552_v32  ;;  %v16636_v21 = vld [vmem:[%s17715_s19 + $0x2528] ss:$16 sps:$4 sm:$0xff]   ;;  %v16641_v32 = vld [vmem:[%s17715_s19 + $0x2544] ss:$16 sps:$4 sm:$0xff]  }
 0x50d   : > { %10865 = vmatprep.subr.bf16.mxu0 %v16557_v33  ;;  %11890 = vmatprep.subr.bf16.mxu1 %v16560_v26  ;;  %v16644_v33 = vld [vmem:[%s17715_s19 + $0x254c] ss:$16 sps:$4 sm:$0xff]   ;;  %v16639_v26 = vld [vmem:[%s17715_s19 + $0x2540] ss:$16 sps:$4 sm:$0xff]  }
 0x510   : > { %10866 = vmatpush1.bf16.msra.mxu0 %v16555_v37  ;;  %11891 = vmatpush1.bf16.msra.mxu1 %v16558_v38  ;;  %v16642_v37 = vld [vmem:[%s17715_s19 + $0x2548] ss:$16 sps:$4 sm:$0xff]   ;;  %v16647_v38 = vld [vmem:[%s17715_s19 + $0x2564] ss:$16 sps:$4 sm:$0xff]  }
 0x511   : > { %10867 = vmatprep.subr.bf16.mxu0 %v16563_v40  ;;  %11892 = vmatprep.subr.bf16.mxu1 %v16566_v27  ;;  %v16650_v40 = vld [vmem:[%s17715_s19 + $0x256c] ss:$16 sps:$4 sm:$0xff]   ;;  %v16645_v27 = vld [vmem:[%s17715_s19 + $0x2560] ss:$16 sps:$4 sm:$0xff]  }
 0x514   : > { %10868 = vmatpush1.bf16.msra.mxu0 %v16561_v41  ;;  %11893 = vmatpush1.bf16.msra.mxu1 %v16564_v22  ;;  %v16648_v41 = vld [vmem:[%s17715_s19 + $0x2568] ss:$16 sps:$4 sm:$0xff]   ;;  %v16653_v22 = vld [vmem:[%s17715_s19 + $0x2584] ss:$16 sps:$4 sm:$0xff]  }
 0x515   : > { %10869 = vmatprep.subr.bf16.mxu0 %v16569_v42  ;;  %11894 = vmatprep.subr.bf16.mxu1 %v16572_v34  ;;  %v16656_v42 = vld [vmem:[%s17715_s19 + $0x258c] ss:$16 sps:$4 sm:$0xff]   ;;  %v16651_v34 = vld [vmem:[%s17715_s19 + $0x2580] ss:$16 sps:$4 sm:$0xff]  }
 0x518   : > { %10870 = vmatpush1.bf16.msra.mxu0 %v16567_v45  ;;  %11895 = vmatpush1.bf16.msra.mxu1 %v16570_v23  ;;  %v16659_v45 = vld [vmem:[%s17715_s19 + $0x25a4] ss:$16 sps:$4 sm:$0xff]   ;;  %v16662_v23 = vld [vmem:[%s17715_s19 + $0x25ac] ss:$16 sps:$4 sm:$0xff]  }
 0x519   : > { %10871 = vmatprep.subr.bf16.mxu0 %v16575_v48  ;;  %11896 = vmatprep.subr.bf16.mxu1 %v16578_v51  ;;  %v16657_v48 = vld [vmem:[%s17715_s19 + $0x25a0] ss:$16 sps:$4 sm:$0xff]   ;;  %v16660_v51 = vld [vmem:[%s17715_s19 + $0x25a8] ss:$16 sps:$4 sm:$0xff]  }
 0x51c   : > { %10872 = vmatpush1.bf16.msra.mxu0 %v16573_v16  ;;  %11897 = vmatpush1.bf16.msra.mxu1 %v16576_v54  ;;  %v16665_v16 = vld [vmem:[%s17715_s19 + $0x25c4] ss:$16 sps:$4 sm:$0xff]   ;;  %v16668_v54 = vld [vmem:[%s17715_s19 + $0x25cc] ss:$16 sps:$4 sm:$0xff]  }
 0x51d   : > { %10882 = vmatprep.subr.bf16.mxu0 %v16581_v55  ;;  %11907 = vmatprep.subr.bf16.mxu1 %v16584_v35  ;;  %v16663_v55 = vld [vmem:[%s17715_s19 + $0x25c0] ss:$16 sps:$4 sm:$0xff]   ;;  %v16666_v35 = vld [vmem:[%s17715_s19 + $0x25c8] ss:$16 sps:$4 sm:$0xff]  }
 0x51f   : > { %10874 = vmatmul.mubr.bf16.vlgmr.msra.gmra.mrb[0].mxu0 %v2188_v39  ;;  %11899 = vmatmul.mubr.bf16.vlgmr.msra.gmra.mrb[0].mxu1 %v2188_v39  ;;  %v16674_v39 = vld [vmem:[%s17715_s19 + $0x25ec] ss:$16 sps:$4 sm:$0xff]  }
 0x520   : > { %10883 = vmatpush1.bf16.msra.mxu0 %v16579_v57  ;;  %11908 = vmatpush1.bf16.msra.mxu1 %v16582_v46  ;;  %v16669_v57 = vld [vmem:[%s17715_s19 + $0x25e0] ss:$16 sps:$4 sm:$0xff]   ;;  %v16672_v46 = vld [vmem:[%s17715_s19 + $0x25e8] ss:$16 sps:$4 sm:$0xff]  }
 0x521   : > { %10884 = vmatprep.subr.bf16.mxu0 %v16587_v58  ;;  %11909 = vmatprep.subr.bf16.mxu1 %v16590_v59  ;;  %v16678_v58 = vld [vmem:[%s17715_s19 + $0x2604] ss:$16 sps:$4 sm:$0xff]   ;;  %v16681_v59 = vld [vmem:[%s17715_s19 + $0x260c] ss:$16 sps:$4 sm:$0xff]  }
 0x522   : > { %10914 = vmatprep.mubr.bf16.mxu0 %v19095_v49  ;;  %11939 = vmatprep.mubr.bf16.mxu1 %v19095_v49 }
 0x524   : > { %10885 = vmatpush1.bf16.msra.mxu0 %v16585_v47  ;;  %11910 = vmatpush1.bf16.msra.mxu1 %v16588_v60  ;;  %v19161_v47 = vrot.slane %v19080_v52, %v17784_v50  ;;  %v16676_v60 = vld [vmem:[%s17715_s19 + $0x2600] ss:$16 sps:$4 sm:$0xff]  }
 0x525   : > { %10886 = vmatprep.subr.bf16.mxu0 %v16593_v62  ;;  %11911 = vmatprep.subr.bf16.mxu1 %v16596_v63  ;;  %v16679_v62 = vld [vmem:[%s17715_s19 + $0x2608] ss:$16 sps:$4 sm:$0xff]   ;;  %v16684_v63 = vld [vmem:[%s17715_s19 + $0x2624] ss:$16 sps:$4 sm:$0xff]   ;;  %v16682_v52 = vld [vmem:[%s17715_s19 + $0x2620] ss:$16 sps:$4 sm:$0xff]  }
 0x528   : > { %10887 = vmatpush1.bf16.msra.mxu0 %v16591_v1  ;;  %11912 = vmatpush1.bf16.msra.mxu1 %v16594_v2  ;;  %v16687_v1 = vld [vmem:[%s17715_s19 + $0x262c] ss:$16 sps:$4 sm:$0xff]   ;;  %v2191_v2 = vcombine.high %v19095_v49, %v19095_v49  ;;  %v16688_v49 = vld [vmem:[%s17715_s19 + $0x2640] ss:$16 sps:$4 sm:$0xff]  }
 0x529   : > { %10888 = vmatprep.subr.bf16.mxu0 %v16599_v36  ;;  %11913 = vmatprep.subr.bf16.mxu1 %v16602_v3  ;;  %v16685_v36 = vld [vmem:[%s17715_s19 + $0x2628] ss:$16 sps:$4 sm:$0xff]   ;;  %v16690_v3 = vld [vmem:[%s17715_s19 + $0x2644] ss:$16 sps:$4 sm:$0xff]  }
 0x52c   : > { %10889 = vmatpush1.bf16.msra.mxu0 %v16597_v4  ;;  %11914 = vmatpush1.bf16.msra.mxu1 %v16600_v5  ;;  %v16693_v4 = vld [vmem:[%s17715_s19 + $0x264c] ss:$16 sps:$4 sm:$0xff]   ;;  %v16691_v5 = vld [vmem:[%s17715_s19 + $0x2648] ss:$16 sps:$4 sm:$0xff]  }
 0x52d   : > { %10890 = vmatprep.subr.bf16.mxu0 %v16605_v6  ;;  %11915 = vmatprep.subr.bf16.mxu1 %v16608_v7  ;;  %v16696_v6 = vld [vmem:[%s17715_s19 + $0x2664] ss:$16 sps:$4 sm:$0xff]   ;;  %v16699_v7 = vld [vmem:[%s17715_s19 + $0x266c] ss:$16 sps:$4 sm:$0xff]  }
 0x530   : > { %10891 = vmatpush1.bf16.msra.mxu0 %v16603_v8  ;;  %11916 = vmatpush1.bf16.msra.mxu1 %v16606_v10  ;;  %v16694_v8 = vld [vmem:[%s17715_s19 + $0x2660] ss:$16 sps:$4 sm:$0xff]   ;;  %v16697_v10 = vld [vmem:[%s17715_s19 + $0x2668] ss:$16 sps:$4 sm:$0xff]  }
 0x531   : > { %10892 = vmatprep.subr.bf16.mxu0 %v16611_v12  ;;  %11917 = vmatprep.subr.bf16.mxu1 %v16614_v13  ;;  %v16702_v12 = vld [vmem:[%s17715_s19 + $0x2684] ss:$16 sps:$4 sm:$0xff]   ;;  %v16705_v13 = vld [vmem:[%s17715_s19 + $0x268c] ss:$16 sps:$4 sm:$0xff]  }
 0x534   : > { %10893 = vmatpush1.bf16.msra.mxu0 %v16609_v15  ;;  %11918 = vmatpush1.bf16.msra.mxu1 %v16612_v0  ;;  %v16700_v15 = vld [vmem:[%s17715_s19 + $0x2680] ss:$16 sps:$4 sm:$0xff]   ;;  %v16703_v0 = vld [vmem:[%s17715_s19 + $0x2688] ss:$16 sps:$4 sm:$0xff]  }
 0x535   : > { %10894 = vmatprep.subr.bf16.mxu0 %v16617_v17  ;;  %11919 = vmatprep.subr.bf16.mxu1 %v16620_v53  ;;  %v16708_v17 = vld [vmem:[%s17715_s19 + $0x26a4] ss:$16 sps:$4 sm:$0xff]   ;;  %v16711_v53 = vld [vmem:[%s17715_s19 + $0x26ac] ss:$16 sps:$4 sm:$0xff]  }
 0x538   : > { %10895 = vmatpush1.bf16.msra.mxu0 %v16615_v18  ;;  %11920 = vmatpush1.bf16.msra.mxu1 %v16618_v9  ;;  %v16706_v18 = vld [vmem:[%s17715_s19 + $0x26a0] ss:$16 sps:$4 sm:$0xff]   ;;  %v16709_v9 = vld [vmem:[%s17715_s19 + $0x26a8] ss:$16 sps:$4 sm:$0xff]  }
 0x539   : > { %10896 = vmatprep.subr.bf16.mxu0 %v16623_v19  ;;  %11921 = vmatprep.subr.bf16.mxu1 %v16626_v20  ;;  %v16714_v19 = vld [vmem:[%s17715_s19 + $0x26c4] ss:$16 sps:$4 sm:$0xff]   ;;  %v16717_v20 = vld [vmem:[%s17715_s19 + $0x26cc] ss:$16 sps:$4 sm:$0xff]  }
 0x53c   : > { %10897 = vmatpush1.bf16.msra.mxu0 %v16621_v14  ;;  %11922 = vmatpush1.bf16.msra.mxu1 %v16624_v24  ;;  %v16712_v14 = vld [vmem:[%s17715_s19 + $0x26c0] ss:$16 sps:$4 sm:$0xff]   ;;  %v16715_v24 = vld [vmem:[%s17715_s19 + $0x26c8] ss:$16 sps:$4 sm:$0xff]  }
 0x53d   : > { %10898 = vmatprep.subr.bf16.mxu0 %v16629_v25  ;;  %11923 = vmatprep.subr.bf16.mxu1 %v16632_v61  ;;  %v16720_v25 = vld [vmem:[%s17715_s19 + $0x26e4] ss:$16 sps:$4 sm:$0xff]   ;;  %v16723_v61 = vld [vmem:[%s17715_s19 + $0x26ec] ss:$16 sps:$4 sm:$0xff]  }
 0x540   : > { %10899 = vmatpush1.bf16.msra.mxu0 %v16627_v28  ;;  %11924 = vmatpush1.bf16.msra.mxu1 %v16630_v29  ;;  %v16718_v28 = vld [vmem:[%s17715_s19 + $0x26e0] ss:$16 sps:$4 sm:$0xff]   ;;  %v16721_v29 = vld [vmem:[%s17715_s19 + $0x26e8] ss:$16 sps:$4 sm:$0xff]  }
 0x541   : > { %10900 = vmatprep.subr.bf16.mxu0 %v16635_v11  ;;  %11925 = vmatprep.subr.bf16.mxu1 %v16638_v30  ;;  %v16726_v11 = vld [vmem:[%s17715_s19 + $0x2704] ss:$16 sps:$4 sm:$0xff]   ;;  %v16729_v30 = vld [vmem:[%s17715_s19 + $0x270c] ss:$16 sps:$4 sm:$0xff]  }
 0x544   : > { %10901 = vmatpush1.bf16.msra.mxu0 %v16633_v31  ;;  %11926 = vmatpush1.bf16.msra.mxu1 %v16636_v21  ;;  %v16724_v31 = vld [vmem:[%s17715_s19 + $0x2700] ss:$16 sps:$4 sm:$0xff]   ;;  %v16727_v21 = vld [vmem:[%s17715_s19 + $0x2708] ss:$16 sps:$4 sm:$0xff]  }
 0x545   : > { %10902 = vmatprep.subr.bf16.mxu0 %v16641_v32  ;;  %11927 = vmatprep.subr.bf16.mxu1 %v16644_v33  ;;  %v16732_v32 = vld [vmem:[%s17715_s19 + $0x2724] ss:$16 sps:$4 sm:$0xff]   ;;  %v16735_v33 = vld [vmem:[%s17715_s19 + $0x272c] ss:$16 sps:$4 sm:$0xff]  }
 0x548   : > { %10903 = vmatpush1.bf16.msra.mxu0 %v16639_v26  ;;  %11928 = vmatpush1.bf16.msra.mxu1 %v16642_v37  ;;  %v16730_v26 = vld [vmem:[%s17715_s19 + $0x2720] ss:$16 sps:$4 sm:$0xff]   ;;  %v16733_v37 = vld [vmem:[%s17715_s19 + $0x2728] ss:$16 sps:$4 sm:$0xff]  }
 0x549   : > { %10904 = vmatprep.subr.bf16.mxu0 %v16647_v38  ;;  %11929 = vmatprep.subr.bf16.mxu1 %v16650_v40  ;;  %v16738_v38 = vld [vmem:[%s17715_s19 + $0x2744] ss:$16 sps:$4 sm:$0xff]   ;;  %v16741_v40 = vld [vmem:[%s17715_s19 + $0x274c] ss:$16 sps:$4 sm:$0xff]  }
 0x54c   : > { %10905 = vmatpush1.bf16.msra.mxu0 %v16645_v27  ;;  %11930 = vmatpush1.bf16.msra.mxu1 %v16648_v41  ;;  %v16736_v27 = vld [vmem:[%s17715_s19 + $0x2740] ss:$16 sps:$4 sm:$0xff]   ;;  %v16739_v41 = vld [vmem:[%s17715_s19 + $0x2748] ss:$16 sps:$4 sm:$0xff]  }
 0x54d   : > { %10906 = vmatprep.subr.bf16.mxu0 %v16653_v22  ;;  %11931 = vmatprep.subr.bf16.mxu1 %v16656_v42  ;;  %v16744_v22 = vld [vmem:[%s17715_s19 + $0x2764] ss:$16 sps:$4 sm:$0xff]   ;;  %v16747_v42 = vld [vmem:[%s17715_s19 + $0x276c] ss:$16 sps:$4 sm:$0xff]  }
 0x550   : > { %10907 = vmatpush1.bf16.msra.mxu0 %v16651_v34  ;;  %11932 = vmatpush1.bf16.msra.mxu1 %v16654_v43  ;;  %v16742_v34 = vld [vmem:[%s17715_s19 + $0x2760] ss:$16 sps:$4 sm:$0xff]   ;;  %v16745_v43 = vld [vmem:[%s17715_s19 + $0x2768] ss:$16 sps:$4 sm:$0xff]  }
 0x551   : > { %10908 = vmatprep.subr.bf16.mxu0 %v16659_v45  ;;  %11933 = vmatprep.subr.bf16.mxu1 %v16662_v23  ;;  %v16750_v45 = vld [vmem:[%s17715_s19 + $0x2784] ss:$16 sps:$4 sm:$0xff]   ;;  %v16753_v23 = vld [vmem:[%s17715_s19 + $0x278c] ss:$16 sps:$4 sm:$0xff]  }
 0x554   : > { %10909 = vmatpush1.bf16.msra.mxu0 %v16657_v48  ;;  %11934 = vmatpush1.bf16.msra.mxu1 %v16660_v51  ;;  %v16748_v48 = vld [vmem:[%s17715_s19 + $0x2780] ss:$16 sps:$4 sm:$0xff]   ;;  %v16751_v51 = vld [vmem:[%s17715_s19 + $0x2788] ss:$16 sps:$4 sm:$0xff]  }
 0x555   : > { %10910 = vmatprep.subr.bf16.mxu0 %v16665_v16  ;;  %11935 = vmatprep.subr.bf16.mxu1 %v16668_v54  ;;  %v16756_v16 = vld [vmem:[%s17715_s19 + $0x27a4] ss:$16 sps:$4 sm:$0xff]   ;;  %v16759_v54 = vld [vmem:[%s17715_s19 + $0x27ac] ss:$16 sps:$4 sm:$0xff]  }
 0x558   : > { %10911 = vmatpush1.bf16.msra.mxu0 %v16663_v55  ;;  %11936 = vmatpush1.bf16.msra.mxu1 %v16666_v35  ;;  %v16754_v55 = vld [vmem:[%s17715_s19 + $0x27a0] ss:$16 sps:$4 sm:$0xff]   ;;  %v16757_v35 = vld [vmem:[%s17715_s19 + $0x27a8] ss:$16 sps:$4 sm:$0xff]  }
 0x559   : > { %10912 = vmatprep.subr.bf16.mxu0 %v16671_v56  ;;  %11937 = vmatprep.subr.bf16.mxu1 %v16674_v39  ;;  %v16762_v56 = vld [vmem:[%s17715_s19 + $0x27c4] ss:$16 sps:$4 sm:$0xff]   ;;  %v16765_v39 = vld [vmem:[%s17715_s19 + $0x27cc] ss:$16 sps:$4 sm:$0xff]  }
 0x55c   : > { %10913 = vmatpush1.bf16.msra.mxu0 %v16669_v57  ;;  %11938 = vmatpush1.bf16.msra.mxu1 %v16672_v46  ;;  %v19224_v57 = vld [vmem:[%s17733_s29 + $0x28] sm:$0xff] }
 0x55d   : > { %10923 = vmatprep.subr.bf16.mxu0 %v16678_v58  ;;  %11948 = vmatprep.subr.bf16.mxu1 %v16681_v59  ;;  %v16760_v46 = vld [vmem:[%s17715_s19 + $0x27c0] ss:$16 sps:$4 sm:$0xff]   ;;  %v16763_v58 = vld [vmem:[%s17715_s19 + $0x27c8] ss:$16 sps:$4 sm:$0xff]   ;;  %v16768_v59 = vld [vmem:[%s17715_s19 + $0x27e4] ss:$16 sps:$4 sm:$0xff]  }
 0x55f   : > { %10915 = vmatmul.mubr.bf16.vlgmr.msra.gmra.mrb[0].mxu0 %v19161_v47  ;;  %11940 = vmatmul.mubr.bf16.vlgmr.msra.gmra.mrb[0].mxu1 %v19161_v47 }
 0x560   : > { %10924 = vmatpush1.bf16.msra.mxu0 %v16676_v60  ;;  %11949 = vmatpush1.bf16.msra.mxu1 %v16679_v62  ;;  %v16771_v60 = vld [vmem:[%s17715_s19 + $0x27ec] ss:$16 sps:$4 sm:$0xff]   ;;  %v19232_v62 = vrot.slane %v19224_v57, %v17784_v50 }
 0x561   : > { %10925 = vmatprep.subr.bf16.mxu0 %v16684_v63  ;;  %11950 = vmatprep.subr.bf16.mxu1 %v16687_v1  ;;  %v16766_v63 = vld [vmem:[%s17715_s19 + $0x27e0] ss:$16 sps:$4 sm:$0xff]   ;;  %v16769_v1 = vld [vmem:[%s17715_s19 + $0x27e8] ss:$16 sps:$4 sm:$0xff]  }
 0x562   : > { %10955 = vmatprep.mubr.bf16.mxu0 %v2191_v2  ;;  %11980 = vmatprep.mubr.bf16.mxu1 %v2191_v2  ;;  %v16774_v2 = vld [vmem:[%s17715_s19 + $0x2804] ss:$16 sps:$4 sm:$0xff]  }
 0x564   : > { %10926 = vmatpush1.bf16.msra.mxu0 %v16682_v52  ;;  %11951 = vmatpush1.bf16.msra.mxu1 %v16685_v36  ;;  %v16777_v52 = vld [vmem:[%s17715_s19 + $0x280c] ss:$16 sps:$4 sm:$0xff]   ;;  %v2207_v36 = vcombine.high %v19232_v62, %v19232_v62 }
 0x565   : > { %10927 = vmatprep.subr.bf16.mxu0 %v16690_v3  ;;  %11952 = vmatprep.subr.bf16.mxu1 %v16693_v4  ;;  %v2189_v3 = vcombine.high %v19161_v47, %v19161_v47  ;;  %v16772_v4 = vld [vmem:[%s17715_s19 + $0x2800] ss:$16 sps:$4 sm:$0xff]  }
 0x566   : > { %v16778_v47 = vld [vmem:[%s17715_s19 + $0x2820] ss:$16 sps:$4 sm:$0xff]  }
 0x568   : > { %10928 = vmatpush1.bf16.msra.mxu0 %v16688_v49  ;;  %11953 = vmatpush1.bf16.msra.mxu1 %v16691_v5  ;;  %v16775_v49 = vld [vmem:[%s17715_s19 + $0x2808] ss:$16 sps:$4 sm:$0xff]   ;;  %v16780_v5 = vld [vmem:[%s17715_s19 + $0x2824] ss:$16 sps:$4 sm:$0xff]  }
 0x569   : > { %10929 = vmatprep.subr.bf16.mxu0 %v16696_v6  ;;  %11954 = vmatprep.subr.bf16.mxu1 %v16699_v7  ;;  %v16783_v6 = vld [vmem:[%s17715_s19 + $0x282c] ss:$16 sps:$4 sm:$0xff]   ;;  %v19247_v7 = vrot.slane %v2207_v36, %v17784_v50  ;;  %v16859_v36 = vld [vmem:[%s17715_s19 + $0x29c8] ss:$16 sps:$4 sm:$0xff]  }
 0x56c   : > { %10930 = vmatpush1.bf16.msra.mxu0 %v16694_v8  ;;  %11955 = vmatpush1.bf16.msra.mxu1 %v16697_v10  ;;  %v16781_v8 = vld [vmem:[%s17715_s19 + $0x2828] ss:$16 sps:$4 sm:$0xff]   ;;  %v16786_v10 = vld [vmem:[%s17715_s19 + $0x2844] ss:$16 sps:$4 sm:$0xff]  }
 0x56d   : > { %10931 = vmatprep.subr.bf16.mxu0 %v16702_v12  ;;  %11956 = vmatprep.subr.bf16.mxu1 %v16705_v13  ;;  %v16789_v12 = vld [vmem:[%s17715_s19 + $0x284c] ss:$16 sps:$4 sm:$0xff]   ;;  %v16784_v13 = vld [vmem:[%s17715_s19 + $0x2840] ss:$16 sps:$4 sm:$0xff]  }
 0x570   : > { %10932 = vmatpush1.bf16.msra.mxu0 %v16700_v15  ;;  %11957 = vmatpush1.bf16.msra.mxu1 %v16703_v0  ;;  %v16787_v15 = vld [vmem:[%s17715_s19 + $0x2848] ss:$16 sps:$4 sm:$0xff]   ;;  %v16792_v0 = vld [vmem:[%s17715_s19 + $0x2864] ss:$16 sps:$4 sm:$0xff]  }
 0x571   : > { %10933 = vmatprep.subr.bf16.mxu0 %v16708_v17  ;;  %11958 = vmatprep.subr.bf16.mxu1 %v16711_v53  ;;  %v16795_v17 = vld [vmem:[%s17715_s19 + $0x286c] ss:$16 sps:$4 sm:$0xff]   ;;  %v16790_v53 = vld [vmem:[%s17715_s19 + $0x2860] ss:$16 sps:$4 sm:$0xff]  }
 0x574   : > { %10934 = vmatpush1.bf16.msra.mxu0 %v16706_v18  ;;  %11959 = vmatpush1.bf16.msra.mxu1 %v16709_v9  ;;  %v16793_v18 = vld [vmem:[%s17715_s19 + $0x2868] ss:$16 sps:$4 sm:$0xff]   ;;  %v16798_v9 = vld [vmem:[%s17715_s19 + $0x2884] ss:$16 sps:$4 sm:$0xff]  }
 0x575   : > { %10935 = vmatprep.subr.bf16.mxu0 %v16714_v19  ;;  %11960 = vmatprep.subr.bf16.mxu1 %v16717_v20  ;;  %v16801_v19 = vld [vmem:[%s17715_s19 + $0x288c] ss:$16 sps:$4 sm:$0xff]   ;;  %v16796_v20 = vld [vmem:[%s17715_s19 + $0x2880] ss:$16 sps:$4 sm:$0xff]  }
 0x578   : > { %10936 = vmatpush1.bf16.msra.mxu0 %v16712_v14  ;;  %11961 = vmatpush1.bf16.msra.mxu1 %v16715_v24  ;;  %v16799_v14 = vld [vmem:[%s17715_s19 + $0x2888] ss:$16 sps:$4 sm:$0xff]   ;;  %v16804_v24 = vld [vmem:[%s17715_s19 + $0x28a4] ss:$16 sps:$4 sm:$0xff]  }
 0x579   : > { %10937 = vmatprep.subr.bf16.mxu0 %v16720_v25  ;;  %11962 = vmatprep.subr.bf16.mxu1 %v16723_v61  ;;  %v16807_v25 = vld [vmem:[%s17715_s19 + $0x28ac] ss:$16 sps:$4 sm:$0xff]   ;;  %v16802_v61 = vld [vmem:[%s17715_s19 + $0x28a0] ss:$16 sps:$4 sm:$0xff]  }
 0x57c   : > { %10938 = vmatpush1.bf16.msra.mxu0 %v16718_v28  ;;  %11963 = vmatpush1.bf16.msra.mxu1 %v16721_v29  ;;  %v16805_v28 = vld [vmem:[%s17715_s19 + $0x28a8] ss:$16 sps:$4 sm:$0xff]   ;;  %v16810_v29 = vld [vmem:[%s17715_s19 + $0x28c4] ss:$16 sps:$4 sm:$0xff]  }
 0x57d   : > { %10939 = vmatprep.subr.bf16.mxu0 %v16726_v11  ;;  %11964 = vmatprep.subr.bf16.mxu1 %v16729_v30  ;;  %v16813_v11 = vld [vmem:[%s17715_s19 + $0x28cc] ss:$16 sps:$4 sm:$0xff]   ;;  %v16808_v30 = vld [vmem:[%s17715_s19 + $0x28c0] ss:$16 sps:$4 sm:$0xff]  }
 0x580   : > { %10940 = vmatpush1.bf16.msra.mxu0 %v16724_v31  ;;  %11965 = vmatpush1.bf16.msra.mxu1 %v16727_v21  ;;  %v16811_v31 = vld [vmem:[%s17715_s19 + $0x28c8] ss:$16 sps:$4 sm:$0xff]   ;;  %v16816_v21 = vld [vmem:[%s17715_s19 + $0x28e4] ss:$16 sps:$4 sm:$0xff]  }
 0x581   : > { %10941 = vmatprep.subr.bf16.mxu0 %v16732_v32  ;;  %11966 = vmatprep.subr.bf16.mxu1 %v16735_v33  ;;  %v16819_v32 = vld [vmem:[%s17715_s19 + $0x28ec] ss:$16 sps:$4 sm:$0xff]   ;;  %v16814_v33 = vld [vmem:[%s17715_s19 + $0x28e0] ss:$16 sps:$4 sm:$0xff]  }
 0x584   : > { %10942 = vmatpush1.bf16.msra.mxu0 %v16730_v26  ;;  %11967 = vmatpush1.bf16.msra.mxu1 %v16733_v37  ;;  %v16817_v26 = vld [vmem:[%s17715_s19 + $0x28e8] ss:$16 sps:$4 sm:$0xff]   ;;  %v16822_v37 = vld [vmem:[%s17715_s19 + $0x2904] ss:$16 sps:$4 sm:$0xff]  }
 0x585   : > { %10943 = vmatprep.subr.bf16.mxu0 %v16738_v38  ;;  %11968 = vmatprep.subr.bf16.mxu1 %v16741_v40  ;;  %v16825_v38 = vld [vmem:[%s17715_s19 + $0x290c] ss:$16 sps:$4 sm:$0xff]   ;;  %v16820_v40 = vld [vmem:[%s17715_s19 + $0x2900] ss:$16 sps:$4 sm:$0xff]  }
 0x588   : > { %10944 = vmatpush1.bf16.msra.mxu0 %v16736_v27  ;;  %11969 = vmatpush1.bf16.msra.mxu1 %v16739_v41  ;;  %v16823_v27 = vld [vmem:[%s17715_s19 + $0x2908] ss:$16 sps:$4 sm:$0xff]   ;;  %v16828_v41 = vld [vmem:[%s17715_s19 + $0x2924] ss:$16 sps:$4 sm:$0xff]  }
 0x589   : > { %10945 = vmatprep.subr.bf16.mxu0 %v16744_v22  ;;  %11970 = vmatprep.subr.bf16.mxu1 %v16747_v42  ;;  %v16831_v22 = vld [vmem:[%s17715_s19 + $0x292c] ss:$16 sps:$4 sm:$0xff]   ;;  %v16826_v42 = vld [vmem:[%s17715_s19 + $0x2920] ss:$16 sps:$4 sm:$0xff]  }
 0x58c   : > { %10946 = vmatpush1.bf16.msra.mxu0 %v16742_v34  ;;  %11971 = vmatpush1.bf16.msra.mxu1 %v16745_v43  ;;  %v16829_v34 = vld [vmem:[%s17715_s19 + $0x2928] ss:$16 sps:$4 sm:$0xff]   ;;  %v16834_v43 = vld [vmem:[%s17715_s19 + $0x2944] ss:$16 sps:$4 sm:$0xff]  }
 0x58d   : > { %10947 = vmatprep.subr.bf16.mxu0 %v16750_v45  ;;  %11972 = vmatprep.subr.bf16.mxu1 %v16753_v23  ;;  %v16837_v45 = vld [vmem:[%s17715_s19 + $0x294c] ss:$16 sps:$4 sm:$0xff]   ;;  %v16832_v23 = vld [vmem:[%s17715_s19 + $0x2940] ss:$16 sps:$4 sm:$0xff]  }
 0x590   : > { %10948 = vmatpush1.bf16.msra.mxu0 %v16748_v48  ;;  %11973 = vmatpush1.bf16.msra.mxu1 %v16751_v51  ;;  %v16835_v48 = vld [vmem:[%s17715_s19 + $0x2948] ss:$16 sps:$4 sm:$0xff]   ;;  %v16840_v51 = vld [vmem:[%s17715_s19 + $0x2964] ss:$16 sps:$4 sm:$0xff]  }
 0x591   : > { %10949 = vmatprep.subr.bf16.mxu0 %v16756_v16  ;;  %11974 = vmatprep.subr.bf16.mxu1 %v16759_v54  ;;  %v16843_v16 = vld [vmem:[%s17715_s19 + $0x296c] ss:$16 sps:$4 sm:$0xff]   ;;  %v16838_v54 = vld [vmem:[%s17715_s19 + $0x2960] ss:$16 sps:$4 sm:$0xff]  }
 0x594   : > { %10950 = vmatpush1.bf16.msra.mxu0 %v16754_v55  ;;  %11975 = vmatpush1.bf16.msra.mxu1 %v16757_v35  ;;  %v16841_v55 = vld [vmem:[%s17715_s19 + $0x2968] ss:$16 sps:$4 sm:$0xff]   ;;  %v16846_v35 = vld [vmem:[%s17715_s19 + $0x2984] ss:$16 sps:$4 sm:$0xff]  }
 0x595   : > { %10951 = vmatprep.subr.bf16.mxu0 %v16762_v56  ;;  %11976 = vmatprep.subr.bf16.mxu1 %v16765_v39  ;;  %v16849_v56 = vld [vmem:[%s17715_s19 + $0x298c] ss:$16 sps:$4 sm:$0xff]   ;;  %v16844_v39 = vld [vmem:[%s17715_s19 + $0x2980] ss:$16 sps:$4 sm:$0xff]  }
 0x598   : > { %10952 = vmatpush1.bf16.msra.mxu0 %v16760_v46  ;;  %11977 = vmatpush1.bf16.msra.mxu1 %v16763_v58  ;;  %v16847_v46 = vld [vmem:[%s17715_s19 + $0x2988] ss:$16 sps:$4 sm:$0xff]   ;;  %v16852_v58 = vld [vmem:[%s17715_s19 + $0x29a4] ss:$16 sps:$4 sm:$0xff]  }
 0x599   : > { %10953 = vmatprep.subr.bf16.mxu0 %v16768_v59  ;;  %11978 = vmatprep.subr.bf16.mxu1 %v16771_v60  ;;  %v16855_v59 = vld [vmem:[%s17715_s19 + $0x29ac] ss:$16 sps:$4 sm:$0xff]   ;;  %v16850_v60 = vld [vmem:[%s17715_s19 + $0x29a0] ss:$16 sps:$4 sm:$0xff]  }
 0x59c   : > { %10954 = vmatpush1.bf16.msra.mxu0 %v16766_v63  ;;  %11979 = vmatpush1.bf16.msra.mxu1 %v16769_v1  ;;  %v16853_v63 = vld [vmem:[%s17715_s19 + $0x29a8] ss:$16 sps:$4 sm:$0xff]   ;;  %v16858_v1 = vld [vmem:[%s17715_s19 + $0x29c4] ss:$16 sps:$4 sm:$0xff]  }
 0x59d   : > { %10964 = vmatprep.subr.bf16.mxu0 %v16774_v2  ;;  %11989 = vmatprep.subr.bf16.mxu1 %v16777_v52  ;;  %v16861_v2 = vld [vmem:[%s17715_s19 + $0x29cc] ss:$16 sps:$4 sm:$0xff]   ;;  %v16856_v52 = vld [vmem:[%s17715_s19 + $0x29c0] ss:$16 sps:$4 sm:$0xff]  }
 0x59f   : > { %10956 = vmatmul.mubr.bf16.vlgmr.msra.gmra.mrb[0].mxu0 %v2189_v3  ;;  %11981 = vmatmul.mubr.bf16.vlgmr.msra.gmra.mrb[0].mxu1 %v2189_v3  ;;  %v16864_v3 = vld [vmem:[%s17715_s19 + $0x29e4] ss:$16 sps:$4 sm:$0xff]  }
 0x5a0   : > { %10965 = vmatpush1.bf16.msra.mxu0 %v16772_v4  ;;  %11990 = vmatpush1.bf16.msra.mxu1 %v16775_v49  ;;  %v16867_v4 = vld [vmem:[%s17715_s19 + $0x29ec] ss:$16 sps:$4 sm:$0xff]   ;;  %v16862_v49 = vld [vmem:[%s17715_s19 + $0x29e0] ss:$16 sps:$4 sm:$0xff]  }
 0x5a1   : > { %10966 = vmatprep.subr.bf16.mxu0 %v16780_v5  ;;  %11991 = vmatprep.subr.bf16.mxu1 %v16783_v6  ;;  %v16865_v5 = vld [vmem:[%s17715_s19 + $0x29e8] ss:$16 sps:$4 sm:$0xff]   ;;  %v16870_v6 = vld [vmem:[%s17715_s19 + $0x2a04] ss:$16 sps:$4 sm:$0xff]  }
 0x5a2   : > { %10996 = vmatprep.mubr.bf16.mxu0 %v19247_v7  ;;  %12021 = vmatprep.mubr.bf16.mxu1 %v19247_v7 }
 0x5a4   : > { %10967 = vmatpush1.bf16.msra.mxu0 %v16778_v47  ;;  %11992 = vmatpush1.bf16.msra.mxu1 %v16781_v8  ;;  %v16873_v47 = vld [vmem:[%s17715_s19 + $0x2a0c] ss:$16 sps:$4 sm:$0xff]   ;;  %v19313_v8 = vrot.slane %v19232_v62, %v17784_v50  ;;  %v16874_v62 = vld [vmem:[%s17715_s19 + $0x2a20] ss:$16 sps:$4 sm:$0xff]  }
 0x5a5   : > { %10968 = vmatprep.subr.bf16.mxu0 %v16786_v10  ;;  %11993 = vmatprep.subr.bf16.mxu1 %v16789_v12  ;;  %v16868_v10 = vld [vmem:[%s17715_s19 + $0x2a00] ss:$16 sps:$4 sm:$0xff]   ;;  %v16871_v12 = vld [vmem:[%s17715_s19 + $0x2a08] ss:$16 sps:$4 sm:$0xff]  }
 0x5a8   : > { %10969 = vmatpush1.bf16.msra.mxu0 %v16784_v13  ;;  %11994 = vmatpush1.bf16.msra.mxu1 %v16787_v15  ;;  %v16876_v13 = vld [vmem:[%s17715_s19 + $0x2a24] ss:$16 sps:$4 sm:$0xff]   ;;  %v16879_v15 = vld [vmem:[%s17715_s19 + $0x2a2c] ss:$16 sps:$4 sm:$0xff]  }
 0x5a9   : > { %10970 = vmatprep.subr.bf16.mxu0 %v16792_v0  ;;  %11995 = vmatprep.subr.bf16.mxu1 %v16795_v17  ;;  %v2239_v0 = vcombine.high %v19247_v7, %v19247_v7  ;;  %v16877_v17 = vld [vmem:[%s17715_s19 + $0x2a28] ss:$16 sps:$4 sm:$0xff]   ;;  %v16880_v7 = vld [vmem:[%s17715_s19 + $0x2a40] ss:$16 sps:$4 sm:$0xff]  }
 0x5ac   : > { %10971 = vmatpush1.bf16.msra.mxu0 %v16790_v53  ;;  %11996 = vmatpush1.bf16.msra.mxu1 %v16793_v18  ;;  %v16882_v53 = vld [vmem:[%s17715_s19 + $0x2a44] ss:$16 sps:$4 sm:$0xff]   ;;  %v16885_v18 = vld [vmem:[%s17715_s19 + $0x2a4c] ss:$16 sps:$4 sm:$0xff]  }
 0x5ad   : > { %10972 = vmatprep.subr.bf16.mxu0 %v16798_v9  ;;  %11997 = vmatprep.subr.bf16.mxu1 %v16801_v19  ;;  %v16883_v9 = vld [vmem:[%s17715_s19 + $0x2a48] ss:$16 sps:$4 sm:$0xff]   ;;  %v16888_v19 = vld [vmem:[%s17715_s19 + $0x2a64] ss:$16 sps:$4 sm:$0xff]  }
 0x5b0   : > { %10973 = vmatpush1.bf16.msra.mxu0 %v16796_v20  ;;  %11998 = vmatpush1.bf16.msra.mxu1 %v16799_v14  ;;  %v16891_v20 = vld [vmem:[%s17715_s19 + $0x2a6c] ss:$16 sps:$4 sm:$0xff]   ;;  %v16886_v14 = vld [vmem:[%s17715_s19 + $0x2a60] ss:$16 sps:$4 sm:$0xff]  }
 0x5b1   : > { %10974 = vmatprep.subr.bf16.mxu0 %v16804_v24  ;;  %11999 = vmatprep.subr.bf16.mxu1 %v16807_v25  ;;  %v16889_v24 = vld [vmem:[%s17715_s19 + $0x2a68] ss:$16 sps:$4 sm:$0xff]   ;;  %v16894_v25 = vld [vmem:[%s17715_s19 + $0x2a84] ss:$16 sps:$4 sm:$0xff]  }
 0x5b4   : > { %10975 = vmatpush1.bf16.msra.mxu0 %v16802_v61  ;;  %12000 = vmatpush1.bf16.msra.mxu1 %v16805_v28  ;;  %v16897_v61 = vld [vmem:[%s17715_s19 + $0x2a8c] ss:$16 sps:$4 sm:$0xff]   ;;  %v16892_v28 = vld [vmem:[%s17715_s19 + $0x2a80] ss:$16 sps:$4 sm:$0xff]  }
 0x5b5   : > { %10976 = vmatprep.subr.bf16.mxu0 %v16810_v29  ;;  %12001 = vmatprep.subr.bf16.mxu1 %v16813_v11  ;;  %v16895_v29 = vld [vmem:[%s17715_s19 + $0x2a88] ss:$16 sps:$4 sm:$0xff]   ;;  %v16900_v11 = vld [vmem:[%s17715_s19 + $0x2aa4] ss:$16 sps:$4 sm:$0xff]  }
 0x5b8   : > { %10977 = vmatpush1.bf16.msra.mxu0 %v16808_v30  ;;  %12002 = vmatpush1.bf16.msra.mxu1 %v16811_v31  ;;  %v16903_v30 = vld [vmem:[%s17715_s19 + $0x2aac] ss:$16 sps:$4 sm:$0xff]   ;;  %v16898_v31 = vld [vmem:[%s17715_s19 + $0x2aa0] ss:$16 sps:$4 sm:$0xff]  }
 0x5b9   : > { %10978 = vmatprep.subr.bf16.mxu0 %v16816_v21  ;;  %12003 = vmatprep.subr.bf16.mxu1 %v16819_v32  ;;  %v16901_v21 = vld [vmem:[%s17715_s19 + $0x2aa8] ss:$16 sps:$4 sm:$0xff]   ;;  %v16906_v32 = vld [vmem:[%s17715_s19 + $0x2ac4] ss:$16 sps:$4 sm:$0xff]  }
 0x5bc   : > { %10979 = vmatpush1.bf16.msra.mxu0 %v16814_v33  ;;  %12004 = vmatpush1.bf16.msra.mxu1 %v16817_v26  ;;  %v16909_v33 = vld [vmem:[%s17715_s19 + $0x2acc] ss:$16 sps:$4 sm:$0xff]   ;;  %v16904_v26 = vld [vmem:[%s17715_s19 + $0x2ac0] ss:$16 sps:$4 sm:$0xff]  }
 0x5bd   : > { %10980 = vmatprep.subr.bf16.mxu0 %v16822_v37  ;;  %12005 = vmatprep.subr.bf16.mxu1 %v16825_v38  ;;  %v16907_v37 = vld [vmem:[%s17715_s19 + $0x2ac8] ss:$16 sps:$4 sm:$0xff]   ;;  %v16912_v38 = vld [vmem:[%s17715_s19 + $0x2ae4] ss:$16 sps:$4 sm:$0xff]  }
 0x5c0   : > { %10981 = vmatpush1.bf16.msra.mxu0 %v16820_v40  ;;  %12006 = vmatpush1.bf16.msra.mxu1 %v16823_v27  ;;  %v16915_v40 = vld [vmem:[%s17715_s19 + $0x2aec] ss:$16 sps:$4 sm:$0xff]   ;;  %v16910_v27 = vld [vmem:[%s17715_s19 + $0x2ae0] ss:$16 sps:$4 sm:$0xff]  }
 0x5c1   : > { %10982 = vmatprep.subr.bf16.mxu0 %v16828_v41  ;;  %12007 = vmatprep.subr.bf16.mxu1 %v16831_v22  ;;  %v16913_v41 = vld [vmem:[%s17715_s19 + $0x2ae8] ss:$16 sps:$4 sm:$0xff]   ;;  %v16918_v22 = vld [vmem:[%s17715_s19 + $0x2b04] ss:$16 sps:$4 sm:$0xff]  }
 0x5c4   : > { %10983 = vmatpush1.bf16.msra.mxu0 %v16826_v42  ;;  %12008 = vmatpush1.bf16.msra.mxu1 %v16829_v34  ;;  %v16921_v42 = vld [vmem:[%s17715_s19 + $0x2b0c] ss:$16 sps:$4 sm:$0xff]   ;;  %v16916_v34 = vld [vmem:[%s17715_s19 + $0x2b00] ss:$16 sps:$4 sm:$0xff]  }
 0x5c5   : > { %10984 = vmatprep.subr.bf16.mxu0 %v16834_v43  ;;  %12009 = vmatprep.subr.bf16.mxu1 %v16837_v45  ;;  %v16919_v43 = vld [vmem:[%s17715_s19 + $0x2b08] ss:$16 sps:$4 sm:$0xff]   ;;  %v16924_v45 = vld [vmem:[%s17715_s19 + $0x2b24] ss:$16 sps:$4 sm:$0xff]  }
 0x5c8   : > { %10985 = vmatpush1.bf16.msra.mxu0 %v16832_v23  ;;  %12010 = vmatpush1.bf16.msra.mxu1 %v16835_v48  ;;  %v16927_v23 = vld [vmem:[%s17715_s19 + $0x2b2c] ss:$16 sps:$4 sm:$0xff]   ;;  %v16922_v48 = vld [vmem:[%s17715_s19 + $0x2b20] ss:$16 sps:$4 sm:$0xff]  }
 0x5c9   : > { %10986 = vmatprep.subr.bf16.mxu0 %v16840_v51  ;;  %12011 = vmatprep.subr.bf16.mxu1 %v16843_v16  ;;  %v16925_v51 = vld [vmem:[%s17715_s19 + $0x2b28] ss:$16 sps:$4 sm:$0xff]   ;;  %v16930_v16 = vld [vmem:[%s17715_s19 + $0x2b44] ss:$16 sps:$4 sm:$0xff]  }
 0x5cc   : > { %10987 = vmatpush1.bf16.msra.mxu0 %v16838_v54  ;;  %12012 = vmatpush1.bf16.msra.mxu1 %v16841_v55  ;;  %v16933_v54 = vld [vmem:[%s17715_s19 + $0x2b4c] ss:$16 sps:$4 sm:$0xff]   ;;  %v16928_v55 = vld [vmem:[%s17715_s19 + $0x2b40] ss:$16 sps:$4 sm:$0xff]  }
 0x5cd   : > { %10988 = vmatprep.subr.bf16.mxu0 %v16846_v35  ;;  %12013 = vmatprep.subr.bf16.mxu1 %v16849_v56  ;;  %v16931_v35 = vld [vmem:[%s17715_s19 + $0x2b48] ss:$16 sps:$4 sm:$0xff]   ;;  %v16936_v56 = vld [vmem:[%s17715_s19 + $0x2b64] ss:$16 sps:$4 sm:$0xff]  }
 0x5d0   : > { %10989 = vmatpush1.bf16.msra.mxu0 %v16844_v39  ;;  %12014 = vmatpush1.bf16.msra.mxu1 %v16847_v46  ;;  %v16939_v39 = vld [vmem:[%s17715_s19 + $0x2b6c] ss:$16 sps:$4 sm:$0xff]   ;;  %v16934_v46 = vld [vmem:[%s17715_s19 + $0x2b60] ss:$16 sps:$4 sm:$0xff]  }
 0x5d1   : > { %10990 = vmatprep.subr.bf16.mxu0 %v16852_v58  ;;  %12015 = vmatprep.subr.bf16.mxu1 %v16855_v59  ;;  %v16937_v58 = vld [vmem:[%s17715_s19 + $0x2b68] ss:$16 sps:$4 sm:$0xff]   ;;  %v16942_v59 = vld [vmem:[%s17715_s19 + $0x2b84] ss:$16 sps:$4 sm:$0xff]  }
 0x5d4   : > { %10991 = vmatpush1.bf16.msra.mxu0 %v16850_v60  ;;  %12016 = vmatpush1.bf16.msra.mxu1 %v16853_v63  ;;  %v16945_v60 = vld [vmem:[%s17715_s19 + $0x2b8c] ss:$16 sps:$4 sm:$0xff]   ;;  %v16940_v63 = vld [vmem:[%s17715_s19 + $0x2b80] ss:$16 sps:$4 sm:$0xff]  }
 0x5d5   : > { %10992 = vmatprep.subr.bf16.mxu0 %v16858_v1  ;;  %12017 = vmatprep.subr.bf16.mxu1 %v16861_v2  ;;  %v16943_v1 = vld [vmem:[%s17715_s19 + $0x2b88] ss:$16 sps:$4 sm:$0xff]   ;;  %v16948_v2 = vld [vmem:[%s17715_s19 + $0x2ba4] ss:$16 sps:$4 sm:$0xff]  }
 0x5d8   : > { %10993 = vmatpush1.bf16.msra.mxu0 %v16856_v52  ;;  %12018 = vmatpush1.bf16.msra.mxu1 %v16859_v36  ;;  %v16951_v52 = vld [vmem:[%s17715_s19 + $0x2bac] ss:$16 sps:$4 sm:$0xff]   ;;  %v16946_v36 = vld [vmem:[%s17715_s19 + $0x2ba0] ss:$16 sps:$4 sm:$0xff]  }
 0x5d9   : > { %10994 = vmatprep.subr.bf16.mxu0 %v16864_v3  ;;  %12019 = vmatprep.subr.bf16.mxu1 %v16867_v4  ;;  %v16949_v3 = vld [vmem:[%s17715_s19 + $0x2ba8] ss:$16 sps:$4 sm:$0xff]   ;;  %v16954_v4 = vld [vmem:[%s17715_s19 + $0x2bc4] ss:$16 sps:$4 sm:$0xff]  }
 0x5dc   : > { %10995 = vmatpush1.bf16.msra.mxu0 %v16862_v49  ;;  %12020 = vmatpush1.bf16.msra.mxu1 %v16865_v5  ;;  %v16957_v49 = vld [vmem:[%s17715_s19 + $0x2bcc] ss:$16 sps:$4 sm:$0xff]   ;;  %v2192_v5 = vcombine.high %v19224_v57, %v19224_v57  ;;  %v16958_v57 = vld [vmem:[%s17715_s19 + $0x2be0] ss:$16 sps:$4 sm:$0xff]  }
 0x5dd   : > { %11005 = vmatprep.subr.bf16.mxu0 %v16870_v6  ;;  %12030 = vmatprep.subr.bf16.mxu1 %v16873_v47  ;;  %v16952_v6 = vld [vmem:[%s17715_s19 + $0x2bc0] ss:$16 sps:$4 sm:$0xff]   ;;  %v16955_v47 = vld [vmem:[%s17715_s19 + $0x2bc8] ss:$16 sps:$4 sm:$0xff]  }
 0x5df   : > { %10997 = vmatmul.mubr.bf16.vlgmr.msra.gmra.mrb[0].mxu0 %v19313_v8  ;;  %12022 = vmatmul.mubr.bf16.vlgmr.msra.gmra.mrb[0].mxu1 %v19313_v8 }
 0x5e0   : > { %11006 = vmatpush1.bf16.msra.mxu0 %v16868_v10  ;;  %12031 = vmatpush1.bf16.msra.mxu1 %v16871_v12  ;;  %v16960_v10 = vld [vmem:[%s17715_s19 + $0x2be4] ss:$16 sps:$4 sm:$0xff]   ;;  %v16963_v12 = vld [vmem:[%s17715_s19 + $0x2bec] ss:$16 sps:$4 sm:$0xff]  }
 0x5e1   : > { %11007 = vmatprep.subr.bf16.mxu0 %v16876_v13  ;;  %12032 = vmatprep.subr.bf16.mxu1 %v16879_v15  ;;  %v19382_v13 = vrot.slane %v2192_v5, %v17784_v50  ;;  %v16961_v15 = vld [vmem:[%s17715_s19 + $0x2be8] ss:$16 sps:$4 sm:$0xff]  }
 0x5e2   : > { %11037 = vmatprep.mubr.bf16.mxu0 %v2239_v0  ;;  %12062 = vmatprep.mubr.bf16.mxu1 %v2239_v0  ;;  %v16966_v0 = vld [vmem:[%s17715_s19 + $0x2c04] ss:$16 sps:$4 sm:$0xff]   ;;  %v17039_v5 = vld [vmem:[%s17715_s19 + $0x2d88] ss:$16 sps:$4 sm:$0xff]  }
 0x5e4   : > { %11008 = vmatpush1.bf16.msra.mxu0 %v16874_v62  ;;  %12033 = vmatpush1.bf16.msra.mxu1 %v16877_v17  ;;  %v16969_v62 = vld [vmem:[%s17715_s19 + $0x2c0c] ss:$16 sps:$4 sm:$0xff]   ;;  %v2208_v17 = vcombine.high %v19382_v13, %v19382_v13 }
 0x5e5   : > { %11009 = vmatprep.subr.bf16.mxu0 %v16882_v53  ;;  %12034 = vmatprep.subr.bf16.mxu1 %v16885_v18  ;;  %v2237_v53 = vcombine.high %v19313_v8, %v19313_v8  ;;  %v16964_v18 = vld [vmem:[%s17715_s19 + $0x2c00] ss:$16 sps:$4 sm:$0xff]  }
 0x5e6   : > { %v16970_v8 = vld [vmem:[%s17715_s19 + $0x2c20] ss:$16 sps:$4 sm:$0xff]  }
 0x5e8   : > { %11010 = vmatpush1.bf16.msra.mxu0 %v16880_v7  ;;  %12035 = vmatpush1.bf16.msra.mxu1 %v16883_v9  ;;  %v16967_v7 = vld [vmem:[%s17715_s19 + $0x2c08] ss:$16 sps:$4 sm:$0xff]   ;;  %v16972_v9 = vld [vmem:[%s17715_s19 + $0x2c24] ss:$16 sps:$4 sm:$0xff]  }
 0x5e9   : > { %11011 = vmatprep.subr.bf16.mxu0 %v16888_v19  ;;  %12036 = vmatprep.subr.bf16.mxu1 %v16891_v20  ;;  %v16975_v19 = vld [vmem:[%s17715_s19 + $0x2c2c] ss:$16 sps:$4 sm:$0xff]   ;;  %v19397_v20 = vrot.slane %v2208_v17, %v17784_v50  ;;  %v17056_v17 = vld [vmem:[%s17715_s19 + $0x2de4] ss:$16 sps:$4 sm:$0xff]  }
 0x5ec   : > { %11012 = vmatpush1.bf16.msra.mxu0 %v16886_v14  ;;  %12037 = vmatpush1.bf16.msra.mxu1 %v16889_v24  ;;  %v16973_v14 = vld [vmem:[%s17715_s19 + $0x2c28] ss:$16 sps:$4 sm:$0xff]   ;;  %v16978_v24 = vld [vmem:[%s17715_s19 + $0x2c44] ss:$16 sps:$4 sm:$0xff]  }
 0x5ed   : > { %11013 = vmatprep.subr.bf16.mxu0 %v16894_v25  ;;  %12038 = vmatprep.subr.bf16.mxu1 %v16897_v61  ;;  %v16981_v25 = vld [vmem:[%s17715_s19 + $0x2c4c] ss:$16 sps:$4 sm:$0xff]   ;;  %v16976_v61 = vld [vmem:[%s17715_s19 + $0x2c40] ss:$16 sps:$4 sm:$0xff]  }
 0x5f0   : > { %11014 = vmatpush1.bf16.msra.mxu0 %v16892_v28  ;;  %12039 = vmatpush1.bf16.msra.mxu1 %v16895_v29  ;;  %v16979_v28 = vld [vmem:[%s17715_s19 + $0x2c48] ss:$16 sps:$4 sm:$0xff]   ;;  %v16984_v29 = vld [vmem:[%s17715_s19 + $0x2c64] ss:$16 sps:$4 sm:$0xff]  }
 0x5f1   : > { %11015 = vmatprep.subr.bf16.mxu0 %v16900_v11  ;;  %12040 = vmatprep.subr.bf16.mxu1 %v16903_v30  ;;  %v16987_v11 = vld [vmem:[%s17715_s19 + $0x2c6c] ss:$16 sps:$4 sm:$0xff]   ;;  %v16982_v30 = vld [vmem:[%s17715_s19 + $0x2c60] ss:$16 sps:$4 sm:$0xff]  }
 0x5f4   : > { %11016 = vmatpush1.bf16.msra.mxu0 %v16898_v31  ;;  %12041 = vmatpush1.bf16.msra.mxu1 %v16901_v21  ;;  %v16985_v31 = vld [vmem:[%s17715_s19 + $0x2c68] ss:$16 sps:$4 sm:$0xff]   ;;  %v16990_v21 = vld [vmem:[%s17715_s19 + $0x2c84] ss:$16 sps:$4 sm:$0xff]  }
 0x5f5   : > { %11017 = vmatprep.subr.bf16.mxu0 %v16906_v32  ;;  %12042 = vmatprep.subr.bf16.mxu1 %v16909_v33  ;;  %v16993_v32 = vld [vmem:[%s17715_s19 + $0x2c8c] ss:$16 sps:$4 sm:$0xff]   ;;  %v16988_v33 = vld [vmem:[%s17715_s19 + $0x2c80] ss:$16 sps:$4 sm:$0xff]  }
 0x5f8   : > { %11018 = vmatpush1.bf16.msra.mxu0 %v16904_v26  ;;  %12043 = vmatpush1.bf16.msra.mxu1 %v16907_v37  ;;  %v16991_v26 = vld [vmem:[%s17715_s19 + $0x2c88] ss:$16 sps:$4 sm:$0xff]   ;;  %v16996_v37 = vld [vmem:[%s17715_s19 + $0x2ca4] ss:$16 sps:$4 sm:$0xff]  }
 0x5f9   : > { %11019 = vmatprep.subr.bf16.mxu0 %v16912_v38  ;;  %12044 = vmatprep.subr.bf16.mxu1 %v16915_v40  ;;  %v16999_v38 = vld [vmem:[%s17715_s19 + $0x2cac] ss:$16 sps:$4 sm:$0xff]   ;;  %v16994_v40 = vld [vmem:[%s17715_s19 + $0x2ca0] ss:$16 sps:$4 sm:$0xff]  }
 0x5fc   : > { %11020 = vmatpush1.bf16.msra.mxu0 %v16910_v27  ;;  %12045 = vmatpush1.bf16.msra.mxu1 %v16913_v41  ;;  %v16997_v27 = vld [vmem:[%s17715_s19 + $0x2ca8] ss:$16 sps:$4 sm:$0xff]   ;;  %v17002_v41 = vld [vmem:[%s17715_s19 + $0x2cc4] ss:$16 sps:$4 sm:$0xff]  }
 0x5fd   : > { %11021 = vmatprep.subr.bf16.mxu0 %v16918_v22  ;;  %12046 = vmatprep.subr.bf16.mxu1 %v16921_v42  ;;  %v17005_v22 = vld [vmem:[%s17715_s19 + $0x2ccc] ss:$16 sps:$4 sm:$0xff]   ;;  %v17000_v42 = vld [vmem:[%s17715_s19 + $0x2cc0] ss:$16 sps:$4 sm:$0xff]  }
 0x600   : > { %11022 = vmatpush1.bf16.msra.mxu0 %v16916_v34  ;;  %12047 = vmatpush1.bf16.msra.mxu1 %v16919_v43  ;;  %v17003_v34 = vld [vmem:[%s17715_s19 + $0x2cc8] ss:$16 sps:$4 sm:$0xff]   ;;  %v17008_v43 = vld [vmem:[%s17715_s19 + $0x2ce4] ss:$16 sps:$4 sm:$0xff]  }
 0x601   : > { %11023 = vmatprep.subr.bf16.mxu0 %v16924_v45  ;;  %12048 = vmatprep.subr.bf16.mxu1 %v16927_v23  ;;  %v17011_v45 = vld [vmem:[%s17715_s19 + $0x2cec] ss:$16 sps:$4 sm:$0xff]   ;;  %v17006_v23 = vld [vmem:[%s17715_s19 + $0x2ce0] ss:$16 sps:$4 sm:$0xff]  }
 0x604   : > { %11024 = vmatpush1.bf16.msra.mxu0 %v16922_v48  ;;  %12049 = vmatpush1.bf16.msra.mxu1 %v16925_v51  ;;  %v17009_v48 = vld [vmem:[%s17715_s19 + $0x2ce8] ss:$16 sps:$4 sm:$0xff]   ;;  %v17014_v51 = vld [vmem:[%s17715_s19 + $0x2d04] ss:$16 sps:$4 sm:$0xff]  }
 0x605   : > { %11025 = vmatprep.subr.bf16.mxu0 %v16930_v16  ;;  %12050 = vmatprep.subr.bf16.mxu1 %v16933_v54  ;;  %v17017_v16 = vld [vmem:[%s17715_s19 + $0x2d0c] ss:$16 sps:$4 sm:$0xff]   ;;  %v17012_v54 = vld [vmem:[%s17715_s19 + $0x2d00] ss:$16 sps:$4 sm:$0xff]  }
 0x608   : > { %11026 = vmatpush1.bf16.msra.mxu0 %v16928_v55  ;;  %12051 = vmatpush1.bf16.msra.mxu1 %v16931_v35  ;;  %v17015_v55 = vld [vmem:[%s17715_s19 + $0x2d08] ss:$16 sps:$4 sm:$0xff]   ;;  %v17020_v35 = vld [vmem:[%s17715_s19 + $0x2d24] ss:$16 sps:$4 sm:$0xff]  }
 0x609   : > { %11027 = vmatprep.subr.bf16.mxu0 %v16936_v56  ;;  %12052 = vmatprep.subr.bf16.mxu1 %v16939_v39  ;;  %v17023_v56 = vld [vmem:[%s17715_s19 + $0x2d2c] ss:$16 sps:$4 sm:$0xff]   ;;  %v17018_v39 = vld [vmem:[%s17715_s19 + $0x2d20] ss:$16 sps:$4 sm:$0xff]  }
 0x60c   : > { %11028 = vmatpush1.bf16.msra.mxu0 %v16934_v46  ;;  %12053 = vmatpush1.bf16.msra.mxu1 %v16937_v58  ;;  %v17021_v46 = vld [vmem:[%s17715_s19 + $0x2d28] ss:$16 sps:$4 sm:$0xff]   ;;  %v17026_v58 = vld [vmem:[%s17715_s19 + $0x2d44] ss:$16 sps:$4 sm:$0xff]  }
 0x60d   : > { %11029 = vmatprep.subr.bf16.mxu0 %v16942_v59  ;;  %12054 = vmatprep.subr.bf16.mxu1 %v16945_v60  ;;  %v17029_v59 = vld [vmem:[%s17715_s19 + $0x2d4c] ss:$16 sps:$4 sm:$0xff]   ;;  %v17024_v60 = vld [vmem:[%s17715_s19 + $0x2d40] ss:$16 sps:$4 sm:$0xff]  }
 0x610   : > { %11030 = vmatpush1.bf16.msra.mxu0 %v16940_v63  ;;  %12055 = vmatpush1.bf16.msra.mxu1 %v16943_v1  ;;  %v17027_v63 = vld [vmem:[%s17715_s19 + $0x2d48] ss:$16 sps:$4 sm:$0xff]   ;;  %v17032_v1 = vld [vmem:[%s17715_s19 + $0x2d64] ss:$16 sps:$4 sm:$0xff]  }
 0x611   : > { %11031 = vmatprep.subr.bf16.mxu0 %v16948_v2  ;;  %12056 = vmatprep.subr.bf16.mxu1 %v16951_v52  ;;  %v17035_v2 = vld [vmem:[%s17715_s19 + $0x2d6c] ss:$16 sps:$4 sm:$0xff]   ;;  %v17030_v52 = vld [vmem:[%s17715_s19 + $0x2d60] ss:$16 sps:$4 sm:$0xff]  }
 0x614   : > { %11032 = vmatpush1.bf16.msra.mxu0 %v16946_v36  ;;  %12057 = vmatpush1.bf16.msra.mxu1 %v16949_v3  ;;  %v17033_v36 = vld [vmem:[%s17715_s19 + $0x2d68] ss:$16 sps:$4 sm:$0xff]   ;;  %v17038_v3 = vld [vmem:[%s17715_s19 + $0x2d84] ss:$16 sps:$4 sm:$0xff]  }
 0x615   : > { %11033 = vmatprep.subr.bf16.mxu0 %v16954_v4  ;;  %12058 = vmatprep.subr.bf16.mxu1 %v16957_v49  ;;  %v17041_v4 = vld [vmem:[%s17715_s19 + $0x2d8c] ss:$16 sps:$4 sm:$0xff]   ;;  %v17036_v49 = vld [vmem:[%s17715_s19 + $0x2d80] ss:$16 sps:$4 sm:$0xff]  }
 0x618   : > { %11034 = vmatpush1.bf16.msra.mxu0 %v16952_v6  ;;  %12059 = vmatpush1.bf16.msra.mxu1 %v16955_v47  ;;  %v17044_v6 = vld [vmem:[%s17715_s19 + $0x2da4] ss:$16 sps:$4 sm:$0xff]   ;;  %v17047_v47 = vld [vmem:[%s17715_s19 + $0x2dac] ss:$16 sps:$4 sm:$0xff]  }
 0x619   : > { %11035 = vmatprep.subr.bf16.mxu0 %v16960_v10  ;;  %12060 = vmatprep.subr.bf16.mxu1 %v16963_v12  ;;  %v17042_v10 = vld [vmem:[%s17715_s19 + $0x2da0] ss:$16 sps:$4 sm:$0xff]   ;;  %v17045_v12 = vld [vmem:[%s17715_s19 + $0x2da8] ss:$16 sps:$4 sm:$0xff]  }
 0x61c   : > { %11036 = vmatpush1.bf16.msra.mxu0 %v16958_v57  ;;  %12061 = vmatpush1.bf16.msra.mxu1 %v16961_v15  ;;  %v17050_v57 = vld [vmem:[%s17715_s19 + $0x2dc4] ss:$16 sps:$4 sm:$0xff]   ;;  %v17053_v15 = vld [vmem:[%s17715_s19 + $0x2dcc] ss:$16 sps:$4 sm:$0xff]  }
 0x61d   : > { %11046 = vmatprep.subr.bf16.mxu0 %v16966_v0  ;;  %12071 = vmatprep.subr.bf16.mxu1 %v16969_v62  ;;  %v17048_v0 = vld [vmem:[%s17715_s19 + $0x2dc0] ss:$16 sps:$4 sm:$0xff]   ;;  %v17051_v62 = vld [vmem:[%s17715_s19 + $0x2dc8] ss:$16 sps:$4 sm:$0xff]  }
 0x61f   : > { %11038 = vmatmul.mubr.bf16.vlgmr.msra.gmra.mrb[0].mxu0 %v2237_v53  ;;  %12063 = vmatmul.mubr.bf16.vlgmr.msra.gmra.mrb[0].mxu1 %v2237_v53  ;;  %v17059_v53 = vld [vmem:[%s17715_s19 + $0x2dec] ss:$16 sps:$4 sm:$0xff]  }
 0x620   : > { %11047 = vmatpush1.bf16.msra.mxu0 %v16964_v18  ;;  %12072 = vmatpush1.bf16.msra.mxu1 %v16967_v7  ;;  %v17054_v18 = vld [vmem:[%s17715_s19 + $0x2de0] ss:$16 sps:$4 sm:$0xff]   ;;  %v17057_v7 = vld [vmem:[%s17715_s19 + $0x2de8] ss:$16 sps:$4 sm:$0xff]  }
 0x621   : > { %11048 = vmatprep.subr.bf16.mxu0 %v16972_v9  ;;  %12073 = vmatprep.subr.bf16.mxu1 %v16975_v19  ;;  %v17063_v9 = vld [vmem:[%s17715_s19 + $0x2e04] ss:$16 sps:$4 sm:$0xff]   ;;  %v17066_v19 = vld [vmem:[%s17715_s19 + $0x2e0c] ss:$16 sps:$4 sm:$0xff]  }
 0x622   : > { %11078 = vmatprep.mubr.bf16.mxu0 %v19397_v20  ;;  %12103 = vmatprep.mubr.bf16.mxu1 %v19397_v20 }
 0x624   : > { %11049 = vmatpush1.bf16.msra.mxu0 %v16970_v8  ;;  %12074 = vmatpush1.bf16.msra.mxu1 %v16973_v14  ;;  %v19463_v8 = vrot.slane %v19382_v13, %v17784_v50  ;;  %v17061_v14 = vld [vmem:[%s17715_s19 + $0x2e00] ss:$16 sps:$4 sm:$0xff]  }
 0x625   : > { %11050 = vmatprep.subr.bf16.mxu0 %v16978_v24  ;;  %12075 = vmatprep.subr.bf16.mxu1 %v16981_v25  ;;  %v17064_v24 = vld [vmem:[%s17715_s19 + $0x2e08] ss:$16 sps:$4 sm:$0xff]   ;;  %v17069_v25 = vld [vmem:[%s17715_s19 + $0x2e24] ss:$16 sps:$4 sm:$0xff]   ;;  %v17067_v13 = vld [vmem:[%s17715_s19 + $0x2e20] ss:$16 sps:$4 sm:$0xff]  }
 0x628   : > { %11051 = vmatpush1.bf16.msra.mxu0 %v16976_v61  ;;  %12076 = vmatpush1.bf16.msra.mxu1 %v16979_v28  ;;  %v17072_v61 = vld [vmem:[%s17715_s19 + $0x2e2c] ss:$16 sps:$4 sm:$0xff]   ;;  %v2240_v28 = vcombine.high %v19397_v20, %v19397_v20  ;;  %v17073_v20 = vld [vmem:[%s17715_s19 + $0x2e40] ss:$16 sps:$4 sm:$0xff]  }
 0x629   : > { %11052 = vmatprep.subr.bf16.mxu0 %v16984_v29  ;;  %12077 = vmatprep.subr.bf16.mxu1 %v16987_v11  ;;  %v17070_v29 = vld [vmem:[%s17715_s19 + $0x2e28] ss:$16 sps:$4 sm:$0xff]   ;;  %v17075_v11 = vld [vmem:[%s17715_s19 + $0x2e44] ss:$16 sps:$4 sm:$0xff]  }
 0x62c   : > { %11053 = vmatpush1.bf16.msra.mxu0 %v16982_v30  ;;  %12078 = vmatpush1.bf16.msra.mxu1 %v16985_v31  ;;  %v17078_v30 = vld [vmem:[%s17715_s19 + $0x2e4c] ss:$16 sps:$4 sm:$0xff]   ;;  %v17076_v31 = vld [vmem:[%s17715_s19 + $0x2e48] ss:$16 sps:$4 sm:$0xff]  }
 0x62d   : > { %11054 = vmatprep.subr.bf16.mxu0 %v16990_v21  ;;  %12079 = vmatprep.subr.bf16.mxu1 %v16993_v32  ;;  %v17081_v21 = vld [vmem:[%s17715_s19 + $0x2e64] ss:$16 sps:$4 sm:$0xff]   ;;  %v17084_v32 = vld [vmem:[%s17715_s19 + $0x2e6c] ss:$16 sps:$4 sm:$0xff]  }
 0x630   : > { %11055 = vmatpush1.bf16.msra.mxu0 %v16988_v33  ;;  %12080 = vmatpush1.bf16.msra.mxu1 %v16991_v26  ;;  %v17079_v33 = vld [vmem:[%s17715_s19 + $0x2e60] ss:$16 sps:$4 sm:$0xff]   ;;  %v17082_v26 = vld [vmem:[%s17715_s19 + $0x2e68] ss:$16 sps:$4 sm:$0xff]  }
 0x631   : > { %11056 = vmatprep.subr.bf16.mxu0 %v16996_v37  ;;  %12081 = vmatprep.subr.bf16.mxu1 %v16999_v38  ;;  %v17087_v37 = vld [vmem:[%s17715_s19 + $0x2e84] ss:$16 sps:$4 sm:$0xff]   ;;  %v17090_v38 = vld [vmem:[%s17715_s19 + $0x2e8c] ss:$16 sps:$4 sm:$0xff]  }
 0x634   : > { %11057 = vmatpush1.bf16.msra.mxu0 %v16994_v40  ;;  %12082 = vmatpush1.bf16.msra.mxu1 %v16997_v27  ;;  %v17085_v40 = vld [vmem:[%s17715_s19 + $0x2e80] ss:$16 sps:$4 sm:$0xff]   ;;  %v17088_v27 = vld [vmem:[%s17715_s19 + $0x2e88] ss:$16 sps:$4 sm:$0xff]  }
 0x635   : > { %11058 = vmatprep.subr.bf16.mxu0 %v17002_v41  ;;  %12083 = vmatprep.subr.bf16.mxu1 %v17005_v22  ;;  %v17093_v41 = vld [vmem:[%s17715_s19 + $0x2ea4] ss:$16 sps:$4 sm:$0xff]   ;;  %v17096_v22 = vld [vmem:[%s17715_s19 + $0x2eac] ss:$16 sps:$4 sm:$0xff]  }
 0x638   : > { %11059 = vmatpush1.bf16.msra.mxu0 %v17000_v42  ;;  %12084 = vmatpush1.bf16.msra.mxu1 %v17003_v34  ;;  %v17091_v42 = vld [vmem:[%s17715_s19 + $0x2ea0] ss:$16 sps:$4 sm:$0xff]   ;;  %v17094_v34 = vld [vmem:[%s17715_s19 + $0x2ea8] ss:$16 sps:$4 sm:$0xff]  }
 0x639   : > { %11060 = vmatprep.subr.bf16.mxu0 %v17008_v43  ;;  %12085 = vmatprep.subr.bf16.mxu1 %v17011_v45  ;;  %v17099_v43 = vld [vmem:[%s17715_s19 + $0x2ec4] ss:$16 sps:$4 sm:$0xff]   ;;  %v17102_v45 = vld [vmem:[%s17715_s19 + $0x2ecc] ss:$16 sps:$4 sm:$0xff]  }
 0x63c   : > { %11061 = vmatpush1.bf16.msra.mxu0 %v17006_v23  ;;  %12086 = vmatpush1.bf16.msra.mxu1 %v17009_v48  ;;  %v17097_v23 = vld [vmem:[%s17715_s19 + $0x2ec0] ss:$16 sps:$4 sm:$0xff]   ;;  %v17100_v48 = vld [vmem:[%s17715_s19 + $0x2ec8] ss:$16 sps:$4 sm:$0xff]  }
 0x63d   : > { %11062 = vmatprep.subr.bf16.mxu0 %v17014_v51  ;;  %12087 = vmatprep.subr.bf16.mxu1 %v17017_v16  ;;  %v17105_v51 = vld [vmem:[%s17715_s19 + $0x2ee4] ss:$16 sps:$4 sm:$0xff]   ;;  %v17108_v16 = vld [vmem:[%s17715_s19 + $0x2eec] ss:$16 sps:$4 sm:$0xff]  }
 0x640   : > { %11063 = vmatpush1.bf16.msra.mxu0 %v17012_v54  ;;  %12088 = vmatpush1.bf16.msra.mxu1 %v17015_v55  ;;  %v17103_v54 = vld [vmem:[%s17715_s19 + $0x2ee0] ss:$16 sps:$4 sm:$0xff]   ;;  %v17106_v55 = vld [vmem:[%s17715_s19 + $0x2ee8] ss:$16 sps:$4 sm:$0xff]  }
 0x641   : > { %11064 = vmatprep.subr.bf16.mxu0 %v17020_v35  ;;  %12089 = vmatprep.subr.bf16.mxu1 %v17023_v56  ;;  %v17111_v35 = vld [vmem:[%s17715_s19 + $0x2f04] ss:$16 sps:$4 sm:$0xff]   ;;  %v17114_v56 = vld [vmem:[%s17715_s19 + $0x2f0c] ss:$16 sps:$4 sm:$0xff]  }
 0x644   : > { %11065 = vmatpush1.bf16.msra.mxu0 %v17018_v39  ;;  %12090 = vmatpush1.bf16.msra.mxu1 %v17021_v46  ;;  %v17109_v39 = vld [vmem:[%s17715_s19 + $0x2f00] ss:$16 sps:$4 sm:$0xff]   ;;  %v17112_v46 = vld [vmem:[%s17715_s19 + $0x2f08] ss:$16 sps:$4 sm:$0xff]  }
 0x645   : > { %11066 = vmatprep.subr.bf16.mxu0 %v17026_v58  ;;  %12091 = vmatprep.subr.bf16.mxu1 %v17029_v59  ;;  %v17117_v58 = vld [vmem:[%s17715_s19 + $0x2f24] ss:$16 sps:$4 sm:$0xff]   ;;  %v17120_v59 = vld [vmem:[%s17715_s19 + $0x2f2c] ss:$16 sps:$4 sm:$0xff]  }
 0x648   : > { %11067 = vmatpush1.bf16.msra.mxu0 %v17024_v60  ;;  %12092 = vmatpush1.bf16.msra.mxu1 %v17027_v63  ;;  %v17115_v60 = vld [vmem:[%s17715_s19 + $0x2f20] ss:$16 sps:$4 sm:$0xff]   ;;  %v17118_v63 = vld [vmem:[%s17715_s19 + $0x2f28] ss:$16 sps:$4 sm:$0xff]  }
 0x649   : > { %11068 = vmatprep.subr.bf16.mxu0 %v17032_v1  ;;  %12093 = vmatprep.subr.bf16.mxu1 %v17035_v2  ;;  %v17123_v1 = vld [vmem:[%s17715_s19 + $0x2f44] ss:$16 sps:$4 sm:$0xff]   ;;  %v17126_v2 = vld [vmem:[%s17715_s19 + $0x2f4c] ss:$16 sps:$4 sm:$0xff]  }
 0x64c   : > { %11069 = vmatpush1.bf16.msra.mxu0 %v17030_v52  ;;  %12094 = vmatpush1.bf16.msra.mxu1 %v17033_v36  ;;  %v17121_v52 = vld [vmem:[%s17715_s19 + $0x2f40] ss:$16 sps:$4 sm:$0xff]   ;;  %v17124_v36 = vld [vmem:[%s17715_s19 + $0x2f48] ss:$16 sps:$4 sm:$0xff]  }
 0x64d   : > { %11070 = vmatprep.subr.bf16.mxu0 %v17038_v3  ;;  %12095 = vmatprep.subr.bf16.mxu1 %v17041_v4  ;;  %v17129_v3 = vld [vmem:[%s17715_s19 + $0x2f64] ss:$16 sps:$4 sm:$0xff]   ;;  %v17132_v4 = vld [vmem:[%s17715_s19 + $0x2f6c] ss:$16 sps:$4 sm:$0xff]  }
 0x650   : > { %11071 = vmatpush1.bf16.msra.mxu0 %v17036_v49  ;;  %12096 = vmatpush1.bf16.msra.mxu1 %v17039_v5  ;;  %v17127_v49 = vld [vmem:[%s17715_s19 + $0x2f60] ss:$16 sps:$4 sm:$0xff]   ;;  %v17130_v5 = vld [vmem:[%s17715_s19 + $0x2f68] ss:$16 sps:$4 sm:$0xff]  }
 0x651   : > { %11072 = vmatprep.subr.bf16.mxu0 %v17044_v6  ;;  %12097 = vmatprep.subr.bf16.mxu1 %v17047_v47  ;;  %v17135_v6 = vld [vmem:[%s17715_s19 + $0x2f84] ss:$16 sps:$4 sm:$0xff]   ;;  %v17138_v47 = vld [vmem:[%s17715_s19 + $0x2f8c] ss:$16 sps:$4 sm:$0xff]  }
 0x654   : > { %11073 = vmatpush1.bf16.msra.mxu0 %v17042_v10  ;;  %12098 = vmatpush1.bf16.msra.mxu1 %v17045_v12  ;;  %v17133_v10 = vld [vmem:[%s17715_s19 + $0x2f80] ss:$16 sps:$4 sm:$0xff]   ;;  %v17136_v12 = vld [vmem:[%s17715_s19 + $0x2f88] ss:$16 sps:$4 sm:$0xff]  }
 0x655   : > { %11074 = vmatprep.subr.bf16.mxu0 %v17050_v57  ;;  %12099 = vmatprep.subr.bf16.mxu1 %v17053_v15  ;;  %v17141_v57 = vld [vmem:[%s17715_s19 + $0x2fa4] ss:$16 sps:$4 sm:$0xff]   ;;  %v17144_v15 = vld [vmem:[%s17715_s19 + $0x2fac] ss:$16 sps:$4 sm:$0xff]  }
 0x658   : > { %11075 = vmatpush1.bf16.msra.mxu0 %v17048_v0  ;;  %12100 = vmatpush1.bf16.msra.mxu1 %v17051_v62  ;;  %v17139_v0 = vld [vmem:[%s17715_s19 + $0x2fa0] ss:$16 sps:$4 sm:$0xff]   ;;  %v17142_v62 = vld [vmem:[%s17715_s19 + $0x2fa8] ss:$16 sps:$4 sm:$0xff]  }
 0x659   : > { %11076 = vmatprep.subr.bf16.mxu0 %v17056_v17  ;;  %12101 = vmatprep.subr.bf16.mxu1 %v17059_v53  ;;  %v17147_v17 = vld [vmem:[%s17715_s19 + $0x2fc4] ss:$16 sps:$4 sm:$0xff]   ;;  %v17150_v53 = vld [vmem:[%s17715_s19 + $0x2fcc] ss:$16 sps:$4 sm:$0xff]  }
 0x65c   : > { %11077 = vmatpush1.bf16.msra.mxu0 %v17054_v18  ;;  %12102 = vmatpush1.bf16.msra.mxu1 %v17057_v7  ;;  %v17145_v18 = vld [vmem:[%s17715_s19 + $0x2fc0] ss:$16 sps:$4 sm:$0xff]   ;;  %v17148_v7 = vld [vmem:[%s17715_s19 + $0x2fc8] ss:$16 sps:$4 sm:$0xff]  }
 0x65d   : > { %11087 = vmatprep.subr.bf16.mxu0 %v17063_v9  ;;  %12112 = vmatprep.subr.bf16.mxu1 %v17066_v19  ;;  %v17153_v9 = vld [vmem:[%s17715_s19 + $0x2fe4] ss:$16 sps:$4 sm:$0xff]   ;;  %v17156_v19 = vld [vmem:[%s17715_s19 + $0x2fec] ss:$16 sps:$4 sm:$0xff]  }
 0x65f   : > { %11079 = vmatmul.mubr.bf16.vlgmr.msra.gmra.mrb[0].mxu0 %v19463_v8  ;;  %12104 = vmatmul.mubr.bf16.vlgmr.msra.gmra.mrb[0].mxu1 %v19463_v8 }
 0x660   : > { %11088 = vmatpush1.bf16.msra.mxu0 %v17061_v14  ;;  %12113 = vmatpush1.bf16.msra.mxu1 %v17064_v24  ;;  %v17151_v14 = vld [vmem:[%s17715_s19 + $0x2fe0] ss:$16 sps:$4 sm:$0xff]   ;;  %v17154_v24 = vld [vmem:[%s17715_s19 + $0x2fe8] ss:$16 sps:$4 sm:$0xff]  }
 0x661   : > { %11089 = vmatprep.subr.bf16.mxu0 %v17069_v25  ;;  %12114 = vmatprep.subr.bf16.mxu1 %v17072_v61  ;;  %v17159_v25 = vld [vmem:[%s17715_s19 + $0x3004] ss:$16 sps:$4 sm:$0xff]   ;;  %v17162_v61 = vld [vmem:[%s17715_s19 + $0x300c] ss:$16 sps:$4 sm:$0xff]  }
 0x662   : > { %11119 = vmatprep.mubr.bf16.mxu0 %v2240_v28  ;;  %12144 = vmatprep.mubr.bf16.mxu1 %v2240_v28  ;;  %v2238_v28 = vcombine.high %v19463_v8, %v19463_v8  ;;  %v17166_v8 = vld [vmem:[%s17715_s19 + $0x3028] ss:$16 sps:$4 sm:$0xff]  }
 0x664   : > { %11090 = vmatpush1.bf16.msra.mxu0 %v17067_v13  ;;  %12115 = vmatpush1.bf16.msra.mxu1 %v17070_v29  ;;  %v17157_v13 = vld [vmem:[%s17715_s19 + $0x3000] ss:$16 sps:$4 sm:$0xff]   ;;  %v17160_v29 = vld [vmem:[%s17715_s19 + $0x3008] ss:$16 sps:$4 sm:$0xff]  }
 0x665   : > { %11091 = vmatprep.subr.bf16.mxu0 %v17075_v11  ;;  %12116 = vmatprep.subr.bf16.mxu1 %v17078_v30  ;;  %v17165_v11 = vld [vmem:[%s17715_s19 + $0x3024] ss:$16 sps:$4 sm:$0xff]   ;;  %v17168_v30 = vld [vmem:[%s17715_s19 + $0x302c] ss:$16 sps:$4 sm:$0xff]  }
 0x668   : > { %11092 = vmatpush1.bf16.msra.mxu0 %v17073_v20  ;;  %12117 = vmatpush1.bf16.msra.mxu1 %v17076_v31  ;;  %v17163_v20 = vld [vmem:[%s17715_s19 + $0x3020] ss:$16 sps:$4 sm:$0xff]   ;;  %v17171_v31 = vld [vmem:[%s17715_s19 + $0x3044] ss:$16 sps:$4 sm:$0xff]  }
 0x669   : > { %11093 = vmatprep.subr.bf16.mxu0 %v17081_v21  ;;  %12118 = vmatprep.subr.bf16.mxu1 %v17084_v32  ;;  %v17174_v21 = vld [vmem:[%s17715_s19 + $0x304c] ss:$16 sps:$4 sm:$0xff]   ;;  %v17476_v32 = vmov 0  }
 0x66c   : > { %11094 = vmatpush1.bf16.msra.mxu0 %v17079_v33  ;;  %12119 = vmatpush1.bf16.msra.mxu1 %v17082_v26  ;;  %v17169_v33 = vld [vmem:[%s17715_s19 + $0x3040] ss:$16 sps:$4 sm:$0xff]   ;;  %v17172_v26 = vld [vmem:[%s17715_s19 + $0x3048] ss:$16 sps:$4 sm:$0xff]  }
 0x66d   : > { %11095 = vmatprep.subr.bf16.mxu0 %v17087_v37  ;;  %12120 = vmatprep.subr.bf16.mxu1 %v17090_v38  ;;  %v17177_v37 = vld [vmem:[%s17715_s19 + $0x3064] ss:$16 sps:$4 sm:$0xff]   ;;  %v17180_v38 = vld [vmem:[%s17715_s19 + $0x306c] ss:$16 sps:$4 sm:$0xff]  }
 0x670   : > { %11096 = vmatpush1.bf16.msra.mxu0 %v17085_v40  ;;  %12121 = vmatpush1.bf16.msra.mxu1 %v17088_v27  ;;  %v17175_v40 = vld [vmem:[%s17715_s19 + $0x3060] ss:$16 sps:$4 sm:$0xff]   ;;  %v17178_v27 = vld [vmem:[%s17715_s19 + $0x3068] ss:$16 sps:$4 sm:$0xff]  }
 0x671   : > { %11097 = vmatprep.subr.bf16.mxu0 %v17093_v41  ;;  %12122 = vmatprep.subr.bf16.mxu1 %v17096_v22  ;;  %v17183_v41 = vld [vmem:[%s17715_s19 + $0x3084] ss:$16 sps:$4 sm:$0xff]   ;;  %v17186_v22 = vld [vmem:[%s17715_s19 + $0x308c] ss:$16 sps:$4 sm:$0xff]  }
 0x674   : > { %11098 = vmatpush1.bf16.msra.mxu0 %v17091_v42  ;;  %12123 = vmatpush1.bf16.msra.mxu1 %v17094_v34  ;;  %v17181_v42 = vld [vmem:[%s17715_s19 + $0x3080] ss:$16 sps:$4 sm:$0xff]   ;;  %v17184_v34 = vld [vmem:[%s17715_s19 + $0x3088] ss:$16 sps:$4 sm:$0xff]  }
 0x675   : > { %11099 = vmatprep.subr.bf16.mxu0 %v17099_v43  ;;  %12124 = vmatprep.subr.bf16.mxu1 %v17102_v45  ;;  %v17189_v43 = vld [vmem:[%s17715_s19 + $0x30a4] ss:$16 sps:$4 sm:$0xff]   ;;  %v17192_v45 = vld [vmem:[%s17715_s19 + $0x30ac] ss:$16 sps:$4 sm:$0xff]  }
 0x678   : > { %11100 = vmatpush1.bf16.msra.mxu0 %v17097_v23  ;;  %12125 = vmatpush1.bf16.msra.mxu1 %v17100_v48  ;;  %v17187_v23 = vld [vmem:[%s17715_s19 + $0x30a0] ss:$16 sps:$4 sm:$0xff]   ;;  %v17190_v48 = vld [vmem:[%s17715_s19 + $0x30a8] ss:$16 sps:$4 sm:$0xff]  }
 0x679   : > { %11101 = vmatprep.subr.bf16.mxu0 %v17105_v51  ;;  %12126 = vmatprep.subr.bf16.mxu1 %v17108_v16  ;;  %v17195_v51 = vld [vmem:[%s17715_s19 + $0x30c4] ss:$16 sps:$4 sm:$0xff]   ;;  %v17198_v16 = vld [vmem:[%s17715_s19 + $0x30cc] ss:$16 sps:$4 sm:$0xff]  }
 0x67c   : > { %11102 = vmatpush1.bf16.msra.mxu0 %v17103_v54  ;;  %12127 = vmatpush1.bf16.msra.mxu1 %v17106_v55  ;;  %v17193_v54 = vld [vmem:[%s17715_s19 + $0x30c0] ss:$16 sps:$4 sm:$0xff]   ;;  %v17196_v55 = vld [vmem:[%s17715_s19 + $0x30c8] ss:$16 sps:$4 sm:$0xff]  }
 0x67d   : > { %11103 = vmatprep.subr.bf16.mxu0 %v17111_v35  ;;  %12128 = vmatprep.subr.bf16.mxu1 %v17114_v56  ;;  %v17201_v35 = vld [vmem:[%s17715_s19 + $0x30e4] ss:$16 sps:$4 sm:$0xff]   ;;  %v17204_v56 = vld [vmem:[%s17715_s19 + $0x30ec] ss:$16 sps:$4 sm:$0xff]  }
 0x680   : > { %11104 = vmatpush1.bf16.msra.mxu0 %v17109_v39  ;;  %12129 = vmatpush1.bf16.msra.mxu1 %v17112_v46  ;;  %v17199_v39 = vld [vmem:[%s17715_s19 + $0x30e0] ss:$16 sps:$4 sm:$0xff]   ;;  %v17202_v46 = vld [vmem:[%s17715_s19 + $0x30e8] ss:$16 sps:$4 sm:$0xff]  }
 0x681   : > { %11105 = vmatprep.subr.bf16.mxu0 %v17117_v58  ;;  %12130 = vmatprep.subr.bf16.mxu1 %v17120_v59  ;;  %v12864_v58 = vld.sshfl [vmem:[%s17733_s29 + $0x30] sm:$0x1 pattern:$0x75316420] }
 0x682   : > { %v2254_v59 = vrot.slane %v12864_v58, %v17784_v50 }
 0x684   : > { %11106 = vmatpush1.bf16.msra.mxu0 %v17115_v60  ;;  %12131 = vmatpush1.bf16.msra.mxu1 %v17118_v63  ;;  %v17477_v60 = vmov 1983009808  }
 0x685   : > { %11107 = vmatprep.subr.bf16.mxu0 %v17123_v1  ;;  %12132 = vmatprep.subr.bf16.mxu1 %v17126_v2  ;;  %v12201_v63 = vunpack.c.l.s4 %v17477_v60 }
 0x687   : > { %v12202_v1 = vunpack.c.0.s8 %v12201_v63 }
 0x688   : > { %11108 = vmatpush1.bf16.msra.mxu0 %v17121_v52  ;;  %12133 = vmatpush1.bf16.msra.mxu1 %v17124_v36 }
 0x689   : > { %11109 = vmatprep.subr.bf16.mxu0 %v17129_v3  ;;  %12134 = vmatprep.subr.bf16.mxu1 %v17132_v4  ;;  %v19568_v36 = vsub.s32 %v12202_v1, %v17776_v44 }
 0x68c   : > { %11110 = vmatpush1.bf16.msra.mxu0 %v17127_v49  ;;  %12135 = vmatpush1.bf16.msra.mxu1 %v17130_v5 }
 0x68d   : > { %11111 = vmatprep.subr.bf16.mxu0 %v17135_v6  ;;  %12136 = vmatprep.subr.bf16.mxu1 %v17138_v47 }
 0x690   : > { %11112 = vmatpush1.bf16.msra.mxu0 %v17133_v10  ;;  %12137 = vmatpush1.bf16.msra.mxu1 %v17136_v12 }
 0x691   : > { %11113 = vmatprep.subr.bf16.mxu0 %v17141_v57  ;;  %12138 = vmatprep.subr.bf16.mxu1 %v17144_v15  ;;  %v364_v15 = vld [vmem:[#allocation2] sm:$0xff] }
 0x694   : > { %11114 = vmatpush1.bf16.msra.mxu0 %v17139_v0  ;;  %12139 = vmatpush1.bf16.msra.mxu1 %v17142_v62 }
 0x695   : > { %11115 = vmatprep.subr.bf16.mxu0 %v17147_v17  ;;  %12140 = vmatprep.subr.bf16.mxu1 %v17150_v53  ;;  %v17207_v17 = vld [vmem:[#allocation8 + $0x40] sm:$0xff] (!%p14433_p1)  }
 0x696   : > { %v17208_v53 = vld [vmem:[#allocation8 + $0xc0] sm:$0xff] (!%p14433_p1)  }
 0x698   : > { %11116 = vmatpush1.bf16.msra.mxu0 %v17145_v18  ;;  %12141 = vmatpush1.bf16.msra.mxu1 %v17148_v7  ;;  %v17209_v18 = vld [vmem:[#allocation8] sm:$0xff] (!%p14433_p1)  }
 0x699   : > { %11117 = vmatprep.subr.bf16.mxu0 %v17153_v9  ;;  %12142 = vmatprep.subr.bf16.mxu1 %v17156_v19  ;;  %v17210_v7 = vld [vmem:[#allocation8 + $0x80] sm:$0xff] (!%p14433_p1)   ;;  %v17211_v9 = vld [vmem:[#allocation8 + $0x48] sm:$0xff] (!%p14433_p1)  }
 0x69a   : > { %v17212_v19 = vld [vmem:[#allocation8 + $0xc8] sm:$0xff] (!%p14433_p1)  }
 0x69c   : > { %11118 = vmatpush1.bf16.msra.mxu0 %v17151_v14  ;;  %12143 = vmatpush1.bf16.msra.mxu1 %v17154_v24  ;;  %v17213_v14 = vld [vmem:[#allocation8 + $0x8] sm:$0xff] (!%p14433_p1)  }
 0x69d   : > { %11128 = vmatprep.subr.bf16.mxu0 %v17159_v25  ;;  %12153 = vmatprep.subr.bf16.mxu1 %v17162_v61  ;;  %v17214_v24 = vld [vmem:[#allocation8 + $0x88] sm:$0xff] (!%p14433_p1)   ;;  %v17215_v25 = vld [vmem:[#allocation8 + $0x50] sm:$0xff] (!%p14433_p1)  }
 0x69e   : > { %v17216_v61 = vld [vmem:[#allocation8 + $0xd0] sm:$0xff] (!%p14433_p1)  }
 0x69f   : > { %11120 = vmatmul.mubr.bf16.vlgmr.msra.gmra.mrb[0].mxu0 %v2238_v28  ;;  %12145 = vmatmul.mubr.bf16.vlgmr.msra.gmra.mrb[0].mxu1 %v2238_v28  ;;  %v17217_v28 = vld [vmem:[#allocation8 + $0x10] sm:$0xff] (!%p14433_p1)  }
 0x6a0   : > { %11129 = vmatpush1.bf16.msra.mxu0 %v17157_v13  ;;  %12154 = vmatpush1.bf16.msra.mxu1 %v17160_v29  ;;  %v17218_v13 = vld [vmem:[#allocation8 + $0x90] sm:$0xff] (!%p14433_p1)   ;;  %v17219_v29 = vld [vmem:[#allocation8 + $0x58] sm:$0xff] (!%p14433_p1)  }
 0x6a1   : > { %11130 = vmatprep.subr.bf16.mxu0 %v17165_v11  ;;  %12155 = vmatprep.subr.bf16.mxu1 %v17168_v30  ;;  %v17220_v11 = vld [vmem:[#allocation8 + $0xd8] sm:$0xff] (!%p14433_p1)  }
 0x6a2   : > { %11160 = vmatprep.mubr.bf16.mxu0 %v17476_v32  ;;  %12185 = vmatprep.mubr.bf16.mxu1 %v17476_v32  ;;  %v17221_v30 = vld [vmem:[#allocation8 + $0x18] sm:$0xff] (!%p14433_p1)   ;;  %v17226_v32 = vld [vmem:[#allocation8 + $0xa0] sm:$0xff] (!%p14433_p1)  }
 0x6a4   : > { %11131 = vmatpush1.bf16.msra.mxu0 %v17163_v20  ;;  %12156 = vmatpush1.bf16.msra.mxu1 %v17166_v8  ;;  %v17222_v20 = vld [vmem:[#allocation8 + $0x98] sm:$0xff] (!%p14433_p1)   ;;  %v17223_v8 = vld [vmem:[#allocation8 + $0x60] sm:$0xff] (!%p14433_p1)  }
 0x6a5   : > { %11132 = vmatprep.subr.bf16.mxu0 %v17171_v31  ;;  %12157 = vmatprep.subr.bf16.mxu1 %v17174_v21  ;;  %v17224_v31 = vld [vmem:[#allocation8 + $0xe0] sm:$0xff] (!%p14433_p1)  }
 0x6a6   : > { %v17225_v21 = vld [vmem:[#allocation8 + $0x20] sm:$0xff] (!%p14433_p1)  }
 0x6a8   : > { %11133 = vmatpush1.bf16.msra.mxu0 %v17169_v33  ;;  %12158 = vmatpush1.bf16.msra.mxu1 %v17172_v26  ;;  %v17227_v33 = vld [vmem:[#allocation8 + $0x68] sm:$0xff] (!%p14433_p1)  }
 0x6a9   : > { %11134 = vmatprep.subr.bf16.mxu0 %v17177_v37  ;;  %12159 = vmatprep.subr.bf16.mxu1 %v17180_v38  ;;  %v17228_v26 = vld [vmem:[#allocation8 + $0xe8] sm:$0xff] (!%p14433_p1)  }
 0x6aa   : > { %v17229_v37 = vld [vmem:[#allocation8 + $0x28] sm:$0xff] (!%p14433_p1)  }
 0x6ab   : > { %v17230_v38 = vld [vmem:[#allocation8 + $0xa8] sm:$0xff] (!%p14433_p1)  }
 0x6ac   : > { %11135 = vmatpush1.bf16.msra.mxu0 %v17175_v40  ;;  %12160 = vmatpush1.bf16.msra.mxu1 %v17178_v27  ;;  %v17231_v40 = vld [vmem:[#allocation8 + $0x70] sm:$0xff] (!%p14433_p1)  }
 0x6ad   : > { %11136 = vmatprep.subr.bf16.mxu0 %v17183_v41  ;;  %12161 = vmatprep.subr.bf16.mxu1 %v17186_v22  ;;  %v17232_v27 = vld [vmem:[#allocation8 + $0xf0] sm:$0xff] (!%p14433_p1)   ;;  %v12227_v22 = vsub.s32 (!%p14433_p1), 0, %v17776_v44 }
 0x6ae   : > { %v17233_v41 = vld [vmem:[#allocation8 + $0x30] sm:$0xff] (!%p14433_p1)  }
 0x6b0   : > { %11137 = vmatpush1.bf16.msra.mxu0 %v17181_v42  ;;  %12162 = vmatpush1.bf16.msra.mxu1 %v17184_v34  ;;  %v17234_v42 = vld [vmem:[#allocation8 + $0xb0] sm:$0xff] (!%p14433_p1)   ;;  %v12231_v34 = vsub.s32 (!%p14433_p1), 1, %v17776_v44 }
 0x6b1   : > { %11138 = vmatprep.subr.bf16.mxu0 %v17189_v43  ;;  %12163 = vmatprep.subr.bf16.mxu1 %v17192_v45  ;;  %v17235_v43 = vld [vmem:[#allocation8 + $0x78] sm:$0xff] (!%p14433_p1)   ;;  %v12235_v45 = vsub.s32 (!%p14433_p1), 2, %v17776_v44 }
 0x6b4   : > { %11139 = vmatpush1.bf16.msra.mxu0 %v17187_v23  ;;  %12164 = vmatpush1.bf16.msra.mxu1 %v17190_v48  ;;  %v17236_v23 = vld [vmem:[#allocation8 + $0xf8] sm:$0xff] (!%p14433_p1)   ;;  %v12239_v48 = vsub.s32 (!%p14433_p1), 3, %v17776_v44 }
 0x6b5   : > { %11140 = vmatprep.subr.bf16.mxu0 %v17195_v51  ;;  %12165 = vmatprep.subr.bf16.mxu1 %v17198_v16  ;;  %v17237_v51 = vld [vmem:[#allocation8 + $0x38] sm:$0xff] (!%p14433_p1)  }
 0x6b6   : > { %v17238_v16 = vld [vmem:[#allocation8 + $0xb8] sm:$0xff] (!%p14433_p1)  }
 0x6b8   : > { %11141 = vmatpush1.bf16.msra.mxu0 %v17193_v54  ;;  %12166 = vmatpush1.bf16.msra.mxu1 %v17196_v55  ;;  %v12223_v54 = vld [vmem:[#allocation6] sm:$0xf] (!%p14433_p1) }
 0x6b9   : > { %11142 = vmatprep.subr.bf16.mxu0 %v17201_v35  ;;  %12167 = vmatprep.subr.bf16.mxu1 %v17204_v56  ;;  %v12228_v55 = vrot.slane (!%p14433_p1), %v12223_v54, %v12227_v22  ;;  %v12232_v35 = vrot.slane (!%p14433_p1), %v12223_v54, %v12231_v34  ;;  %v12236_v56 = vrot.slane (!%p14433_p1), %v12223_v54, %v12235_v45 }
 0x6bb   : > { %v12241_v58 = vcombine.low (!%p14433_p1), %v12228_v55, %v12232_v35 }
 0x6bc   : > { %11143 = vmatpush1.bf16.msra.mxu0 %v17199_v39  ;;  %12168 = vmatpush1.bf16.msra.mxu1 %v17202_v46  ;;  %v12240_v39 = vrot.slane (!%p14433_p1), %v12223_v54, %v12239_v48  ;;  %v17478_v46 = vmov (!%p14433_p1), 0.0  }
 0x6bd   : > { %14483 = vmatprep.subr.bf16.mxu0 (!%p14433_p1), %v17207_v17  ;;  %14505 = vmatprep.subr.bf16.mxu1 (!%p14433_p1), %v17208_v53  ;;  %v12249_v63 = vrot.slane (!%p14433_p1), %v12241_v58, %v19568_v36  ;;  %v17244_v17 = vld [vmem:[%s19646_s5 + $0x28] sm:$0xff] (!%p14433_p1)   ;;  %v17245_v53 = vld [vmem:[%s19646_s5 + $0x30] sm:$0xff] (!%p14433_p1)  }
 0x6bf   : > { %11161 = vmatmul.mubr.bf16.vlgmr.msra.gmra.mrb[0].mxu0 %v2254_v59  ;;  %12186 = vmatmul.mubr.bf16.vlgmr.msra.gmra.mrb[0].mxu1 %v2254_v59  ;;  %v12242_v59 = vcombine.low (!%p14433_p1), %v12236_v56, %v12240_v39 }
 0x6c0   : > { %14484 = vmatpush3.bf16.msra.mxu0 (!%p14433_p1), %v17209_v18  ;;  %14506 = vmatpush3.bf16.msra.mxu1 (!%p14433_p1), %v17210_v7  ;;  %v17246_v18 = vld [vmem:[%s19646_s5 + $0x38] sm:$0xff] (!%p14433_p1)  }
 0x6c1   : > { %14485 = vmatprep.subr.bf16.mxu0 (!%p14433_p1), %v17211_v9  ;;  %14507 = vmatprep.subr.bf16.mxu1 (!%p14433_p1), %v17212_v19  ;;  %v12256_v44 = vrot.slane (!%p14433_p1), %v12242_v59, %v19568_v36  ;;  %v14434_v9 = vld [vmem:[#allocation9] ss:$0 sm:$0xff] (!%p14433_p1) }
 0x6c3   : > { %v12257_v1 = vcombine.low (!%p14433_p1), %v12249_v63, %v12256_v44 }
 0x6c4   : > { %14486 = vmatpush3.bf16.msra.mxu0 (!%p14433_p1), %v17213_v14  ;;  %14508 = vmatpush3.bf16.msra.mxu1 (!%p14433_p1), %v17214_v24 }
 0x6c5   : > { %14487 = vmatprep.subr.bf16.mxu0 (!%p14433_p1), %v17215_v25  ;;  %14509 = vmatprep.subr.bf16.mxu1 (!%p14433_p1), %v17216_v61 }
 0x6c8   : > { %14488 = vmatpush3.bf16.msra.mxu0 (!%p14433_p1), %v17217_v28  ;;  %14510 = vmatpush3.bf16.msra.mxu1 (!%p14433_p1), %v17218_v13 }
 0x6c9   : > { %14489 = vmatprep.subr.bf16.mxu0 (!%p14433_p1), %v17219_v29  ;;  %14511 = vmatprep.subr.bf16.mxu1 (!%p14433_p1), %v17220_v11 }
 0x6cc   : > { %14490 = vmatpush3.bf16.msra.mxu0 (!%p14433_p1), %v17221_v30  ;;  %14512 = vmatpush3.bf16.msra.mxu1 (!%p14433_p1), %v17222_v20 }
 0x6cd   : > { %14491 = vmatprep.subr.bf16.mxu0 (!%p14433_p1), %v17223_v8  ;;  %14513 = vmatprep.subr.bf16.mxu1 (!%p14433_p1), %v17224_v31 }
 0x6d0   : > { %14492 = vmatpush3.bf16.msra.mxu0 (!%p14433_p1), %v17225_v21  ;;  %14514 = vmatpush3.bf16.msra.mxu1 (!%p14433_p1), %v17226_v32  ;;  %v14467_v21 = vld [vmem:[#allocation11] ss:$0 sm:$0xff] (!%p14433_p1) }
 0x6d1   : > { %14493 = vmatprep.subr.bf16.mxu0 (!%p14433_p1), %v17227_v33  ;;  %14515 = vmatprep.subr.bf16.mxu1 (!%p14433_p1), %v17228_v26 }
 0x6d4   : > { %14494 = vmatpush3.bf16.msra.mxu0 (!%p14433_p1), %v17229_v37  ;;  %14516 = vmatpush3.bf16.msra.mxu1 (!%p14433_p1), %v17230_v38 }
 0x6d5   : > { %14495 = vmatprep.subr.bf16.mxu0 (!%p14433_p1), %v17231_v40  ;;  %14517 = vmatprep.subr.bf16.mxu1 (!%p14433_p1), %v17232_v27 }
 0x6d8   : > { %14496 = vmatpush3.bf16.msra.mxu0 (!%p14433_p1), %v17233_v41  ;;  %14518 = vmatpush3.bf16.msra.mxu1 (!%p14433_p1), %v17234_v42 }
 0x6d9   : > { %14497 = vmatprep.subr.bf16.mxu0 (!%p14433_p1), %v17235_v43  ;;  %14519 = vmatprep.subr.bf16.mxu1 (!%p14433_p1), %v17236_v23 }
 0x6dc   : > { %14498 = vmatpush3.bf16.msra.mxu0 (!%p14433_p1), %v17237_v51  ;;  %14520 = vmatpush3.bf16.msra.mxu1 (!%p14433_p1), %v17238_v16 }
 0x6dd   : > { %14536 = vmatprep.subr.bf16.mxu0 (!%p14433_p1), %v17478_v46 }
 0x792   : > { %v11162_v2 = vpop.f32.mrb[0].mxu0  ;;  %v12187_v52 = vpop.f32.mrb[0].mxu1 }
 0x793   : > { %v11164_v3 = vpop.f32.mrb[1].mxu0  ;;  %v12189_v4 = vpop.f32.mrb[1].mxu1 }
 0x794   : > { %v12198_v49 = vcombine.low %v11162_v2, %v11164_v3  ;;  %v12199_v5 = vcombine.low %v12187_v52, %v12189_v4  ;;  %v11166_v6 = vpop.f32.mrb[2].mxu0  ;;  %v12191_v47 = vpop.f32.mrb[2].mxu1 }
 0x795   : > { %v11167_v10 = vpop.f32.mrb[3].mxu0  ;;  %v12192_v50 = vpop.f32.mrb[3].mxu1 }
 0x796   : > { %v12206_v12 = vrot.slane %v12198_v49, %v19568_v36  ;;  %v12213_v57 = vrot.slane %v12199_v5, %v19568_v36  ;;  %12221 = sbr.rel (%p14433_p1) target bundleno = 2405 (0x965), region = 76  ;;  %v17239_v50 = vld [vmem:[%s19646_s5] sm:$0xff] (!%p14433_p1)  }
 0x798   : > { %v12214_v0 = vcombine.low %v12206_v12, %v12213_v57 }
 0x79a   : > { %v12216_v62 = vadd.f32 %v12214_v0, %v364_v15  ;;  %v17240_v15 = vld [vmem:[%s19646_s5 + $0x8] sm:$0xff] (!%p14433_p1)   ;;  %v17242_v0 = vld [vmem:[%s19646_s5 + $0x18] sm:$0xff] (!%p14433_p1)  }
 0x79c   : > { %12217 = vst [vmem:[#allocation2] sm:$0xff] %v12216_v62  ;;  %v17243_v62 = vld [vmem:[%s19646_s5 + $0x20] sm:$0xff] (!%p14433_p1)  }
 0x7a3   : > { %v12222_v60 = vld [vmem:[#allocation2] sm:$0xff] }
 0x7a4   : > { %v12259_v2 = vadd.f32 %v12257_v1, %v12222_v60 }
 0x7a6   : > { %v12260_v52 = vmax.f32 %v12259_v2, 0.0 }
 0x7a8   : > { %v12269_v3 = vrot.slane %v12260_v52, %v19568_v36  ;;  %v12262_v4 = vcombine.high %v12260_v52, %v12260_v52 }
 0x7aa   : > { %v12277_v49 = vcombine.high %v12269_v3, %v12269_v3  ;;  %v12276_v5 = vrot.slane %v12262_v4, %v19568_v36  ;;  %v12283_v6 = vpack.c.bf16 %v12269_v3, %v12269_v3  ;;  %v17241_v36 = vld [vmem:[%s19646_s5 + $0x10] sm:$0xff]  }
 0x7ac   : > { %v12284_v47 = vpack.c.bf16 %v12277_v49, %v12277_v49  ;;  %v12278_v10 = vcombine.high %v12276_v5, %v12276_v5  ;;  %v12285_v12 = vpack.c.bf16 %v12276_v5, %v12276_v5 }
 0x7ae   : > { %12582 = vmatprep.mubr.bf16.mxu0 %v12284_v47  ;;  %v12286_v57 = vpack.c.bf16 %v12278_v10, %v12278_v10 }
 0x7af   : > { %12583 = vmatmul.mubr.bf16.vlgmr.msra.gmra.mrb[0].mxu0 %v12283_v6 }
 0x7b0   : > { %12622 = vmatprep.mubr.bf16.mxu1 %v12286_v57  ;;  %14537 = vmatpush3.bf16.msra.mxu0 %v17239_v50 }
 0x7b1   : > { %12623 = vmatmul.mubr.bf16.vlgmr.msra.gmra.mrb[0].mxu1 %v12285_v12  ;;  %14538 = vmatprep.subr.bf16.mxu0 %v17478_v46 }
 0x7b2   : > { %14552 = vmatprep.mubr.msk.bf16.mxu0 %vm17479_vm0, %v17478_v46 }
 0x7b4   : > { %14539 = vmatpush3.bf16.msra.mxu0 %v17240_v15 }
 0x7b5   : > { %14540 = vmatprep.subr.bf16.mxu0 %v17478_v46 }
 0x7b8   : > { %14541 = vmatpush3.bf16.msra.mxu0 %v17241_v36 }
 0x7b9   : > { %14542 = vmatprep.subr.bf16.mxu0 %v17478_v46 }
 0x7bc   : > { %14543 = vmatpush3.bf16.msra.mxu0 %v17242_v0 }
 0x7bd   : > { %14544 = vmatprep.subr.bf16.mxu0 %v17478_v46 }
 0x7c0   : > { %14545 = vmatpush3.bf16.msra.mxu0 %v17243_v62 }
 0x7c1   : > { %14546 = vmatprep.subr.bf16.mxu0 %v17478_v46 }
 0x7c4   : > { %14547 = vmatpush3.bf16.msra.mxu0 %v17244_v17 }
 0x7c5   : > { %14548 = vmatprep.subr.bf16.mxu0 %v17478_v46 }
 0x7c8   : > { %14549 = vmatpush3.bf16.msra.mxu0 %v17245_v53 }
 0x7c9   : > { %14550 = vmatprep.subr.bf16.mxu0 %v17478_v46 }
 0x7cc   : > { %14551 = vmatpush3.bf16.msra.mxu0 %v17246_v18 }
 0x882   : > { %v14499_v7 = vpop.f32.mrb[0].mxu0 }
 0x883   : > { %v14500_v19 = vpop.f32.mrb[1].mxu0 }
 0x884   : > { %v14521_v14 = vpop.f32.mrb[0].mxu1  ;;  %v14501_v24 = vadd.f32 %v14500_v19, %v14499_v7  ;;  %v14502_v25 = vpop.f32.mrb[2].mxu0 }
 0x885   : > { %v14522_v61 = vpop.f32.mrb[1].mxu1  ;;  %v14503_v28 = vpop.f32.mrb[3].mxu0 }
 0x886   : > { %v12585_v13 = vadd.f32 %v14501_v24, %v14434_v9  ;;  %v14523_v29 = vadd.f32 %v14522_v61, %v14521_v14  ;;  %v14524_v11 = vpop.f32.mrb[2].mxu1 }
 0x887   : > { %v14525_v30 = vpop.f32.mrb[3].mxu1 }
 0x888   : > { %v12625_v20 = vadd.f32 %v14523_v29, %v12585_v13 }
 0x88a   : > { %v12630_v8 = vmax.f32 %v12625_v20, 0.0 }
 0x88c   : > { %v12631_v31 = vpack.c.bf16 %v12630_v8, %v12630_v8 }
 0x88e   : > { %14553 = vmatmul.mubr.bf16.vlgmr.msra.gmra.mrb[4].mxu0 %v12631_v31 }
 0x961   : > { %v12737_v32 = vpop.f32.mrb[4].mxu0 }
 0x962   : > { %v12738_v33 = vadd.f32 %v14467_v21, %v12737_v32  ;;  %v14554_v26 = vpop.f32.mrb[5].mxu0 }
 0x963   : > { %v12740_v37 = vpop.f32.mrb[6].mxu0 }
 0x964   : > { %12744 = vst.msk [vmem:[#allocation12] sm:$0x3] %vm12743_vm1, %v12738_v33  ;;  %v14555_v38 = vpop.f32.mrb[7].mxu0 }
 0x965 PF: > { %p14798_p4 = scmp.eq.s32.totalorder %s17540_s28, 3  ;;  %s17480_s15 = smov [#allocation12]  }
 0x966   : > { %s12752_s29 = sshll.u32 %s17480_s15, 4  ;;  %s12753_s29 = int_to_ptr.vmem [resolvable:$true] %s12752_s29 }
 0x967   : > { %s17391_s17 = scalar_lea.vmem %s12753_s29, 32  ;;  %p17398_p2 = scmp.lt.s32.totalorder %s12753_s29, %s12753_s29 }
 0x968   : > { %p17392_p8 = scmp.ne.s32.totalorder %s12753_s29, %s17391_s17  ;;  %p17399_p6 = scmp.lt.s32.totalorder %s17391_s17, %s17391_s17 }
 0x96a   : > { %p17393_p12 = pnand %p17392_p8, %p14798_p4  ;;  %p17400_p13 = por %p17399_p6, %p17398_p2 }
 0x96c   : > { %p17394_p0 = pneg %p17393_p12 }
 0x96e   : > { %p17401_p3 = pnand %p17400_p13, %p17394_p0 }
 0x970   : > { %17404 = shalt.err (!%p17401_p3)
}
 0x971   : > { %s17405_s21 = scalar_lea.hbm %s19648_s7, 32 }
 0x972   : > { %p17406_p5 = scmp.ne.s32.totalorder %s19648_s7, %s17405_s21  ;;  %p17411_p9 = scmp.lt.u32.totalorder %s17405_s21, %s19648_s7 }
 0x974   : > { %p17407_p7 = pnand %p17406_p5, %p14798_p4 }
 0x976   : > { %p17408_p10 = pneg %p17407_p7 }
 0x978   : > { %p17413_p11 = pnand %p17411_p9, %p17408_p10 }
 0x97a   : > { %17416 = shalt.err (!%p17413_p11)
}
 0x97b   : > { %14769 = dma.vmem_to_hbm [thread:$0]  (%p14798_p4), %s12753_s29, 32, %s19648_s7, [#allocation5]  }
 0x97c   : > { %17446 = dma.done.wait (%p14798_p4), [#allocation5], 32  }
 0x97d   : > { %17448 = vsyncadd (%p14798_p4), [#allocation5], 4294967264 }
 0x97e PF: > { %p20_p1 = scmp.ge.s32.totalorder %s17659_s20, 6   ;;  %s19664_s24 = smov %s17455_s25 }
 0x97f   : > { %s19665_s25 = smov %s17459_s26  ;;  %s19666_s26 = smov %s17670_s22 }
 0x980   : > { %s19667_s27 = smov %s17659_s20  ;;  %22 = sbr.rel (!%p20_p1) target bundleno = 6 (0x6), region = 112 }
 0x987   :  { %12765 = vsyncpa [#allocation4], 1 }
 0x988   :  { %12767 = vsyncpa [#allocation4 + $0x1], 1 }
 0x989   :  { %12768 = vsyncpa [#allocation7], 1 }
 0x98a   :  { %12769 = vsyncpa [#allocation10], 1 }
 0x98b   :  { %12770 = vsyncpa [#allocation5], 1 }
 0x98c   :  { %12772 = vsyncpa [#allocation5 + $0x1], 1 }

</bundles_post_ra>
